<compile_context>
chip_gen: v7x
topology: tpu7x:2x2x1
jax: 0.10.0
libtpu: 0.0.40
codegen_flags: <defaults>
</compile_context>

<pallas_src>
import jax
import jax.numpy as jnp
from jax import lax
from jax.experimental import pallas as pl
from jax.experimental.pallas import tpu as pltpu


# ---------------------------------------------------------------------------
# Host-side weight preparation (runs once per parameter set).
# The dense Toeplitz-style matrices are built by pushing input basis vectors
# through the *real* convolution, so the layout is correct by construction.
# ---------------------------------------------------------------------------
def _conv1_pool_mats(w):
    """4 dense (784 -> 1440) matrices, one per 2x2 pool position, for conv1.
    Column order is channel-last (hp, wp, cout) over the 12x12x10 outputs."""
    eye = jnp.eye(784, dtype=jnp.float32).reshape(784, 1, 28, 28)
    dn = lax.conv_dimension_numbers(eye.shape, w.shape, ("NCHW", "OIHW", "NCHW"))
    y = lax.conv_general_dilated(eye, w, (1, 1), "VALID", dimension_numbers=dn,
                                 precision=lax.Precision.HIGHEST)    # (784,10,24,24)
    mats = []
    for pi in range(2):
        for pj in range(2):
            yk = y[:, :, pi::2, pj::2]                               # (784,10,12,12)
            mats.append(jnp.transpose(yk, (0, 2, 3, 1)).reshape(784, 1440))
    return mats


def _conv2_pool_mats(w):
    """4 dense (1536 -> 320) matrices for conv2; rows are indexed by the
    band-padded h1 layout (6 bands x [2 rows x 12 cols x 10 ch + 16 pad])."""
    eye = jnp.eye(1536, dtype=jnp.float32)
    t = eye.reshape(1536, 6, 256)[:, :, :240].reshape(1536, 6, 2, 12, 10)
    t = t.reshape(1536, 12, 12, 10)                                  # (h, w, c)
    x = jnp.transpose(t, (0, 3, 1, 2))                               # (1536,10,12,12)
    dn = lax.conv_dimension_numbers(x.shape, w.shape, ("NCHW", "OIHW", "NCHW"))
    y = lax.conv_general_dilated(x, w, (1, 1), "VALID", dimension_numbers=dn,
                                 precision=lax.Precision.HIGHEST)    # (1536,20,8,8)
    mats = []
    for pi in range(2):
        for pj in range(2):
            yk = y[:, :, pi::2, pj::2]                               # (1536,20,4,4)
            mats.append(jnp.transpose(yk, (0, 2, 3, 1)).reshape(1536, 320))
    return mats


def _fc1_mat(fc1_w):
    """(512 -> 50) matrix from the band-padded h2 layout (4 x [4x20 + 48 pad])
    to fc1 outputs, folding in PyTorch's NCHW flatten order."""
    eye = jnp.eye(512, dtype=jnp.float32)
    t = eye.reshape(512, 4, 128)[:, :, :80].reshape(512, 4, 4, 20)   # (h, w, c)
    t = jnp.transpose(t, (0, 3, 1, 2)).reshape(512, 320)             # torch (c,h,w)
    return t @ fc1_w.T                                               # (512, 50)


def prepare_params(params):
    """Precompute the banded / padded bf16 matmul weights consumed by the kernel."""
    f32, bf16 = jnp.float32, jnp.bfloat16

    # conv1: 6 bands of 2 pooled rows.  Band b reads image rows 4b..4b+7
    # (224 values -> pad 256) and emits 240 outputs (-> pad 256) per pool
    # position; the 4 positions are concatenated along N: one (256,1024) matmul.
    c1m = _conv1_pool_mats(params["conv1_w"].astype(f32))
    w1 = []
    for b in range(6):
        r0, c0 = 4 * b * 28, 2 * b * 120
        blocks = [jnp.pad(m[r0:r0 + 224, c0:c0 + 240], ((0, 32), (0, 16)))
                  for m in c1m]
        w1.append(jnp.concatenate(blocks, axis=1))                   # (256, 1024)
    w1 = jnp.stack(w1).astype(bf16)                                  # (6, 256, 1024)

    # conv2: 4 bands of 1 pooled row.  Band b reads h1 columns [256b, 256b+768)
    # and emits 80 outputs (-> pad 128) per pool position: one (768,512) matmul.
    c2m = _conv2_pool_mats(params["conv2_w"].astype(f32))
    w2 = []
    for b in range(4):
        r0, c0 = 256 * b, 80 * b
        blocks = [jnp.pad(m[r0:r0 + 768, c0:c0 + 80], ((0, 0), (0, 48)))
                  for m in c2m]
        w2.append(jnp.concatenate(blocks, axis=1))                   # (768, 512)
    w2 = jnp.stack(w2).astype(bf16)                                  # (4, 768, 512)

    b1 = jnp.tile(jnp.pad(jnp.tile(params["conv1_b"].astype(f32), 24), (0, 16)), 6)
    b2 = jnp.tile(jnp.pad(jnp.tile(params["conv2_b"].astype(f32), 4), (0, 48)), 4)

    fc1w = jnp.pad(_fc1_mat(params["fc1_w"].astype(f32)), ((0, 0), (0, 78)))  # (512,128)
    fc1b = jnp.pad(params["fc1_b"].astype(f32), (0, 78)).reshape(1, 128)
    fc2w = jnp.zeros((128, 128), f32).at[:50, 0].set(params["fc2_w"].astype(f32)[0])
    fc2b = jnp.zeros((1, 128), f32).at[0, 0].set(params["fc2_b"].astype(f32)[0])
    return dict(w1=w1, w2=w2, b1=b1.reshape(1, 1536), b2=b2.reshape(1, 512),
                fc1w=fc1w, fc1b=fc1b, fc2w=fc2w, fc2b=fc2b)


def _band_input(x):
    """(N,1,28,28) image -> (N,1536) bf16 band-major layout: 6 bands of 8 rows
    (rows 4b..4b+7), each flattened to 224 values and padded to 256 lanes."""
    n = x.shape[0]
    img = x.astype(jnp.float32).reshape(n, 28, 28)
    rows = 4 * jnp.arange(6)[:, None] + jnp.arange(8)[None, :]       # (6, 8)
    xb = img[:, rows, :].reshape(n, 6, 224)
    xb = jnp.pad(xb, ((0, 0), (0, 0), (0, 32)))
    return xb.reshape(n, 1536).astype(jnp.bfloat16)


def _num_tensorcores():
    """Best-effort TensorCore-per-chip count; safe fallback is 1."""
    try:
        info = pltpu.get_tpu_info()
        for name in ("num_cores", "core_count", "num_tensorcores",
                     "tensorcore_count", "cores_per_chip", "num_cores_per_chip"):
            v = getattr(info, name, None)
            if isinstance(v, int) and 1 <= v <= 8:
                return v
    except Exception:
        pass
    try:
        dev = jax.devices()[0]
        v = getattr(dev, "num_cores", None)
        if isinstance(v, int) and 1 <= v <= 8:
            return v
        kind = str(getattr(dev, "device_kind", "")).lower()
        if any(t in kind for t in ("v4", "v5p", "v7")):
            return 2
    except Exception:
        pass
    return 1


# ---------------------------------------------------------------------------
# Fused kernel: the whole forward pass for one batch tile.
# ---------------------------------------------------------------------------
def _disc_kernel(x_ref, w1_hbm, w2_hbm, b1_ref, b2_ref,
                 fw1_ref, fb1_ref, fw2_ref, fb2_ref,
                 o_ref, w1_vmem, w2_vmem, h1_scr, dma_sem):
    j = pl.program_id(1)

    # One-time (per core) load of the banded conv weights into VMEM scratch.
    # w1 is waited on immediately (conv1 needs it); the w2 wait is deferred to
    # just before the conv2 matmuls so its DMA overlaps conv1 compute.
    @pl.when(j == 0)
    def _start_weight_dma():
        pltpu.make_async_copy(w1_hbm, w1_vmem, dma_sem.at[0]).start()
        pltpu.make_async_copy(w2_hbm, w2_vmem, dma_sem.at[1]).start()
        pltpu.make_async_copy(w1_hbm, w1_vmem, dma_sem.at[0]).wait()

    # conv1 (5x5) + 2x2 max-pool + relu, band-split over 6 row bands.
    # Per band: one bf16 MXU matmul emitting all 4 pool positions (4 x 256
    # lanes), then elementwise max / bias / relu in f32.
    for b in range(6):
        xb = x_ref[:, b * 256:(b + 1) * 256]                                 # (tn,256) bf16
        m = jnp.dot(xb, w1_vmem[b], preferred_element_type=jnp.float32)      # (tn,1024) f32
        hb = jnp.maximum(jnp.maximum(m[:, 0:256], m[:, 256:512]),
                         jnp.maximum(m[:, 512:768], m[:, 768:1024]))
        hb = jnp.maximum(hb + b1_ref[:, b * 256:(b + 1) * 256], 0.0)
        h1_scr[:, b * 256:(b + 1) * 256] = hb.astype(jnp.bfloat16)

    @pl.when(j == 0)
    def _wait_w2_dma():
        pltpu.make_async_copy(w2_hbm, w2_vmem, dma_sem.at[1]).wait()

    # conv2 (5x5) + 2x2 max-pool + relu, band-split over the 4 pooled rows.
    # TODO(synk): Dropout2d / dropout are eval-mode identities (no stochastic masks).
    h2_parts = []
    for b in range(4):
        hin = h1_scr[:, b * 256:b * 256 + 768]                               # (tn,768) bf16
        m = jnp.dot(hin, w2_vmem[b], preferred_element_type=jnp.float32)     # (tn,512) f32
        hb = jnp.maximum(jnp.maximum(m[:, 0:128], m[:, 128:256]),
                         jnp.maximum(m[:, 256:384], m[:, 384:512]))
        hb = jnp.maximum(hb + b2_ref[:, b * 128:(b + 1) * 128], 0.0)
        h2_parts.append(hb)
    h2 = jnp.concatenate(h2_parts, axis=1)                                   # (tn,512) f32

    # fc1 + relu, fc2 + sigmoid.  Tiny matmuls kept in f32 for accuracy;
    # sigmoid via tanh (stable, exact EUP path, no approx reciprocal).
    f1 = jnp.dot(h2, fw1_ref[...], preferred_element_type=jnp.float32) + fb1_ref[...]
    f1 = jnp.maximum(f1, 0.0)                                                # (tn,128)
    z = jnp.dot(f1, fw2_ref[...], preferred_element_type=jnp.float32) + fb2_ref[...]
    o_ref[...] = 0.5 * (jnp.tanh(0.5 * z) + 1.0)                             # (tn,128)


def discriminator_forward(x, dp, tile_n=None, num_cores=None):
    """Eval-mode forward pass of the Discriminator. x: (N, 1, 28, 28)."""
    n = x.shape[0]
    xb = _band_input(x)                                    # (n, 1536) bf16
    cores = num_cores if num_cores is not None else _num_tensorcores()
    tn = tile_n if tile_n is not None else (128 if n >= 128 else 32)
    inner = pl.cdiv(pl.cdiv(n, tn), cores)                 # grid steps per core
    n_pad = cores * inner * tn
    xb = jnp.pad(xb, ((0, n_pad - n), (0, 0)))

    def const_spec(a):
        return pl.BlockSpec(a.shape, lambda i, j: (0,) * a.ndim)

    out = pl.pallas_call(
        _disc_kernel,
        out_shape=jax.ShapeDtypeStruct((n_pad, 128), jnp.float32),
        grid=(cores, inner),
        in_specs=[
            pl.BlockSpec((tn, 1536), lambda i, j: (i * inner + j, 0)),
            pl.BlockSpec(memory_space=pl.ANY),   # banded conv1 weights (HBM)
            pl.BlockSpec(memory_space=pl.ANY),   # banded conv2 weights (HBM)
            const_spec(dp["b1"]), const_spec(dp["b2"]),
            const_spec(dp["fc1w"]), const_spec(dp["fc1b"]),
            const_spec(dp["fc2w"]), const_spec(dp["fc2b"]),
        ],
        out_specs=pl.BlockSpec((tn, 128), lambda i, j: (i * inner + j, 0)),
        scratch_shapes=[
            pltpu.VMEM((6, 256, 1024), jnp.bfloat16),   # conv1 bands (resident)
            pltpu.VMEM((4, 768, 512), jnp.bfloat16),    # conv2 bands (resident)
            pltpu.VMEM((tn, 1536), jnp.bfloat16),       # h1 activation buffer
            pltpu.SemaphoreType.DMA((2,)),
        ],
        compiler_params=pltpu.CompilerParams(
            dimension_semantics=("parallel", "arbitrary"),
            vmem_limit_bytes=40 * 1024 * 1024,
        ),
    )(xb, dp["w1"], dp["w2"], dp["b1"], dp["b2"],
      dp["fc1w"], dp["fc1b"], dp["fc2w"], dp["fc2b"])
    return out[:n, :1]


# ---------------------------------------------------------------------------
# Pure-JAX reference (validation only).
# ---------------------------------------------------------------------------
def reference_forward(x, params):
    def conv(y, w, b):
        dn = lax.conv_dimension_numbers(y.shape, w.shape, ("NCHW", "OIHW", "NCHW"))
        y = lax.conv_general_dilated(y, w, (1, 1), "VALID", dimension_numbers=dn,
                                     precision=lax.Precision.HIGHEST)
        return y + b[None, :, None, None]

    def pool(y):
        return lax.reduce_window(y, -jnp.inf, lax.max, (1, 1, 2, 2), (1, 1, 2, 2), "VALID")

    y = jnp.maximum(pool(conv(x, params["conv1_w"], params["conv1_b"])), 0.0)
    y = jnp.maximum(pool(conv(y, params["conv2_w"], params["conv2_b"])), 0.0)
    y = y.reshape(y.shape[0], 320)
    y = jnp.maximum(
        jnp.dot(y, params["fc1_w"].T, precision=lax.Precision.HIGHEST) + params["fc1_b"], 0.0)
    y = jnp.dot(y, params["fc2_w"].T, precision=lax.Precision.HIGHEST) + params["fc2_b"]
    return jax.nn.sigmoid(y)


def init_params(key):
    ks = jax.random.split(key, 8)
    s = 0.1
    return {
        "conv1_w": s * jax.random.normal(ks[0], (10, 1, 5, 5), jnp.float32),
        "conv1_b": s * jax.random.normal(ks[1], (10,), jnp.float32),
        "conv2_w": s * jax.random.normal(ks[2], (20, 10, 5, 5), jnp.float32),
        "conv2_b": s * jax.random.normal(ks[3], (20,), jnp.float32),
        "fc1_w": s * jax.random.normal(ks[4], (50, 320), jnp.float32),
        "fc1_b": s * jax.random.normal(ks[5], (50,), jnp.float32),
        "fc2_w": s * jax.random.normal(ks[6], (1, 50), jnp.float32),
        "fc2_b": s * jax.random.normal(ks[7], (1,), jnp.float32),
    }


if __name__ == "__main__":
    key = jax.random.PRNGKey(0)
    k_param, k_x = jax.random.split(key)
    params = init_params(k_param)
    # MNIST-style input: 28x28 is required so that the flatten gives 320 features.
    x = jax.random.normal(k_x, (2, 1, 28, 28), jnp.float32)

    dp = prepare_params(params)                       # one-time weight prep
    out = jax.jit(discriminator_forward)(x, dp)
    out = jax.block_until_ready(out)
    assert out.shape == (2, 1), out.shape

    ref = jax.block_until_ready(reference_forward(x, params))
    # bf16 MXU operands (inputs + conv weights) -> slightly looser tolerance.
    assert jnp.allclose(out, ref, atol=4e-3, rtol=4e-3), (out, ref)

    print("KERNEL_OK")
</pallas_src>

<mosaic_0001>
module attributes {stable_mosaic.version = 11 : i64} {
  func.func @_disc_kernel(%arg0: i32, %arg1: i32, %arg2: memref<32x1536xbf16, #tpu.memory_space<vmem>>, %arg3: memref<6x256x1024xbf16, #tpu.memory_space<any>>, %arg4: memref<4x768x512xbf16, #tpu.memory_space<any>>, %arg5: memref<1x1536xf32, #tpu.memory_space<vmem>>, %arg6: memref<1x512xf32, #tpu.memory_space<vmem>>, %arg7: memref<512x128xf32, #tpu.memory_space<vmem>>, %arg8: memref<1x128xf32, #tpu.memory_space<vmem>>, %arg9: memref<128x128xf32, #tpu.memory_space<vmem>>, %arg10: memref<1x128xf32, #tpu.memory_space<vmem>>, %arg11: memref<32x128xf32, #tpu.memory_space<vmem>>, %arg12: memref<6x256x1024xbf16, #tpu.memory_space<vmem>>, %arg13: memref<4x768x512xbf16, #tpu.memory_space<vmem>>, %arg14: memref<32x1536xbf16, #tpu.memory_space<vmem>>, %arg15: memref<2x!tpu.dma_semaphore, #tpu.memory_space<semaphore_mem>>) attributes {dimension_semantics = [#tpu.dimension_semantics<parallel>, #tpu.dimension_semantics<arbitrary>], iteration_bounds = array<i64: 1, 1>, scalar_prefetch = 0 : i64, scratch_operands = 4 : i64, tpu.core_type = #tpu.core_type<tc>, window_params = [{transform_indices = @transform_0, window_bounds = array<i64: 32, 1536>}, {}, {}, {pipeline_mode = #tpu.pipeline_mode<synchronous>, transform_indices = @transform_3, window_bounds = array<i64: 1, 1536>}, {pipeline_mode = #tpu.pipeline_mode<synchronous>, transform_indices = @transform_4, window_bounds = array<i64: 1, 512>}, {pipeline_mode = #tpu.pipeline_mode<synchronous>, transform_indices = @transform_5, window_bounds = array<i64: 512, 128>}, {pipeline_mode = #tpu.pipeline_mode<synchronous>, transform_indices = @transform_6, window_bounds = array<i64: 1, 128>}, {pipeline_mode = #tpu.pipeline_mode<synchronous>, transform_indices = @transform_7, window_bounds = array<i64: 128, 128>}, {pipeline_mode = #tpu.pipeline_mode<synchronous>, transform_indices = @transform_8, window_bounds = array<i64: 1, 128>}, {transform_indices = @transform_9, window_bounds = array<i64: 32, 128>}]} {
    %c0_i32 = arith.constant 0 : i32
    %0 = arith.cmpi eq, %arg1, %c0_i32 : i32
    %1 = arith.extui %0 : i1 to i32
    %c0_i32_0 = arith.constant 0 : i32
    %2 = arith.cmpi ne, %1, %c0_i32_0 : i32
    scf.if %2 {
      %c0_i32_107 = arith.constant 0 : i32
      %199 = tpu.memref_slice %arg15[%c0_i32_107] : memref<2x!tpu.dma_semaphore, #tpu.memory_space<semaphore_mem>> -> memref<1x!tpu.dma_semaphore, #tpu.memory_space<semaphore_mem>>
      %200 = tpu.memref_squeeze %199 : memref<1x!tpu.dma_semaphore, #tpu.memory_space<semaphore_mem>> -> memref<!tpu.dma_semaphore, #tpu.memory_space<semaphore_mem>>
      tpu.enqueue_dma source(%arg3 : memref<6x256x1024xbf16, #tpu.memory_space<any>>) target(%arg12 : memref<6x256x1024xbf16, #tpu.memory_space<vmem>>) target_semaphore(%200 : memref<!tpu.dma_semaphore, #tpu.memory_space<semaphore_mem>>)
      %c1_i32 = arith.constant 1 : i32
      %201 = tpu.memref_slice %arg15[%c1_i32] : memref<2x!tpu.dma_semaphore, #tpu.memory_space<semaphore_mem>> -> memref<1x!tpu.dma_semaphore, #tpu.memory_space<semaphore_mem>>
      %202 = tpu.memref_squeeze %201 : memref<1x!tpu.dma_semaphore, #tpu.memory_space<semaphore_mem>> -> memref<!tpu.dma_semaphore, #tpu.memory_space<semaphore_mem>>
      tpu.enqueue_dma source(%arg4 : memref<4x768x512xbf16, #tpu.memory_space<any>>) target(%arg13 : memref<4x768x512xbf16, #tpu.memory_space<vmem>>) target_semaphore(%202 : memref<!tpu.dma_semaphore, #tpu.memory_space<semaphore_mem>>)
      %c0_i32_108 = arith.constant 0 : i32
      %203 = tpu.memref_slice %arg15[%c0_i32_108] : memref<2x!tpu.dma_semaphore, #tpu.memory_space<semaphore_mem>> -> memref<1x!tpu.dma_semaphore, #tpu.memory_space<semaphore_mem>>
      %204 = tpu.memref_squeeze %203 : memref<1x!tpu.dma_semaphore, #tpu.memory_space<semaphore_mem>> -> memref<!tpu.dma_semaphore, #tpu.memory_space<semaphore_mem>>
      tpu.wait_dma2 semaphore(%204 : memref<!tpu.dma_semaphore, #tpu.memory_space<semaphore_mem>>) src(%arg3 : memref<6x256x1024xbf16, #tpu.memory_space<any>>) dst(%arg12 : memref<6x256x1024xbf16, #tpu.memory_space<vmem>>)
    } else {
    }
    %c0 = arith.constant 0 : index
    %c0_1 = arith.constant 0 : index
    %3 = vector.load %arg2[%c0, %c0_1] : memref<32x1536xbf16, #tpu.memory_space<vmem>>, vector<32x256xbf16>
    %c0_2 = arith.constant 0 : index
    %c0_3 = arith.constant 0 : index
    %c0_4 = arith.constant 0 : index
    %4 = vector.load %arg12[%c0_2, %c0_3, %c0_4] : memref<6x256x1024xbf16, #tpu.memory_space<vmem>>, vector<1x256x1024xbf16>
    %5 = vector.shape_cast %4 : vector<1x256x1024xbf16> to vector<256x1024xbf16>
    %cst = arith.constant dense<0.000000e+00> : vector<32x1024xf32>
    %6 = tpu.matmul %3, %5, %cst {dimension_numbers = #tpu.dot_dimension_numbers<[1], [0], [0], [1], [0, 0, 1, 1], [], []>} : vector<32x256xbf16>, vector<256x1024xbf16>, vector<32x1024xf32> -> vector<32x1024xf32>
    %7 = vector.extract_strided_slice %6 {offsets = [0, 0], sizes = [32, 256], strides = [1, 1]} : vector<32x1024xf32> to vector<32x256xf32>
    %8 = vector.extract_strided_slice %6 {offsets = [0, 256], sizes = [32, 256], strides = [1, 1]} : vector<32x1024xf32> to vector<32x256xf32>
    %9 = arith.maximumf %7, %8 : vector<32x256xf32>
    %10 = vector.extract_strided_slice %6 {offsets = [0, 512], sizes = [32, 256], strides = [1, 1]} : vector<32x1024xf32> to vector<32x256xf32>
    %11 = vector.extract_strided_slice %6 {offsets = [0, 768], sizes = [32, 256], strides = [1, 1]} : vector<32x1024xf32> to vector<32x256xf32>
    %12 = arith.maximumf %10, %11 : vector<32x256xf32>
    %13 = arith.maximumf %9, %12 : vector<32x256xf32>
    %c0_5 = arith.constant 0 : index
    %c0_6 = arith.constant 0 : index
    %14 = vector.load %arg5[%c0_5, %c0_6] : memref<1x1536xf32, #tpu.memory_space<vmem>>, vector<1x256xf32>
    %15 = vector.broadcast %14 : vector<1x256xf32> to vector<32x256xf32>
    %16 = arith.addf %13, %15 : vector<32x256xf32>
    %cst_7 = arith.constant 0.000000e+00 : f32
    %17 = vector.broadcast %cst_7 : f32 to vector<32x256xf32>
    %18 = arith.maximumf %16, %17 : vector<32x256xf32>
    %19 = arith.truncf %18 : vector<32x256xf32> to vector<32x256xbf16>
    %c0_8 = arith.constant 0 : index
    %c0_9 = arith.constant 0 : index
    %20 = vector.load %arg14[%c0_8, %c0_9] : memref<32x1536xbf16, #tpu.memory_space<vmem>>, vector<32x256xbf16>
    tpu.vector_store %arg14[%c0_8, %c0_9], %19 {strides = array<i32>} : memref<32x1536xbf16, #tpu.memory_space<vmem>>, vector<32x256xbf16>,
    %c0_10 = arith.constant 0 : index
    %c256 = arith.constant 256 : index
    %21 = vector.load %arg2[%c0_10, %c256] : memref<32x1536xbf16, #tpu.memory_space<vmem>>, vector<32x256xbf16>
    %c1 = arith.constant 1 : index
    %c0_11 = arith.constant 0 : index
    %c0_12 = arith.constant 0 : index
    %22 = vector.load %arg12[%c1, %c0_11, %c0_12] : memref<6x256x1024xbf16, #tpu.memory_space<vmem>>, vector<1x256x1024xbf16>
    %23 = vector.shape_cast %22 : vector<1x256x1024xbf16> to vector<256x1024xbf16>
    %cst_13 = arith.constant dense<0.000000e+00> : vector<32x1024xf32>
    %24 = tpu.matmul %21, %23, %cst_13 {dimension_numbers = #tpu.dot_dimension_numbers<[1], [0], [0], [1], [0, 0, 1, 1], [], []>} : vector<32x256xbf16>, vector<256x1024xbf16>, vector<32x1024xf32> -> vector<32x1024xf32>
    %25 = vector.extract_strided_slice %24 {offsets = [0, 0], sizes = [32, 256], strides = [1, 1]} : vector<32x1024xf32> to vector<32x256xf32>
    %26 = vector.extract_strided_slice %24 {offsets = [0, 256], sizes = [32, 256], strides = [1, 1]} : vector<32x1024xf32> to vector<32x256xf32>
    %27 = arith.maximumf %25, %26 : vector<32x256xf32>
    %28 = vector.extract_strided_slice %24 {offsets = [0, 512], sizes = [32, 256], strides = [1, 1]} : vector<32x1024xf32> to vector<32x256xf32>
    %29 = vector.extract_strided_slice %24 {offsets = [0, 768], sizes = [32, 256], strides = [1, 1]} : vector<32x1024xf32> to vector<32x256xf32>
    %30 = arith.maximumf %28, %29 : vector<32x256xf32>
    %31 = arith.maximumf %27, %30 : vector<32x256xf32>
    %c0_14 = arith.constant 0 : index
    %c256_15 = arith.constant 256 : index
    %32 = vector.load %arg5[%c0_14, %c256_15] : memref<1x1536xf32, #tpu.memory_space<vmem>>, vector<1x256xf32>
    %33 = vector.broadcast %32 : vector<1x256xf32> to vector<32x256xf32>
    %34 = arith.addf %31, %33 : vector<32x256xf32>
    %cst_16 = arith.constant 0.000000e+00 : f32
    %35 = vector.broadcast %cst_16 : f32 to vector<32x256xf32>
    %36 = arith.maximumf %34, %35 : vector<32x256xf32>
    %37 = arith.truncf %36 : vector<32x256xf32> to vector<32x256xbf16>
    %c0_17 = arith.constant 0 : index
    %c256_18 = arith.constant 256 : index
    %38 = vector.load %arg14[%c0_17, %c256_18] : memref<32x1536xbf16, #tpu.memory_space<vmem>>, vector<32x256xbf16>
    tpu.vector_store %arg14[%c0_17, %c256_18], %37 {strides = array<i32>} : memref<32x1536xbf16, #tpu.memory_space<vmem>>, vector<32x256xbf16>,
    %c0_19 = arith.constant 0 : index
    %c512 = arith.constant 512 : index
    %39 = vector.load %arg2[%c0_19, %c512] : memref<32x1536xbf16, #tpu.memory_space<vmem>>, vector<32x256xbf16>
    %c2 = arith.constant 2 : index
    %c0_20 = arith.constant 0 : index
    %c0_21 = arith.constant 0 : index
    %40 = vector.load %arg12[%c2, %c0_20, %c0_21] : memref<6x256x1024xbf16, #tpu.memory_space<vmem>>, vector<1x256x1024xbf16>
    %41 = vector.shape_cast %40 : vector<1x256x1024xbf16> to vector<256x1024xbf16>
    %cst_22 = arith.constant dense<0.000000e+00> : vector<32x1024xf32>
    %42 = tpu.matmul %39, %41, %cst_22 {dimension_numbers = #tpu.dot_dimension_numbers<[1], [0], [0], [1], [0, 0, 1, 1], [], []>} : vector<32x256xbf16>, vector<256x1024xbf16>, vector<32x1024xf32> -> vector<32x1024xf32>
    %43 = vector.extract_strided_slice %42 {offsets = [0, 0], sizes = [32, 256], strides = [1, 1]} : vector<32x1024xf32> to vector<32x256xf32>
    %44 = vector.extract_strided_slice %42 {offsets = [0, 256], sizes = [32, 256], strides = [1, 1]} : vector<32x1024xf32> to vector<32x256xf32>
    %45 = arith.maximumf %43, %44 : vector<32x256xf32>
    %46 = vector.extract_strided_slice %42 {offsets = [0, 512], sizes = [32, 256], strides = [1, 1]} : vector<32x1024xf32> to vector<32x256xf32>
    %47 = vector.extract_strided_slice %42 {offsets = [0, 768], sizes = [32, 256], strides = [1, 1]} : vector<32x1024xf32> to vector<32x256xf32>
    %48 = arith.maximumf %46, %47 : vector<32x256xf32>
    %49 = arith.maximumf %45, %48 : vector<32x256xf32>
    %c0_23 = arith.constant 0 : index
    %c512_24 = arith.constant 512 : index
    %50 = vector.load %arg5[%c0_23, %c512_24] : memref<1x1536xf32, #tpu.memory_space<vmem>>, vector<1x256xf32>
    %51 = vector.broadcast %50 : vector<1x256xf32> to vector<32x256xf32>
    %52 = arith.addf %49, %51 : vector<32x256xf32>
    %cst_25 = arith.constant 0.000000e+00 : f32
    %53 = vector.broadcast %cst_25 : f32 to vector<32x256xf32>
    %54 = arith.maximumf %52, %53 : vector<32x256xf32>
    %55 = arith.truncf %54 : vector<32x256xf32> to vector<32x256xbf16>
    %c0_26 = arith.constant 0 : index
    %c512_27 = arith.constant 512 : index
    %56 = vector.load %arg14[%c0_26, %c512_27] : memref<32x1536xbf16, #tpu.memory_space<vmem>>, vector<32x256xbf16>
    tpu.vector_store %arg14[%c0_26, %c512_27], %55 {strides = array<i32>} : memref<32x1536xbf16, #tpu.memory_space<vmem>>, vector<32x256xbf16>,
    %c0_28 = arith.constant 0 : index
    %c768 = arith.constant 768 : index
    %57 = vector.load %arg2[%c0_28, %c768] : memref<32x1536xbf16, #tpu.memory_space<vmem>>, vector<32x256xbf16>
    %c3 = arith.constant 3 : index
    %c0_29 = arith.constant 0 : index
    %c0_30 = arith.constant 0 : index
    %58 = vector.load %arg12[%c3, %c0_29, %c0_30] : memref<6x256x1024xbf16, #tpu.memory_space<vmem>>, vector<1x256x1024xbf16>
    %59 = vector.shape_cast %58 : vector<1x256x1024xbf16> to vector<256x1024xbf16>
    %cst_31 = arith.constant dense<0.000000e+00> : vector<32x1024xf32>
    %60 = tpu.matmul %57, %59, %cst_31 {dimension_numbers = #tpu.dot_dimension_numbers<[1], [0], [0], [1], [0, 0, 1, 1], [], []>} : vector<32x256xbf16>, vector<256x1024xbf16>, vector<32x1024xf32> -> vector<32x1024xf32>
    %61 = vector.extract_strided_slice %60 {offsets = [0, 0], sizes = [32, 256], strides = [1, 1]} : vector<32x1024xf32> to vector<32x256xf32>
    %62 = vector.extract_strided_slice %60 {offsets = [0, 256], sizes = [32, 256], strides = [1, 1]} : vector<32x1024xf32> to vector<32x256xf32>
    %63 = arith.maximumf %61, %62 : vector<32x256xf32>
    %64 = vector.extract_strided_slice %60 {offsets = [0, 512], sizes = [32, 256], strides = [1, 1]} : vector<32x1024xf32> to vector<32x256xf32>
    %65 = vector.extract_strided_slice %60 {offsets = [0, 768], sizes = [32, 256], strides = [1, 1]} : vector<32x1024xf32> to vector<32x256xf32>
    %66 = arith.maximumf %64, %65 : vector<32x256xf32>
    %67 = arith.maximumf %63, %66 : vector<32x256xf32>
    %c0_32 = arith.constant 0 : index
    %c768_33 = arith.constant 768 : index
    %68 = vector.load %arg5[%c0_32, %c768_33] : memref<1x1536xf32, #tpu.memory_space<vmem>>, vector<1x256xf32>
    %69 = vector.broadcast %68 : vector<1x256xf32> to vector<32x256xf32>
    %70 = arith.addf %67, %69 : vector<32x256xf32>
    %cst_34 = arith.constant 0.000000e+00 : f32
    %71 = vector.broadcast %cst_34 : f32 to vector<32x256xf32>
    %72 = arith.maximumf %70, %71 : vector<32x256xf32>
    %73 = arith.truncf %72 : vector<32x256xf32> to vector<32x256xbf16>
    %c0_35 = arith.constant 0 : index
    %c768_36 = arith.constant 768 : index
    %74 = vector.load %arg14[%c0_35, %c768_36] : memref<32x1536xbf16, #tpu.memory_space<vmem>>, vector<32x256xbf16>
    tpu.vector_store %arg14[%c0_35, %c768_36], %73 {strides = array<i32>} : memref<32x1536xbf16, #tpu.memory_space<vmem>>, vector<32x256xbf16>,
    %c0_37 = arith.constant 0 : index
    %c1024 = arith.constant 1024 : index
    %75 = vector.load %arg2[%c0_37, %c1024] : memref<32x1536xbf16, #tpu.memory_space<vmem>>, vector<32x256xbf16>
    %c4 = arith.constant 4 : index
    %c0_38 = arith.constant 0 : index
    %c0_39 = arith.constant 0 : index
    %76 = vector.load %arg12[%c4, %c0_38, %c0_39] : memref<6x256x1024xbf16, #tpu.memory_space<vmem>>, vector<1x256x1024xbf16>
    %77 = vector.shape_cast %76 : vector<1x256x1024xbf16> to vector<256x1024xbf16>
    %cst_40 = arith.constant dense<0.000000e+00> : vector<32x1024xf32>
    %78 = tpu.matmul %75, %77, %cst_40 {dimension_numbers = #tpu.dot_dimension_numbers<[1], [0], [0], [1], [0, 0, 1, 1], [], []>} : vector<32x256xbf16>, vector<256x1024xbf16>, vector<32x1024xf32> -> vector<32x1024xf32>
    %79 = vector.extract_strided_slice %78 {offsets = [0, 0], sizes = [32, 256], strides = [1, 1]} : vector<32x1024xf32> to vector<32x256xf32>
    %80 = vector.extract_strided_slice %78 {offsets = [0, 256], sizes = [32, 256], strides = [1, 1]} : vector<32x1024xf32> to vector<32x256xf32>
    %81 = arith.maximumf %79, %80 : vector<32x256xf32>
    %82 = vector.extract_strided_slice %78 {offsets = [0, 512], sizes = [32, 256], strides = [1, 1]} : vector<32x1024xf32> to vector<32x256xf32>
    %83 = vector.extract_strided_slice %78 {offsets = [0, 768], sizes = [32, 256], strides = [1, 1]} : vector<32x1024xf32> to vector<32x256xf32>
    %84 = arith.maximumf %82, %83 : vector<32x256xf32>
    %85 = arith.maximumf %81, %84 : vector<32x256xf32>
    %c0_41 = arith.constant 0 : index
    %c1024_42 = arith.constant 1024 : index
    %86 = vector.load %arg5[%c0_41, %c1024_42] : memref<1x1536xf32, #tpu.memory_space<vmem>>, vector<1x256xf32>
    %87 = vector.broadcast %86 : vector<1x256xf32> to vector<32x256xf32>
    %88 = arith.addf %85, %87 : vector<32x256xf32>
    %cst_43 = arith.constant 0.000000e+00 : f32
    %89 = vector.broadcast %cst_43 : f32 to vector<32x256xf32>
    %90 = arith.maximumf %88, %89 : vector<32x256xf32>
    %91 = arith.truncf %90 : vector<32x256xf32> to vector<32x256xbf16>
    %c0_44 = arith.constant 0 : index
    %c1024_45 = arith.constant 1024 : index
    %92 = vector.load %arg14[%c0_44, %c1024_45] : memref<32x1536xbf16, #tpu.memory_space<vmem>>, vector<32x256xbf16>
    tpu.vector_store %arg14[%c0_44, %c1024_45], %91 {strides = array<i32>} : memref<32x1536xbf16, #tpu.memory_space<vmem>>, vector<32x256xbf16>,
    %c0_46 = arith.constant 0 : index
    %c1280 = arith.constant 1280 : index
    %93 = vector.load %arg2[%c0_46, %c1280] : memref<32x1536xbf16, #tpu.memory_space<vmem>>, vector<32x256xbf16>
    %c5 = arith.constant 5 : index
    %c0_47 = arith.constant 0 : index
    %c0_48 = arith.constant 0 : index
    %94 = vector.load %arg12[%c5, %c0_47, %c0_48] : memref<6x256x1024xbf16, #tpu.memory_space<vmem>>, vector<1x256x1024xbf16>
    %95 = vector.shape_cast %94 : vector<1x256x1024xbf16> to vector<256x1024xbf16>
    %cst_49 = arith.constant dense<0.000000e+00> : vector<32x1024xf32>
    %96 = tpu.matmul %93, %95, %cst_49 {dimension_numbers = #tpu.dot_dimension_numbers<[1], [0], [0], [1], [0, 0, 1, 1], [], []>} : vector<32x256xbf16>, vector<256x1024xbf16>, vector<32x1024xf32> -> vector<32x1024xf32>
    %97 = vector.extract_strided_slice %96 {offsets = [0, 0], sizes = [32, 256], strides = [1, 1]} : vector<32x1024xf32> to vector<32x256xf32>
    %98 = vector.extract_strided_slice %96 {offsets = [0, 256], sizes = [32, 256], strides = [1, 1]} : vector<32x1024xf32> to vector<32x256xf32>
    %99 = arith.maximumf %97, %98 : vector<32x256xf32>
    %100 = vector.extract_strided_slice %96 {offsets = [0, 512], sizes = [32, 256], strides = [1, 1]} : vector<32x1024xf32> to vector<32x256xf32>
    %101 = vector.extract_strided_slice %96 {offsets = [0, 768], sizes = [32, 256], strides = [1, 1]} : vector<32x1024xf32> to vector<32x256xf32>
    %102 = arith.maximumf %100, %101 : vector<32x256xf32>
    %103 = arith.maximumf %99, %102 : vector<32x256xf32>
    %c0_50 = arith.constant 0 : index
    %c1280_51 = arith.constant 1280 : index
    %104 = vector.load %arg5[%c0_50, %c1280_51] : memref<1x1536xf32, #tpu.memory_space<vmem>>, vector<1x256xf32>
    %105 = vector.broadcast %104 : vector<1x256xf32> to vector<32x256xf32>
    %106 = arith.addf %103, %105 : vector<32x256xf32>
    %cst_52 = arith.constant 0.000000e+00 : f32
    %107 = vector.broadcast %cst_52 : f32 to vector<32x256xf32>
    %108 = arith.maximumf %106, %107 : vector<32x256xf32>
    %109 = arith.truncf %108 : vector<32x256xf32> to vector<32x256xbf16>
    %c0_53 = arith.constant 0 : index
    %c1280_54 = arith.constant 1280 : index
    %110 = vector.load %arg14[%c0_53, %c1280_54] : memref<32x1536xbf16, #tpu.memory_space<vmem>>, vector<32x256xbf16>
    tpu.vector_store %arg14[%c0_53, %c1280_54], %109 {strides = array<i32>} : memref<32x1536xbf16, #tpu.memory_space<vmem>>, vector<32x256xbf16>,
    %c0_i32_55 = arith.constant 0 : i32
    %111 = arith.cmpi eq, %arg1, %c0_i32_55 : i32
    %112 = arith.extui %111 : i1 to i32
    %c0_i32_56 = arith.constant 0 : i32
    %113 = arith.cmpi ne, %112, %c0_i32_56 : i32
    scf.if %113 {
      %c1_i32 = arith.constant 1 : i32
      %199 = tpu.memref_slice %arg15[%c1_i32] : memref<2x!tpu.dma_semaphore, #tpu.memory_space<semaphore_mem>> -> memref<1x!tpu.dma_semaphore, #tpu.memory_space<semaphore_mem>>
      %200 = tpu.memref_squeeze %199 : memref<1x!tpu.dma_semaphore, #tpu.memory_space<semaphore_mem>> -> memref<!tpu.dma_semaphore, #tpu.memory_space<semaphore_mem>>
      tpu.wait_dma2 semaphore(%200 : memref<!tpu.dma_semaphore, #tpu.memory_space<semaphore_mem>>) src(%arg4 : memref<4x768x512xbf16, #tpu.memory_space<any>>) dst(%arg13 : memref<4x768x512xbf16, #tpu.memory_space<vmem>>)
    } else {
    }
    %c0_57 = arith.constant 0 : index
    %c0_58 = arith.constant 0 : index
    %114 = vector.load %arg14[%c0_57, %c0_58] : memref<32x1536xbf16, #tpu.memory_space<vmem>>, vector<32x768xbf16>
    %c0_59 = arith.constant 0 : index
    %c0_60 = arith.constant 0 : index
    %c0_61 = arith.constant 0 : index
    %115 = vector.load %arg13[%c0_59, %c0_60, %c0_61] : memref<4x768x512xbf16, #tpu.memory_space<vmem>>, vector<1x768x512xbf16>
    %116 = vector.shape_cast %115 : vector<1x768x512xbf16> to vector<768x512xbf16>
    %cst_62 = arith.constant dense<0.000000e+00> : vector<32x512xf32>
    %117 = tpu.matmul %114, %116, %cst_62 {dimension_numbers = #tpu.dot_dimension_numbers<[1], [0], [0], [1], [0, 0, 1, 1], [], []>} : vector<32x768xbf16>, vector<768x512xbf16>, vector<32x512xf32> -> vector<32x512xf32>
    %118 = vector.extract_strided_slice %117 {offsets = [0, 0], sizes = [32, 128], strides = [1, 1]} : vector<32x512xf32> to vector<32x128xf32>
    %119 = vector.extract_strided_slice %117 {offsets = [0, 128], sizes = [32, 128], strides = [1, 1]} : vector<32x512xf32> to vector<32x128xf32>
    %120 = arith.maximumf %118, %119 : vector<32x128xf32>
    %121 = vector.extract_strided_slice %117 {offsets = [0, 256], sizes = [32, 128], strides = [1, 1]} : vector<32x512xf32> to vector<32x128xf32>
    %122 = vector.extract_strided_slice %117 {offsets = [0, 384], sizes = [32, 128], strides = [1, 1]} : vector<32x512xf32> to vector<32x128xf32>
    %123 = arith.maximumf %121, %122 : vector<32x128xf32>
    %124 = arith.maximumf %120, %123 : vector<32x128xf32>
    %c0_63 = arith.constant 0 : index
    %c0_64 = arith.constant 0 : index
    %125 = vector.load %arg6[%c0_63, %c0_64] : memref<1x512xf32, #tpu.memory_space<vmem>>, vector<1x128xf32>
    %126 = vector.broadcast %125 : vector<1x128xf32> to vector<32x128xf32>
    %127 = arith.addf %124, %126 : vector<32x128xf32>
    %cst_65 = arith.constant 0.000000e+00 : f32
    %128 = vector.broadcast %cst_65 : f32 to vector<32x128xf32>
    %129 = arith.maximumf %127, %128 : vector<32x128xf32>
    %c0_66 = arith.constant 0 : index
    %c256_67 = arith.constant 256 : index
    %130 = vector.load %arg14[%c0_66, %c256_67] : memref<32x1536xbf16, #tpu.memory_space<vmem>>, vector<32x768xbf16>
    %c1_68 = arith.constant 1 : index
    %c0_69 = arith.constant 0 : index
    %c0_70 = arith.constant 0 : index
    %131 = vector.load %arg13[%c1_68, %c0_69, %c0_70] : memref<4x768x512xbf16, #tpu.memory_space<vmem>>, vector<1x768x512xbf16>
    %132 = vector.shape_cast %131 : vector<1x768x512xbf16> to vector<768x512xbf16>
    %cst_71 = arith.constant dense<0.000000e+00> : vector<32x512xf32>
    %133 = tpu.matmul %130, %132, %cst_71 {dimension_numbers = #tpu.dot_dimension_numbers<[1], [0], [0], [1], [0, 0, 1, 1], [], []>} : vector<32x768xbf16>, vector<768x512xbf16>, vector<32x512xf32> -> vector<32x512xf32>
    %134 = vector.extract_strided_slice %133 {offsets = [0, 0], sizes = [32, 128], strides = [1, 1]} : vector<32x512xf32> to vector<32x128xf32>
    %135 = vector.extract_strided_slice %133 {offsets = [0, 128], sizes = [32, 128], strides = [1, 1]} : vector<32x512xf32> to vector<32x128xf32>
    %136 = arith.maximumf %134, %135 : vector<32x128xf32>
    %137 = vector.extract_strided_slice %133 {offsets = [0, 256], sizes = [32, 128], strides = [1, 1]} : vector<32x512xf32> to vector<32x128xf32>
    %138 = vector.extract_strided_slice %133 {offsets = [0, 384], sizes = [32, 128], strides = [1, 1]} : vector<32x512xf32> to vector<32x128xf32>
    %139 = arith.maximumf %137, %138 : vector<32x128xf32>
    %140 = arith.maximumf %136, %139 : vector<32x128xf32>
    %c0_72 = arith.constant 0 : index
    %c128 = arith.constant 128 : index
    %141 = vector.load %arg6[%c0_72, %c128] : memref<1x512xf32, #tpu.memory_space<vmem>>, vector<1x128xf32>
    %142 = vector.broadcast %141 : vector<1x128xf32> to vector<32x128xf32>
    %143 = arith.addf %140, %142 : vector<32x128xf32>
    %cst_73 = arith.constant 0.000000e+00 : f32
    %144 = vector.broadcast %cst_73 : f32 to vector<32x128xf32>
    %145 = arith.maximumf %143, %144 : vector<32x128xf32>
    %c0_74 = arith.constant 0 : index
    %c512_75 = arith.constant 512 : index
    %146 = vector.load %arg14[%c0_74, %c512_75] : memref<32x1536xbf16, #tpu.memory_space<vmem>>, vector<32x768xbf16>
    %c2_76 = arith.constant 2 : index
    %c0_77 = arith.constant 0 : index
    %c0_78 = arith.constant 0 : index
    %147 = vector.load %arg13[%c2_76, %c0_77, %c0_78] : memref<4x768x512xbf16, #tpu.memory_space<vmem>>, vector<1x768x512xbf16>
    %148 = vector.shape_cast %147 : vector<1x768x512xbf16> to vector<768x512xbf16>
    %cst_79 = arith.constant dense<0.000000e+00> : vector<32x512xf32>
    %149 = tpu.matmul %146, %148, %cst_79 {dimension_numbers = #tpu.dot_dimension_numbers<[1], [0], [0], [1], [0, 0, 1, 1], [], []>} : vector<32x768xbf16>, vector<768x512xbf16>, vector<32x512xf32> -> vector<32x512xf32>
    %150 = vector.extract_strided_slice %149 {offsets = [0, 0], sizes = [32, 128], strides = [1, 1]} : vector<32x512xf32> to vector<32x128xf32>
    %151 = vector.extract_strided_slice %149 {offsets = [0, 128], sizes = [32, 128], strides = [1, 1]} : vector<32x512xf32> to vector<32x128xf32>
    %152 = arith.maximumf %150, %151 : vector<32x128xf32>
    %153 = vector.extract_strided_slice %149 {offsets = [0, 256], sizes = [32, 128], strides = [1, 1]} : vector<32x512xf32> to vector<32x128xf32>
    %154 = vector.extract_strided_slice %149 {offsets = [0, 384], sizes = [32, 128], strides = [1, 1]} : vector<32x512xf32> to vector<32x128xf32>
    %155 = arith.maximumf %153, %154 : vector<32x128xf32>
    %156 = arith.maximumf %152, %155 : vector<32x128xf32>
    %c0_80 = arith.constant 0 : index
    %c256_81 = arith.constant 256 : index
    %157 = vector.load %arg6[%c0_80, %c256_81] : memref<1x512xf32, #tpu.memory_space<vmem>>, vector<1x128xf32>
    %158 = vector.broadcast %157 : vector<1x128xf32> to vector<32x128xf32>
    %159 = arith.addf %156, %158 : vector<32x128xf32>
    %cst_82 = arith.constant 0.000000e+00 : f32
    %160 = vector.broadcast %cst_82 : f32 to vector<32x128xf32>
    %161 = arith.maximumf %159, %160 : vector<32x128xf32>
    %c0_83 = arith.constant 0 : index
    %c768_84 = arith.constant 768 : index
    %162 = vector.load %arg14[%c0_83, %c768_84] : memref<32x1536xbf16, #tpu.memory_space<vmem>>, vector<32x768xbf16>
    %c3_85 = arith.constant 3 : index
    %c0_86 = arith.constant 0 : index
    %c0_87 = arith.constant 0 : index
    %163 = vector.load %arg13[%c3_85, %c0_86, %c0_87] : memref<4x768x512xbf16, #tpu.memory_space<vmem>>, vector<1x768x512xbf16>
    %164 = vector.shape_cast %163 : vector<1x768x512xbf16> to vector<768x512xbf16>
    %cst_88 = arith.constant dense<0.000000e+00> : vector<32x512xf32>
    %165 = tpu.matmul %162, %164, %cst_88 {dimension_numbers = #tpu.dot_dimension_numbers<[1], [0], [0], [1], [0, 0, 1, 1], [], []>} : vector<32x768xbf16>, vector<768x512xbf16>, vector<32x512xf32> -> vector<32x512xf32>
    %166 = vector.extract_strided_slice %165 {offsets = [0, 0], sizes = [32, 128], strides = [1, 1]} : vector<32x512xf32> to vector<32x128xf32>
    %167 = vector.extract_strided_slice %165 {offsets = [0, 128], sizes = [32, 128], strides = [1, 1]} : vector<32x512xf32> to vector<32x128xf32>
    %168 = arith.maximumf %166, %167 : vector<32x128xf32>
    %169 = vector.extract_strided_slice %165 {offsets = [0, 256], sizes = [32, 128], strides = [1, 1]} : vector<32x512xf32> to vector<32x128xf32>
    %170 = vector.extract_strided_slice %165 {offsets = [0, 384], sizes = [32, 128], strides = [1, 1]} : vector<32x512xf32> to vector<32x128xf32>
    %171 = arith.maximumf %169, %170 : vector<32x128xf32>
    %172 = arith.maximumf %168, %171 : vector<32x128xf32>
    %c0_89 = arith.constant 0 : index
    %c384 = arith.constant 384 : index
    %173 = vector.load %arg6[%c0_89, %c384] : memref<1x512xf32, #tpu.memory_space<vmem>>, vector<1x128xf32>
    %174 = vector.broadcast %173 : vector<1x128xf32> to vector<32x128xf32>
    %175 = arith.addf %172, %174 : vector<32x128xf32>
    %cst_90 = arith.constant 0.000000e+00 : f32
    %176 = vector.broadcast %cst_90 : f32 to vector<32x128xf32>
    %177 = arith.maximumf %175, %176 : vector<32x128xf32>
    %178 = tpu.concatenate %129, %145, %161, %177 in 1 : vector<32x128xf32>, vector<32x128xf32>, vector<32x128xf32>, vector<32x128xf32> -> vector<32x512xf32>
    %c0_91 = arith.constant 0 : index
    %c0_92 = arith.constant 0 : index
    %179 = vector.load %arg7[%c0_91, %c0_92] : memref<512x128xf32, #tpu.memory_space<vmem>>, vector<512x128xf32>
    %cst_93 = arith.constant dense<0.000000e+00> : vector<32x128xf32>
    %180 = tpu.matmul %178, %179, %cst_93 {dimension_numbers = #tpu.dot_dimension_numbers<[1], [0], [0], [1], [0, 0, 1, 1], [], []>} : vector<32x512xf32>, vector<512x128xf32>, vector<32x128xf32> -> vector<32x128xf32>
    %c0_94 = arith.constant 0 : index
    %c0_95 = arith.constant 0 : index
    %181 = vector.load %arg8[%c0_94, %c0_95] : memref<1x128xf32, #tpu.memory_space<vmem>>, vector<1x128xf32>
    %182 = vector.broadcast %181 : vector<1x128xf32> to vector<32x128xf32>
    %183 = arith.addf %180, %182 : vector<32x128xf32>
    %cst_96 = arith.constant 0.000000e+00 : f32
    %184 = vector.broadcast %cst_96 : f32 to vector<32x128xf32>
    %185 = arith.maximumf %183, %184 : vector<32x128xf32>
    %c0_97 = arith.constant 0 : index
    %c0_98 = arith.constant 0 : index
    %186 = vector.load %arg9[%c0_97, %c0_98] : memref<128x128xf32, #tpu.memory_space<vmem>>, vector<128x128xf32>
    %cst_99 = arith.constant dense<0.000000e+00> : vector<32x128xf32>
    %187 = tpu.matmul %185, %186, %cst_99 {dimension_numbers = #tpu.dot_dimension_numbers<[1], [0], [0], [1], [0, 0, 1, 1], [], []>} : vector<32x128xf32>, vector<128x128xf32>, vector<32x128xf32> -> vector<32x128xf32>
    %c0_100 = arith.constant 0 : index
    %c0_101 = arith.constant 0 : index
    %188 = vector.load %arg10[%c0_100, %c0_101] : memref<1x128xf32, #tpu.memory_space<vmem>>, vector<1x128xf32>
    %189 = vector.broadcast %188 : vector<1x128xf32> to vector<32x128xf32>
    %190 = arith.addf %187, %189 : vector<32x128xf32>
    %cst_102 = arith.constant 5.000000e-01 : f32
    %191 = vector.broadcast %cst_102 : f32 to vector<32x128xf32>
    %192 = arith.mulf %191, %190 : vector<32x128xf32>
    %193 = math.tanh %192 : vector<32x128xf32>
    %cst_103 = arith.constant 1.000000e+00 : f32
    %194 = vector.broadcast %cst_103 : f32 to vector<32x128xf32>
    %195 = arith.addf %193, %194 : vector<32x128xf32>
    %cst_104 = arith.constant 5.000000e-01 : f32
    %196 = vector.broadcast %cst_104 : f32 to vector<32x128xf32>
    %197 = arith.mulf %196, %195 : vector<32x128xf32>
    %c0_105 = arith.constant 0 : index
    %c0_106 = arith.constant 0 : index
    %198 = vector.load %arg11[%c0_105, %c0_106] : memref<32x128xf32, #tpu.memory_space<vmem>>, vector<32x128xf32>
    tpu.vector_store %arg11[%c0_105, %c0_106], %197 {strides = array<i32>} : memref<32x128xf32, #tpu.memory_space<vmem>>, vector<32x128xf32>,
    return
  }
  func.func @transform_0(%arg0: i32, %arg1: i32) -> (i32, i32) {
    %c1_i32 = arith.constant 1 : i32
    %0 = arith.muli %arg0, %c1_i32 : i32
    %1 = arith.addi %0, %arg1 : i32
    %c0_i32 = arith.constant 0 : i32
    %c0_i32_0 = arith.constant 0 : i32
    return %1, %c0_i32 : i32, i32
  }
  func.func @transform_3(%arg0: i32, %arg1: i32) -> (i32, i32) {
    %c0_i32 = arith.constant 0 : i32
    %c0_i32_0 = arith.constant 0 : i32
    %c0_i32_1 = arith.constant 0 : i32
    return %c0_i32, %c0_i32_0 : i32, i32
  }
  func.func @transform_4(%arg0: i32, %arg1: i32) -> (i32, i32) {
    %c0_i32 = arith.constant 0 : i32
    %c0_i32_0 = arith.constant 0 : i32
    %c0_i32_1 = arith.constant 0 : i32
    return %c0_i32, %c0_i32_0 : i32, i32
  }
  func.func @transform_5(%arg0: i32, %arg1: i32) -> (i32, i32) {
    %c0_i32 = arith.constant 0 : i32
    %c0_i32_0 = arith.constant 0 : i32
    %c0_i32_1 = arith.constant 0 : i32
    return %c0_i32, %c0_i32_0 : i32, i32
  }
  func.func @transform_6(%arg0: i32, %arg1: i32) -> (i32, i32) {
    %c0_i32 = arith.constant 0 : i32
    %c0_i32_0 = arith.constant 0 : i32
    %c0_i32_1 = arith.constant 0 : i32
    return %c0_i32, %c0_i32_0 : i32, i32
  }
  func.func @transform_7(%arg0: i32, %arg1: i32) -> (i32, i32) {
    %c0_i32 = arith.constant 0 : i32
    %c0_i32_0 = arith.constant 0 : i32
    %c0_i32_1 = arith.constant 0 : i32
    return %c0_i32, %c0_i32_0 : i32, i32
  }
  func.func @transform_8(%arg0: i32, %arg1: i32) -> (i32, i32) {
    %c0_i32 = arith.constant 0 : i32
    %c0_i32_0 = arith.constant 0 : i32
    %c0_i32_1 = arith.constant 0 : i32
    return %c0_i32, %c0_i32_0 : i32, i32
  }
  func.func @transform_9(%arg0: i32, %arg1: i32) -> (i32, i32) {
    %c1_i32 = arith.constant 1 : i32
    %0 = arith.muli %arg0, %c1_i32 : i32
    %1 = arith.addi %0, %arg1 : i32
    %c0_i32 = arith.constant 0 : i32
    %c0_i32_0 = arith.constant 0 : i32
    return %1, %c0_i32 : i32, i32
  }
}

</mosaic_0001>

<bundles_post_ra>
// kernel: discriminator_forward.1
= control target key start
LH: loop header
LB: loop body
LE: loop exit
PB: predicated region body
PF: predicated region fallthrough
CT: control target
= control target key end

     0   :  { %14 = vsyncpa [#allocation7], 0  ;;  %s6982_s0 = inlined_call_operand.vmem [shape: bf16[32,1536], index: 0, kind: input, shape index: {}]   ;;  %s6983_s1 = inlined_call_operand.hbm [shape: bf16[6,256,1024], index: 1, kind: input, shape index: {}]   ;;  %s6984_s2 = inlined_call_operand.hbm [shape: bf16[4,768,512], index: 2, kind: input, shape index: {}]   ;;  %s6985_s3 = inlined_call_operand.hbm [shape: f32[1,1536], index: 3, kind: input, shape index: {}]   ;;  %s6986_s4 = inlined_call_operand.hbm [shape: f32[1,512], index: 4, kind: input, shape index: {}]   ;;  %s6987_s5 = inlined_call_operand.hbm [shape: f32[512,128], index: 5, kind: input, shape index: {}]   ;;  %s6988_s6 = inlined_call_operand.hbm [shape: f32[1,128], index: 6, kind: input, shape index: {}]   ;;  %s6989_s7 = inlined_call_operand.hbm [shape: f32[128,128], index: 7, kind: input, shape index: {}]   ;;  %s6990_s8 = inlined_call_operand.hbm [shape: f32[1,128], index: 8, kind: input, shape index: {}]   ;;  %s6991_s9 = inlined_call_operand.vmem [shape: f32[32,128], index: 9, kind: output, shape index: {}]  }
   0x1   :  { %15 = vsyncpa [#allocation9], 0 }
   0x2   :  { %16 = vsyncpa [#allocation12], 0 }
   0x3   :  { %17 = vsyncpa [#allocation15], 0  ;;  %s6031_s30 = smov [#allocation8]   ;;  %s6032_s11 = smov [#allocation11]  }
   0x4   :  { %s45_s10 = sshll.u32 %s6031_s30, 4  ;;  %s67_s12 = sshll.u32 %s6032_s11, 4  ;;  %s46_s10 = int_to_ptr.vmem [resolvable:$true] %s45_s10  ;;  %s68_s12 = int_to_ptr.vmem [resolvable:$true] %s67_s12 }
   0x5   :  { %s5887_s15 = scalar_lea.hbm %s6986_s4, 64 }
   0x6   :  { %p5888_p0 = scmp.ne.s32.totalorder %s6986_s4, %s5887_s15  ;;  %p5891_p1 = scmp.lt.u32.totalorder %s5887_s15, %s6986_s4 }
   0x8   :  { %p5893_p2 = pnand %p5891_p1, %p5888_p0 }
   0xa   :  { %5896 = shalt.err (!%p5893_p2)
}
   0xb   :  { %s5897_s20 = scalar_lea.vmem %s46_s10, 64  ;;  %p5902_p4 = scmp.lt.s32.totalorder %s46_s10, %s46_s10 }
   0xc   :  { %p5898_p3 = scmp.ne.s32.totalorder %s46_s10, %s5897_s20  ;;  %p5903_p5 = scmp.lt.s32.totalorder %s5897_s20, %s5897_s20 }
   0xe   :  { %p5904_p6 = por %p5903_p5, %p5902_p4 }
  0x10   :  { %p5905_p7 = pnand %p5904_p6, %p5898_p3 }
  0x12   :  { %5908 = shalt.err (!%p5905_p7)
}
  0x13   :  { %48 = dma.hbm_to_vmem [thread:$0]  %s6986_s4, 64, %s46_s10, [#allocation9]  }
  0x14   :  { %s5909_s25 = scalar_lea.hbm %s6988_s6, 16 }
  0x15   :  { %p5910_p8 = scmp.ne.s32.totalorder %s6988_s6, %s5909_s25  ;;  %p5913_p9 = scmp.lt.u32.totalorder %s5909_s25, %s6988_s6 }
  0x17   :  { %p5915_p10 = pnand %p5913_p9, %p5910_p8 }
  0x19   :  { %5918 = shalt.err (!%p5915_p10)
}
  0x1a   :  { %s5919_s30 = scalar_lea.vmem %s68_s12, 16  ;;  %s5923_s11 = scalar_lea.vmem %s68_s12, 32 }
  0x1b   :  { %p5920_p11 = scmp.ne.s32.totalorder %s68_s12, %s5919_s30  ;;  %p5924_p12 = scmp.lt.s32.totalorder %s68_s12, %s68_s12 }
  0x1c   :  { %p5925_p13 = scmp.lt.s32.totalorder %s5923_s11, %s5919_s30 }
  0x1e   :  { %p5926_p0 = por %p5925_p13, %p5924_p12 }
  0x20   :  { %p5927_p1 = pnand %p5926_p0, %p5920_p11 }
  0x22   :  { %5930 = shalt.err (!%p5927_p1)
}
  0x23   :  { %70 = dma.hbm_to_vmem [thread:$0]  %s6988_s6, 16, %s68_s12, [#allocation12]  }
  0x24   :  { %s6033_s13 = smov [#allocation6]   ;;  %s6034_s15 = smov [#allocation10]  }
  0x25   :  { %s35_s14 = sshll.u32 %s6033_s13, 4  ;;  %s54_s16 = sshll.u32 %s6034_s15, 4  ;;  %s36_s14 = int_to_ptr.vmem [resolvable:$true] %s35_s14  ;;  %s6127_s16 = int_to_ptr.vmem [resolvable:$true] %s54_s16 }
  0x26   :  { %s5931_s19 = scalar_lea.hbm %s6985_s3, 192 }
  0x27   :  { %p5932_p2 = scmp.ne.s32.totalorder %s6985_s3, %s5931_s19  ;;  %p5935_p3 = scmp.lt.u32.totalorder %s5931_s19, %s6985_s3 }
  0x29   :  { %p5937_p4 = pnand %p5935_p3, %p5932_p2 }
  0x2b   :  { %5940 = shalt.err (!%p5937_p4)
}
  0x2c   :  { %s5941_s6 = scalar_lea.vmem %s36_s14, 192  ;;  %p5946_p6 = scmp.lt.s32.totalorder %s36_s14, %s36_s14 }
  0x2d   :  { %p5942_p5 = scmp.ne.s32.totalorder %s36_s14, %s5941_s6  ;;  %p5947_p7 = scmp.lt.s32.totalorder %s5941_s6, %s5941_s6 }
  0x2f   :  { %p5948_p8 = por %p5947_p7, %p5946_p6 }
  0x31   :  { %p5949_p9 = pnand %p5948_p8, %p5942_p5 }
  0x33   :  { %5952 = shalt.err (!%p5949_p9)
}
  0x34   :  { %38 = dma.hbm_to_vmem [thread:$0]  %s6985_s3, 192, %s36_s14, [#allocation7]  }
  0x35   :  { %s5953_s27 = scalar_lea.hbm %s6987_s5, 8192 }
  0x36   :  { %p5954_p10 = scmp.ne.s32.totalorder %s6987_s5, %s5953_s27  ;;  %p5957_p11 = scmp.lt.u32.totalorder %s5953_s27, %s6987_s5 }
  0x38   :  { %p5959_p12 = pnand %p5957_p11, %p5954_p10 }
  0x3a   :  { %5962 = shalt.err (!%p5959_p12)
}
  0x3b   :  { %s5963_s4 = scalar_lea.vmem %s6127_s16, 8192  ;;  %p5968_p0 = scmp.lt.s32.totalorder %s6127_s16, %s6127_s16 }
  0x3c   :  { %p5964_p13 = scmp.ne.s32.totalorder %s6127_s16, %s5963_s4  ;;  %p5969_p1 = scmp.lt.s32.totalorder %s5963_s4, %s5963_s4 }
  0x3e   :  { %p5970_p2 = por %p5969_p1, %p5968_p0 }
  0x40   :  { %p5971_p3 = pnand %p5970_p2, %p5964_p13 }
  0x42   :  { %5974 = shalt.err (!%p5971_p3)
}
  0x43   :  { %s6035_s3 = smov 128   ;;  %s6036_s10 = smov 8  }
  0x44   :  { %60 = dma.hbm_to_vmem [thread:$0]  %s6987_s5, 8192, %s6127_s16, [#allocation9], %s6035_s3, %s6035_s3, %s6036_s10  }
  0x45   :  { %s6037_s15 = smov [#allocation13]   ;;  %s6038_s18 = smov [#allocation14]  }
  0x46   :  { %s76_s17 = sshll.u32 %s6037_s15, 4  ;;  %s89_s19 = sshll.u32 %s6038_s18, 4  ;;  %s77_s17 = int_to_ptr.vmem [resolvable:$true] %s76_s17  ;;  %s90_s19 = int_to_ptr.vmem [resolvable:$true] %s89_s19 }
  0x47   :  { %s5975_s22 = scalar_lea.hbm %s6989_s7, 2048 }
  0x48   :  { %p5976_p4 = scmp.ne.s32.totalorder %s6989_s7, %s5975_s22  ;;  %p5979_p5 = scmp.lt.u32.totalorder %s5975_s22, %s6989_s7 }
  0x4a   :  { %p5981_p6 = pnand %p5979_p5, %p5976_p4 }
  0x4c   :  { %5984 = shalt.err (!%p5981_p6)
}
  0x4d   :  { %s5985_s5 = scalar_lea.vmem %s77_s17, 2048  ;;  %p5990_p8 = scmp.lt.s32.totalorder %s77_s17, %s77_s17 }
  0x4e   :  { %p5986_p7 = scmp.ne.s32.totalorder %s77_s17, %s5985_s5  ;;  %p5991_p9 = scmp.lt.s32.totalorder %s5985_s5, %s5985_s5 }
  0x50   :  { %p5992_p10 = por %p5991_p9, %p5990_p8 }
  0x52   :  { %p5993_p11 = pnand %p5992_p10, %p5986_p7 }
  0x54   :  { %5996 = shalt.err (!%p5993_p11)
}
  0x55   :  { %82 = dma.hbm_to_vmem [thread:$0]  %s6989_s7, 2048, %s77_s17, [#allocation12], %s6035_s3, %s6035_s3, %s6036_s10  }
  0x56   :  { %s5997_s28 = scalar_lea.hbm %s6990_s8, 16 }
  0x57   :  { %p5998_p12 = scmp.ne.s32.totalorder %s6990_s8, %s5997_s28  ;;  %p6001_p13 = scmp.lt.u32.totalorder %s5997_s28, %s6990_s8 }
  0x59   :  { %p6003_p0 = pnand %p6001_p13, %p5998_p12 }
  0x5b   :  { %6006 = shalt.err (!%p6003_p0)
}
  0x5c   :  { %s6007_s13 = scalar_lea.vmem %s90_s19, 16  ;;  %s6011_s14 = scalar_lea.vmem %s90_s19, 32 }
  0x5d   :  { %p6008_p1 = scmp.ne.s32.totalorder %s90_s19, %s6007_s13  ;;  %p6012_p2 = scmp.lt.s32.totalorder %s90_s19, %s90_s19 }
  0x5e   :  { %p6013_p3 = scmp.lt.s32.totalorder %s6011_s14, %s6007_s13 }
  0x60   :  { %p6014_p4 = por %p6013_p3, %p6012_p2 }
  0x62   :  { %p6015_p5 = pnand %p6014_p4, %p6008_p1 }
  0x64   :  { %6018 = shalt.err (!%p6015_p5)
}
  0x65   :  { %92 = dma.hbm_to_vmem [thread:$0]  %s6990_s8, 16, %s90_s19, [#allocation15]  }
  0x66   :  { %6019 = dma.done.wait [#allocation7], 192  }
  0x67   :  { %6020 = vsyncadd [#allocation7], 4294967104 }
  0x68   :  { %6021 = dma.done.wait [#allocation9], 8256  }
  0x69   :  { %6022 = vsyncadd [#allocation9], 4294959040 }
  0x6a   :  { %6023 = dma.done.wait [#allocation12], 2064  }
  0x6b   :  { %6024 = vsyncadd [#allocation12], 4294965232 }
  0x6c   :  { %6025 = dma.done.wait [#allocation15], 16  }
  0x6d   :  { %6026 = vsyncadd [#allocation15], 4294967280 }
  0x6e   :  { %s149_s10 = sld [smem:[#allocation0]]   ;;  %s6039_s15 = smov [#allocation2]  }
  0x6f   :  { %s157_s17 = sshll.u32 %s6039_s15, 4  ;;  %s6040_s18 = smov 1024   ;;  %s158_s17 = int_to_ptr.vmem [resolvable:$true] %s157_s17 }
  0x70   :  { %161 = sst [smem:[#allocation17]] %s6040_s18  ;;  %s6041_s20 = smov 8  }
  0x71   :  { %163 = sst [smem:[#allocation17 + $0x1]] %s6040_s18  ;;  %s6042_s21 = smov 64  }
  0x72   :  { %165 = sst [smem:[#allocation17 + $0x2]] %s6041_s20  ;;  %s6043_s19 = smov 128  }
  0x73   :  { %167 = sst [smem:[#allocation17 + $0x3]] %s6042_s21  ;;  %s6044_s23 = smov 2  }
  0x74   :  { %s5399_s8 = sshll.u32 %s149_s10, 26  ;;  %169 = sst [smem:[#allocation17 + $0x4]] %s6043_s19 }
  0x75   :  { %s6182_s22 = sadd.s32 134217728, %s5399_s8  ;;  %171 = sst [smem:[#allocation17 + $0x5]] %s6044_s23 }
  0x76   :  { %s6045_s6 = smov 512   ;;  %175 = sst [smem:[#allocation17 + $0x7]] %s6042_s21 }
  0x77   :  { %173 = sst [smem:[#allocation17 + $0x6]] %s6045_s6  ;;  %s6046_s12 = smov 4  }
  0x78   :  { %177 = sst [smem:[#allocation17 + $0x8]] %s6046_s12  ;;  %s6047_s24 = smov [#allocation5]  }
  0x79   :  { %s6048_s5 = smov [#allocation16]   ;;  %s6049_s26 = smov [#allocation3]  }
  0x7a   :  { %179 = dma.general %s6983_s1, 98304, %s158_s17, %s6047_s24, %s6048_s5, [#allocation17], %s6182_s22, 0  }
  0x7b   :  { %196 = sst [smem:[#allocation19]] %s6045_s6  ;;  %s192_s27 = sshll.u32 %s6049_s26, 4  ;;  %s193_s27 = int_to_ptr.vmem [resolvable:$true] %s192_s27 }
  0x7c   :  { %198 = sst [smem:[#allocation19 + $0x1]] %s6045_s6  ;;  %s6050_s28 = smov 256  }
  0x7d   :  { %200 = sst [smem:[#allocation19 + $0x2]] %s6046_s12  ;;  %s6051_s29 = smov [#allocation5 + $0x1]  }
  0x7e   :  { %202 = sst [smem:[#allocation19 + $0x3]] %s6042_s21  ;;  %s6052_s30 = smov [#allocation18]  }
  0x7f   :  { %204 = sst [smem:[#allocation19 + $0x4]] %s6043_s19 }
  0x80   :  { %206 = sst [smem:[#allocation19 + $0x5]] %s6044_s23 }
  0x81   :  { %208 = sst [smem:[#allocation19 + $0x6]] %s6050_s28 }
  0x82   :  { %210 = sst [smem:[#allocation19 + $0x7]] %s6042_s21 }
  0x83   :  { %212 = sst [smem:[#allocation19 + $0x8]] %s6046_s12 }
  0x84   :  { %214 = dma.general %s6984_s2, 98304, %s193_s27, %s6051_s29, %s6052_s30, [#allocation19], %s6182_s22, 0  }
  0x85   :  { %6027 = dma.done.wait [#allocation5], 98304 }
  0x86   :  { %6028 = vsyncadd [#allocation5], 4294868992  ;;  %v225_v0 = vld [vmem:[#allocation2 + $0x8] sm:$0xff]  ;;  %v227_v1 = vld [vmem:[#allocation2 + $0x18] sm:$0xff] }
  0x87   :  { %v224_v2 = vld [vmem:[#allocation2] sm:$0xff]  ;;  %372 = vmatprep.subr.bf16.mxu0 %v225_v0  ;;  %425 = vmatprep.subr.bf16.mxu1 %v227_v1  ;;  %v226_v3 = vld [vmem:[#allocation2 + $0x10] sm:$0xff]  ;;  %v233_v4 = vld [vmem:[#allocation2 + $0x48] sm:$0xff] }
  0x88   :  { %v235_v5 = vld [vmem:[#allocation2 + $0x58] sm:$0xff]  ;;  %373 = vmatpush1.bf16.msra.mxu0 %v224_v2  ;;  %426 = vmatpush1.bf16.msra.mxu1 %v226_v3  ;;  %v232_v6 = vld [vmem:[#allocation2 + $0x40] sm:$0xff]  ;;  %v234_v7 = vld [vmem:[#allocation2 + $0x50] sm:$0xff] }
  0x89   :  { %374 = vmatprep.subr.bf16.mxu0 %v233_v4  ;;  %427 = vmatprep.subr.bf16.mxu1 %v235_v5  ;;  %v241_v8 = vld [vmem:[#allocation2 + $0x88] sm:$0xff]  ;;  %v243_v9 = vld [vmem:[#allocation2 + $0x98] sm:$0xff]  ;;  %v240_v10 = vld [vmem:[#allocation2 + $0x80] sm:$0xff] }
  0x8a   :  { %v242_v11 = vld [vmem:[#allocation2 + $0x90] sm:$0xff]  ;;  %v249_v12 = vld [vmem:[#allocation2 + $0xc8] sm:$0xff]  ;;  %v251_v13 = vld [vmem:[#allocation2 + $0xd8] sm:$0xff] }
  0x8b   :  { %v248_v14 = vld [vmem:[#allocation2 + $0xc0] sm:$0xff]  ;;  %v250_v15 = vld [vmem:[#allocation2 + $0xd0] sm:$0xff]  ;;  %v257_v16 = vld [vmem:[#allocation2 + $0x108] sm:$0xff] }
  0x8c   :  { %375 = vmatpush1.bf16.msra.mxu0 %v232_v6  ;;  %428 = vmatpush1.bf16.msra.mxu1 %v234_v7  ;;  %v259_v17 = vld [vmem:[#allocation2 + $0x118] sm:$0xff]  ;;  %v256_v18 = vld [vmem:[#allocation2 + $0x100] sm:$0xff]  ;;  %v258_v19 = vld [vmem:[#allocation2 + $0x110] sm:$0xff] }
  0x8d   :  { %376 = vmatprep.subr.bf16.mxu0 %v241_v8  ;;  %429 = vmatprep.subr.bf16.mxu1 %v243_v9  ;;  %v265_v20 = vld [vmem:[#allocation2 + $0x148] sm:$0xff]  ;;  %v267_v21 = vld [vmem:[#allocation2 + $0x158] sm:$0xff]  ;;  %v264_v22 = vld [vmem:[#allocation2 + $0x140] sm:$0xff] }
  0x8e   :  { %v266_v23 = vld [vmem:[#allocation2 + $0x150] sm:$0xff]  ;;  %v273_v24 = vld [vmem:[#allocation2 + $0x188] sm:$0xff]  ;;  %v275_v25 = vld [vmem:[#allocation2 + $0x198] sm:$0xff] }
  0x8f   :  { %v6195_v26 = vld [vmem:[%s6982_s0 + $0x4] ss:$48 sps:$4 sm:$0xff]   ;;  %v281_v29 = vld [vmem:[#allocation2 + $0x1c8] sm:$0xff]  ;;  %v283_v30 = vld [vmem:[#allocation2 + $0x1d8] sm:$0xff] }
  0x90   :  { %377 = vmatpush1.bf16.msra.mxu0 %v240_v10  ;;  %430 = vmatpush1.bf16.msra.mxu1 %v242_v11  ;;  %v272_v27 = vld [vmem:[#allocation2 + $0x180] sm:$0xff]  ;;  %v274_v28 = vld [vmem:[#allocation2 + $0x190] sm:$0xff]  ;;  %v289_v33 = vld [vmem:[#allocation2 + $0x208] sm:$0xff] }
  0x91   :  { %378 = vmatprep.subr.bf16.mxu0 %v249_v12  ;;  %431 = vmatprep.subr.bf16.mxu1 %v251_v13  ;;  %v280_v31 = vld [vmem:[#allocation2 + $0x1c0] sm:$0xff]  ;;  %v282_v32 = vld [vmem:[#allocation2 + $0x1d0] sm:$0xff]  ;;  %v291_v34 = vld [vmem:[#allocation2 + $0x218] sm:$0xff] }
  0x92   :  { %404 = vmatprep.mubr.bf16.mxu0 %v6195_v26  ;;  %457 = vmatprep.mubr.bf16.mxu1 %v6195_v26  ;;  %v288_v35 = vld [vmem:[#allocation2 + $0x200] sm:$0xff]  ;;  %v290_v36 = vld [vmem:[#allocation2 + $0x210] sm:$0xff]  ;;  %v297_v37 = vld [vmem:[#allocation2 + $0x248] sm:$0xff] }
  0x93   :  { %v299_v38 = vld [vmem:[#allocation2 + $0x258] sm:$0xff]  ;;  %v296_v39 = vld [vmem:[#allocation2 + $0x240] sm:$0xff]  ;;  %v298_v40 = vld [vmem:[#allocation2 + $0x250] sm:$0xff] }
  0x94   :  { %379 = vmatpush1.bf16.msra.mxu0 %v248_v14  ;;  %432 = vmatpush1.bf16.msra.mxu1 %v250_v15  ;;  %v305_v41 = vld [vmem:[#allocation2 + $0x288] sm:$0xff]  ;;  %v307_v42 = vld [vmem:[#allocation2 + $0x298] sm:$0xff]  ;;  %v304_v43 = vld [vmem:[#allocation2 + $0x280] sm:$0xff] }
  0x95   :  { %380 = vmatprep.subr.bf16.mxu0 %v257_v16  ;;  %433 = vmatprep.subr.bf16.mxu1 %v259_v17  ;;  %v306_v44 = vld [vmem:[#allocation2 + $0x290] sm:$0xff]  ;;  %v313_v45 = vld [vmem:[#allocation2 + $0x2c8] sm:$0xff]  ;;  %v315_v46 = vld [vmem:[#allocation2 + $0x2d8] sm:$0xff] }
  0x96   :  { %v312_v47 = vld [vmem:[#allocation2 + $0x2c0] sm:$0xff]  ;;  %v314_v48 = vld [vmem:[#allocation2 + $0x2d0] sm:$0xff]  ;;  %v321_v49 = vld [vmem:[#allocation2 + $0x308] sm:$0xff] }
  0x97   :  { %v323_v50 = vld [vmem:[#allocation2 + $0x318] sm:$0xff]  ;;  %v320_v51 = vld [vmem:[#allocation2 + $0x300] sm:$0xff]  ;;  %v322_v52 = vld [vmem:[#allocation2 + $0x310] sm:$0xff] }
  0x98   :  { %381 = vmatpush1.bf16.msra.mxu0 %v256_v18  ;;  %434 = vmatpush1.bf16.msra.mxu1 %v258_v19  ;;  %v329_v53 = vld [vmem:[#allocation2 + $0x348] sm:$0xff]  ;;  %v331_v54 = vld [vmem:[#allocation2 + $0x358] sm:$0xff]  ;;  %v328_v55 = vld [vmem:[#allocation2 + $0x340] sm:$0xff] }
  0x99   :  { %382 = vmatprep.subr.bf16.mxu0 %v265_v20  ;;  %435 = vmatprep.subr.bf16.mxu1 %v267_v21  ;;  %v330_v56 = vld [vmem:[#allocation2 + $0x350] sm:$0xff]  ;;  %v337_v57 = vld [vmem:[#allocation2 + $0x388] sm:$0xff]  ;;  %v339_v58 = vld [vmem:[#allocation2 + $0x398] sm:$0xff] }
  0x9a   :  { %v336_v59 = vld [vmem:[#allocation2 + $0x380] sm:$0xff]  ;;  %v338_v60 = vld [vmem:[#allocation2 + $0x390] sm:$0xff]  ;;  %v345_v61 = vld [vmem:[#allocation2 + $0x3c8] sm:$0xff] }
  0x9b   :  { %v347_v62 = vld [vmem:[#allocation2 + $0x3d8] sm:$0xff]  ;;  %v344_v63 = vld [vmem:[#allocation2 + $0x3c0] sm:$0xff]  ;;  %v346_v0 = vld [vmem:[#allocation2 + $0x3d0] sm:$0xff] }
  0x9c   :  { %383 = vmatpush1.bf16.msra.mxu0 %v264_v22  ;;  %436 = vmatpush1.bf16.msra.mxu1 %v266_v23  ;;  %v229_v1 = vld [vmem:[#allocation2 + $0x28] sm:$0xff]  ;;  %v231_v2 = vld [vmem:[#allocation2 + $0x38] sm:$0xff]  ;;  %v6202_v3 = vld [vmem:[%s6982_s0] ss:$48 sps:$4 sm:$0xff]  }
  0x9d   :  { %384 = vmatprep.subr.bf16.mxu0 %v273_v24  ;;  %437 = vmatprep.subr.bf16.mxu1 %v275_v25  ;;  %v228_v4 = vld [vmem:[#allocation2 + $0x20] sm:$0xff]  ;;  %v230_v5 = vld [vmem:[#allocation2 + $0x30] sm:$0xff]  ;;  %v237_v6 = vld [vmem:[#allocation2 + $0x68] sm:$0xff] }
  0x9e   :  { %v239_v7 = vld [vmem:[#allocation2 + $0x78] sm:$0xff]  ;;  %v6207_v8 = vld [vmem:[%s6982_s0 + $0x64] ss:$48 sps:$4 sm:$0xff]   ;;  %v245_v11 = vld [vmem:[#allocation2 + $0xa8] sm:$0xff] }
  0x9f   :  { %v236_v9 = vld [vmem:[#allocation2 + $0x60] sm:$0xff]  ;;  %v238_v10 = vld [vmem:[#allocation2 + $0x70] sm:$0xff]  ;;  %v247_v12 = vld [vmem:[#allocation2 + $0xb8] sm:$0xff] }
  0xa0   :  { %385 = vmatpush1.bf16.msra.mxu0 %v272_v27  ;;  %438 = vmatpush1.bf16.msra.mxu1 %v274_v28  ;;  %v6216_v13 = vld [vmem:[%s6982_s0 + $0x60] ss:$48 sps:$4 sm:$0xff]   ;;  %v253_v16 = vld [vmem:[#allocation2 + $0xe8] sm:$0xff]  ;;  %v255_v17 = vld [vmem:[#allocation2 + $0xf8] sm:$0xff] }
  0xa1   :  { %386 = vmatprep.subr.bf16.mxu0 %v281_v29  ;;  %439 = vmatprep.subr.bf16.mxu1 %v283_v30  ;;  %v244_v14 = vld [vmem:[#allocation2 + $0xa0] sm:$0xff]  ;;  %v246_v15 = vld [vmem:[#allocation2 + $0xb0] sm:$0xff]  ;;  %v261_v20 = vld [vmem:[#allocation2 + $0x128] sm:$0xff] }
  0xa2   :  { %v252_v18 = vld [vmem:[#allocation2 + $0xe0] sm:$0xff]  ;;  %v254_v19 = vld [vmem:[#allocation2 + $0xf0] sm:$0xff]  ;;  %v263_v21 = vld [vmem:[#allocation2 + $0x138] sm:$0xff] }
  0xa3   :  { %v260_v22 = vld [vmem:[#allocation2 + $0x120] sm:$0xff]  ;;  %v262_v23 = vld [vmem:[#allocation2 + $0x130] sm:$0xff]  ;;  %v269_v24 = vld [vmem:[#allocation2 + $0x168] sm:$0xff] }
  0xa4   :  { %387 = vmatpush1.bf16.msra.mxu0 %v280_v31  ;;  %440 = vmatpush1.bf16.msra.mxu1 %v282_v32  ;;  %v271_v25 = vld [vmem:[#allocation2 + $0x178] sm:$0xff]  ;;  %v268_v27 = vld [vmem:[#allocation2 + $0x160] sm:$0xff]  ;;  %v270_v28 = vld [vmem:[#allocation2 + $0x170] sm:$0xff] }
  0xa5   :  { %388 = vmatprep.subr.bf16.mxu0 %v289_v33  ;;  %441 = vmatprep.subr.bf16.mxu1 %v291_v34  ;;  %v277_v29 = vld [vmem:[#allocation2 + $0x1a8] sm:$0xff]  ;;  %v279_v30 = vld [vmem:[#allocation2 + $0x1b8] sm:$0xff]  ;;  %v278_v31 = vld [vmem:[#allocation2 + $0x1b0] sm:$0xff] }
  0xa6   :  { %v285_v32 = vld [vmem:[#allocation2 + $0x1e8] sm:$0xff]  ;;  %v287_v33 = vld [vmem:[#allocation2 + $0x1f8] sm:$0xff]  ;;  %v284_v34 = vld [vmem:[#allocation2 + $0x1e0] sm:$0xff] }
  0xa8   :  { %389 = vmatpush1.bf16.msra.mxu0 %v288_v35  ;;  %442 = vmatpush1.bf16.msra.mxu1 %v290_v36  ;;  %v286_v35 = vld [vmem:[#allocation2 + $0x1f0] sm:$0xff]  ;;  %v293_v36 = vld [vmem:[#allocation2 + $0x228] sm:$0xff] }
  0xa9   :  { %390 = vmatprep.subr.bf16.mxu0 %v297_v37  ;;  %443 = vmatprep.subr.bf16.mxu1 %v299_v38  ;;  %v295_v37 = vld [vmem:[#allocation2 + $0x238] sm:$0xff]  ;;  %v292_v38 = vld [vmem:[#allocation2 + $0x220] sm:$0xff] }
  0xac   :  { %391 = vmatpush1.bf16.msra.mxu0 %v296_v39  ;;  %444 = vmatpush1.bf16.msra.mxu1 %v298_v40  ;;  %v294_v39 = vld [vmem:[#allocation2 + $0x230] sm:$0xff]  ;;  %v301_v40 = vld [vmem:[#allocation2 + $0x268] sm:$0xff] }
  0xad   :  { %392 = vmatprep.subr.bf16.mxu0 %v305_v41  ;;  %445 = vmatprep.subr.bf16.mxu1 %v307_v42  ;;  %v303_v41 = vld [vmem:[#allocation2 + $0x278] sm:$0xff]  ;;  %v300_v42 = vld [vmem:[#allocation2 + $0x260] sm:$0xff] }
  0xb0   :  { %393 = vmatpush1.bf16.msra.mxu0 %v304_v43  ;;  %446 = vmatpush1.bf16.msra.mxu1 %v306_v44  ;;  %v302_v43 = vld [vmem:[#allocation2 + $0x270] sm:$0xff]  ;;  %v309_v44 = vld [vmem:[#allocation2 + $0x2a8] sm:$0xff] }
  0xb1   :  { %394 = vmatprep.subr.bf16.mxu0 %v313_v45  ;;  %447 = vmatprep.subr.bf16.mxu1 %v315_v46  ;;  %v311_v45 = vld [vmem:[#allocation2 + $0x2b8] sm:$0xff]  ;;  %v308_v46 = vld [vmem:[#allocation2 + $0x2a0] sm:$0xff] }
  0xb4   :  { %395 = vmatpush1.bf16.msra.mxu0 %v312_v47  ;;  %448 = vmatpush1.bf16.msra.mxu1 %v314_v48  ;;  %v310_v47 = vld [vmem:[#allocation2 + $0x2b0] sm:$0xff]  ;;  %v317_v48 = vld [vmem:[#allocation2 + $0x2e8] sm:$0xff] }
  0xb5   :  { %396 = vmatprep.subr.bf16.mxu0 %v321_v49  ;;  %449 = vmatprep.subr.bf16.mxu1 %v323_v50  ;;  %v319_v49 = vld [vmem:[#allocation2 + $0x2f8] sm:$0xff]  ;;  %v316_v50 = vld [vmem:[#allocation2 + $0x2e0] sm:$0xff] }
  0xb8   :  { %397 = vmatpush1.bf16.msra.mxu0 %v320_v51  ;;  %450 = vmatpush1.bf16.msra.mxu1 %v322_v52  ;;  %v318_v51 = vld [vmem:[#allocation2 + $0x2f0] sm:$0xff]  ;;  %v325_v52 = vld [vmem:[#allocation2 + $0x328] sm:$0xff] }
  0xb9   :  { %398 = vmatprep.subr.bf16.mxu0 %v329_v53  ;;  %451 = vmatprep.subr.bf16.mxu1 %v331_v54  ;;  %v327_v53 = vld [vmem:[#allocation2 + $0x338] sm:$0xff]  ;;  %v324_v54 = vld [vmem:[#allocation2 + $0x320] sm:$0xff] }
  0xbc   :  { %399 = vmatpush1.bf16.msra.mxu0 %v328_v55  ;;  %452 = vmatpush1.bf16.msra.mxu1 %v330_v56  ;;  %v326_v55 = vld [vmem:[#allocation2 + $0x330] sm:$0xff]  ;;  %v333_v56 = vld [vmem:[#allocation2 + $0x368] sm:$0xff] }
  0xbd   :  { %400 = vmatprep.subr.bf16.mxu0 %v337_v57  ;;  %453 = vmatprep.subr.bf16.mxu1 %v339_v58  ;;  %v335_v57 = vld [vmem:[#allocation2 + $0x378] sm:$0xff]  ;;  %v332_v58 = vld [vmem:[#allocation2 + $0x360] sm:$0xff] }
  0xc0   :  { %401 = vmatpush1.bf16.msra.mxu0 %v336_v59  ;;  %454 = vmatpush1.bf16.msra.mxu1 %v338_v60  ;;  %v334_v59 = vld [vmem:[#allocation2 + $0x370] sm:$0xff]  ;;  %v341_v60 = vld [vmem:[#allocation2 + $0x3a8] sm:$0xff] }
  0xc1   :  { %402 = vmatprep.subr.bf16.mxu0 %v345_v61  ;;  %455 = vmatprep.subr.bf16.mxu1 %v347_v62  ;;  %v343_v61 = vld [vmem:[#allocation2 + $0x3b8] sm:$0xff]  ;;  %v340_v62 = vld [vmem:[#allocation2 + $0x3a0] sm:$0xff] }
  0xc4   :  { %403 = vmatpush1.bf16.msra.mxu0 %v344_v63  ;;  %456 = vmatpush1.bf16.msra.mxu1 %v346_v0  ;;  %v342_v63 = vld [vmem:[#allocation2 + $0x3b0] sm:$0xff]  ;;  %v349_v0 = vld [vmem:[#allocation2 + $0x3e8] sm:$0xff] }
  0xc5   :  { %478 = vmatprep.subr.bf16.mxu0 %v229_v1  ;;  %531 = vmatprep.subr.bf16.mxu1 %v231_v2  ;;  %v351_v1 = vld [vmem:[#allocation2 + $0x3f8] sm:$0xff]  ;;  %v348_v2 = vld [vmem:[#allocation2 + $0x3e0] sm:$0xff] }
  0xc7   :  { %405 = vmatmul.mubr.bf16.vlgmr.msra.gmra.mrb[0].mxu0 %v6202_v3  ;;  %458 = vmatmul.mubr.bf16.vlgmr.msra.gmra.mrb[0].mxu1 %v6202_v3 }
  0xc8   :  { %479 = vmatpush1.bf16.msra.mxu0 %v228_v4  ;;  %532 = vmatpush1.bf16.msra.mxu1 %v230_v5  ;;  %v350_v4 = vld [vmem:[#allocation2 + $0x3f0] sm:$0xff]  ;;  %v650_v5 = vld [vmem:[#allocation2 + $0x408] sm:$0xff] }
  0xc9   :  { %480 = vmatprep.subr.bf16.mxu0 %v237_v6  ;;  %533 = vmatprep.subr.bf16.mxu1 %v239_v7  ;;  %v652_v6 = vld [vmem:[#allocation2 + $0x418] sm:$0xff]  ;;  %v649_v7 = vld [vmem:[#allocation2 + $0x400] sm:$0xff] }
  0xca   :  { %414 = vmatprep.mubr.bf16.mxu0 %v6207_v8  ;;  %467 = vmatprep.mubr.bf16.mxu1 %v6207_v8 }
  0xcc   :  { %481 = vmatpush1.bf16.msra.mxu0 %v236_v9  ;;  %534 = vmatpush1.bf16.msra.mxu1 %v238_v10  ;;  %v651_v9 = vld [vmem:[#allocation2 + $0x410] sm:$0xff]  ;;  %v658_v10 = vld [vmem:[#allocation2 + $0x448] sm:$0xff] }
  0xcd   :  { %482 = vmatprep.subr.bf16.mxu0 %v245_v11  ;;  %535 = vmatprep.subr.bf16.mxu1 %v247_v12  ;;  %v660_v11 = vld [vmem:[#allocation2 + $0x458] sm:$0xff]  ;;  %v657_v12 = vld [vmem:[#allocation2 + $0x440] sm:$0xff] }
  0xcf   :  { %415 = vmatmul.mubr.bf16.gmra.mrb[4].mxu0 %v6216_v13  ;;  %468 = vmatmul.mubr.bf16.gmra.mrb[4].mxu1 %v6216_v13 }
  0xd0   :  { %483 = vmatpush1.bf16.msra.mxu0 %v244_v14  ;;  %536 = vmatpush1.bf16.msra.mxu1 %v246_v15  ;;  %v659_v14 = vld [vmem:[#allocation2 + $0x450] sm:$0xff]  ;;  %v666_v15 = vld [vmem:[#allocation2 + $0x488] sm:$0xff] }
  0xd1   :  { %484 = vmatprep.subr.bf16.mxu0 %v253_v16  ;;  %537 = vmatprep.subr.bf16.mxu1 %v255_v17  ;;  %v668_v16 = vld [vmem:[#allocation2 + $0x498] sm:$0xff]  ;;  %v665_v17 = vld [vmem:[#allocation2 + $0x480] sm:$0xff] }
  0xd2   :  { %510 = vmatprep.mubr.bf16.mxu0 %v6195_v26  ;;  %563 = vmatprep.mubr.bf16.mxu1 %v6195_v26  ;;  %v276_v26 = vld [vmem:[#allocation2 + $0x1a0] sm:$0xff] }
  0xd4   :  { %485 = vmatpush1.bf16.msra.mxu0 %v252_v18  ;;  %538 = vmatpush1.bf16.msra.mxu1 %v254_v19  ;;  %v667_v18 = vld [vmem:[#allocation2 + $0x490] sm:$0xff]  ;;  %v674_v19 = vld [vmem:[#allocation2 + $0x4c8] sm:$0xff] }
  0xd5   :  { %486 = vmatprep.subr.bf16.mxu0 %v261_v20  ;;  %539 = vmatprep.subr.bf16.mxu1 %v263_v21  ;;  %v6229_v20 = vld [vmem:[%s6982_s0 + $0xc] ss:$48 sps:$4 sm:$0xff]   ;;  %v675_v21 = vld [vmem:[#allocation2 + $0x4d0] sm:$0xff] }
  0xd8   :  { %487 = vmatpush1.bf16.msra.mxu0 %v260_v22  ;;  %540 = vmatpush1.bf16.msra.mxu1 %v262_v23  ;;  %v682_v22 = vld [vmem:[#allocation2 + $0x508] sm:$0xff]  ;;  %v684_v23 = vld [vmem:[#allocation2 + $0x518] sm:$0xff] }
  0xd9   :  { %488 = vmatprep.subr.bf16.mxu0 %v269_v24  ;;  %541 = vmatprep.subr.bf16.mxu1 %v271_v25  ;;  %v681_v24 = vld [vmem:[#allocation2 + $0x500] sm:$0xff]  ;;  %v683_v25 = vld [vmem:[#allocation2 + $0x510] sm:$0xff] }
  0xdc   :  { %489 = vmatpush1.bf16.msra.mxu0 %v268_v27  ;;  %542 = vmatpush1.bf16.msra.mxu1 %v270_v28  ;;  %v690_v27 = vld [vmem:[#allocation2 + $0x548] sm:$0xff]  ;;  %v689_v28 = vld [vmem:[#allocation2 + $0x540] sm:$0xff] }
  0xdd   :  { %490 = vmatprep.subr.bf16.mxu0 %v277_v29  ;;  %543 = vmatprep.subr.bf16.mxu1 %v279_v30  ;;  %v691_v29 = vld [vmem:[#allocation2 + $0x550] sm:$0xff]  ;;  %v698_v30 = vld [vmem:[#allocation2 + $0x588] sm:$0xff] }
  0xe0   :  { %491 = vmatpush1.bf16.msra.mxu0 %v276_v26  ;;  %544 = vmatpush1.bf16.msra.mxu1 %v278_v31  ;;  %v700_v26 = vld [vmem:[#allocation2 + $0x598] sm:$0xff]  ;;  %v697_v31 = vld [vmem:[#allocation2 + $0x580] sm:$0xff] }
  0xe1   :  { %492 = vmatprep.subr.bf16.mxu0 %v285_v32  ;;  %545 = vmatprep.subr.bf16.mxu1 %v287_v33  ;;  %v699_v32 = vld [vmem:[#allocation2 + $0x590] sm:$0xff]  ;;  %v706_v33 = vld [vmem:[#allocation2 + $0x5c8] sm:$0xff] }
  0xe4   :  { %493 = vmatpush1.bf16.msra.mxu0 %v284_v34  ;;  %546 = vmatpush1.bf16.msra.mxu1 %v286_v35  ;;  %v708_v34 = vld [vmem:[#allocation2 + $0x5d8] sm:$0xff]  ;;  %v705_v35 = vld [vmem:[#allocation2 + $0x5c0] sm:$0xff] }
  0xe5   :  { %494 = vmatprep.subr.bf16.mxu0 %v293_v36  ;;  %547 = vmatprep.subr.bf16.mxu1 %v295_v37  ;;  %v707_v36 = vld [vmem:[#allocation2 + $0x5d0] sm:$0xff]  ;;  %v714_v37 = vld [vmem:[#allocation2 + $0x608] sm:$0xff] }
  0xe8   :  { %495 = vmatpush1.bf16.msra.mxu0 %v292_v38  ;;  %548 = vmatpush1.bf16.msra.mxu1 %v294_v39  ;;  %v716_v38 = vld [vmem:[#allocation2 + $0x618] sm:$0xff]  ;;  %v713_v39 = vld [vmem:[#allocation2 + $0x600] sm:$0xff] }
  0xe9   :  { %496 = vmatprep.subr.bf16.mxu0 %v301_v40  ;;  %549 = vmatprep.subr.bf16.mxu1 %v303_v41  ;;  %v715_v40 = vld [vmem:[#allocation2 + $0x610] sm:$0xff]  ;;  %v722_v41 = vld [vmem:[#allocation2 + $0x648] sm:$0xff] }
  0xec   :  { %497 = vmatpush1.bf16.msra.mxu0 %v300_v42  ;;  %550 = vmatpush1.bf16.msra.mxu1 %v302_v43  ;;  %v724_v42 = vld [vmem:[#allocation2 + $0x658] sm:$0xff]  ;;  %v721_v43 = vld [vmem:[#allocation2 + $0x640] sm:$0xff] }
  0xed   :  { %498 = vmatprep.subr.bf16.mxu0 %v309_v44  ;;  %551 = vmatprep.subr.bf16.mxu1 %v311_v45  ;;  %v723_v44 = vld [vmem:[#allocation2 + $0x650] sm:$0xff]  ;;  %v730_v45 = vld [vmem:[#allocation2 + $0x688] sm:$0xff] }
  0xf0   :  { %499 = vmatpush1.bf16.msra.mxu0 %v308_v46  ;;  %552 = vmatpush1.bf16.msra.mxu1 %v310_v47  ;;  %v732_v46 = vld [vmem:[#allocation2 + $0x698] sm:$0xff]  ;;  %v729_v47 = vld [vmem:[#allocation2 + $0x680] sm:$0xff] }
  0xf1   :  { %500 = vmatprep.subr.bf16.mxu0 %v317_v48  ;;  %553 = vmatprep.subr.bf16.mxu1 %v319_v49  ;;  %v731_v48 = vld [vmem:[#allocation2 + $0x690] sm:$0xff]  ;;  %v738_v49 = vld [vmem:[#allocation2 + $0x6c8] sm:$0xff] }
  0xf4   :  { %501 = vmatpush1.bf16.msra.mxu0 %v316_v50  ;;  %554 = vmatpush1.bf16.msra.mxu1 %v318_v51  ;;  %v740_v50 = vld [vmem:[#allocation2 + $0x6d8] sm:$0xff]  ;;  %v737_v51 = vld [vmem:[#allocation2 + $0x6c0] sm:$0xff] }
  0xf5   :  { %502 = vmatprep.subr.bf16.mxu0 %v325_v52  ;;  %555 = vmatprep.subr.bf16.mxu1 %v327_v53  ;;  %v739_v52 = vld [vmem:[#allocation2 + $0x6d0] sm:$0xff]  ;;  %v746_v53 = vld [vmem:[#allocation2 + $0x708] sm:$0xff] }
  0xf8   :  { %503 = vmatpush1.bf16.msra.mxu0 %v324_v54  ;;  %556 = vmatpush1.bf16.msra.mxu1 %v326_v55  ;;  %v748_v54 = vld [vmem:[#allocation2 + $0x718] sm:$0xff]  ;;  %v745_v55 = vld [vmem:[#allocation2 + $0x700] sm:$0xff] }
  0xf9   :  { %504 = vmatprep.subr.bf16.mxu0 %v333_v56  ;;  %557 = vmatprep.subr.bf16.mxu1 %v335_v57  ;;  %v747_v56 = vld [vmem:[#allocation2 + $0x710] sm:$0xff]  ;;  %v754_v57 = vld [vmem:[#allocation2 + $0x748] sm:$0xff] }
  0xfc   :  { %505 = vmatpush1.bf16.msra.mxu0 %v332_v58  ;;  %558 = vmatpush1.bf16.msra.mxu1 %v334_v59  ;;  %v756_v58 = vld [vmem:[#allocation2 + $0x758] sm:$0xff]  ;;  %v753_v59 = vld [vmem:[#allocation2 + $0x740] sm:$0xff] }
  0xfd   :  { %506 = vmatprep.subr.bf16.mxu0 %v341_v60  ;;  %559 = vmatprep.subr.bf16.mxu1 %v343_v61  ;;  %v755_v60 = vld [vmem:[#allocation2 + $0x750] sm:$0xff]  ;;  %v762_v61 = vld [vmem:[#allocation2 + $0x788] sm:$0xff] }
 0x100   :  { %507 = vmatpush1.bf16.msra.mxu0 %v340_v62  ;;  %560 = vmatpush1.bf16.msra.mxu1 %v342_v63  ;;  %v764_v62 = vld [vmem:[#allocation2 + $0x798] sm:$0xff]  ;;  %v761_v63 = vld [vmem:[#allocation2 + $0x780] sm:$0xff] }
 0x101   :  { %508 = vmatprep.subr.bf16.mxu0 %v349_v0  ;;  %561 = vmatprep.subr.bf16.mxu1 %v351_v1  ;;  %v763_v0 = vld [vmem:[#allocation2 + $0x790] sm:$0xff]  ;;  %v770_v1 = vld [vmem:[#allocation2 + $0x7c8] sm:$0xff] }
 0x104   :  { %509 = vmatpush1.bf16.msra.mxu0 %v348_v2  ;;  %562 = vmatpush1.bf16.msra.mxu1 %v350_v4  ;;  %v772_v2 = vld [vmem:[#allocation2 + $0x7d8] sm:$0xff]  ;;  %v769_v4 = vld [vmem:[#allocation2 + $0x7c0] sm:$0xff] }
 0x105   :  { %797 = vmatprep.subr.bf16.mxu0 %v650_v5  ;;  %850 = vmatprep.subr.bf16.mxu1 %v652_v6  ;;  %v771_v5 = vld [vmem:[#allocation2 + $0x7d0] sm:$0xff]  ;;  %v654_v6 = vld [vmem:[#allocation2 + $0x428] sm:$0xff] }
 0x107   :  { %511 = vmatmul.mubr.bf16.vlgmr.msra.gmra.mrb[8].mxu0 %v6202_v3  ;;  %564 = vmatmul.mubr.bf16.vlgmr.msra.gmra.mrb[8].mxu1 %v6202_v3  ;;  %v676_v3 = vld [vmem:[#allocation2 + $0x4d8] sm:$0xff] }
 0x108   :  { %798 = vmatpush1.bf16.msra.mxu0 %v649_v7  ;;  %851 = vmatpush1.bf16.msra.mxu1 %v651_v9  ;;  %v656_v7 = vld [vmem:[#allocation2 + $0x438] sm:$0xff] }
 0x109   :  { %799 = vmatprep.subr.bf16.mxu0 %v658_v10  ;;  %852 = vmatprep.subr.bf16.mxu1 %v660_v11  ;;  %v6238_v9 = vld [vmem:[%s6982_s0 + $0x8] ss:$48 sps:$4 sm:$0xff]   ;;  %v653_v10 = vld [vmem:[#allocation2 + $0x420] sm:$0xff]  ;;  %v655_v11 = vld [vmem:[#allocation2 + $0x430] sm:$0xff] }
 0x10a   :  { %520 = vmatprep.mubr.bf16.mxu0 %v6207_v8  ;;  %573 = vmatprep.mubr.bf16.mxu1 %v6207_v8  ;;  %v673_v8 = vld [vmem:[#allocation2 + $0x4c0] sm:$0xff] }
 0x10c   :  { %800 = vmatpush1.bf16.msra.mxu0 %v657_v12  ;;  %853 = vmatpush1.bf16.msra.mxu1 %v659_v14  ;;  %v662_v12 = vld [vmem:[#allocation2 + $0x468] sm:$0xff]  ;;  %v664_v14 = vld [vmem:[#allocation2 + $0x478] sm:$0xff] }
 0x10d   :  { %801 = vmatprep.subr.bf16.mxu0 %v666_v15  ;;  %854 = vmatprep.subr.bf16.mxu1 %v668_v16  ;;  %v6243_v15 = vld [vmem:[%s6982_s0 + $0x6c] ss:$48 sps:$4 sm:$0xff]   ;;  %v661_v16 = vld [vmem:[#allocation2 + $0x460] sm:$0xff] }
 0x10f   :  { %521 = vmatmul.mubr.bf16.gmra.mrb[12].mxu0 %v6216_v13  ;;  %574 = vmatmul.mubr.bf16.gmra.mrb[12].mxu1 %v6216_v13  ;;  %v692_v13 = vld [vmem:[#allocation2 + $0x558] sm:$0xff] }
 0x110   :  { %802 = vmatpush1.bf16.msra.mxu0 %v665_v17  ;;  %855 = vmatpush1.bf16.msra.mxu1 %v667_v18  ;;  %v663_v17 = vld [vmem:[#allocation2 + $0x470] sm:$0xff]  ;;  %v670_v18 = vld [vmem:[#allocation2 + $0x4a8] sm:$0xff] }
 0x111   :  { %803 = vmatprep.subr.bf16.mxu0 %v674_v19  ;;  %856 = vmatprep.subr.bf16.mxu1 %v676_v3  ;;  %v672_v19 = vld [vmem:[#allocation2 + $0x4b8] sm:$0xff] }
 0x112   :  { %829 = vmatprep.mubr.bf16.mxu0 %v6229_v20  ;;  %882 = vmatprep.mubr.bf16.mxu1 %v6229_v20  ;;  %v6252_v3 = vld [vmem:[%s6982_s0 + $0x68] ss:$48 sps:$4 sm:$0xff]  }
 0x114   :  { %804 = vmatpush1.bf16.msra.mxu0 %v673_v8  ;;  %857 = vmatpush1.bf16.msra.mxu1 %v675_v21  ;;  %v669_v8 = vld [vmem:[#allocation2 + $0x4a0] sm:$0xff]  ;;  %v671_v21 = vld [vmem:[#allocation2 + $0x4b0] sm:$0xff] }
 0x115   :  { %805 = vmatprep.subr.bf16.mxu0 %v682_v22  ;;  %858 = vmatprep.subr.bf16.mxu1 %v684_v23  ;;  %v678_v22 = vld [vmem:[#allocation2 + $0x4e8] sm:$0xff]  ;;  %v680_v23 = vld [vmem:[#allocation2 + $0x4f8] sm:$0xff] }
 0x118   :  { %806 = vmatpush1.bf16.msra.mxu0 %v681_v24  ;;  %859 = vmatpush1.bf16.msra.mxu1 %v683_v25  ;;  %v677_v24 = vld [vmem:[#allocation2 + $0x4e0] sm:$0xff]  ;;  %v679_v25 = vld [vmem:[#allocation2 + $0x4f0] sm:$0xff] }
 0x119   :  { %807 = vmatprep.subr.bf16.mxu0 %v690_v27  ;;  %860 = vmatprep.subr.bf16.mxu1 %v692_v13  ;;  %v686_v27 = vld [vmem:[#allocation2 + $0x528] sm:$0xff]  ;;  %v688_v13 = vld [vmem:[#allocation2 + $0x538] sm:$0xff] }
 0x11c   :  { %808 = vmatpush1.bf16.msra.mxu0 %v689_v28  ;;  %861 = vmatpush1.bf16.msra.mxu1 %v691_v29  ;;  %v685_v28 = vld [vmem:[#allocation2 + $0x520] sm:$0xff]  ;;  %v687_v29 = vld [vmem:[#allocation2 + $0x530] sm:$0xff] }
 0x11d   :  { %809 = vmatprep.subr.bf16.mxu0 %v698_v30  ;;  %862 = vmatprep.subr.bf16.mxu1 %v700_v26  ;;  %v694_v30 = vld [vmem:[#allocation2 + $0x568] sm:$0xff]  ;;  %v696_v26 = vld [vmem:[#allocation2 + $0x578] sm:$0xff] }
 0x120   :  { %810 = vmatpush1.bf16.msra.mxu0 %v697_v31  ;;  %863 = vmatpush1.bf16.msra.mxu1 %v699_v32  ;;  %v693_v31 = vld [vmem:[#allocation2 + $0x560] sm:$0xff]  ;;  %v695_v32 = vld [vmem:[#allocation2 + $0x570] sm:$0xff] }
 0x121   :  { %811 = vmatprep.subr.bf16.mxu0 %v706_v33  ;;  %864 = vmatprep.subr.bf16.mxu1 %v708_v34  ;;  %v702_v33 = vld [vmem:[#allocation2 + $0x5a8] sm:$0xff]  ;;  %v704_v34 = vld [vmem:[#allocation2 + $0x5b8] sm:$0xff] }
 0x124   :  { %812 = vmatpush1.bf16.msra.mxu0 %v705_v35  ;;  %865 = vmatpush1.bf16.msra.mxu1 %v707_v36  ;;  %v703_v35 = vld [vmem:[#allocation2 + $0x5b0] sm:$0xff]  ;;  %v710_v36 = vld [vmem:[#allocation2 + $0x5e8] sm:$0xff] }
 0x125   :  { %813 = vmatprep.subr.bf16.mxu0 %v714_v37  ;;  %866 = vmatprep.subr.bf16.mxu1 %v716_v38  ;;  %v712_v37 = vld [vmem:[#allocation2 + $0x5f8] sm:$0xff]  ;;  %v709_v38 = vld [vmem:[#allocation2 + $0x5e0] sm:$0xff] }
 0x128   :  { %814 = vmatpush1.bf16.msra.mxu0 %v713_v39  ;;  %867 = vmatpush1.bf16.msra.mxu1 %v715_v40  ;;  %v711_v39 = vld [vmem:[#allocation2 + $0x5f0] sm:$0xff]  ;;  %v718_v40 = vld [vmem:[#allocation2 + $0x628] sm:$0xff] }
 0x129   :  { %815 = vmatprep.subr.bf16.mxu0 %v722_v41  ;;  %868 = vmatprep.subr.bf16.mxu1 %v724_v42  ;;  %v720_v41 = vld [vmem:[#allocation2 + $0x638] sm:$0xff]  ;;  %v717_v42 = vld [vmem:[#allocation2 + $0x620] sm:$0xff] }
 0x12c   :  { %816 = vmatpush1.bf16.msra.mxu0 %v721_v43  ;;  %869 = vmatpush1.bf16.msra.mxu1 %v723_v44  ;;  %v719_v43 = vld [vmem:[#allocation2 + $0x630] sm:$0xff]  ;;  %v726_v44 = vld [vmem:[#allocation2 + $0x668] sm:$0xff] }
 0x12d   :  { %817 = vmatprep.subr.bf16.mxu0 %v730_v45  ;;  %870 = vmatprep.subr.bf16.mxu1 %v732_v46  ;;  %v728_v45 = vld [vmem:[#allocation2 + $0x678] sm:$0xff]  ;;  %v725_v46 = vld [vmem:[#allocation2 + $0x660] sm:$0xff] }
 0x130   :  { %818 = vmatpush1.bf16.msra.mxu0 %v729_v47  ;;  %871 = vmatpush1.bf16.msra.mxu1 %v731_v48  ;;  %v727_v47 = vld [vmem:[#allocation2 + $0x670] sm:$0xff]  ;;  %v734_v48 = vld [vmem:[#allocation2 + $0x6a8] sm:$0xff] }
 0x131   :  { %819 = vmatprep.subr.bf16.mxu0 %v738_v49  ;;  %872 = vmatprep.subr.bf16.mxu1 %v740_v50  ;;  %v736_v49 = vld [vmem:[#allocation2 + $0x6b8] sm:$0xff]  ;;  %v733_v50 = vld [vmem:[#allocation2 + $0x6a0] sm:$0xff] }
 0x134   :  { %820 = vmatpush1.bf16.msra.mxu0 %v737_v51  ;;  %873 = vmatpush1.bf16.msra.mxu1 %v739_v52  ;;  %v735_v51 = vld [vmem:[#allocation2 + $0x6b0] sm:$0xff]  ;;  %v742_v52 = vld [vmem:[#allocation2 + $0x6e8] sm:$0xff] }
 0x135   :  { %821 = vmatprep.subr.bf16.mxu0 %v746_v53  ;;  %874 = vmatprep.subr.bf16.mxu1 %v748_v54  ;;  %v744_v53 = vld [vmem:[#allocation2 + $0x6f8] sm:$0xff]  ;;  %v741_v54 = vld [vmem:[#allocation2 + $0x6e0] sm:$0xff] }
 0x138   :  { %822 = vmatpush1.bf16.msra.mxu0 %v745_v55  ;;  %875 = vmatpush1.bf16.msra.mxu1 %v747_v56  ;;  %v743_v55 = vld [vmem:[#allocation2 + $0x6f0] sm:$0xff]  ;;  %v750_v56 = vld [vmem:[#allocation2 + $0x728] sm:$0xff] }
 0x139   :  { %823 = vmatprep.subr.bf16.mxu0 %v754_v57  ;;  %876 = vmatprep.subr.bf16.mxu1 %v756_v58  ;;  %v752_v57 = vld [vmem:[#allocation2 + $0x738] sm:$0xff]  ;;  %v749_v58 = vld [vmem:[#allocation2 + $0x720] sm:$0xff] }
 0x13c   :  { %824 = vmatpush1.bf16.msra.mxu0 %v753_v59  ;;  %877 = vmatpush1.bf16.msra.mxu1 %v755_v60  ;;  %v751_v59 = vld [vmem:[#allocation2 + $0x730] sm:$0xff]  ;;  %v758_v60 = vld [vmem:[#allocation2 + $0x768] sm:$0xff] }
 0x13d   :  { %825 = vmatprep.subr.bf16.mxu0 %v762_v61  ;;  %878 = vmatprep.subr.bf16.mxu1 %v764_v62  ;;  %v760_v61 = vld [vmem:[#allocation2 + $0x778] sm:$0xff]  ;;  %v757_v62 = vld [vmem:[#allocation2 + $0x760] sm:$0xff] }
 0x140   :  { %826 = vmatpush1.bf16.msra.mxu0 %v761_v63  ;;  %879 = vmatpush1.bf16.msra.mxu1 %v763_v0  ;;  %v759_v63 = vld [vmem:[#allocation2 + $0x770] sm:$0xff]  ;;  %v766_v0 = vld [vmem:[#allocation2 + $0x7a8] sm:$0xff] }
 0x141   :  { %827 = vmatprep.subr.bf16.mxu0 %v770_v1  ;;  %880 = vmatprep.subr.bf16.mxu1 %v772_v2  ;;  %v768_v1 = vld [vmem:[#allocation2 + $0x7b8] sm:$0xff]  ;;  %v765_v2 = vld [vmem:[#allocation2 + $0x7a0] sm:$0xff] }
 0x144   :  { %828 = vmatpush1.bf16.msra.mxu0 %v769_v4  ;;  %881 = vmatpush1.bf16.msra.mxu1 %v771_v5  ;;  %v767_v4 = vld [vmem:[#allocation2 + $0x7b0] sm:$0xff]  ;;  %v774_v5 = vld [vmem:[#allocation2 + $0x7e8] sm:$0xff] }
 0x145   :  { %903 = vmatprep.subr.bf16.mxu0 %v654_v6  ;;  %956 = vmatprep.subr.bf16.mxu1 %v656_v7  ;;  %v776_v6 = vld [vmem:[#allocation2 + $0x7f8] sm:$0xff]  ;;  %v773_v7 = vld [vmem:[#allocation2 + $0x7e0] sm:$0xff] }
 0x147   :  { %830 = vmatmul.mubr.bf16.vlgmr.msra.gmra.mrb[16].mxu0 %v6238_v9  ;;  %883 = vmatmul.mubr.bf16.vlgmr.msra.gmra.mrb[16].mxu1 %v6238_v9 }
 0x148   :  { %904 = vmatpush1.bf16.msra.mxu0 %v653_v10  ;;  %957 = vmatpush1.bf16.msra.mxu1 %v655_v11  ;;  %v775_v10 = vld [vmem:[#allocation2 + $0x7f0] sm:$0xff]  ;;  %v1075_v11 = vld [vmem:[#allocation2 + $0x808] sm:$0xff] }
 0x149   :  { %905 = vmatprep.subr.bf16.mxu0 %v662_v12  ;;  %958 = vmatprep.subr.bf16.mxu1 %v664_v14  ;;  %v1077_v12 = vld [vmem:[#allocation2 + $0x818] sm:$0xff]  ;;  %v1074_v14 = vld [vmem:[#allocation2 + $0x800] sm:$0xff] }
 0x14a   :  { %839 = vmatprep.mubr.bf16.mxu0 %v6243_v15  ;;  %892 = vmatprep.mubr.bf16.mxu1 %v6243_v15 }
 0x14c   :  { %906 = vmatpush1.bf16.msra.mxu0 %v661_v16  ;;  %959 = vmatpush1.bf16.msra.mxu1 %v663_v17  ;;  %v1076_v16 = vld [vmem:[#allocation2 + $0x810] sm:$0xff]  ;;  %v1083_v17 = vld [vmem:[#allocation2 + $0x848] sm:$0xff] }
 0x14d   :  { %907 = vmatprep.subr.bf16.mxu0 %v670_v18  ;;  %960 = vmatprep.subr.bf16.mxu1 %v672_v19  ;;  %v1085_v18 = vld [vmem:[#allocation2 + $0x858] sm:$0xff]  ;;  %v1082_v19 = vld [vmem:[#allocation2 + $0x840] sm:$0xff] }
 0x14f   :  { %840 = vmatmul.mubr.bf16.gmra.mrb[20].mxu0 %v6252_v3  ;;  %893 = vmatmul.mubr.bf16.gmra.mrb[20].mxu1 %v6252_v3 }
 0x150   :  { %908 = vmatpush1.bf16.msra.mxu0 %v669_v8  ;;  %961 = vmatpush1.bf16.msra.mxu1 %v671_v21  ;;  %v1084_v8 = vld [vmem:[#allocation2 + $0x850] sm:$0xff]  ;;  %v1091_v21 = vld [vmem:[#allocation2 + $0x888] sm:$0xff] }
 0x151   :  { %909 = vmatprep.subr.bf16.mxu0 %v678_v22  ;;  %962 = vmatprep.subr.bf16.mxu1 %v680_v23  ;;  %v1093_v22 = vld [vmem:[#allocation2 + $0x898] sm:$0xff]  ;;  %v1090_v23 = vld [vmem:[#allocation2 + $0x880] sm:$0xff] }
 0x152   :  { %935 = vmatprep.mubr.bf16.mxu0 %v6229_v20  ;;  %988 = vmatprep.mubr.bf16.mxu1 %v6229_v20  ;;  %v701_v20 = vld [vmem:[#allocation2 + $0x5a0] sm:$0xff] }
 0x154   :  { %910 = vmatpush1.bf16.msra.mxu0 %v677_v24  ;;  %963 = vmatpush1.bf16.msra.mxu1 %v679_v25  ;;  %v1092_v24 = vld [vmem:[#allocation2 + $0x890] sm:$0xff]  ;;  %v1099_v25 = vld [vmem:[#allocation2 + $0x8c8] sm:$0xff] }
 0x155   :  { %911 = vmatprep.subr.bf16.mxu0 %v686_v27  ;;  %964 = vmatprep.subr.bf16.mxu1 %v688_v13  ;;  %v6265_v27 = vld [vmem:[%s6982_s0 + $0x14] ss:$48 sps:$4 sm:$0xff]  }
 0x156   :  { %v1100_v13 = vld [vmem:[#allocation2 + $0x8d0] sm:$0xff] }
 0x158   :  { %912 = vmatpush1.bf16.msra.mxu0 %v685_v28  ;;  %965 = vmatpush1.bf16.msra.mxu1 %v687_v29  ;;  %v1107_v28 = vld [vmem:[#allocation2 + $0x908] sm:$0xff]  ;;  %v1109_v29 = vld [vmem:[#allocation2 + $0x918] sm:$0xff] }
 0x159   :  { %913 = vmatprep.subr.bf16.mxu0 %v694_v30  ;;  %966 = vmatprep.subr.bf16.mxu1 %v696_v26  ;;  %v1106_v30 = vld [vmem:[#allocation2 + $0x900] sm:$0xff]  ;;  %v1108_v26 = vld [vmem:[#allocation2 + $0x910] sm:$0xff] }
 0x15c   :  { %914 = vmatpush1.bf16.msra.mxu0 %v693_v31  ;;  %967 = vmatpush1.bf16.msra.mxu1 %v695_v32  ;;  %v1115_v31 = vld [vmem:[#allocation2 + $0x948] sm:$0xff]  ;;  %v1114_v32 = vld [vmem:[#allocation2 + $0x940] sm:$0xff] }
 0x15d   :  { %915 = vmatprep.subr.bf16.mxu0 %v702_v33  ;;  %968 = vmatprep.subr.bf16.mxu1 %v704_v34  ;;  %v1116_v33 = vld [vmem:[#allocation2 + $0x950] sm:$0xff] }
 0x160   :  { %916 = vmatpush1.bf16.msra.mxu0 %v701_v20  ;;  %969 = vmatpush1.bf16.msra.mxu1 %v703_v35  ;;  %v1123_v35 = vld [vmem:[#allocation2 + $0x988] sm:$0xff] }
 0x161   :  { %917 = vmatprep.subr.bf16.mxu0 %v710_v36  ;;  %970 = vmatprep.subr.bf16.mxu1 %v712_v37  ;;  %v1125_v36 = vld [vmem:[#allocation2 + $0x998] sm:$0xff] }
 0x164   :  { %918 = vmatpush1.bf16.msra.mxu0 %v709_v38  ;;  %971 = vmatpush1.bf16.msra.mxu1 %v711_v39 }
 0x165   :  { %919 = vmatprep.subr.bf16.mxu0 %v718_v40  ;;  %972 = vmatprep.subr.bf16.mxu1 %v720_v41 }
 0x168   :  { %920 = vmatpush1.bf16.msra.mxu0 %v717_v42  ;;  %973 = vmatpush1.bf16.msra.mxu1 %v719_v43 }
 0x169   :  { %921 = vmatprep.subr.bf16.mxu0 %v726_v44  ;;  %974 = vmatprep.subr.bf16.mxu1 %v728_v45 }
 0x16c   :  { %922 = vmatpush1.bf16.msra.mxu0 %v725_v46  ;;  %975 = vmatpush1.bf16.msra.mxu1 %v727_v47  ;;  %v1122_v46 = vld [vmem:[#allocation2 + $0x980] sm:$0xff]  ;;  %v1124_v47 = vld [vmem:[#allocation2 + $0x990] sm:$0xff] }
 0x16d   :  { %923 = vmatprep.subr.bf16.mxu0 %v734_v48  ;;  %976 = vmatprep.subr.bf16.mxu1 %v736_v49  ;;  %v1131_v49 = vld [vmem:[#allocation2 + $0x9c8] sm:$0xff] }
 0x170   :  { %924 = vmatpush1.bf16.msra.mxu0 %v733_v50  ;;  %977 = vmatpush1.bf16.msra.mxu1 %v735_v51  ;;  %v1133_v50 = vld [vmem:[#allocation2 + $0x9d8] sm:$0xff]  ;;  %v1130_v51 = vld [vmem:[#allocation2 + $0x9c0] sm:$0xff] }
 0x171   :  { %925 = vmatprep.subr.bf16.mxu0 %v742_v52  ;;  %978 = vmatprep.subr.bf16.mxu1 %v744_v53  ;;  %v1132_v52 = vld [vmem:[#allocation2 + $0x9d0] sm:$0xff]  ;;  %v1139_v53 = vld [vmem:[#allocation2 + $0xa08] sm:$0xff] }
 0x174   :  { %926 = vmatpush1.bf16.msra.mxu0 %v741_v54  ;;  %979 = vmatpush1.bf16.msra.mxu1 %v743_v55  ;;  %v1141_v54 = vld [vmem:[#allocation2 + $0xa18] sm:$0xff] }
 0x175   :  { %927 = vmatprep.subr.bf16.mxu0 %v750_v56  ;;  %980 = vmatprep.subr.bf16.mxu1 %v752_v57 }
 0x178   :  { %928 = vmatpush1.bf16.msra.mxu0 %v749_v58  ;;  %981 = vmatpush1.bf16.msra.mxu1 %v751_v59 }
 0x179   :  { %929 = vmatprep.subr.bf16.mxu0 %v758_v60  ;;  %982 = vmatprep.subr.bf16.mxu1 %v760_v61 }
 0x17c   :  { %930 = vmatpush1.bf16.msra.mxu0 %v757_v62  ;;  %983 = vmatpush1.bf16.msra.mxu1 %v759_v63  ;;  %v1138_v63 = vld [vmem:[#allocation2 + $0xa00] sm:$0xff] }
 0x17d   :  { %931 = vmatprep.subr.bf16.mxu0 %v766_v0  ;;  %984 = vmatprep.subr.bf16.mxu1 %v768_v1  ;;  %v1140_v0 = vld [vmem:[#allocation2 + $0xa10] sm:$0xff] }
 0x180   :  { %932 = vmatpush1.bf16.msra.mxu0 %v765_v2  ;;  %985 = vmatpush1.bf16.msra.mxu1 %v767_v4 }
 0x181   :  { %933 = vmatprep.subr.bf16.mxu0 %v774_v5  ;;  %986 = vmatprep.subr.bf16.mxu1 %v776_v6  ;;  %v1147_v5 = vld [vmem:[#allocation2 + $0xa48] sm:$0xff]  ;;  %v1149_v6 = vld [vmem:[#allocation2 + $0xa58] sm:$0xff] }
 0x184   :  { %934 = vmatpush1.bf16.msra.mxu0 %v773_v7  ;;  %987 = vmatpush1.bf16.msra.mxu1 %v775_v10  ;;  %v1146_v10 = vld [vmem:[#allocation2 + $0xa40] sm:$0xff] }
 0x185   :  { %1222 = vmatprep.subr.bf16.mxu0 %v1075_v11  ;;  %1275 = vmatprep.subr.bf16.mxu1 %v1077_v12  ;;  %v1148_v11 = vld [vmem:[#allocation2 + $0xa50] sm:$0xff]  ;;  %v1155_v12 = vld [vmem:[#allocation2 + $0xa88] sm:$0xff] }
 0x187   :  { %936 = vmatmul.mubr.bf16.vlgmr.msra.gmra.mrb[24].mxu0 %v6238_v9  ;;  %989 = vmatmul.mubr.bf16.vlgmr.msra.gmra.mrb[24].mxu1 %v6238_v9  ;;  %v1101_v9 = vld [vmem:[#allocation2 + $0x8d8] sm:$0xff] }
 0x188   :  { %1223 = vmatpush1.bf16.msra.mxu0 %v1074_v14  ;;  %1276 = vmatpush1.bf16.msra.mxu1 %v1076_v16  ;;  %v1157_v14 = vld [vmem:[#allocation2 + $0xa98] sm:$0xff]  ;;  %v1154_v16 = vld [vmem:[#allocation2 + $0xa80] sm:$0xff] }
 0x189   :  { %1224 = vmatprep.subr.bf16.mxu0 %v1083_v17  ;;  %1277 = vmatprep.subr.bf16.mxu1 %v1085_v18  ;;  %v1156_v17 = vld [vmem:[#allocation2 + $0xa90] sm:$0xff]  ;;  %v1163_v18 = vld [vmem:[#allocation2 + $0xac8] sm:$0xff] }
 0x18a   :  { %945 = vmatprep.mubr.bf16.mxu0 %v6243_v15  ;;  %998 = vmatprep.mubr.bf16.mxu1 %v6243_v15  ;;  %v1098_v15 = vld [vmem:[#allocation2 + $0x8c0] sm:$0xff] }
 0x18c   :  { %1225 = vmatpush1.bf16.msra.mxu0 %v1082_v19  ;;  %1278 = vmatpush1.bf16.msra.mxu1 %v1084_v8  ;;  %v1165_v19 = vld [vmem:[#allocation2 + $0xad8] sm:$0xff]  ;;  %v1162_v8 = vld [vmem:[#allocation2 + $0xac0] sm:$0xff] }
 0x18d   :  { %1226 = vmatprep.subr.bf16.mxu0 %v1091_v21  ;;  %1279 = vmatprep.subr.bf16.mxu1 %v1093_v22  ;;  %v1164_v21 = vld [vmem:[#allocation2 + $0xad0] sm:$0xff]  ;;  %v1171_v22 = vld [vmem:[#allocation2 + $0xb08] sm:$0xff] }
 0x18f   :  { %946 = vmatmul.mubr.bf16.gmra.mrb[28].mxu0 %v6252_v3  ;;  %999 = vmatmul.mubr.bf16.gmra.mrb[28].mxu1 %v6252_v3  ;;  %v1117_v3 = vld [vmem:[#allocation2 + $0x958] sm:$0xff] }
 0x190   :  { %1227 = vmatpush1.bf16.msra.mxu0 %v1090_v23  ;;  %1280 = vmatpush1.bf16.msra.mxu1 %v1092_v24  ;;  %v1173_v23 = vld [vmem:[#allocation2 + $0xb18] sm:$0xff]  ;;  %v1170_v24 = vld [vmem:[#allocation2 + $0xb00] sm:$0xff] }
 0x191   :  { %1228 = vmatprep.subr.bf16.mxu0 %v1099_v25  ;;  %1281 = vmatprep.subr.bf16.mxu1 %v1101_v9  ;;  %v1172_v25 = vld [vmem:[#allocation2 + $0xb10] sm:$0xff]  ;;  %v1179_v9 = vld [vmem:[#allocation2 + $0xb48] sm:$0xff] }
 0x192   :  { %1254 = vmatprep.mubr.bf16.mxu0 %v6265_v27  ;;  %1307 = vmatprep.mubr.bf16.mxu1 %v6265_v27 }
 0x194   :  { %1229 = vmatpush1.bf16.msra.mxu0 %v1098_v15  ;;  %1282 = vmatpush1.bf16.msra.mxu1 %v1100_v13  ;;  %v1181_v15 = vld [vmem:[#allocation2 + $0xb58] sm:$0xff]  ;;  %v1178_v13 = vld [vmem:[#allocation2 + $0xb40] sm:$0xff] }
 0x195   :  { %1230 = vmatprep.subr.bf16.mxu0 %v1107_v28  ;;  %1283 = vmatprep.subr.bf16.mxu1 %v1109_v29  ;;  %v1180_v28 = vld [vmem:[#allocation2 + $0xb50] sm:$0xff]  ;;  %v1187_v29 = vld [vmem:[#allocation2 + $0xb88] sm:$0xff] }
 0x198   :  { %1231 = vmatpush1.bf16.msra.mxu0 %v1106_v30  ;;  %1284 = vmatpush1.bf16.msra.mxu1 %v1108_v26  ;;  %v1189_v30 = vld [vmem:[#allocation2 + $0xb98] sm:$0xff]  ;;  %v1186_v26 = vld [vmem:[#allocation2 + $0xb80] sm:$0xff] }
 0x199   :  { %1232 = vmatprep.subr.bf16.mxu0 %v1115_v31  ;;  %1285 = vmatprep.subr.bf16.mxu1 %v1117_v3  ;;  %v1188_v31 = vld [vmem:[#allocation2 + $0xb90] sm:$0xff]  ;;  %v1195_v3 = vld [vmem:[#allocation2 + $0xbc8] sm:$0xff] }
 0x19a   :  { %v6271_v34 = vpop.f32.mrb[0].mxu0  ;;  %v6273_v20 = vpop.f32.mrb[0].mxu1 }
 0x19b   :  { %v584_v37 = vmax.f32 %v6271_v34, %v6273_v20  ;;  %v6277_v38 = vpop.f32.mrb[1].mxu0  ;;  %v6279_v39 = vpop.f32.mrb[1].mxu1 }
 0x19c   :  { %v585_v40 = vmax.f32 %v6277_v38, %v6279_v39  ;;  %v6283_v41 = vpop.f32.mrb[2].mxu0  ;;  %v6285_v42 = vpop.f32.mrb[2].mxu1  ;;  %1233 = vmatpush1.bf16.msra.mxu0 %v1114_v32  ;;  %1286 = vmatpush1.bf16.msra.mxu1 %v1116_v33  ;;  %v1197_v32 = vld [vmem:[#allocation2 + $0xbd8] sm:$0xff]  ;;  %v1194_v33 = vld [vmem:[#allocation2 + $0xbc0] sm:$0xff] }
 0x19d   :  { %v586_v43 = vmax.f32 %v6283_v41, %v6285_v42  ;;  %v6289_v44 = vpop.f32.mrb[3].mxu0  ;;  %v6291_v45 = vpop.f32.mrb[3].mxu1  ;;  %1234 = vmatprep.subr.bf16.mxu0 %v1123_v35  ;;  %1287 = vmatprep.subr.bf16.mxu1 %v1125_v36  ;;  %v1196_v35 = vld [vmem:[#allocation2 + $0xbd0] sm:$0xff]  ;;  %v1079_v36 = vld [vmem:[#allocation2 + $0x828] sm:$0xff]  ;;  %v1134_v39 = vld [vmem:[#allocation2 + $0x9e0] sm:$0xff] }
 0x19e   :  { %v587_v48 = vmax.f32 %v6289_v44, %v6291_v45  ;;  %v1143_v41 = vld [vmem:[#allocation2 + $0xa28] sm:$0xff]  ;;  %v1145_v42 = vld [vmem:[#allocation2 + $0xa38] sm:$0xff] }
 0x1a0   :  { %1235 = vmatpush1.bf16.msra.mxu0 %v1122_v46  ;;  %1288 = vmatpush1.bf16.msra.mxu1 %v1124_v47  ;;  %v1081_v46 = vld [vmem:[#allocation2 + $0x838] sm:$0xff]  ;;  %v6322_v47 = vld [vmem:[%s6982_s0 + $0x10] ss:$48 sps:$4 sm:$0xff]  }
 0x1a1   :  { %1236 = vmatprep.subr.bf16.mxu0 %v1131_v49  ;;  %1289 = vmatprep.subr.bf16.mxu1 %v1133_v50  ;;  %v1078_v49 = vld [vmem:[#allocation2 + $0x820] sm:$0xff]  ;;  %v1080_v50 = vld [vmem:[#allocation2 + $0x830] sm:$0xff] }
 0x1a2   :  { %v6295_v55 = vpop.f32.mrb[4].mxu0  ;;  %v6297_v56 = vpop.f32.mrb[4].mxu1 }
 0x1a3   :  { %v588_v57 = vmax.f32 %v6295_v55, %v6297_v56  ;;  %v6301_v58 = vpop.f32.mrb[5].mxu0  ;;  %v6303_v59 = vpop.f32.mrb[5].mxu1 }
 0x1a4   :  { %1237 = vmatpush1.bf16.msra.mxu0 %v1130_v51  ;;  %1290 = vmatpush1.bf16.msra.mxu1 %v1132_v52  ;;  %v589_v60 = vmax.f32 %v6301_v58, %v6303_v59  ;;  %v6307_v61 = vpop.f32.mrb[6].mxu0  ;;  %v6309_v62 = vpop.f32.mrb[6].mxu1  ;;  %v1087_v51 = vld [vmem:[#allocation2 + $0x868] sm:$0xff]  ;;  %v1089_v52 = vld [vmem:[#allocation2 + $0x878] sm:$0xff]  ;;  %v1150_v59 = vld [vmem:[#allocation2 + $0xa60] sm:$0xff] }
 0x1a5   :  { %1238 = vmatprep.subr.bf16.mxu0 %v1139_v53  ;;  %1291 = vmatprep.subr.bf16.mxu1 %v1141_v54  ;;  %v590_v1 = vmax.f32 %v6307_v61, %v6309_v62  ;;  %v6313_v2 = vpop.f32.mrb[7].mxu0  ;;  %v6315_v4 = vpop.f32.mrb[7].mxu1  ;;  %v6327_v53 = vld [vmem:[%s6982_s0 + $0x74] ss:$48 sps:$4 sm:$0xff]  }
 0x1a6   :  { %v591_v7 = vmax.f32 %v6313_v2, %v6315_v4  ;;  %v1086_v54 = vld [vmem:[#allocation2 + $0x860] sm:$0xff] }
 0x1a7   :  { %v1158_v4 = vld [vmem:[#allocation2 + $0xaa0] sm:$0xff] }
 0x1a8   :  { %1239 = vmatpush1.bf16.msra.mxu0 %v1138_v63  ;;  %1292 = vmatpush1.bf16.msra.mxu1 %v1140_v0  ;;  %v1088_v63 = vld [vmem:[#allocation2 + $0x870] sm:$0xff]  ;;  %v1095_v0 = vld [vmem:[#allocation2 + $0x8a8] sm:$0xff] }
 0x1a9   :  { %1240 = vmatprep.subr.bf16.mxu0 %v1147_v5  ;;  %1293 = vmatprep.subr.bf16.mxu1 %v1149_v6  ;;  %v1097_v5 = vld [vmem:[#allocation2 + $0x8b8] sm:$0xff]  ;;  %v6336_v6 = vld [vmem:[%s6982_s0 + $0x70] ss:$48 sps:$4 sm:$0xff]  }
 0x1ac   :  { %1241 = vmatpush1.bf16.msra.mxu0 %v1146_v10  ;;  %1294 = vmatpush1.bf16.msra.mxu1 %v1148_v11  ;;  %v1094_v10 = vld [vmem:[#allocation2 + $0x8a0] sm:$0xff]  ;;  %v1096_v11 = vld [vmem:[#allocation2 + $0x8b0] sm:$0xff] }
 0x1ad   :  { %1242 = vmatprep.subr.bf16.mxu0 %v1155_v12  ;;  %1295 = vmatprep.subr.bf16.mxu1 %v1157_v14  ;;  %v1103_v12 = vld [vmem:[#allocation2 + $0x8e8] sm:$0xff]  ;;  %v1105_v14 = vld [vmem:[#allocation2 + $0x8f8] sm:$0xff] }
 0x1b0   :  { %1243 = vmatpush1.bf16.msra.mxu0 %v1154_v16  ;;  %1296 = vmatpush1.bf16.msra.mxu1 %v1156_v17  ;;  %v610_v16 = vlaneseq  ;;  %v1102_v17 = vld [vmem:[#allocation2 + $0x8e0] sm:$0xff] }
 0x1b1   :  { %1244 = vmatprep.subr.bf16.mxu0 %v1163_v18  ;;  %1297 = vmatprep.subr.bf16.mxu1 %v1165_v19  ;;  %v1104_v18 = vld [vmem:[#allocation2 + $0x8f0] sm:$0xff]  ;;  %v1111_v19 = vld [vmem:[#allocation2 + $0x928] sm:$0xff] }
 0x1b4   :  { %1245 = vmatpush1.bf16.msra.mxu0 %v1162_v8  ;;  %1298 = vmatpush1.bf16.msra.mxu1 %v1164_v21  ;;  %v1113_v8 = vld [vmem:[#allocation2 + $0x938] sm:$0xff]  ;;  %v611_v21 = vshrl.u32 %v610_v16, 7 }
 0x1b5   :  { %1246 = vmatprep.subr.bf16.mxu0 %v1171_v22  ;;  %1299 = vmatprep.subr.bf16.mxu1 %v1173_v23  ;;  %v1110_v22 = vld [vmem:[#allocation2 + $0x920] sm:$0xff]  ;;  %v1112_v23 = vld [vmem:[#allocation2 + $0x930] sm:$0xff] }
 0x1b8   :  { %1247 = vmatpush1.bf16.msra.mxu0 %v1170_v24  ;;  %1300 = vmatpush1.bf16.msra.mxu1 %v1172_v25  ;;  %v1119_v24 = vld [vmem:[#allocation2 + $0x968] sm:$0xff]  ;;  %v1121_v25 = vld [vmem:[#allocation2 + $0x978] sm:$0xff] }
 0x1b9   :  { %1248 = vmatprep.subr.bf16.mxu0 %v1179_v9  ;;  %1301 = vmatprep.subr.bf16.mxu1 %v1181_v15  ;;  %v6342_v9 = vsub.s32 0, %v611_v21  ;;  %v608_v15 = vld [vmem:[#allocation6] sm:$0x3] }
 0x1bc   :  { %1249 = vmatpush1.bf16.msra.mxu0 %v1178_v13  ;;  %1302 = vmatpush1.bf16.msra.mxu1 %v1180_v28  ;;  %v6344_v13 = vsub.s32 1, %v611_v21  ;;  %v1118_v28 = vld [vmem:[#allocation2 + $0x960] sm:$0xff] }
 0x1bd   :  { %1250 = vmatprep.subr.bf16.mxu0 %v1187_v29  ;;  %1303 = vmatprep.subr.bf16.mxu1 %v1189_v30 }
 0x1c0   :  { %1251 = vmatpush1.bf16.msra.mxu0 %v1186_v26  ;;  %1304 = vmatpush1.bf16.msra.mxu1 %v1188_v31  ;;  %v1127_v26 = vld [vmem:[#allocation2 + $0x9a8] sm:$0xff]  ;;  %v1129_v31 = vld [vmem:[#allocation2 + $0x9b8] sm:$0xff] }
 0x1c1   :  { %1252 = vmatprep.subr.bf16.mxu0 %v1195_v3  ;;  %1305 = vmatprep.subr.bf16.mxu1 %v1197_v32  ;;  %v6347_v32 = vrot.slane %v608_v15, %v6342_v9 }
 0x1c4   :  { %1253 = vmatpush1.bf16.msra.mxu0 %v1194_v33  ;;  %1306 = vmatpush1.bf16.msra.mxu1 %v1196_v35 }
 0x1c5   :  { %1328 = vmatprep.subr.bf16.mxu0 %v1079_v36  ;;  %1381 = vmatprep.subr.bf16.mxu1 %v1081_v46  ;;  %v6350_v46 = vrot.slane %v608_v15, %v6344_v13 }
 0x1c7   :  { %1255 = vmatmul.mubr.bf16.vlgmr.msra.gmra.mrb[32].mxu0 %v6322_v47  ;;  %1308 = vmatmul.mubr.bf16.vlgmr.msra.gmra.mrb[32].mxu1 %v6322_v47 }
 0x1c8   :  { %1329 = vmatpush1.bf16.msra.mxu0 %v1078_v49  ;;  %1382 = vmatpush1.bf16.msra.mxu1 %v1080_v50 }
 0x1c9   :  { %1330 = vmatprep.subr.bf16.mxu0 %v1087_v51  ;;  %1383 = vmatprep.subr.bf16.mxu1 %v1089_v52 }
 0x1ca   :  { %1264 = vmatprep.mubr.bf16.mxu0 %v6327_v53  ;;  %1317 = vmatprep.mubr.bf16.mxu1 %v6327_v53 }
 0x1cc   :  { %1331 = vmatpush1.bf16.msra.mxu0 %v1086_v54  ;;  %1384 = vmatpush1.bf16.msra.mxu1 %v1088_v63 }
 0x1cd   :  { %1332 = vmatprep.subr.bf16.mxu0 %v1095_v0  ;;  %1385 = vmatprep.subr.bf16.mxu1 %v1097_v5  ;;  %v1126_v0 = vld [vmem:[#allocation2 + $0x9a0] sm:$0xff]  ;;  %v1128_v5 = vld [vmem:[#allocation2 + $0x9b0] sm:$0xff] }
 0x1cf   :  { %1265 = vmatmul.mubr.bf16.gmra.mrb[36].mxu0 %v6336_v6  ;;  %1318 = vmatmul.mubr.bf16.gmra.mrb[36].mxu1 %v6336_v6 }
 0x1d0   :  { %1333 = vmatpush1.bf16.msra.mxu0 %v1094_v10  ;;  %1386 = vmatpush1.bf16.msra.mxu1 %v1096_v11 }
 0x1d1   :  { %1334 = vmatprep.subr.bf16.mxu0 %v1103_v12  ;;  %1387 = vmatprep.subr.bf16.mxu1 %v1105_v14  ;;  %v1135_v12 = vld [vmem:[#allocation2 + $0x9e8] sm:$0xff]  ;;  %v1137_v14 = vld [vmem:[#allocation2 + $0x9f8] sm:$0xff] }
 0x1d2   :  { %1360 = vmatprep.mubr.bf16.mxu0 %v6265_v27  ;;  %1413 = vmatprep.mubr.bf16.mxu1 %v6265_v27  ;;  %v1120_v27 = vld [vmem:[#allocation2 + $0x970] sm:$0xff] }
 0x1d4   :  { %1335 = vmatpush1.bf16.msra.mxu0 %v1102_v17  ;;  %1388 = vmatpush1.bf16.msra.mxu1 %v1104_v18 }
 0x1d5   :  { %1336 = vmatprep.subr.bf16.mxu0 %v1111_v19  ;;  %1389 = vmatprep.subr.bf16.mxu1 %v1113_v8 }
 0x1d8   :  { %1337 = vmatpush1.bf16.msra.mxu0 %v1110_v22  ;;  %1390 = vmatpush1.bf16.msra.mxu1 %v1112_v23 }
 0x1d9   :  { %1338 = vmatprep.subr.bf16.mxu0 %v1119_v24  ;;  %1391 = vmatprep.subr.bf16.mxu1 %v1121_v25 }
 0x1da   :  { %v512_v29 = vpop.f32.mrb[8].mxu0  ;;  %v565_v30 = vpop.f32.mrb[8].mxu1 }
 0x1db   :  { %v592_v3 = vmax.f32 %v512_v29, %v565_v30  ;;  %v514_v33 = vpop.f32.mrb[9].mxu0  ;;  %v567_v35 = vpop.f32.mrb[9].mxu1 }
 0x1dc   :  { %v593_v36 = vmax.f32 %v514_v33, %v567_v35  ;;  %v516_v49 = vpop.f32.mrb[10].mxu0  ;;  %v569_v50 = vpop.f32.mrb[10].mxu1  ;;  %1339 = vmatpush1.bf16.msra.mxu0 %v1118_v28  ;;  %1392 = vmatpush1.bf16.msra.mxu1 %v1120_v27 }
 0x1dd   :  { %v600_v51 = vmax.f32 %v584_v37, %v592_v3  ;;  %v594_v52 = vmax.f32 %v516_v49, %v569_v50  ;;  %v518_v54 = vpop.f32.mrb[11].mxu0  ;;  %v571_v63 = vpop.f32.mrb[11].mxu1  ;;  %1340 = vmatprep.subr.bf16.mxu0 %v1127_v26  ;;  %1393 = vmatprep.subr.bf16.mxu1 %v1129_v31  ;;  %v1142_v26 = vld [vmem:[#allocation2 + $0xa20] sm:$0xff]  ;;  %v1144_v31 = vld [vmem:[#allocation2 + $0xa30] sm:$0xff]  ;;  %v1153_v49 = vld [vmem:[#allocation2 + $0xa78] sm:$0xff] }
 0x1de   :  { %v601_v10 = vmax.f32 %v585_v40, %v593_v36  ;;  %v595_v11 = vmax.f32 %v518_v54, %v571_v63  ;;  %v1136_v40 = vld [vmem:[#allocation2 + $0x9f0] sm:$0xff]  ;;  %v1151_v36 = vld [vmem:[#allocation2 + $0xa68] sm:$0xff]  ;;  %v1161_v54 = vld [vmem:[#allocation2 + $0xab8] sm:$0xff] }
 0x1df   :  { %v620_v16 = vadd.f32 %v6347_v32, %v600_v51  ;;  %v602_v34 = vmax.f32 %v586_v43, %v594_v52  ;;  %v1159_v52 = vld [vmem:[#allocation2 + $0xaa8] sm:$0xff] }
 0x1e0   :  { %v621_v20 = vadd.f32 %v6350_v46, %v601_v10  ;;  %v603_v37 = vmax.f32 %v587_v48, %v595_v11  ;;  %1341 = vmatpush1.bf16.msra.mxu0 %v1126_v0  ;;  %1394 = vmatpush1.bf16.msra.mxu1 %v1128_v5  ;;  %v1167_v0 = vld [vmem:[#allocation2 + $0xae8] sm:$0xff]  ;;  %v1169_v5 = vld [vmem:[#allocation2 + $0xaf8] sm:$0xff]  ;;  %v1168_v10 = vld [vmem:[#allocation2 + $0xaf0] sm:$0xff] }
 0x1e1   :  { %v622_v38 = vadd.f32 %v6347_v32, %v602_v34  ;;  %1342 = vmatprep.subr.bf16.mxu0 %v1135_v12  ;;  %1395 = vmatprep.subr.bf16.mxu1 %v1137_v14  ;;  %v628_v43 = vmax.f32 %v620_v16, 0.0  ;;  %v1175_v11 = vld [vmem:[#allocation2 + $0xb28] sm:$0xff]  ;;  %v1177_v12 = vld [vmem:[#allocation2 + $0xb38] sm:$0xff]  ;;  %v1174_v14 = vld [vmem:[#allocation2 + $0xb20] sm:$0xff] }
 0x1e2   :  { %v623_v17 = vadd.f32 %v6350_v46, %v603_v37  ;;  %v522_v18 = vpop.f32.mrb[12].mxu0  ;;  %v575_v19 = vpop.f32.mrb[12].mxu1  ;;  %v629_v45 = vmax.f32 %v621_v20, 0.0  ;;  %v1176_v16 = vld [vmem:[#allocation2 + $0xb30] sm:$0xff]  ;;  %v1183_v34 = vld [vmem:[#allocation2 + $0xb68] sm:$0xff]  ;;  %v1185_v20 = vld [vmem:[#allocation2 + $0xb78] sm:$0xff] }
 0x1e3   :  { %v630_v8 = vmax.f32 %v622_v38, 0.0  ;;  %v596_v21 = vmax.f32 %v522_v18, %v575_v19  ;;  %v524_v22 = vpop.f32.mrb[13].mxu0  ;;  %v577_v44 = vpop.f32.mrb[13].mxu1  ;;  %v1182_v37 = vld [vmem:[#allocation2 + $0xb60] sm:$0xff]  ;;  %v1184_v38 = vld [vmem:[#allocation2 + $0xb70] sm:$0xff]  ;;  %v1199_v19 = vld [vmem:[#allocation2 + $0xbe8] sm:$0xff] }
 0x1e4   :  { %v631_v48 = vmax.f32 %v623_v17, 0.0  ;;  %v597_v23 = vmax.f32 %v524_v22, %v577_v44  ;;  %v526_v24 = vpop.f32.mrb[14].mxu0  ;;  %v579_v25 = vpop.f32.mrb[14].mxu1  ;;  %1343 = vmatpush1.bf16.msra.mxu0 %v1134_v39  ;;  %1396 = vmatpush1.bf16.msra.mxu1 %v1136_v40  ;;  %v1191_v39 = vld [vmem:[#allocation2 + $0xba8] sm:$0xff]  ;;  %v1193_v40 = vld [vmem:[#allocation2 + $0xbb8] sm:$0xff]  ;;  %v1190_v17 = vld [vmem:[#allocation2 + $0xba0] sm:$0xff] }
 0x1e5   :  { %v6368_v15 = vpack.c.bf16 %v630_v8, %v628_v43  ;;  %v604_v28 = vmax.f32 %v588_v57, %v596_v21  ;;  %v598_v27 = vmax.f32 %v526_v24, %v579_v25  ;;  %v528_v29 = vpop.f32.mrb[15].mxu0  ;;  %v581_v30 = vpop.f32.mrb[15].mxu1  ;;  %1344 = vmatprep.subr.bf16.mxu0 %v1143_v41  ;;  %1397 = vmatprep.subr.bf16.mxu1 %v1145_v42  ;;  %v1192_v18 = vld [vmem:[#allocation2 + $0xbb0] sm:$0xff]  ;;  %v1201_v41 = vld [vmem:[#allocation2 + $0xbf8] sm:$0xff]  ;;  %v1198_v42 = vld [vmem:[#allocation2 + $0xbe0] sm:$0xff] }
 0x1e6   :  { %v6373_v3 = vpack.c.bf16 %v631_v48, %v629_v45  ;;  %v605_v33 = vmax.f32 %v589_v60, %v597_v23  ;;  %v599_v35 = vmax.f32 %v528_v29, %v581_v30  ;;  %v1152_v60 = vld [vmem:[#allocation2 + $0xa70] sm:$0xff]  ;;  %v1500_v8 = vld [vmem:[#allocation2 + $0xc08] sm:$0xff]  ;;  %v1502_v21 = vld [vmem:[#allocation2 + $0xc18] sm:$0xff] }
 0x1e7   :  { %v624_v50 = vadd.f32 %v6347_v32, %v604_v28  ;;  %v606_v55 = vmax.f32 %v590_v1, %v598_v27  ;;  %v1200_v43 = vld [vmem:[#allocation2 + $0xbf0] sm:$0xff]  ;;  %v1499_v22 = vld [vmem:[#allocation2 + $0xc00] sm:$0xff]  ;;  %v1508_v45 = vld [vmem:[#allocation2 + $0xc48] sm:$0xff] }
 0x1e8   :  { %v625_v56 = vadd.f32 %v6350_v46, %v605_v33  ;;  %v607_v57 = vmax.f32 %v591_v7, %v599_v35  ;;  %1345 = vmatpush1.bf16.msra.mxu0 %v1142_v26  ;;  %1398 = vmatpush1.bf16.msra.mxu1 %v1144_v31  ;;  %v1160_v7 = vld [vmem:[#allocation2 + $0xab0] sm:$0xff]  ;;  %v1510_v48 = vld [vmem:[#allocation2 + $0xc58] sm:$0xff]  ;;  %v1507_v23 = vld [vmem:[#allocation2 + $0xc40] sm:$0xff] }
 0x1e9   :  { %v626_v58 = vadd.f32 %v6347_v32, %v606_v55  ;;  %1346 = vmatprep.subr.bf16.mxu0 %v1151_v36  ;;  %1399 = vmatprep.subr.bf16.mxu1 %v1153_v49  ;;  %v632_v61 = vmax.f32 %v624_v50, 0.0  ;;  %v1501_v44 = vld [vmem:[#allocation2 + $0xc10] sm:$0xff]  ;;  %v1516_v25 = vld [vmem:[#allocation2 + $0xc88] sm:$0xff]  ;;  %v1518_v28 = vld [vmem:[#allocation2 + $0xc98] sm:$0xff] }
 0x1ea   :  { %v627_v51 = vadd.f32 %v6350_v46, %v607_v57  ;;  %v633_v1 = vmax.f32 %v625_v56, 0.0  ;;  %v1166_v46 = vld [vmem:[#allocation2 + $0xae0] sm:$0xff]  ;;  %v1509_v24 = vld [vmem:[#allocation2 + $0xc50] sm:$0xff]  ;;  %v1524_v30 = vld [vmem:[#allocation2 + $0xcc8] sm:$0xff] }
 0x1eb   :  { %v634_v62 = vmax.f32 %v626_v58, 0.0  ;;  %v1515_v27 = vld [vmem:[#allocation2 + $0xc80] sm:$0xff]  ;;  %v1517_v29 = vld [vmem:[#allocation2 + $0xc90] sm:$0xff]  ;;  %v6399_v26 = vld [vmem:[%s6982_s0 + $0x1c] ss:$48 sps:$4 sm:$0xff]  }
 0x1ec   :  { %v635_v63 = vmax.f32 %v627_v51, 0.0  ;;  %1347 = vmatpush1.bf16.msra.mxu0 %v1150_v59  ;;  %1400 = vmatpush1.bf16.msra.mxu1 %v1152_v60  ;;  %v1525_v31 = vld [vmem:[#allocation2 + $0xcd0] sm:$0xff]  ;;  %v1532_v33 = vld [vmem:[#allocation2 + $0xd08] sm:$0xff]  ;;  %v1534_v35 = vld [vmem:[#allocation2 + $0xd18] sm:$0xff] }
 0x1ed   :  { %v6388_v2 = vpack.c.bf16 %v634_v62, %v632_v61  ;;  %1348 = vmatprep.subr.bf16.mxu0 %v1159_v52  ;;  %1401 = vmatprep.subr.bf16.mxu1 %v1161_v54  ;;  %v1531_v36 = vld [vmem:[#allocation2 + $0xd00] sm:$0xff]  ;;  %v1533_v49 = vld [vmem:[#allocation2 + $0xd10] sm:$0xff]  ;;  %v1540_v50 = vld [vmem:[#allocation2 + $0xd48] sm:$0xff] }
 0x1ee   :  { %v6390_v32 = vpack.c.bf16 %v635_v63, %v633_v1  ;;  %v1539_v55 = vld [vmem:[#allocation2 + $0xd40] sm:$0xff]  ;;  %v1541_v56 = vld [vmem:[#allocation2 + $0xd50] sm:$0xff]  ;;  %v1548_v59 = vld [vmem:[#allocation2 + $0xd88] sm:$0xff] }
 0x1ef   :  { %v1550_v60 = vld [vmem:[#allocation2 + $0xd98] sm:$0xff] }
 0x1f0   :  { %1349 = vmatpush1.bf16.msra.mxu0 %v1158_v4  ;;  %1402 = vmatpush1.bf16.msra.mxu1 %v1160_v7 }
 0x1f1   :  { %1350 = vmatprep.subr.bf16.mxu0 %v1167_v0  ;;  %1403 = vmatprep.subr.bf16.mxu1 %v1169_v5  ;;  %v1547_v0 = vld [vmem:[#allocation2 + $0xd80] sm:$0xff]  ;;  %v1549_v5 = vld [vmem:[#allocation2 + $0xd90] sm:$0xff] }
 0x1f4   :  { %1351 = vmatpush1.bf16.msra.mxu0 %v1166_v46  ;;  %1404 = vmatpush1.bf16.msra.mxu1 %v1168_v10  ;;  %v1556_v10 = vld [vmem:[#allocation2 + $0xdc8] sm:$0xff] }
 0x1f5   :  { %1352 = vmatprep.subr.bf16.mxu0 %v1175_v11  ;;  %1405 = vmatprep.subr.bf16.mxu1 %v1177_v12  ;;  %v1558_v11 = vld [vmem:[#allocation2 + $0xdd8] sm:$0xff]  ;;  %v1555_v12 = vld [vmem:[#allocation2 + $0xdc0] sm:$0xff] }
 0x1f8   :  { %1353 = vmatpush1.bf16.msra.mxu0 %v1174_v14  ;;  %1406 = vmatpush1.bf16.msra.mxu1 %v1176_v16  ;;  %v1557_v14 = vld [vmem:[#allocation2 + $0xdd0] sm:$0xff]  ;;  %v1564_v16 = vld [vmem:[#allocation2 + $0xe08] sm:$0xff] }
 0x1f9   :  { %1354 = vmatprep.subr.bf16.mxu0 %v1183_v34  ;;  %1407 = vmatprep.subr.bf16.mxu1 %v1185_v20  ;;  %v1566_v34 = vld [vmem:[#allocation2 + $0xe18] sm:$0xff] }
 0x1fc   :  { %1355 = vmatpush1.bf16.msra.mxu0 %v1182_v37  ;;  %1408 = vmatpush1.bf16.msra.mxu1 %v1184_v38 }
 0x1fd   :  { %1356 = vmatprep.subr.bf16.mxu0 %v1191_v39  ;;  %1409 = vmatprep.subr.bf16.mxu1 %v1193_v40 }
 0x200   :  { %1357 = vmatpush1.bf16.msra.mxu0 %v1190_v17  ;;  %1410 = vmatpush1.bf16.msra.mxu1 %v1192_v18 }
 0x201   :  { %1358 = vmatprep.subr.bf16.mxu0 %v1199_v19  ;;  %1411 = vmatprep.subr.bf16.mxu1 %v1201_v41  ;;  %v1563_v41 = vld [vmem:[#allocation2 + $0xe00] sm:$0xff] }
 0x204   :  { %1359 = vmatpush1.bf16.msra.mxu0 %v1198_v42  ;;  %1412 = vmatpush1.bf16.msra.mxu1 %v1200_v43  ;;  %v1565_v42 = vld [vmem:[#allocation2 + $0xe10] sm:$0xff] }
 0x205   :  { %1647 = vmatprep.subr.bf16.mxu0 %v1500_v8  ;;  %1700 = vmatprep.subr.bf16.mxu1 %v1502_v21 }
 0x207   :  { %1361 = vmatmul.mubr.bf16.vlgmr.msra.gmra.mrb[40].mxu0 %v6322_v47  ;;  %1414 = vmatmul.mubr.bf16.vlgmr.msra.gmra.mrb[40].mxu1 %v6322_v47  ;;  %v1526_v47 = vld [vmem:[#allocation2 + $0xcd8] sm:$0xff] }
 0x208   :  { %1648 = vmatpush1.bf16.msra.mxu0 %v1499_v22  ;;  %1701 = vmatpush1.bf16.msra.mxu1 %v1501_v44  ;;  %v1572_v22 = vld [vmem:[#allocation2 + $0xe48] sm:$0xff]  ;;  %v1574_v44 = vld [vmem:[#allocation2 + $0xe58] sm:$0xff] }
 0x209   :  { %1649 = vmatprep.subr.bf16.mxu0 %v1508_v45  ;;  %1702 = vmatprep.subr.bf16.mxu1 %v1510_v48  ;;  %v1571_v48 = vld [vmem:[#allocation2 + $0xe40] sm:$0xff] }
 0x20a   :  { %1370 = vmatprep.mubr.bf16.mxu0 %v6327_v53  ;;  %1423 = vmatprep.mubr.bf16.mxu1 %v6327_v53  ;;  %v1523_v53 = vld [vmem:[#allocation2 + $0xcc0] sm:$0xff] }
 0x20c   :  { %1650 = vmatpush1.bf16.msra.mxu0 %v1507_v23  ;;  %1703 = vmatpush1.bf16.msra.mxu1 %v1509_v24  ;;  %v1573_v23 = vld [vmem:[#allocation2 + $0xe50] sm:$0xff]  ;;  %v1580_v24 = vld [vmem:[#allocation2 + $0xe88] sm:$0xff] }
 0x20d   :  { %1651 = vmatprep.subr.bf16.mxu0 %v1516_v25  ;;  %1704 = vmatprep.subr.bf16.mxu1 %v1518_v28  ;;  %v1582_v25 = vld [vmem:[#allocation2 + $0xe98] sm:$0xff]  ;;  %v1579_v28 = vld [vmem:[#allocation2 + $0xe80] sm:$0xff] }
 0x20f   :  { %1371 = vmatmul.mubr.bf16.gmra.mrb[44].mxu0 %v6336_v6  ;;  %1424 = vmatmul.mubr.bf16.gmra.mrb[44].mxu1 %v6336_v6  ;;  %v1542_v6 = vld [vmem:[#allocation2 + $0xd58] sm:$0xff] }
 0x210   :  { %1652 = vmatpush1.bf16.msra.mxu0 %v1515_v27  ;;  %1705 = vmatpush1.bf16.msra.mxu1 %v1517_v29  ;;  %v1581_v27 = vld [vmem:[#allocation2 + $0xe90] sm:$0xff]  ;;  %v1588_v29 = vld [vmem:[#allocation2 + $0xec8] sm:$0xff] }
 0x211   :  { %1653 = vmatprep.subr.bf16.mxu0 %v1524_v30  ;;  %1706 = vmatprep.subr.bf16.mxu1 %v1526_v47  ;;  %v1590_v30 = vld [vmem:[#allocation2 + $0xed8] sm:$0xff]  ;;  %v1587_v47 = vld [vmem:[#allocation2 + $0xec0] sm:$0xff] }
 0x212   :  { %1679 = vmatprep.mubr.bf16.mxu0 %v6399_v26  ;;  %1732 = vmatprep.mubr.bf16.mxu1 %v6399_v26 }
 0x214   :  { %1654 = vmatpush1.bf16.msra.mxu0 %v1523_v53  ;;  %1707 = vmatpush1.bf16.msra.mxu1 %v1525_v31  ;;  %v1589_v53 = vld [vmem:[#allocation2 + $0xed0] sm:$0xff]  ;;  %v1596_v31 = vld [vmem:[#allocation2 + $0xf08] sm:$0xff] }
 0x215   :  { %1655 = vmatprep.subr.bf16.mxu0 %v1532_v33  ;;  %1708 = vmatprep.subr.bf16.mxu1 %v1534_v35  ;;  %v1598_v33 = vld [vmem:[#allocation2 + $0xf18] sm:$0xff]  ;;  %v1595_v35 = vld [vmem:[#allocation2 + $0xf00] sm:$0xff] }
 0x218   :  { %1656 = vmatpush1.bf16.msra.mxu0 %v1531_v36  ;;  %1709 = vmatpush1.bf16.msra.mxu1 %v1533_v49  ;;  %v1597_v36 = vld [vmem:[#allocation2 + $0xf10] sm:$0xff]  ;;  %v1604_v49 = vld [vmem:[#allocation2 + $0xf48] sm:$0xff] }
 0x219   :  { %1657 = vmatprep.subr.bf16.mxu0 %v1540_v50  ;;  %1710 = vmatprep.subr.bf16.mxu1 %v1542_v6  ;;  %v1606_v50 = vld [vmem:[#allocation2 + $0xf58] sm:$0xff]  ;;  %v1603_v6 = vld [vmem:[#allocation2 + $0xf40] sm:$0xff] }
 0x21a   :  { %v6405_v57 = vpop.f32.mrb[16].mxu0  ;;  %v6407_v58 = vpop.f32.mrb[16].mxu1 }
 0x21b   :  { %v1009_v51 = vmax.f32 %v6405_v57, %v6407_v58  ;;  %v6411_v52 = vpop.f32.mrb[17].mxu0  ;;  %v6413_v54 = vpop.f32.mrb[17].mxu1 }
 0x21c   :  { %v1010_v61 = vmax.f32 %v6411_v52, %v6413_v54  ;;  %v6417_v62 = vpop.f32.mrb[18].mxu0  ;;  %v6419_v1 = vpop.f32.mrb[18].mxu1  ;;  %1658 = vmatpush1.bf16.msra.mxu0 %v1539_v55  ;;  %1711 = vmatpush1.bf16.msra.mxu1 %v1541_v56  ;;  %v1605_v55 = vld [vmem:[#allocation2 + $0xf50] sm:$0xff]  ;;  %v1612_v56 = vld [vmem:[#allocation2 + $0xf88] sm:$0xff]  ;;  %v1559_v54 = vld [vmem:[#allocation2 + $0xde0] sm:$0xff] }
 0x21d   :  { %v1011_v63 = vmax.f32 %v6417_v62, %v6419_v1  ;;  %v6423_v4 = vpop.f32.mrb[19].mxu0  ;;  %v6425_v7 = vpop.f32.mrb[19].mxu1  ;;  %1659 = vmatprep.subr.bf16.mxu0 %v1548_v59  ;;  %1712 = vmatprep.subr.bf16.mxu1 %v1550_v60  ;;  %v1614_v59 = vld [vmem:[#allocation2 + $0xf98] sm:$0xff]  ;;  %v1611_v60 = vld [vmem:[#allocation2 + $0xf80] sm:$0xff]  ;;  %v1568_v62 = vld [vmem:[#allocation2 + $0xe28] sm:$0xff] }
 0x21e   :  { %v1012_v46 = vmax.f32 %v6423_v4, %v6425_v7  ;;  %v1570_v1 = vld [vmem:[#allocation2 + $0xe38] sm:$0xff] }
 0x220   :  { %1660 = vmatpush1.bf16.msra.mxu0 %v1547_v0  ;;  %1713 = vmatpush1.bf16.msra.mxu1 %v1549_v5  ;;  %v1613_v0 = vld [vmem:[#allocation2 + $0xf90] sm:$0xff]  ;;  %v1620_v5 = vld [vmem:[#allocation2 + $0xfc8] sm:$0xff] }
 0x221   :  { %1661 = vmatprep.subr.bf16.mxu0 %v1556_v10  ;;  %1714 = vmatprep.subr.bf16.mxu1 %v1558_v11  ;;  %v1622_v10 = vld [vmem:[#allocation2 + $0xfd8] sm:$0xff]  ;;  %v1619_v11 = vld [vmem:[#allocation2 + $0xfc0] sm:$0xff] }
 0x222   :  { %v6429_v20 = vpop.f32.mrb[20].mxu0  ;;  %v6431_v37 = vpop.f32.mrb[20].mxu1 }
 0x223   :  { %v1013_v38 = vmax.f32 %v6429_v20, %v6431_v37  ;;  %v6435_v39 = vpop.f32.mrb[21].mxu0  ;;  %v6437_v40 = vpop.f32.mrb[21].mxu1 }
 0x224   :  { %1662 = vmatpush1.bf16.msra.mxu0 %v1555_v12  ;;  %1715 = vmatpush1.bf16.msra.mxu1 %v1557_v14  ;;  %v1014_v17 = vmax.f32 %v6435_v39, %v6437_v40  ;;  %v6441_v18 = vpop.f32.mrb[22].mxu0  ;;  %v6443_v19 = vpop.f32.mrb[22].mxu1  ;;  %v1621_v12 = vld [vmem:[#allocation2 + $0xfd0] sm:$0xff]  ;;  %v1504_v14 = vld [vmem:[#allocation2 + $0xc28] sm:$0xff]  ;;  %v1575_v40 = vld [vmem:[#allocation2 + $0xe60] sm:$0xff] }
 0x225   :  { %1663 = vmatprep.subr.bf16.mxu0 %v1564_v16  ;;  %1716 = vmatprep.subr.bf16.mxu1 %v1566_v34  ;;  %v1015_v43 = vmax.f32 %v6441_v18, %v6443_v19  ;;  %v6447_v8 = vpop.f32.mrb[23].mxu0  ;;  %v6449_v21 = vpop.f32.mrb[23].mxu1  ;;  %v1506_v16 = vld [vmem:[#allocation2 + $0xc38] sm:$0xff] }
 0x226   :  { %v1016_v45 = vmax.f32 %v6447_v8, %v6449_v21  ;;  %v6456_v34 = vld [vmem:[%s6982_s0 + $0x18] ss:$48 sps:$4 sm:$0xff]   ;;  %v1583_v21 = vld [vmem:[#allocation2 + $0xea0] sm:$0xff] }
 0x228   :  { %1664 = vmatpush1.bf16.msra.mxu0 %v1563_v41  ;;  %1717 = vmatpush1.bf16.msra.mxu1 %v1565_v42  ;;  %v1503_v41 = vld [vmem:[#allocation2 + $0xc20] sm:$0xff]  ;;  %v1505_v42 = vld [vmem:[#allocation2 + $0xc30] sm:$0xff] }
 0x229   :  { %1665 = vmatprep.subr.bf16.mxu0 %v1572_v22  ;;  %1718 = vmatprep.subr.bf16.mxu1 %v1574_v44  ;;  %v1512_v22 = vld [vmem:[#allocation2 + $0xc68] sm:$0xff]  ;;  %v1514_v44 = vld [vmem:[#allocation2 + $0xc78] sm:$0xff] }
 0x22c   :  { %1666 = vmatpush1.bf16.msra.mxu0 %v1571_v48  ;;  %1719 = vmatpush1.bf16.msra.mxu1 %v1573_v23  ;;  %v6461_v48 = vld [vmem:[%s6982_s0 + $0x7c] ss:$48 sps:$4 sm:$0xff]   ;;  %v1511_v23 = vld [vmem:[#allocation2 + $0xc60] sm:$0xff] }
 0x22d   :  { %1667 = vmatprep.subr.bf16.mxu0 %v1580_v24  ;;  %1720 = vmatprep.subr.bf16.mxu1 %v1582_v25  ;;  %v1513_v24 = vld [vmem:[#allocation2 + $0xc70] sm:$0xff]  ;;  %v1520_v25 = vld [vmem:[#allocation2 + $0xca8] sm:$0xff] }
 0x230   :  { %1668 = vmatpush1.bf16.msra.mxu0 %v1579_v28  ;;  %1721 = vmatpush1.bf16.msra.mxu1 %v1581_v27  ;;  %v1522_v28 = vld [vmem:[#allocation2 + $0xcb8] sm:$0xff] }
 0x231   :  { %1669 = vmatprep.subr.bf16.mxu0 %v1588_v29  ;;  %1722 = vmatprep.subr.bf16.mxu1 %v1590_v30  ;;  %v6470_v27 = vld [vmem:[%s6982_s0 + $0x78] ss:$48 sps:$4 sm:$0xff]   ;;  %v1519_v29 = vld [vmem:[#allocation2 + $0xca0] sm:$0xff]  ;;  %v1521_v30 = vld [vmem:[#allocation2 + $0xcb0] sm:$0xff] }
 0x234   :  { %1670 = vmatpush1.bf16.msra.mxu0 %v1587_v47  ;;  %1723 = vmatpush1.bf16.msra.mxu1 %v1589_v53  ;;  %v1528_v47 = vld [vmem:[#allocation2 + $0xce8] sm:$0xff]  ;;  %v1530_v53 = vld [vmem:[#allocation2 + $0xcf8] sm:$0xff] }
 0x235   :  { %1671 = vmatprep.subr.bf16.mxu0 %v1596_v31  ;;  %1724 = vmatprep.subr.bf16.mxu1 %v1598_v33  ;;  %v1527_v31 = vld [vmem:[#allocation2 + $0xce0] sm:$0xff]  ;;  %v1529_v33 = vld [vmem:[#allocation2 + $0xcf0] sm:$0xff] }
 0x238   :  { %1672 = vmatpush1.bf16.msra.mxu0 %v1595_v35  ;;  %1725 = vmatpush1.bf16.msra.mxu1 %v1597_v36  ;;  %v1536_v35 = vld [vmem:[#allocation2 + $0xd28] sm:$0xff]  ;;  %v1538_v36 = vld [vmem:[#allocation2 + $0xd38] sm:$0xff] }
 0x239   :  { %1673 = vmatprep.subr.bf16.mxu0 %v1604_v49  ;;  %1726 = vmatprep.subr.bf16.mxu1 %v1606_v50  ;;  %v1535_v49 = vld [vmem:[#allocation2 + $0xd20] sm:$0xff]  ;;  %v1537_v50 = vld [vmem:[#allocation2 + $0xd30] sm:$0xff] }
 0x23c   :  { %1674 = vmatpush1.bf16.msra.mxu0 %v1603_v6  ;;  %1727 = vmatpush1.bf16.msra.mxu1 %v1605_v55  ;;  %v1544_v6 = vld [vmem:[#allocation2 + $0xd68] sm:$0xff]  ;;  %v1546_v55 = vld [vmem:[#allocation2 + $0xd78] sm:$0xff] }
 0x23d   :  { %1675 = vmatprep.subr.bf16.mxu0 %v1612_v56  ;;  %1728 = vmatprep.subr.bf16.mxu1 %v1614_v59  ;;  %v1033_v56 = vld [vmem:[#allocation6 + $0x2] sm:$0x3] }
 0x23e   :  { %v1543_v59 = vld [vmem:[#allocation2 + $0xd60] sm:$0xff] }
 0x240   :  { %1676 = vmatpush1.bf16.msra.mxu0 %v1611_v60  ;;  %1729 = vmatpush1.bf16.msra.mxu1 %v1613_v0  ;;  %v1545_v60 = vld [vmem:[#allocation2 + $0xd70] sm:$0xff] }
 0x241   :  { %1677 = vmatprep.subr.bf16.mxu0 %v1620_v5  ;;  %1730 = vmatprep.subr.bf16.mxu1 %v1622_v10  ;;  %v1552_v10 = vld [vmem:[#allocation2 + $0xda8] sm:$0xff] }
 0x244   :  { %1678 = vmatpush1.bf16.msra.mxu0 %v1619_v11  ;;  %1731 = vmatpush1.bf16.msra.mxu1 %v1621_v12  ;;  %v1554_v11 = vld [vmem:[#allocation2 + $0xdb8] sm:$0xff]  ;;  %v6477_v12 = vrot.slane %v1033_v56, %v6342_v9 }
 0x245   :  { %1753 = vmatprep.subr.bf16.mxu0 %v1504_v14  ;;  %1806 = vmatprep.subr.bf16.mxu1 %v1506_v16 }
 0x247   :  { %1680 = vmatmul.mubr.bf16.vlgmr.msra.gmra.mrb[48].mxu0 %v6456_v34  ;;  %1733 = vmatmul.mubr.bf16.vlgmr.msra.gmra.mrb[48].mxu1 %v6456_v34 }
 0x248   :  { %1754 = vmatpush1.bf16.msra.mxu0 %v1503_v41  ;;  %1807 = vmatpush1.bf16.msra.mxu1 %v1505_v42  ;;  %v6480_v42 = vrot.slane %v1033_v56, %v6344_v13 }
 0x249   :  { %1755 = vmatprep.subr.bf16.mxu0 %v1512_v22  ;;  %1808 = vmatprep.subr.bf16.mxu1 %v1514_v44 }
 0x24a   :  { %1689 = vmatprep.mubr.bf16.mxu0 %v6461_v48  ;;  %1742 = vmatprep.mubr.bf16.mxu1 %v6461_v48 }
 0x24c   :  { %1756 = vmatpush1.bf16.msra.mxu0 %v1511_v23  ;;  %1809 = vmatpush1.bf16.msra.mxu1 %v1513_v24 }
 0x24d   :  { %1757 = vmatprep.subr.bf16.mxu0 %v1520_v25  ;;  %1810 = vmatprep.subr.bf16.mxu1 %v1522_v28 }
 0x24f   :  { %1690 = vmatmul.mubr.bf16.gmra.mrb[52].mxu0 %v6470_v27  ;;  %1743 = vmatmul.mubr.bf16.gmra.mrb[52].mxu1 %v6470_v27 }
 0x250   :  { %1758 = vmatpush1.bf16.msra.mxu0 %v1519_v29  ;;  %1811 = vmatpush1.bf16.msra.mxu1 %v1521_v30  ;;  %v1551_v29 = vld [vmem:[#allocation2 + $0xda0] sm:$0xff]  ;;  %v1553_v30 = vld [vmem:[#allocation2 + $0xdb0] sm:$0xff] }
 0x251   :  { %1759 = vmatprep.subr.bf16.mxu0 %v1528_v47  ;;  %1812 = vmatprep.subr.bf16.mxu1 %v1530_v53 }
 0x252   :  { %1785 = vmatprep.mubr.bf16.mxu0 %v6399_v26  ;;  %1838 = vmatprep.mubr.bf16.mxu1 %v6399_v26 }
 0x254   :  { %1760 = vmatpush1.bf16.msra.mxu0 %v1527_v31  ;;  %1813 = vmatpush1.bf16.msra.mxu1 %v1529_v33  ;;  %v1560_v31 = vld [vmem:[#allocation2 + $0xde8] sm:$0xff]  ;;  %v1562_v33 = vld [vmem:[#allocation2 + $0xdf8] sm:$0xff] }
 0x255   :  { %1761 = vmatprep.subr.bf16.mxu0 %v1536_v35  ;;  %1814 = vmatprep.subr.bf16.mxu1 %v1538_v36 }
 0x258   :  { %1762 = vmatpush1.bf16.msra.mxu0 %v1535_v49  ;;  %1815 = vmatpush1.bf16.msra.mxu1 %v1537_v50 }
 0x259   :  { %1763 = vmatprep.subr.bf16.mxu0 %v1544_v6  ;;  %1816 = vmatprep.subr.bf16.mxu1 %v1546_v55 }
 0x25a   :  { %v937_v0 = vpop.f32.mrb[24].mxu0  ;;  %v990_v5 = vpop.f32.mrb[24].mxu1 }
 0x25b   :  { %v1017_v26 = vmax.f32 %v937_v0, %v990_v5  ;;  %v939_v14 = vpop.f32.mrb[25].mxu0  ;;  %v992_v16 = vpop.f32.mrb[25].mxu1 }
 0x25c   :  { %v1018_v41 = vmax.f32 %v939_v14, %v992_v16  ;;  %v941_v22 = vpop.f32.mrb[26].mxu0  ;;  %v994_v44 = vpop.f32.mrb[26].mxu1  ;;  %1764 = vmatpush1.bf16.msra.mxu0 %v1543_v59  ;;  %1817 = vmatpush1.bf16.msra.mxu1 %v1545_v60  ;;  %v1567_v16 = vld [vmem:[#allocation2 + $0xe20] sm:$0xff] }
 0x25d   :  { %v1025_v23 = vmax.f32 %v1009_v51, %v1017_v26  ;;  %v1019_v24 = vmax.f32 %v941_v22, %v994_v44  ;;  %v943_v25 = vpop.f32.mrb[27].mxu0  ;;  %v996_v28 = vpop.f32.mrb[27].mxu1  ;;  %1765 = vmatprep.subr.bf16.mxu0 %v1552_v10  ;;  %1818 = vmatprep.subr.bf16.mxu1 %v1554_v11 }
 0x25e   :  { %v1026_v47 = vmax.f32 %v1010_v61, %v1018_v41  ;;  %v1020_v53 = vmax.f32 %v943_v25, %v996_v28  ;;  %v1561_v61 = vld [vmem:[#allocation2 + $0xdf0] sm:$0xff]  ;;  %v1578_v25 = vld [vmem:[#allocation2 + $0xe78] sm:$0xff] }
 0x25f   :  { %v1045_v35 = vadd.f32 %v6477_v12, %v1025_v23  ;;  %v1027_v57 = vmax.f32 %v1011_v63, %v1019_v24  ;;  %v1569_v41 = vld [vmem:[#allocation2 + $0xe30] sm:$0xff]  ;;  %v1576_v24 = vld [vmem:[#allocation2 + $0xe68] sm:$0xff] }
 0x260   :  { %v1046_v58 = vadd.f32 %v6480_v42, %v1026_v47  ;;  %v1028_v51 = vmax.f32 %v1012_v46, %v1020_v53  ;;  %1766 = vmatpush1.bf16.msra.mxu0 %v1551_v29  ;;  %1819 = vmatpush1.bf16.msra.mxu1 %v1553_v30  ;;  %v1584_v30 = vld [vmem:[#allocation2 + $0xea8] sm:$0xff]  ;;  %v1586_v47 = vld [vmem:[#allocation2 + $0xeb8] sm:$0xff] }
 0x261   :  { %v1047_v52 = vadd.f32 %v6477_v12, %v1027_v57  ;;  %1767 = vmatprep.subr.bf16.mxu0 %v1560_v31  ;;  %1820 = vmatprep.subr.bf16.mxu1 %v1562_v33  ;;  %v1053_v63 = vmax.f32 %v1045_v35, 0.0  ;;  %v1592_v31 = vld [vmem:[#allocation2 + $0xee8] sm:$0xff]  ;;  %v1594_v33 = vld [vmem:[#allocation2 + $0xef8] sm:$0xff]  ;;  %v1593_v35 = vld [vmem:[#allocation2 + $0xef0] sm:$0xff] }
 0x262   :  { %v1048_v36 = vadd.f32 %v6480_v42, %v1028_v51  ;;  %v947_v49 = vpop.f32.mrb[28].mxu0  ;;  %v1000_v50 = vpop.f32.mrb[28].mxu1  ;;  %v1054_v7 = vmax.f32 %v1046_v58, 0.0  ;;  %v1600_v57 = vld [vmem:[#allocation2 + $0xf28] sm:$0xff]  ;;  %v1602_v58 = vld [vmem:[#allocation2 + $0xf38] sm:$0xff]  ;;  %v1599_v51 = vld [vmem:[#allocation2 + $0xf20] sm:$0xff] }
 0x263   :  { %v1055_v6 = vmax.f32 %v1047_v52, 0.0  ;;  %v1021_v55 = vmax.f32 %v947_v49, %v1000_v50  ;;  %v949_v56 = vpop.f32.mrb[29].mxu0  ;;  %v1002_v4 = vpop.f32.mrb[29].mxu1  ;;  %v1601_v52 = vld [vmem:[#allocation2 + $0xf30] sm:$0xff]  ;;  %v1616_v50 = vld [vmem:[#allocation2 + $0xfa8] sm:$0xff] }
 0x264   :  { %v1056_v46 = vmax.f32 %v1048_v36, 0.0  ;;  %v1022_v59 = vmax.f32 %v949_v56, %v1002_v4  ;;  %v951_v60 = vpop.f32.mrb[30].mxu0  ;;  %v1004_v0 = vpop.f32.mrb[30].mxu1  ;;  %1768 = vmatpush1.bf16.msra.mxu0 %v1559_v54  ;;  %1821 = vmatpush1.bf16.msra.mxu1 %v1561_v61  ;;  %v1608_v54 = vld [vmem:[#allocation2 + $0xf68] sm:$0xff]  ;;  %v1610_v61 = vld [vmem:[#allocation2 + $0xf78] sm:$0xff]  ;;  %v1607_v36 = vld [vmem:[#allocation2 + $0xf60] sm:$0xff] }
 0x265   :  { %v6498_v5 = vpack.c.bf16 %v1055_v6, %v1053_v63  ;;  %v1029_v10 = vmax.f32 %v1013_v38, %v1021_v55  ;;  %v1023_v11 = vmax.f32 %v951_v60, %v1004_v0  ;;  %v953_v26 = vpop.f32.mrb[31].mxu0  ;;  %v1006_v14 = vpop.f32.mrb[31].mxu1  ;;  %1769 = vmatprep.subr.bf16.mxu0 %v1568_v62  ;;  %1822 = vmatprep.subr.bf16.mxu1 %v1570_v1  ;;  %v1609_v49 = vld [vmem:[#allocation2 + $0xf70] sm:$0xff]  ;;  %v1618_v62 = vld [vmem:[#allocation2 + $0xfb8] sm:$0xff]  ;;  %v1615_v1 = vld [vmem:[#allocation2 + $0xfa0] sm:$0xff] }
 0x266   :  { %v6503_v22 = vpack.c.bf16 %v1056_v46, %v1054_v7  ;;  %v1030_v44 = vmax.f32 %v1014_v17, %v1022_v59  ;;  %v1024_v23 = vmax.f32 %v953_v26, %v1006_v14  ;;  %v1577_v17 = vld [vmem:[#allocation2 + $0xe70] sm:$0xff]  ;;  %v1624_v6 = vld [vmem:[#allocation2 + $0xfe8] sm:$0xff]  ;;  %v1626_v55 = vld [vmem:[#allocation2 + $0xff8] sm:$0xff] }
 0x267   :  { %v1049_v28 = vadd.f32 %v6477_v12, %v1029_v10  ;;  %v1031_v20 = vmax.f32 %v1015_v43, %v1023_v11  ;;  %v1617_v63 = vld [vmem:[#allocation2 + $0xfb0] sm:$0xff]  ;;  %v1623_v56 = vld [vmem:[#allocation2 + $0xfe0] sm:$0xff]  ;;  %v1925_v7 = vld [vmem:[#allocation2 + $0x1008] sm:$0xff] }
 0x268   :  { %v1050_v37 = vadd.f32 %v6480_v42, %v1030_v44  ;;  %v1032_v38 = vmax.f32 %v1016_v45, %v1024_v23  ;;  %1770 = vmatpush1.bf16.msra.mxu0 %v1567_v16  ;;  %1823 = vmatpush1.bf16.msra.mxu1 %v1569_v41  ;;  %v1585_v45 = vld [vmem:[#allocation2 + $0xeb0] sm:$0xff]  ;;  %v1927_v46 = vld [vmem:[#allocation2 + $0x1018] sm:$0xff]  ;;  %v1924_v59 = vld [vmem:[#allocation2 + $0x1000] sm:$0xff] }
 0x269   :  { %v1051_v39 = vadd.f32 %v6477_v12, %v1031_v20  ;;  %1771 = vmatprep.subr.bf16.mxu0 %v1576_v24  ;;  %1824 = vmatprep.subr.bf16.mxu1 %v1578_v25  ;;  %v1057_v18 = vmax.f32 %v1049_v28, 0.0  ;;  %v1625_v4 = vld [vmem:[#allocation2 + $0xff0] sm:$0xff]  ;;  %v1933_v0 = vld [vmem:[#allocation2 + $0x1048] sm:$0xff]  ;;  %v1935_v10 = vld [vmem:[#allocation2 + $0x1058] sm:$0xff] }
 0x26a   :  { %v1052_v29 = vadd.f32 %v6480_v42, %v1032_v38  ;;  %v1058_v43 = vmax.f32 %v1050_v37, 0.0  ;;  %v1591_v42 = vld [vmem:[#allocation2 + $0xee0] sm:$0xff]  ;;  %v1926_v60 = vld [vmem:[#allocation2 + $0x1010] sm:$0xff]  ;;  %v1941_v14 = vld [vmem:[#allocation2 + $0x1088] sm:$0xff] }
 0x26b   :  { %v1059_v19 = vmax.f32 %v1051_v39, 0.0  ;;  %v1932_v11 = vld [vmem:[#allocation2 + $0x1040] sm:$0xff]  ;;  %v1934_v26 = vld [vmem:[#allocation2 + $0x1050] sm:$0xff]  ;;  %v1943_v16 = vld [vmem:[#allocation2 + $0x1098] sm:$0xff] }
 0x26c   :  { %v1060_v53 = vmax.f32 %v1052_v29, 0.0  ;;  %1772 = vmatpush1.bf16.msra.mxu0 %v1575_v40  ;;  %1825 = vmatpush1.bf16.msra.mxu1 %v1577_v17  ;;  %v1940_v41 = vld [vmem:[#allocation2 + $0x1080] sm:$0xff]  ;;  %v1942_v44 = vld [vmem:[#allocation2 + $0x1090] sm:$0xff]  ;;  %v1949_v23 = vld [vmem:[#allocation2 + $0x10c8] sm:$0xff] }
 0x26d   :  { %v6518_v8 = vpack.c.bf16 %v1059_v19, %v1057_v18  ;;  %1773 = vmatprep.subr.bf16.mxu0 %v1584_v30  ;;  %1826 = vmatprep.subr.bf16.mxu1 %v1586_v47  ;;  %v6529_v24 = vld [vmem:[%s6982_s0 + $0x24] ss:$48 sps:$4 sm:$0xff]   ;;  %v1957_v28 = vld [vmem:[#allocation2 + $0x1108] sm:$0xff]  ;;  %v1959_v20 = vld [vmem:[#allocation2 + $0x1118] sm:$0xff] }
 0x26e   :  { %v6520_v12 = vpack.c.bf16 %v1060_v53, %v1058_v43  ;;  %v1950_v25 = vld [vmem:[#allocation2 + $0x10d0] sm:$0xff]  ;;  %v1956_v37 = vld [vmem:[#allocation2 + $0x1100] sm:$0xff]  ;;  %v1965_v39 = vld [vmem:[#allocation2 + $0x1148] sm:$0xff] }
 0x26f   :  { %v1958_v38 = vld [vmem:[#allocation2 + $0x1110] sm:$0xff]  ;;  %v1964_v40 = vld [vmem:[#allocation2 + $0x1140] sm:$0xff]  ;;  %v1973_v47 = vld [vmem:[#allocation2 + $0x1188] sm:$0xff] }
 0x270   :  { %1774 = vmatpush1.bf16.msra.mxu0 %v1583_v21  ;;  %1827 = vmatpush1.bf16.msra.mxu1 %v1585_v45  ;;  %v1966_v17 = vld [vmem:[#allocation2 + $0x1150] sm:$0xff]  ;;  %v1975_v18 = vld [vmem:[#allocation2 + $0x1198] sm:$0xff] }
 0x271   :  { %1775 = vmatprep.subr.bf16.mxu0 %v1592_v31  ;;  %1828 = vmatprep.subr.bf16.mxu1 %v1594_v33 }
 0x274   :  { %1776 = vmatpush1.bf16.msra.mxu0 %v1591_v42  ;;  %1829 = vmatpush1.bf16.msra.mxu1 %v1593_v35 }
 0x275   :  { %1777 = vmatprep.subr.bf16.mxu0 %v1600_v57  ;;  %1830 = vmatprep.subr.bf16.mxu1 %v1602_v58  ;;  %v1972_v57 = vld [vmem:[#allocation2 + $0x1180] sm:$0xff]  ;;  %v1974_v58 = vld [vmem:[#allocation2 + $0x1190] sm:$0xff] }
 0x278   :  { %1778 = vmatpush1.bf16.msra.mxu0 %v1599_v51  ;;  %1831 = vmatpush1.bf16.msra.mxu1 %v1601_v52  ;;  %v1981_v52 = vld [vmem:[#allocation2 + $0x11c8] sm:$0xff] }
 0x279   :  { %1779 = vmatprep.subr.bf16.mxu0 %v1608_v54  ;;  %1832 = vmatprep.subr.bf16.mxu1 %v1610_v61  ;;  %v1983_v54 = vld [vmem:[#allocation2 + $0x11d8] sm:$0xff]  ;;  %v1980_v61 = vld [vmem:[#allocation2 + $0x11c0] sm:$0xff] }
 0x27c   :  { %1780 = vmatpush1.bf16.msra.mxu0 %v1607_v36  ;;  %1833 = vmatpush1.bf16.msra.mxu1 %v1609_v49  ;;  %v1982_v36 = vld [vmem:[#allocation2 + $0x11d0] sm:$0xff]  ;;  %v1989_v49 = vld [vmem:[#allocation2 + $0x1208] sm:$0xff] }
 0x27d   :  { %1781 = vmatprep.subr.bf16.mxu0 %v1616_v50  ;;  %1834 = vmatprep.subr.bf16.mxu1 %v1618_v62  ;;  %v1991_v50 = vld [vmem:[#allocation2 + $0x1218] sm:$0xff] }
 0x280   :  { %1782 = vmatpush1.bf16.msra.mxu0 %v1615_v1  ;;  %1835 = vmatpush1.bf16.msra.mxu1 %v1617_v63 }
 0x281   :  { %1783 = vmatprep.subr.bf16.mxu0 %v1624_v6  ;;  %1836 = vmatprep.subr.bf16.mxu1 %v1626_v55 }
 0x284   :  { %1784 = vmatpush1.bf16.msra.mxu0 %v1623_v56  ;;  %1837 = vmatpush1.bf16.msra.mxu1 %v1625_v4 }
 0x285   :  { %2072 = vmatprep.subr.bf16.mxu0 %v1925_v7  ;;  %2125 = vmatprep.subr.bf16.mxu1 %v1927_v46  ;;  %v1988_v46 = vld [vmem:[#allocation2 + $0x1200] sm:$0xff] }
 0x287   :  { %1786 = vmatmul.mubr.bf16.vlgmr.msra.gmra.mrb[56].mxu0 %v6456_v34  ;;  %1839 = vmatmul.mubr.bf16.vlgmr.msra.gmra.mrb[56].mxu1 %v6456_v34  ;;  %v1951_v34 = vld [vmem:[#allocation2 + $0x10d8] sm:$0xff] }
 0x288   :  { %2073 = vmatpush1.bf16.msra.mxu0 %v1924_v59  ;;  %2126 = vmatpush1.bf16.msra.mxu1 %v1926_v60  ;;  %v1990_v59 = vld [vmem:[#allocation2 + $0x1210] sm:$0xff] }
 0x289   :  { %2074 = vmatprep.subr.bf16.mxu0 %v1933_v0  ;;  %2127 = vmatprep.subr.bf16.mxu1 %v1935_v10 }
 0x28a   :  { %1795 = vmatprep.mubr.bf16.mxu0 %v6461_v48  ;;  %1848 = vmatprep.mubr.bf16.mxu1 %v6461_v48  ;;  %v1948_v48 = vld [vmem:[#allocation2 + $0x10c0] sm:$0xff] }
 0x28c   :  { %2075 = vmatpush1.bf16.msra.mxu0 %v1932_v11  ;;  %2128 = vmatpush1.bf16.msra.mxu1 %v1934_v26  ;;  %v1997_v11 = vld [vmem:[#allocation2 + $0x1248] sm:$0xff]  ;;  %v1999_v26 = vld [vmem:[#allocation2 + $0x1258] sm:$0xff] }
 0x28d   :  { %2076 = vmatprep.subr.bf16.mxu0 %v1941_v14  ;;  %2129 = vmatprep.subr.bf16.mxu1 %v1943_v16  ;;  %v1996_v16 = vld [vmem:[#allocation2 + $0x1240] sm:$0xff] }
 0x28f   :  { %1796 = vmatmul.mubr.bf16.gmra.mrb[60].mxu0 %v6470_v27  ;;  %1849 = vmatmul.mubr.bf16.gmra.mrb[60].mxu1 %v6470_v27  ;;  %v1967_v27 = vld [vmem:[#allocation2 + $0x1158] sm:$0xff] }
 0x290   :  { %2077 = vmatpush1.bf16.msra.mxu0 %v1940_v41  ;;  %2130 = vmatpush1.bf16.msra.mxu1 %v1942_v44  ;;  %v1998_v41 = vld [vmem:[#allocation2 + $0x1250] sm:$0xff]  ;;  %v2005_v44 = vld [vmem:[#allocation2 + $0x1288] sm:$0xff] }
 0x291   :  { %2078 = vmatprep.subr.bf16.mxu0 %v1949_v23  ;;  %2131 = vmatprep.subr.bf16.mxu1 %v1951_v34  ;;  %v2007_v23 = vld [vmem:[#allocation2 + $0x1298] sm:$0xff]  ;;  %v2004_v34 = vld [vmem:[#allocation2 + $0x1280] sm:$0xff] }
 0x292   :  { %2104 = vmatprep.mubr.bf16.mxu0 %v6529_v24  ;;  %2157 = vmatprep.mubr.bf16.mxu1 %v6529_v24 }
 0x294   :  { %2079 = vmatpush1.bf16.msra.mxu0 %v1948_v48  ;;  %2132 = vmatpush1.bf16.msra.mxu1 %v1950_v25  ;;  %v2006_v48 = vld [vmem:[#allocation2 + $0x1290] sm:$0xff]  ;;  %v2013_v25 = vld [vmem:[#allocation2 + $0x12c8] sm:$0xff] }
 0x295   :  { %2080 = vmatprep.subr.bf16.mxu0 %v1957_v28  ;;  %2133 = vmatprep.subr.bf16.mxu1 %v1959_v20  ;;  %v2015_v28 = vld [vmem:[#allocation2 + $0x12d8] sm:$0xff]  ;;  %v2012_v20 = vld [vmem:[#allocation2 + $0x12c0] sm:$0xff] }
 0x298   :  { %2081 = vmatpush1.bf16.msra.mxu0 %v1956_v37  ;;  %2134 = vmatpush1.bf16.msra.mxu1 %v1958_v38  ;;  %v2014_v37 = vld [vmem:[#allocation2 + $0x12d0] sm:$0xff]  ;;  %v2021_v38 = vld [vmem:[#allocation2 + $0x1308] sm:$0xff] }
 0x299   :  { %2082 = vmatprep.subr.bf16.mxu0 %v1965_v39  ;;  %2135 = vmatprep.subr.bf16.mxu1 %v1967_v27  ;;  %v2023_v39 = vld [vmem:[#allocation2 + $0x1318] sm:$0xff]  ;;  %v2020_v27 = vld [vmem:[#allocation2 + $0x1300] sm:$0xff] }
 0x29a   :  { %v6535_v29 = vpop.f32.mrb[32].mxu0  ;;  %v6537_v30 = vpop.f32.mrb[32].mxu1 }
 0x29b   :  { %v1434_v19 = vmax.f32 %v6535_v29, %v6537_v30  ;;  %v6541_v43 = vpop.f32.mrb[33].mxu0  ;;  %v6543_v53 = vpop.f32.mrb[33].mxu1 }
 0x29c   :  { %v1435_v21 = vmax.f32 %v6541_v43, %v6543_v53  ;;  %v6547_v45 = vpop.f32.mrb[34].mxu0  ;;  %v6549_v31 = vpop.f32.mrb[34].mxu1  ;;  %2083 = vmatpush1.bf16.msra.mxu0 %v1964_v40  ;;  %2136 = vmatpush1.bf16.msra.mxu1 %v1966_v17  ;;  %v2022_v40 = vld [vmem:[#allocation2 + $0x1310] sm:$0xff]  ;;  %v2029_v17 = vld [vmem:[#allocation2 + $0x1348] sm:$0xff]  ;;  %v1984_v53 = vld [vmem:[#allocation2 + $0x11e0] sm:$0xff] }
 0x29d   :  { %v1436_v33 = vmax.f32 %v6547_v45, %v6549_v31  ;;  %v6553_v42 = vpop.f32.mrb[35].mxu0  ;;  %v6555_v35 = vpop.f32.mrb[35].mxu1  ;;  %2084 = vmatprep.subr.bf16.mxu0 %v1973_v47  ;;  %2137 = vmatprep.subr.bf16.mxu1 %v1975_v18  ;;  %v2031_v47 = vld [vmem:[#allocation2 + $0x1358] sm:$0xff]  ;;  %v2028_v18 = vld [vmem:[#allocation2 + $0x1340] sm:$0xff]  ;;  %v1993_v45 = vld [vmem:[#allocation2 + $0x1228] sm:$0xff] }
 0x29e   :  { %v1437_v51 = vmax.f32 %v6553_v42, %v6555_v35  ;;  %v1995_v31 = vld [vmem:[#allocation2 + $0x1238] sm:$0xff] }
 0x2a0   :  { %2085 = vmatpush1.bf16.msra.mxu0 %v1972_v57  ;;  %2138 = vmatpush1.bf16.msra.mxu1 %v1974_v58  ;;  %v2030_v57 = vld [vmem:[#allocation2 + $0x1350] sm:$0xff]  ;;  %v2037_v58 = vld [vmem:[#allocation2 + $0x1388] sm:$0xff] }
 0x2a1   :  { %2086 = vmatprep.subr.bf16.mxu0 %v1981_v52  ;;  %2139 = vmatprep.subr.bf16.mxu1 %v1983_v54  ;;  %v2039_v52 = vld [vmem:[#allocation2 + $0x1398] sm:$0xff]  ;;  %v2036_v54 = vld [vmem:[#allocation2 + $0x1380] sm:$0xff] }
 0x2a2   :  { %v6559_v62 = vpop.f32.mrb[36].mxu0  ;;  %v6561_v1 = vpop.f32.mrb[36].mxu1 }
 0x2a3   :  { %v1438_v63 = vmax.f32 %v6559_v62, %v6561_v1  ;;  %v6565_v6 = vpop.f32.mrb[37].mxu0  ;;  %v6567_v55 = vpop.f32.mrb[37].mxu1 }
 0x2a4   :  { %2087 = vmatpush1.bf16.msra.mxu0 %v1980_v61  ;;  %2140 = vmatpush1.bf16.msra.mxu1 %v1982_v36  ;;  %v1439_v56 = vmax.f32 %v6565_v6, %v6567_v55  ;;  %v6571_v4 = vpop.f32.mrb[38].mxu0  ;;  %v6573_v7 = vpop.f32.mrb[38].mxu1  ;;  %v2038_v61 = vld [vmem:[#allocation2 + $0x1390] sm:$0xff]  ;;  %v2045_v36 = vld [vmem:[#allocation2 + $0x13c8] sm:$0xff]  ;;  %v2000_v55 = vld [vmem:[#allocation2 + $0x1260] sm:$0xff] }
 0x2a5   :  { %2088 = vmatprep.subr.bf16.mxu0 %v1989_v49  ;;  %2141 = vmatprep.subr.bf16.mxu1 %v1991_v50  ;;  %v1440_v60 = vmax.f32 %v6571_v4, %v6573_v7  ;;  %v6577_v0 = vpop.f32.mrb[39].mxu0  ;;  %v6579_v10 = vpop.f32.mrb[39].mxu1  ;;  %v2047_v49 = vld [vmem:[#allocation2 + $0x13d8] sm:$0xff]  ;;  %v2044_v50 = vld [vmem:[#allocation2 + $0x13c0] sm:$0xff] }
 0x2a6   :  { %v1441_v14 = vmax.f32 %v6577_v0, %v6579_v10  ;;  %v2008_v10 = vld [vmem:[#allocation2 + $0x12a0] sm:$0xff] }
 0x2a8   :  { %2089 = vmatpush1.bf16.msra.mxu0 %v1988_v46  ;;  %2142 = vmatpush1.bf16.msra.mxu1 %v1990_v59  ;;  %v2046_v46 = vld [vmem:[#allocation2 + $0x13d0] sm:$0xff]  ;;  %v1929_v59 = vld [vmem:[#allocation2 + $0x1028] sm:$0xff] }
 0x2a9   :  { %2090 = vmatprep.subr.bf16.mxu0 %v1997_v11  ;;  %2143 = vmatprep.subr.bf16.mxu1 %v1999_v26  ;;  %v1931_v11 = vld [vmem:[#allocation2 + $0x1038] sm:$0xff]  ;;  %v6586_v26 = vld [vmem:[%s6982_s0 + $0x20] ss:$48 sps:$4 sm:$0xff]  }
 0x2ac   :  { %2091 = vmatpush1.bf16.msra.mxu0 %v1996_v16  ;;  %2144 = vmatpush1.bf16.msra.mxu1 %v1998_v41  ;;  %v1928_v16 = vld [vmem:[#allocation2 + $0x1020] sm:$0xff]  ;;  %v1930_v41 = vld [vmem:[#allocation2 + $0x1030] sm:$0xff] }
 0x2ad   :  { %2092 = vmatprep.subr.bf16.mxu0 %v2005_v44  ;;  %2145 = vmatprep.subr.bf16.mxu1 %v2007_v23  ;;  %v1937_v44 = vld [vmem:[#allocation2 + $0x1068] sm:$0xff]  ;;  %v1939_v23 = vld [vmem:[#allocation2 + $0x1078] sm:$0xff] }
 0x2b0   :  { %2093 = vmatpush1.bf16.msra.mxu0 %v2004_v34  ;;  %2146 = vmatpush1.bf16.msra.mxu1 %v2006_v48  ;;  %v6591_v34 = vld [vmem:[%s6982_s0 + $0x84] ss:$48 sps:$4 sm:$0xff]  }
 0x2b1   :  { %2094 = vmatprep.subr.bf16.mxu0 %v2013_v25  ;;  %2147 = vmatprep.subr.bf16.mxu1 %v2015_v28  ;;  %v1936_v48 = vld [vmem:[#allocation2 + $0x1060] sm:$0xff]  ;;  %v1938_v25 = vld [vmem:[#allocation2 + $0x1070] sm:$0xff]  ;;  %v1945_v28 = vld [vmem:[#allocation2 + $0x10a8] sm:$0xff] }
 0x2b4   :  { %2095 = vmatpush1.bf16.msra.mxu0 %v2012_v20  ;;  %2148 = vmatpush1.bf16.msra.mxu1 %v2014_v37  ;;  %v1947_v20 = vld [vmem:[#allocation2 + $0x10b8] sm:$0xff]  ;;  %v6600_v37 = vld [vmem:[%s6982_s0 + $0x80] ss:$48 sps:$4 sm:$0xff]  }
 0x2b5   :  { %2096 = vmatprep.subr.bf16.mxu0 %v2021_v38  ;;  %2149 = vmatprep.subr.bf16.mxu1 %v2023_v39  ;;  %v1944_v38 = vld [vmem:[#allocation2 + $0x10a0] sm:$0xff]  ;;  %v1946_v39 = vld [vmem:[#allocation2 + $0x10b0] sm:$0xff] }
 0x2b8   :  { %2097 = vmatpush1.bf16.msra.mxu0 %v2020_v27  ;;  %2150 = vmatpush1.bf16.msra.mxu1 %v2022_v40  ;;  %v1953_v27 = vld [vmem:[#allocation2 + $0x10e8] sm:$0xff]  ;;  %v1955_v40 = vld [vmem:[#allocation2 + $0x10f8] sm:$0xff] }
 0x2b9   :  { %2098 = vmatprep.subr.bf16.mxu0 %v2029_v17  ;;  %2151 = vmatprep.subr.bf16.mxu1 %v2031_v47  ;;  %v1952_v17 = vld [vmem:[#allocation2 + $0x10e0] sm:$0xff]  ;;  %v1954_v47 = vld [vmem:[#allocation2 + $0x10f0] sm:$0xff] }
 0x2bc   :  { %2099 = vmatpush1.bf16.msra.mxu0 %v2028_v18  ;;  %2152 = vmatpush1.bf16.msra.mxu1 %v2030_v57  ;;  %v1961_v18 = vld [vmem:[#allocation2 + $0x1128] sm:$0xff]  ;;  %v1963_v57 = vld [vmem:[#allocation2 + $0x1138] sm:$0xff] }
 0x2bd   :  { %2100 = vmatprep.subr.bf16.mxu0 %v2037_v58  ;;  %2153 = vmatprep.subr.bf16.mxu1 %v2039_v52  ;;  %v1960_v58 = vld [vmem:[#allocation2 + $0x1120] sm:$0xff]  ;;  %v1962_v52 = vld [vmem:[#allocation2 + $0x1130] sm:$0xff] }
 0x2c0   :  { %2101 = vmatpush1.bf16.msra.mxu0 %v2036_v54  ;;  %2154 = vmatpush1.bf16.msra.mxu1 %v2038_v61  ;;  %v1969_v54 = vld [vmem:[#allocation2 + $0x1168] sm:$0xff]  ;;  %v1971_v61 = vld [vmem:[#allocation2 + $0x1178] sm:$0xff] }
 0x2c1   :  { %2102 = vmatprep.subr.bf16.mxu0 %v2045_v36  ;;  %2155 = vmatprep.subr.bf16.mxu1 %v2047_v49  ;;  %v1458_v36 = vld [vmem:[#allocation6 + $0x4] sm:$0x3] }
 0x2c2   :  { %v1968_v49 = vld [vmem:[#allocation2 + $0x1160] sm:$0xff] }
 0x2c4   :  { %2103 = vmatpush1.bf16.msra.mxu0 %v2044_v50  ;;  %2156 = vmatpush1.bf16.msra.mxu1 %v2046_v46  ;;  %v1970_v50 = vld [vmem:[#allocation2 + $0x1170] sm:$0xff] }
 0x2c5   :  { %2178 = vmatprep.subr.bf16.mxu0 %v1929_v59  ;;  %2231 = vmatprep.subr.bf16.mxu1 %v1931_v11  ;;  %v1977_v11 = vld [vmem:[#allocation2 + $0x11a8] sm:$0xff] }
 0x2c7   :  { %2105 = vmatmul.mubr.bf16.vlgmr.msra.gmra.mrb[64].mxu0 %v6586_v26  ;;  %2158 = vmatmul.mubr.bf16.vlgmr.msra.gmra.mrb[64].mxu1 %v6586_v26 }
 0x2c8   :  { %2179 = vmatpush1.bf16.msra.mxu0 %v1928_v16  ;;  %2232 = vmatpush1.bf16.msra.mxu1 %v1930_v41  ;;  %v1979_v16 = vld [vmem:[#allocation2 + $0x11b8] sm:$0xff]  ;;  %v6607_v41 = vrot.slane %v1458_v36, %v6342_v9 }
 0x2c9   :  { %2180 = vmatprep.subr.bf16.mxu0 %v1937_v44  ;;  %2233 = vmatprep.subr.bf16.mxu1 %v1939_v23 }
 0x2ca   :  { %2114 = vmatprep.mubr.bf16.mxu0 %v6591_v34  ;;  %2167 = vmatprep.mubr.bf16.mxu1 %v6591_v34 }
 0x2cc   :  { %2181 = vmatpush1.bf16.msra.mxu0 %v1936_v48  ;;  %2234 = vmatpush1.bf16.msra.mxu1 %v1938_v25  ;;  %v6610_v25 = vrot.slane %v1458_v36, %v6344_v13 }
 0x2cd   :  { %2182 = vmatprep.subr.bf16.mxu0 %v1945_v28  ;;  %2235 = vmatprep.subr.bf16.mxu1 %v1947_v20 }
 0x2cf   :  { %2115 = vmatmul.mubr.bf16.gmra.mrb[68].mxu0 %v6600_v37  ;;  %2168 = vmatmul.mubr.bf16.gmra.mrb[68].mxu1 %v6600_v37 }
 0x2d0   :  { %2183 = vmatpush1.bf16.msra.mxu0 %v1944_v38  ;;  %2236 = vmatpush1.bf16.msra.mxu1 %v1946_v39 }
 0x2d1   :  { %2184 = vmatprep.subr.bf16.mxu0 %v1953_v27  ;;  %2237 = vmatprep.subr.bf16.mxu1 %v1955_v40 }
 0x2d2   :  { %2210 = vmatprep.mubr.bf16.mxu0 %v6529_v24  ;;  %2263 = vmatprep.mubr.bf16.mxu1 %v6529_v24 }
 0x2d4   :  { %2185 = vmatpush1.bf16.msra.mxu0 %v1952_v17  ;;  %2238 = vmatpush1.bf16.msra.mxu1 %v1954_v47  ;;  %v1976_v17 = vld [vmem:[#allocation2 + $0x11a0] sm:$0xff]  ;;  %v1978_v47 = vld [vmem:[#allocation2 + $0x11b0] sm:$0xff] }
 0x2d5   :  { %2186 = vmatprep.subr.bf16.mxu0 %v1961_v18  ;;  %2239 = vmatprep.subr.bf16.mxu1 %v1963_v57 }
 0x2d8   :  { %2187 = vmatpush1.bf16.msra.mxu0 %v1960_v58  ;;  %2240 = vmatpush1.bf16.msra.mxu1 %v1962_v52  ;;  %v1985_v58 = vld [vmem:[#allocation2 + $0x11e8] sm:$0xff]  ;;  %v1987_v52 = vld [vmem:[#allocation2 + $0x11f8] sm:$0xff] }
 0x2d9   :  { %2188 = vmatprep.subr.bf16.mxu0 %v1969_v54  ;;  %2241 = vmatprep.subr.bf16.mxu1 %v1971_v61 }
 0x2da   :  { %v1362_v46 = vpop.f32.mrb[40].mxu0  ;;  %v1415_v59 = vpop.f32.mrb[40].mxu1 }
 0x2db   :  { %v1442_v24 = vmax.f32 %v1362_v46, %v1415_v59  ;;  %v1364_v44 = vpop.f32.mrb[41].mxu0  ;;  %v1417_v23 = vpop.f32.mrb[41].mxu1 }
 0x2dc   :  { %v1443_v48 = vmax.f32 %v1364_v44, %v1417_v23  ;;  %v1366_v28 = vpop.f32.mrb[42].mxu0  ;;  %v1419_v20 = vpop.f32.mrb[42].mxu1  ;;  %2189 = vmatpush1.bf16.msra.mxu0 %v1968_v49  ;;  %2242 = vmatpush1.bf16.msra.mxu1 %v1970_v50 }
 0x2dd   :  { %v1450_v38 = vmax.f32 %v1434_v19, %v1442_v24  ;;  %v1444_v39 = vmax.f32 %v1366_v28, %v1419_v20  ;;  %v1368_v27 = vpop.f32.mrb[43].mxu0  ;;  %v1421_v40 = vpop.f32.mrb[43].mxu1  ;;  %2190 = vmatprep.subr.bf16.mxu0 %v1977_v11  ;;  %2243 = vmatprep.subr.bf16.mxu1 %v1979_v16 }
 0x2de   :  { %v1451_v18 = vmax.f32 %v1435_v21, %v1443_v48  ;;  %v1445_v57 = vmax.f32 %v1368_v27, %v1421_v40  ;;  %v1986_v21 = vld [vmem:[#allocation2 + $0x11f0] sm:$0xff] }
 0x2df   :  { %v1470_v54 = vadd.f32 %v6607_v41, %v1450_v38  ;;  %v1452_v29 = vmax.f32 %v1436_v33, %v1444_v39  ;;  %v1992_v38 = vld [vmem:[#allocation2 + $0x1220] sm:$0xff]  ;;  %v1994_v39 = vld [vmem:[#allocation2 + $0x1230] sm:$0xff] }
 0x2e0   :  { %v1471_v30 = vadd.f32 %v6610_v25, %v1451_v18  ;;  %v1453_v19 = vmax.f32 %v1437_v51, %v1445_v57  ;;  %2191 = vmatpush1.bf16.msra.mxu0 %v1976_v17  ;;  %2244 = vmatpush1.bf16.msra.mxu1 %v1978_v47  ;;  %v2001_v47 = vld [vmem:[#allocation2 + $0x1268] sm:$0xff]  ;;  %v2003_v18 = vld [vmem:[#allocation2 + $0x1278] sm:$0xff] }
 0x2e1   :  { %v1472_v43 = vadd.f32 %v6607_v41, %v1452_v29  ;;  %2192 = vmatprep.subr.bf16.mxu0 %v1985_v58  ;;  %2245 = vmatprep.subr.bf16.mxu1 %v1987_v52  ;;  %v1478_v33 = vmax.f32 %v1470_v54, 0.0  ;;  %v2009_v52 = vld [vmem:[#allocation2 + $0x12a8] sm:$0xff]  ;;  %v2011_v54 = vld [vmem:[#allocation2 + $0x12b8] sm:$0xff] }
 0x2e2   :  { %v1473_v61 = vadd.f32 %v6610_v25, %v1453_v19  ;;  %v1372_v36 = vpop.f32.mrb[44].mxu0  ;;  %v1425_v49 = vpop.f32.mrb[44].mxu1  ;;  %v1479_v35 = vmax.f32 %v1471_v30, 0.0  ;;  %v2017_v30 = vld [vmem:[#allocation2 + $0x12e8] sm:$0xff]  ;;  %v2019_v19 = vld [vmem:[#allocation2 + $0x12f8] sm:$0xff] }
 0x2e3   :  { %v1480_v50 = vmax.f32 %v1472_v43, 0.0  ;;  %v1446_v46 = vmax.f32 %v1372_v36, %v1425_v49  ;;  %v1374_v59 = vpop.f32.mrb[45].mxu0  ;;  %v1427_v42 = vpop.f32.mrb[45].mxu1  ;;  %v2018_v43 = vld [vmem:[#allocation2 + $0x12f0] sm:$0xff]  ;;  %v2033_v49 = vld [vmem:[#allocation2 + $0x1368] sm:$0xff] }
 0x2e4   :  { %v1481_v51 = vmax.f32 %v1473_v61, 0.0  ;;  %v1447_v11 = vmax.f32 %v1374_v59, %v1427_v42  ;;  %v1376_v16 = vpop.f32.mrb[46].mxu0  ;;  %v1429_v24 = vpop.f32.mrb[46].mxu1  ;;  %2193 = vmatpush1.bf16.msra.mxu0 %v1984_v53  ;;  %2246 = vmatpush1.bf16.msra.mxu1 %v1986_v21  ;;  %v2025_v53 = vld [vmem:[#allocation2 + $0x1328] sm:$0xff]  ;;  %v2027_v21 = vld [vmem:[#allocation2 + $0x1338] sm:$0xff]  ;;  %v2024_v61 = vld [vmem:[#allocation2 + $0x1320] sm:$0xff] }
 0x2e5   :  { %v6628_v44 = vpack.c.bf16 %v1480_v50, %v1478_v33  ;;  %v1454_v23 = vmax.f32 %v1438_v63, %v1446_v46  ;;  %v1448_v48 = vmax.f32 %v1376_v16, %v1429_v24  ;;  %v1378_v28 = vpop.f32.mrb[47].mxu0  ;;  %v1431_v20 = vpop.f32.mrb[47].mxu1  ;;  %2194 = vmatprep.subr.bf16.mxu0 %v1993_v45  ;;  %2247 = vmatprep.subr.bf16.mxu1 %v1995_v31  ;;  %v2026_v36 = vld [vmem:[#allocation2 + $0x1330] sm:$0xff]  ;;  %v2035_v45 = vld [vmem:[#allocation2 + $0x1378] sm:$0xff]  ;;  %v2032_v31 = vld [vmem:[#allocation2 + $0x1360] sm:$0xff] }
 0x2e6   :  { %v6633_v27 = vpack.c.bf16 %v1481_v51, %v1479_v35  ;;  %v1455_v40 = vmax.f32 %v1439_v56, %v1447_v11  ;;  %v1449_v17 = vmax.f32 %v1378_v28, %v1431_v20  ;;  %v2002_v56 = vld [vmem:[#allocation2 + $0x1270] sm:$0xff]  ;;  %v2041_v50 = vld [vmem:[#allocation2 + $0x13a8] sm:$0xff]  ;;  %v2043_v46 = vld [vmem:[#allocation2 + $0x13b8] sm:$0xff] }
 0x2e7   :  { %v1474_v57 = vadd.f32 %v6607_v41, %v1454_v23  ;;  %v1456_v62 = vmax.f32 %v1440_v60, %v1448_v48  ;;  %v2034_v33 = vld [vmem:[#allocation2 + $0x1370] sm:$0xff]  ;;  %v2040_v59 = vld [vmem:[#allocation2 + $0x13a0] sm:$0xff]  ;;  %v2049_v35 = vld [vmem:[#allocation2 + $0x13e8] sm:$0xff] }
 0x2e8   :  { %v1475_v1 = vadd.f32 %v6610_v25, %v1455_v40  ;;  %v1457_v63 = vmax.f32 %v1441_v14, %v1449_v17  ;;  %2195 = vmatpush1.bf16.msra.mxu0 %v1992_v38  ;;  %2248 = vmatpush1.bf16.msra.mxu1 %v1994_v39  ;;  %v2010_v14 = vld [vmem:[#allocation2 + $0x12b0] sm:$0xff]  ;;  %v2051_v51 = vld [vmem:[#allocation2 + $0x13f8] sm:$0xff]  ;;  %v2048_v11 = vld [vmem:[#allocation2 + $0x13e0] sm:$0xff] }
 0x2e9   :  { %v1476_v6 = vadd.f32 %v6607_v41, %v1456_v62  ;;  %2196 = vmatprep.subr.bf16.mxu0 %v2001_v47  ;;  %2249 = vmatprep.subr.bf16.mxu1 %v2003_v18  ;;  %v1482_v4 = vmax.f32 %v1474_v57, 0.0  ;;  %v2042_v42 = vld [vmem:[#allocation2 + $0x13b0] sm:$0xff]  ;;  %v2350_v24 = vld [vmem:[#allocation2 + $0x1408] sm:$0xff]  ;;  %v2352_v23 = vld [vmem:[#allocation2 + $0x1418] sm:$0xff] }
 0x2ea   :  { %v1477_v58 = vadd.f32 %v6610_v25, %v1457_v63  ;;  %v1483_v60 = vmax.f32 %v1475_v1, 0.0  ;;  %v2016_v25 = vld [vmem:[#allocation2 + $0x12e0] sm:$0xff]  ;;  %v2050_v16 = vld [vmem:[#allocation2 + $0x13f0] sm:$0xff]  ;;  %v2358_v20 = vld [vmem:[#allocation2 + $0x1448] sm:$0xff] }
 0x2eb   :  { %v1484_v7 = vmax.f32 %v1476_v6, 0.0  ;;  %v2349_v48 = vld [vmem:[#allocation2 + $0x1400] sm:$0xff]  ;;  %v2351_v28 = vld [vmem:[#allocation2 + $0x1410] sm:$0xff]  ;;  %v2360_v38 = vld [vmem:[#allocation2 + $0x1458] sm:$0xff] }
 0x2ec   :  { %v1485_v29 = vmax.f32 %v1477_v58, 0.0  ;;  %2197 = vmatpush1.bf16.msra.mxu0 %v2000_v55  ;;  %2250 = vmatpush1.bf16.msra.mxu1 %v2002_v56  ;;  %v2357_v39 = vld [vmem:[#allocation2 + $0x1440] sm:$0xff]  ;;  %v2359_v40 = vld [vmem:[#allocation2 + $0x1450] sm:$0xff]  ;;  %v2366_v17 = vld [vmem:[#allocation2 + $0x1488] sm:$0xff] }
 0x2ed   :  { %v6648_v0 = vpack.c.bf16 %v1484_v7, %v1482_v4  ;;  %2198 = vmatprep.subr.bf16.mxu0 %v2009_v52  ;;  %2251 = vmatprep.subr.bf16.mxu1 %v2011_v54  ;;  %v2368_v47 = vld [vmem:[#allocation2 + $0x1498] sm:$0xff]  ;;  %v2365_v18 = vld [vmem:[#allocation2 + $0x1480] sm:$0xff]  ;;  %v2367_v57 = vld [vmem:[#allocation2 + $0x1490] sm:$0xff] }
 0x2ee   :  { %v6650_v41 = vpack.c.bf16 %v1485_v29, %v1483_v60  ;;  %v2374_v62 = vld [vmem:[#allocation2 + $0x14c8] sm:$0xff]  ;;  %v2375_v63 = vld [vmem:[#allocation2 + $0x14d0] sm:$0xff]  ;;  %v2384_v55 = vld [vmem:[#allocation2 + $0x1518] sm:$0xff] }
 0x2ef   :  { %v6659_v1 = vld [vmem:[%s6982_s0 + $0x2c] ss:$48 sps:$4 sm:$0xff]   ;;  %v2381_v56 = vld [vmem:[#allocation2 + $0x1500] sm:$0xff]  ;;  %v2383_v58 = vld [vmem:[#allocation2 + $0x1510] sm:$0xff] }
 0x2f0   :  { %2199 = vmatpush1.bf16.msra.mxu0 %v2008_v10  ;;  %2252 = vmatpush1.bf16.msra.mxu1 %v2010_v14  ;;  %v2382_v6 = vld [vmem:[#allocation2 + $0x1508] sm:$0xff]  ;;  %v2389_v54 = vld [vmem:[#allocation2 + $0x1540] sm:$0xff]  ;;  %v2391_v4 = vld [vmem:[#allocation2 + $0x1550] sm:$0xff] }
 0x2f1   :  { %2200 = vmatprep.subr.bf16.mxu0 %v2017_v30  ;;  %2253 = vmatprep.subr.bf16.mxu1 %v2019_v19  ;;  %v2390_v52 = vld [vmem:[#allocation2 + $0x1548] sm:$0xff]  ;;  %v2400_v10 = vld [vmem:[#allocation2 + $0x1598] sm:$0xff] }
 0x2f2   :  { %v2398_v29 = vld [vmem:[#allocation2 + $0x1588] sm:$0xff] }
 0x2f4   :  { %2201 = vmatpush1.bf16.msra.mxu0 %v2016_v25  ;;  %2254 = vmatpush1.bf16.msra.mxu1 %v2018_v43 }
 0x2f5   :  { %2202 = vmatprep.subr.bf16.mxu0 %v2025_v53  ;;  %2255 = vmatprep.subr.bf16.mxu1 %v2027_v21 }
 0x2f8   :  { %2203 = vmatpush1.bf16.msra.mxu0 %v2024_v61  ;;  %2256 = vmatpush1.bf16.msra.mxu1 %v2026_v36 }
 0x2f9   :  { %2204 = vmatprep.subr.bf16.mxu0 %v2033_v49  ;;  %2257 = vmatprep.subr.bf16.mxu1 %v2035_v45  ;;  %v2397_v49 = vld [vmem:[#allocation2 + $0x1580] sm:$0xff]  ;;  %v2399_v45 = vld [vmem:[#allocation2 + $0x1590] sm:$0xff] }
 0x2fc   :  { %2205 = vmatpush1.bf16.msra.mxu0 %v2032_v31  ;;  %2258 = vmatpush1.bf16.msra.mxu1 %v2034_v33  ;;  %v2406_v33 = vld [vmem:[#allocation2 + $0x15c8] sm:$0xff] }
 0x2fd   :  { %2206 = vmatprep.subr.bf16.mxu0 %v2041_v50  ;;  %2259 = vmatprep.subr.bf16.mxu1 %v2043_v46  ;;  %v2408_v50 = vld [vmem:[#allocation2 + $0x15d8] sm:$0xff]  ;;  %v2405_v46 = vld [vmem:[#allocation2 + $0x15c0] sm:$0xff] }
 0x300   :  { %2207 = vmatpush1.bf16.msra.mxu0 %v2040_v59  ;;  %2260 = vmatpush1.bf16.msra.mxu1 %v2042_v42  ;;  %v2407_v59 = vld [vmem:[#allocation2 + $0x15d0] sm:$0xff]  ;;  %v2414_v42 = vld [vmem:[#allocation2 + $0x1608] sm:$0xff] }
 0x301   :  { %2208 = vmatprep.subr.bf16.mxu0 %v2049_v35  ;;  %2261 = vmatprep.subr.bf16.mxu1 %v2051_v51  ;;  %v2416_v35 = vld [vmem:[#allocation2 + $0x1618] sm:$0xff] }
 0x304   :  { %2209 = vmatpush1.bf16.msra.mxu0 %v2048_v11  ;;  %2262 = vmatpush1.bf16.msra.mxu1 %v2050_v16 }
 0x305   :  { %2497 = vmatprep.subr.bf16.mxu0 %v2350_v24  ;;  %2550 = vmatprep.subr.bf16.mxu1 %v2352_v23 }
 0x307   :  { %2211 = vmatmul.mubr.bf16.vlgmr.msra.gmra.mrb[72].mxu0 %v6586_v26  ;;  %2264 = vmatmul.mubr.bf16.vlgmr.msra.gmra.mrb[72].mxu1 %v6586_v26  ;;  %v2376_v26 = vld [vmem:[#allocation2 + $0x14d8] sm:$0xff] }
 0x308   :  { %2498 = vmatpush1.bf16.msra.mxu0 %v2349_v48  ;;  %2551 = vmatpush1.bf16.msra.mxu1 %v2351_v28 }
 0x309   :  { %2499 = vmatprep.subr.bf16.mxu0 %v2358_v20  ;;  %2552 = vmatprep.subr.bf16.mxu1 %v2360_v38  ;;  %v2413_v38 = vld [vmem:[#allocation2 + $0x1600] sm:$0xff] }
 0x30a   :  { %2220 = vmatprep.mubr.bf16.mxu0 %v6591_v34  ;;  %2273 = vmatprep.mubr.bf16.mxu1 %v6591_v34  ;;  %v2373_v34 = vld [vmem:[#allocation2 + $0x14c0] sm:$0xff] }
 0x30c   :  { %2500 = vmatpush1.bf16.msra.mxu0 %v2357_v39  ;;  %2553 = vmatpush1.bf16.msra.mxu1 %v2359_v40  ;;  %v2415_v39 = vld [vmem:[#allocation2 + $0x1610] sm:$0xff] }
 0x30d   :  { %2501 = vmatprep.subr.bf16.mxu0 %v2366_v17  ;;  %2554 = vmatprep.subr.bf16.mxu1 %v2368_v47 }
 0x30f   :  { %2221 = vmatmul.mubr.bf16.gmra.mrb[76].mxu0 %v6600_v37  ;;  %2274 = vmatmul.mubr.bf16.gmra.mrb[76].mxu1 %v6600_v37  ;;  %v2392_v37 = vld [vmem:[#allocation2 + $0x1558] sm:$0xff] }
 0x310   :  { %2502 = vmatpush1.bf16.msra.mxu0 %v2365_v18  ;;  %2555 = vmatpush1.bf16.msra.mxu1 %v2367_v57  ;;  %v2422_v18 = vld [vmem:[#allocation2 + $0x1648] sm:$0xff]  ;;  %v2424_v57 = vld [vmem:[#allocation2 + $0x1658] sm:$0xff] }
 0x311   :  { %2503 = vmatprep.subr.bf16.mxu0 %v2374_v62  ;;  %2556 = vmatprep.subr.bf16.mxu1 %v2376_v26  ;;  %v2421_v26 = vld [vmem:[#allocation2 + $0x1640] sm:$0xff] }
 0x312   :  { %2529 = vmatprep.mubr.bf16.mxu0 %v6659_v1  ;;  %2582 = vmatprep.mubr.bf16.mxu1 %v6659_v1 }
 0x314   :  { %2504 = vmatpush1.bf16.msra.mxu0 %v2373_v34  ;;  %2557 = vmatpush1.bf16.msra.mxu1 %v2375_v63  ;;  %v2423_v34 = vld [vmem:[#allocation2 + $0x1650] sm:$0xff]  ;;  %v2430_v63 = vld [vmem:[#allocation2 + $0x1688] sm:$0xff] }
 0x315   :  { %2505 = vmatprep.subr.bf16.mxu0 %v2382_v6  ;;  %2558 = vmatprep.subr.bf16.mxu1 %v2384_v55  ;;  %v2432_v6 = vld [vmem:[#allocation2 + $0x1698] sm:$0xff]  ;;  %v2429_v55 = vld [vmem:[#allocation2 + $0x1680] sm:$0xff] }
 0x318   :  { %2506 = vmatpush1.bf16.msra.mxu0 %v2381_v56  ;;  %2559 = vmatpush1.bf16.msra.mxu1 %v2383_v58  ;;  %v2431_v56 = vld [vmem:[#allocation2 + $0x1690] sm:$0xff]  ;;  %v2438_v58 = vld [vmem:[#allocation2 + $0x16c8] sm:$0xff] }
 0x319   :  { %2507 = vmatprep.subr.bf16.mxu0 %v2390_v52  ;;  %2560 = vmatprep.subr.bf16.mxu1 %v2392_v37  ;;  %v2440_v52 = vld [vmem:[#allocation2 + $0x16d8] sm:$0xff]  ;;  %v2437_v37 = vld [vmem:[#allocation2 + $0x16c0] sm:$0xff] }
 0x31a   :  { %v6665_v7 = vpop.f32.mrb[48].mxu0  ;;  %v6667_v60 = vpop.f32.mrb[48].mxu1 }
 0x31b   :  { %v1859_v14 = vmax.f32 %v6665_v7, %v6667_v60  ;;  %v6671_v30 = vpop.f32.mrb[49].mxu0  ;;  %v6673_v19 = vpop.f32.mrb[49].mxu1 }
 0x31c   :  { %v1860_v25 = vmax.f32 %v6671_v30, %v6673_v19  ;;  %v6677_v43 = vpop.f32.mrb[50].mxu0  ;;  %v6679_v53 = vpop.f32.mrb[50].mxu1  ;;  %2508 = vmatpush1.bf16.msra.mxu0 %v2389_v54  ;;  %2561 = vmatpush1.bf16.msra.mxu1 %v2391_v4  ;;  %v2439_v54 = vld [vmem:[#allocation2 + $0x16d0] sm:$0xff]  ;;  %v2446_v4 = vld [vmem:[#allocation2 + $0x1708] sm:$0xff]  ;;  %v2409_v19 = vld [vmem:[#allocation2 + $0x15e0] sm:$0xff] }
 0x31d   :  { %v1861_v21 = vmax.f32 %v6677_v43, %v6679_v53  ;;  %v6683_v61 = vpop.f32.mrb[51].mxu0  ;;  %v6685_v36 = vpop.f32.mrb[51].mxu1  ;;  %2509 = vmatprep.subr.bf16.mxu0 %v2398_v29  ;;  %2562 = vmatprep.subr.bf16.mxu1 %v2400_v10  ;;  %v2448_v29 = vld [vmem:[#allocation2 + $0x1718] sm:$0xff]  ;;  %v2445_v10 = vld [vmem:[#allocation2 + $0x1700] sm:$0xff]  ;;  %v2418_v43 = vld [vmem:[#allocation2 + $0x1628] sm:$0xff] }
 0x31e   :  { %v1862_v31 = vmax.f32 %v6683_v61, %v6685_v36  ;;  %v2420_v53 = vld [vmem:[#allocation2 + $0x1638] sm:$0xff] }
 0x320   :  { %2510 = vmatpush1.bf16.msra.mxu0 %v2397_v49  ;;  %2563 = vmatpush1.bf16.msra.mxu1 %v2399_v45  ;;  %v2447_v49 = vld [vmem:[#allocation2 + $0x1710] sm:$0xff]  ;;  %v2454_v45 = vld [vmem:[#allocation2 + $0x1748] sm:$0xff] }
 0x321   :  { %2511 = vmatprep.subr.bf16.mxu0 %v2406_v33  ;;  %2564 = vmatprep.subr.bf16.mxu1 %v2408_v50  ;;  %v2456_v33 = vld [vmem:[#allocation2 + $0x1758] sm:$0xff]  ;;  %v2453_v50 = vld [vmem:[#allocation2 + $0x1740] sm:$0xff] }
 0x322   :  { %v6689_v51 = vpop.f32.mrb[52].mxu0  ;;  %v6691_v11 = vpop.f32.mrb[52].mxu1 }
 0x323   :  { %v1863_v16 = vmax.f32 %v6689_v51, %v6691_v11  ;;  %v6695_v24 = vpop.f32.mrb[53].mxu0  ;;  %v6697_v23 = vpop.f32.mrb[53].mxu1 }
 0x324   :  { %2512 = vmatpush1.bf16.msra.mxu0 %v2405_v46  ;;  %2565 = vmatpush1.bf16.msra.mxu1 %v2407_v59  ;;  %v1864_v48 = vmax.f32 %v6695_v24, %v6697_v23  ;;  %v6701_v28 = vpop.f32.mrb[54].mxu0  ;;  %v6703_v20 = vpop.f32.mrb[54].mxu1  ;;  %v2455_v46 = vld [vmem:[#allocation2 + $0x1750] sm:$0xff]  ;;  %v2462_v59 = vld [vmem:[#allocation2 + $0x1788] sm:$0xff]  ;;  %v2425_v23 = vld [vmem:[#allocation2 + $0x1660] sm:$0xff] }
 0x325   :  { %2513 = vmatprep.subr.bf16.mxu0 %v2414_v42  ;;  %2566 = vmatprep.subr.bf16.mxu1 %v2416_v35  ;;  %v1865_v40 = vmax.f32 %v6701_v28, %v6703_v20  ;;  %v6707_v17 = vpop.f32.mrb[55].mxu0  ;;  %v6709_v47 = vpop.f32.mrb[55].mxu1  ;;  %v2464_v42 = vld [vmem:[#allocation2 + $0x1798] sm:$0xff]  ;;  %v2461_v35 = vld [vmem:[#allocation2 + $0x1780] sm:$0xff] }
 0x326   :  { %v1866_v62 = vmax.f32 %v6707_v17, %v6709_v47  ;;  %v2433_v47 = vld [vmem:[#allocation2 + $0x16a0] sm:$0xff] }
 0x328   :  { %2514 = vmatpush1.bf16.msra.mxu0 %v2413_v38  ;;  %2567 = vmatpush1.bf16.msra.mxu1 %v2415_v39  ;;  %v2463_v38 = vld [vmem:[#allocation2 + $0x1790] sm:$0xff]  ;;  %v2470_v39 = vld [vmem:[#allocation2 + $0x17c8] sm:$0xff] }
 0x329   :  { %2515 = vmatprep.subr.bf16.mxu0 %v2422_v18  ;;  %2568 = vmatprep.subr.bf16.mxu1 %v2424_v57  ;;  %v2472_v18 = vld [vmem:[#allocation2 + $0x17d8] sm:$0xff]  ;;  %v2469_v57 = vld [vmem:[#allocation2 + $0x17c0] sm:$0xff] }
 0x32c   :  { %2516 = vmatpush1.bf16.msra.mxu0 %v2421_v26  ;;  %2569 = vmatpush1.bf16.msra.mxu1 %v2423_v34  ;;  %v2471_v26 = vld [vmem:[#allocation2 + $0x17d0] sm:$0xff]  ;;  %v2354_v34 = vld [vmem:[#allocation2 + $0x1428] sm:$0xff] }
 0x32d   :  { %2517 = vmatprep.subr.bf16.mxu0 %v2430_v63  ;;  %2570 = vmatprep.subr.bf16.mxu1 %v2432_v6  ;;  %v2356_v63 = vld [vmem:[#allocation2 + $0x1438] sm:$0xff] }
 0x32e   :  { %v6716_v6 = vld [vmem:[%s6982_s0 + $0x28] ss:$48 sps:$4 sm:$0xff]  }
 0x330   :  { %2518 = vmatpush1.bf16.msra.mxu0 %v2429_v55  ;;  %2571 = vmatpush1.bf16.msra.mxu1 %v2431_v56  ;;  %v2353_v55 = vld [vmem:[#allocation2 + $0x1420] sm:$0xff]  ;;  %v2355_v56 = vld [vmem:[#allocation2 + $0x1430] sm:$0xff] }
 0x331   :  { %2519 = vmatprep.subr.bf16.mxu0 %v2438_v58  ;;  %2572 = vmatprep.subr.bf16.mxu1 %v2440_v52  ;;  %v2362_v58 = vld [vmem:[#allocation2 + $0x1468] sm:$0xff]  ;;  %v2364_v52 = vld [vmem:[#allocation2 + $0x1478] sm:$0xff] }
 0x334   :  { %2520 = vmatpush1.bf16.msra.mxu0 %v2437_v37  ;;  %2573 = vmatpush1.bf16.msra.mxu1 %v2439_v54  ;;  %v6721_v37 = vld [vmem:[%s6982_s0 + $0x8c] ss:$48 sps:$4 sm:$0xff]   ;;  %v2361_v54 = vld [vmem:[#allocation2 + $0x1460] sm:$0xff] }
 0x335   :  { %2521 = vmatprep.subr.bf16.mxu0 %v2446_v4  ;;  %2574 = vmatprep.subr.bf16.mxu1 %v2448_v29  ;;  %v2363_v4 = vld [vmem:[#allocation2 + $0x1470] sm:$0xff]  ;;  %v2370_v29 = vld [vmem:[#allocation2 + $0x14a8] sm:$0xff] }
 0x338   :  { %2522 = vmatpush1.bf16.msra.mxu0 %v2445_v10  ;;  %2575 = vmatpush1.bf16.msra.mxu1 %v2447_v49  ;;  %v2372_v10 = vld [vmem:[#allocation2 + $0x14b8] sm:$0xff] }
 0x339   :  { %2523 = vmatprep.subr.bf16.mxu0 %v2454_v45  ;;  %2576 = vmatprep.subr.bf16.mxu1 %v2456_v33  ;;  %v6730_v49 = vld [vmem:[%s6982_s0 + $0x88] ss:$48 sps:$4 sm:$0xff]   ;;  %v2369_v45 = vld [vmem:[#allocation2 + $0x14a0] sm:$0xff]  ;;  %v2371_v33 = vld [vmem:[#allocation2 + $0x14b0] sm:$0xff] }
 0x33c   :  { %2524 = vmatpush1.bf16.msra.mxu0 %v2453_v50  ;;  %2577 = vmatpush1.bf16.msra.mxu1 %v2455_v46  ;;  %v2378_v50 = vld [vmem:[#allocation2 + $0x14e8] sm:$0xff]  ;;  %v2380_v46 = vld [vmem:[#allocation2 + $0x14f8] sm:$0xff] }
 0x33d   :  { %2525 = vmatprep.subr.bf16.mxu0 %v2462_v59  ;;  %2578 = vmatprep.subr.bf16.mxu1 %v2464_v42  ;;  %v2377_v59 = vld [vmem:[#allocation2 + $0x14e0] sm:$0xff]  ;;  %v2379_v42 = vld [vmem:[#allocation2 + $0x14f0] sm:$0xff] }
 0x340   :  { %2526 = vmatpush1.bf16.msra.mxu0 %v2461_v35  ;;  %2579 = vmatpush1.bf16.msra.mxu1 %v2463_v38  ;;  %v2386_v35 = vld [vmem:[#allocation2 + $0x1528] sm:$0xff]  ;;  %v2388_v38 = vld [vmem:[#allocation2 + $0x1538] sm:$0xff] }
 0x341   :  { %2527 = vmatprep.subr.bf16.mxu0 %v2470_v39  ;;  %2580 = vmatprep.subr.bf16.mxu1 %v2472_v18  ;;  %v2385_v39 = vld [vmem:[#allocation2 + $0x1520] sm:$0xff]  ;;  %v2387_v18 = vld [vmem:[#allocation2 + $0x1530] sm:$0xff] }
 0x344   :  { %2528 = vmatpush1.bf16.msra.mxu0 %v2469_v57  ;;  %2581 = vmatpush1.bf16.msra.mxu1 %v2471_v26  ;;  %v2394_v57 = vld [vmem:[#allocation2 + $0x1568] sm:$0xff]  ;;  %v2396_v26 = vld [vmem:[#allocation2 + $0x1578] sm:$0xff] }
 0x345   :  { %2603 = vmatprep.subr.bf16.mxu0 %v2354_v34  ;;  %2656 = vmatprep.subr.bf16.mxu1 %v2356_v63  ;;  %v1883_v34 = vld [vmem:[#allocation6 + $0x6] sm:$0x3] }
 0x346   :  { %v2393_v63 = vld [vmem:[#allocation2 + $0x1560] sm:$0xff] }
 0x347   :  { %2530 = vmatmul.mubr.bf16.vlgmr.msra.gmra.mrb[80].mxu0 %v6716_v6  ;;  %2583 = vmatmul.mubr.bf16.vlgmr.msra.gmra.mrb[80].mxu1 %v6716_v6 }
 0x348   :  { %2604 = vmatpush1.bf16.msra.mxu0 %v2353_v55  ;;  %2657 = vmatpush1.bf16.msra.mxu1 %v2355_v56  ;;  %v2395_v55 = vld [vmem:[#allocation2 + $0x1570] sm:$0xff] }
 0x349   :  { %2605 = vmatprep.subr.bf16.mxu0 %v2362_v58  ;;  %2658 = vmatprep.subr.bf16.mxu1 %v2364_v52  ;;  %v2402_v52 = vld [vmem:[#allocation2 + $0x15a8] sm:$0xff] }
 0x34a   :  { %2539 = vmatprep.mubr.bf16.mxu0 %v6721_v37  ;;  %2592 = vmatprep.mubr.bf16.mxu1 %v6721_v37 }
 0x34c   :  { %2606 = vmatpush1.bf16.msra.mxu0 %v2361_v54  ;;  %2659 = vmatpush1.bf16.msra.mxu1 %v2363_v4  ;;  %v2404_v54 = vld [vmem:[#allocation2 + $0x15b8] sm:$0xff]  ;;  %v6737_v4 = vrot.slane %v1883_v34, %v6342_v9 }
 0x34d   :  { %2607 = vmatprep.subr.bf16.mxu0 %v2370_v29  ;;  %2660 = vmatprep.subr.bf16.mxu1 %v2372_v10 }
 0x34f   :  { %2540 = vmatmul.mubr.bf16.gmra.mrb[84].mxu0 %v6730_v49  ;;  %2593 = vmatmul.mubr.bf16.gmra.mrb[84].mxu1 %v6730_v49 }
 0x350   :  { %2608 = vmatpush1.bf16.msra.mxu0 %v2369_v45  ;;  %2661 = vmatpush1.bf16.msra.mxu1 %v2371_v33  ;;  %v6740_v33 = vrot.slane %v1883_v34, %v6344_v13  ;;  %v2410_v34 = vld [vmem:[#allocation2 + $0x15e8] sm:$0xff] }
 0x351   :  { %2609 = vmatprep.subr.bf16.mxu0 %v2378_v50  ;;  %2662 = vmatprep.subr.bf16.mxu1 %v2380_v46 }
 0x352   :  { %2635 = vmatprep.mubr.bf16.mxu0 %v6659_v1  ;;  %2688 = vmatprep.mubr.bf16.mxu1 %v6659_v1 }
 0x354   :  { %2610 = vmatpush1.bf16.msra.mxu0 %v2377_v59  ;;  %2663 = vmatpush1.bf16.msra.mxu1 %v2379_v42 }
 0x355   :  { %2611 = vmatprep.subr.bf16.mxu0 %v2386_v35  ;;  %2664 = vmatprep.subr.bf16.mxu1 %v2388_v38 }
 0x358   :  { %2612 = vmatpush1.bf16.msra.mxu0 %v2385_v39  ;;  %2665 = vmatpush1.bf16.msra.mxu1 %v2387_v18  ;;  %v2401_v39 = vld [vmem:[#allocation2 + $0x15a0] sm:$0xff]  ;;  %v2403_v18 = vld [vmem:[#allocation2 + $0x15b0] sm:$0xff] }
 0x359   :  { %2613 = vmatprep.subr.bf16.mxu0 %v2394_v57  ;;  %2666 = vmatprep.subr.bf16.mxu1 %v2396_v26 }
 0x35a   :  { %v1787_v56 = vpop.f32.mrb[56].mxu0  ;;  %v1840_v58 = vpop.f32.mrb[56].mxu1 }
 0x35b   :  { %v1867_v1 = vmax.f32 %v1787_v56, %v1840_v58  ;;  %v1789_v29 = vpop.f32.mrb[57].mxu0  ;;  %v1842_v10 = vpop.f32.mrb[57].mxu1  ;;  %v2412_v56 = vld [vmem:[#allocation2 + $0x15f8] sm:$0xff] }
 0x35c   :  { %v1868_v45 = vmax.f32 %v1789_v29, %v1842_v10  ;;  %v1791_v50 = vpop.f32.mrb[58].mxu0  ;;  %v1844_v46 = vpop.f32.mrb[58].mxu1  ;;  %2614 = vmatpush1.bf16.msra.mxu0 %v2393_v63  ;;  %2667 = vmatpush1.bf16.msra.mxu1 %v2395_v55 }
 0x35d   :  { %v1875_v59 = vmax.f32 %v1859_v14, %v1867_v1  ;;  %v1869_v42 = vmax.f32 %v1791_v50, %v1844_v46  ;;  %v1793_v35 = vpop.f32.mrb[59].mxu0  ;;  %v1846_v38 = vpop.f32.mrb[59].mxu1  ;;  %2615 = vmatprep.subr.bf16.mxu0 %v2402_v52  ;;  %2668 = vmatprep.subr.bf16.mxu1 %v2404_v54 }
 0x35e   :  { %v1876_v57 = vmax.f32 %v1860_v25, %v1868_v45  ;;  %v1870_v26 = vmax.f32 %v1793_v35, %v1846_v38  ;;  %v2411_v25 = vld [vmem:[#allocation2 + $0x15f0] sm:$0xff] }
 0x35f   :  { %v1895_v63 = vadd.f32 %v6737_v4, %v1875_v59  ;;  %v1877_v7 = vmax.f32 %v1861_v21, %v1869_v42 }
 0x360   :  { %v1896_v60 = vadd.f32 %v6740_v33, %v1876_v57  ;;  %v1878_v14 = vmax.f32 %v1862_v31, %v1870_v26  ;;  %2616 = vmatpush1.bf16.msra.mxu0 %v2401_v39  ;;  %2669 = vmatpush1.bf16.msra.mxu1 %v2403_v18  ;;  %v2417_v39 = vld [vmem:[#allocation2 + $0x1620] sm:$0xff]  ;;  %v2419_v18 = vld [vmem:[#allocation2 + $0x1630] sm:$0xff] }
 0x361   :  { %v1897_v30 = vadd.f32 %v6737_v4, %v1877_v7  ;;  %2617 = vmatprep.subr.bf16.mxu0 %v2410_v34  ;;  %2670 = vmatprep.subr.bf16.mxu1 %v2412_v56  ;;  %v1903_v21 = vmax.f32 %v1895_v63, 0.0  ;;  %v2426_v56 = vld [vmem:[#allocation2 + $0x1668] sm:$0xff]  ;;  %v2428_v63 = vld [vmem:[#allocation2 + $0x1678] sm:$0xff] }
 0x362   :  { %v1898_v55 = vadd.f32 %v6740_v33, %v1878_v14  ;;  %v1797_v58 = vpop.f32.mrb[60].mxu0  ;;  %v1850_v52 = vpop.f32.mrb[60].mxu1  ;;  %v1904_v36 = vmax.f32 %v1896_v60, 0.0  ;;  %v2434_v14 = vld [vmem:[#allocation2 + $0x16a8] sm:$0xff] }
 0x363   :  { %v1905_v54 = vmax.f32 %v1897_v30, 0.0  ;;  %v1871_v1 = vmax.f32 %v1797_v58, %v1850_v52  ;;  %v1799_v29 = vpop.f32.mrb[61].mxu0  ;;  %v1852_v61 = vpop.f32.mrb[61].mxu1  ;;  %v2436_v30 = vld [vmem:[#allocation2 + $0x16b8] sm:$0xff]  ;;  %v2443_v58 = vld [vmem:[#allocation2 + $0x16f0] sm:$0xff]  ;;  %v2450_v52 = vld [vmem:[#allocation2 + $0x1728] sm:$0xff] }
 0x364   :  { %v1906_v31 = vmax.f32 %v1898_v55, 0.0  ;;  %v1872_v10 = vmax.f32 %v1799_v29, %v1852_v61  ;;  %v1801_v45 = vpop.f32.mrb[62].mxu0  ;;  %v1854_v50 = vpop.f32.mrb[62].mxu1  ;;  %2618 = vmatpush1.bf16.msra.mxu0 %v2409_v19  ;;  %2671 = vmatpush1.bf16.msra.mxu1 %v2411_v25  ;;  %v2442_v25 = vld [vmem:[#allocation2 + $0x16e8] sm:$0xff]  ;;  %v2444_v55 = vld [vmem:[#allocation2 + $0x16f8] sm:$0xff]  ;;  %v2457_v29 = vld [vmem:[#allocation2 + $0x1760] sm:$0xff] }
 0x365   :  { %v6758_v46 = vpack.c.bf16 %v1905_v54, %v1903_v21  ;;  %v1879_v59 = vmax.f32 %v1863_v16, %v1871_v1  ;;  %v1873_v42 = vmax.f32 %v1801_v45, %v1854_v50  ;;  %v1803_v35 = vpop.f32.mrb[63].mxu0  ;;  %v1856_v38 = vpop.f32.mrb[63].mxu1  ;;  %2619 = vmatprep.subr.bf16.mxu0 %v2418_v43  ;;  %2672 = vmatprep.subr.bf16.mxu1 %v2420_v53  ;;  %v2452_v43 = vld [vmem:[#allocation2 + $0x1738] sm:$0xff]  ;;  %v2449_v53 = vld [vmem:[#allocation2 + $0x1720] sm:$0xff]  ;;  %v2451_v21 = vld [vmem:[#allocation2 + $0x1730] sm:$0xff] }
 0x366   :  { %v6763_v57 = vpack.c.bf16 %v1906_v31, %v1904_v36  ;;  %v1880_v26 = vmax.f32 %v1864_v48, %v1872_v10  ;;  %v1874_v34 = vmax.f32 %v1803_v35, %v1856_v38  ;;  %v2427_v48 = vld [vmem:[#allocation2 + $0x1670] sm:$0xff]  ;;  %v2458_v54 = vld [vmem:[#allocation2 + $0x1768] sm:$0xff]  ;;  %v2460_v1 = vld [vmem:[#allocation2 + $0x1778] sm:$0xff] }
 0x367   :  { %v1899_v7 = vadd.f32 %v6737_v4, %v1879_v59  ;;  %v1881_v51 = vmax.f32 %v1865_v40, %v1873_v42  ;;  %v2459_v61 = vld [vmem:[#allocation2 + $0x1770] sm:$0xff]  ;;  %v2466_v36 = vld [vmem:[#allocation2 + $0x17a8] sm:$0xff]  ;;  %v2468_v31 = vld [vmem:[#allocation2 + $0x17b8] sm:$0xff] }
 0x368   :  { %v1900_v11 = vadd.f32 %v6740_v33, %v1880_v26  ;;  %v1882_v16 = vmax.f32 %v1866_v62, %v1874_v34  ;;  %2620 = vmatpush1.bf16.msra.mxu0 %v2417_v39  ;;  %2673 = vmatpush1.bf16.msra.mxu1 %v2419_v18  ;;  %v2435_v62 = vld [vmem:[#allocation2 + $0x16b0] sm:$0xff]  ;;  %v2465_v10 = vld [vmem:[#allocation2 + $0x17a0] sm:$0xff]  ;;  %v2474_v50 = vld [vmem:[#allocation2 + $0x17e8] sm:$0xff] }
 0x369   :  { %v1901_v24 = vadd.f32 %v6737_v4, %v1881_v51  ;;  %2621 = vmatprep.subr.bf16.mxu0 %v2426_v56  ;;  %2674 = vmatprep.subr.bf16.mxu1 %v2428_v63  ;;  %v1907_v28 = vmax.f32 %v1899_v7, 0.0  ;;  %v2467_v45 = vld [vmem:[#allocation2 + $0x17b0] sm:$0xff]  ;;  %v2476_v59 = vld [vmem:[#allocation2 + $0x17f8] sm:$0xff]  ;;  %v2473_v42 = vld [vmem:[#allocation2 + $0x17e0] sm:$0xff] }
 0x36a   :  { %v1902_v60 = vadd.f32 %v6740_v33, %v1882_v16  ;;  %v1908_v40 = vmax.f32 %v1900_v11, 0.0  ;;  %v2441_v33 = vld [vmem:[#allocation2 + $0x16e0] sm:$0xff]  ;;  %v2475_v35 = vld [vmem:[#allocation2 + $0x17f0] sm:$0xff] }
 0x36b   :  { %v1909_v20 = vmax.f32 %v1901_v24, 0.0 }
 0x36c   :  { %v1910_v19 = vmax.f32 %v1902_v60, 0.0  ;;  %2622 = vmatpush1.bf16.msra.mxu0 %v2425_v23  ;;  %2675 = vmatpush1.bf16.msra.mxu1 %v2427_v48 }
 0x36d   :  { %v6778_v17 = vpack.c.bf16 %v1909_v20, %v1907_v28  ;;  %2623 = vmatprep.subr.bf16.mxu0 %v2434_v14  ;;  %2676 = vmatprep.subr.bf16.mxu1 %v2436_v30 }
 0x36e   :  { %v6780_v4 = vpack.c.bf16 %v1910_v19, %v1908_v40 }
 0x370   :  { %2624 = vmatpush1.bf16.msra.mxu0 %v2433_v47  ;;  %2677 = vmatpush1.bf16.msra.mxu1 %v2435_v62  ;;  %v2308_v47 = vld [vmem:[#allocation6 + $0x8] sm:$0x3] }
 0x371   :  { %2625 = vmatprep.subr.bf16.mxu0 %v2442_v25  ;;  %2678 = vmatprep.subr.bf16.mxu1 %v2444_v55 }
 0x374   :  { %2626 = vmatpush1.bf16.msra.mxu0 %v2441_v33  ;;  %2679 = vmatpush1.bf16.msra.mxu1 %v2443_v58  ;;  %v2313_v33 = vrot.slane %v2308_v47, %v6342_v9 }
 0x375   :  { %2627 = vmatprep.subr.bf16.mxu0 %v2450_v52  ;;  %2680 = vmatprep.subr.bf16.mxu1 %v2452_v43 }
 0x378   :  { %2628 = vmatpush1.bf16.msra.mxu0 %v2449_v53  ;;  %2681 = vmatpush1.bf16.msra.mxu1 %v2451_v21  ;;  %v2317_v53 = vrot.slane %v2308_v47, %v6344_v13 }
 0x379   :  { %2629 = vmatprep.subr.bf16.mxu0 %v2458_v54  ;;  %2682 = vmatprep.subr.bf16.mxu1 %v2460_v1 }
 0x37c   :  { %2630 = vmatpush1.bf16.msra.mxu0 %v2457_v29  ;;  %2683 = vmatpush1.bf16.msra.mxu1 %v2459_v61 }
 0x37d   :  { %2631 = vmatprep.subr.bf16.mxu0 %v2466_v36  ;;  %2684 = vmatprep.subr.bf16.mxu1 %v2468_v31 }
 0x380   :  { %2632 = vmatpush1.bf16.msra.mxu0 %v2465_v10  ;;  %2685 = vmatpush1.bf16.msra.mxu1 %v2467_v45 }
 0x381   :  { %2633 = vmatprep.subr.bf16.mxu0 %v2474_v50  ;;  %2686 = vmatprep.subr.bf16.mxu1 %v2476_v59 }
 0x384   :  { %2634 = vmatpush1.bf16.msra.mxu0 %v2473_v42  ;;  %2687 = vmatpush1.bf16.msra.mxu1 %v2475_v35 }
 0x387   :  { %2636 = vmatmul.mubr.bf16.vlgmr.msra.gmra.mrb[88].mxu0 %v6716_v6  ;;  %2689 = vmatmul.mubr.bf16.vlgmr.msra.gmra.mrb[88].mxu1 %v6716_v6 }
 0x388   :  { %2645 = vmatprep.mubr.bf16.mxu0 %v6721_v37  ;;  %2698 = vmatprep.mubr.bf16.mxu1 %v6721_v37 }
 0x38f   :  { %2646 = vmatmul.mubr.bf16.gmra.mrb[92].mxu0 %v6730_v49  ;;  %2699 = vmatmul.mubr.bf16.gmra.mrb[92].mxu1 %v6730_v49 }
 0x39a   :  { %v2106_v38 = vpop.f32.mrb[64].mxu0  ;;  %v2159_v39 = vpop.f32.mrb[64].mxu1 }
 0x39b   :  { %v2284_v18 = vmax.f32 %v2106_v38, %v2159_v39  ;;  %v2108_v26 = vpop.f32.mrb[65].mxu0  ;;  %v2161_v34 = vpop.f32.mrb[65].mxu1 }
 0x39c   :  { %v2285_v56 = vmax.f32 %v2108_v26, %v2161_v34  ;;  %v2110_v63 = vpop.f32.mrb[66].mxu0  ;;  %v2163_v7 = vpop.f32.mrb[66].mxu1 }
 0x39d   :  { %v2286_v51 = vmax.f32 %v2110_v63, %v2163_v7  ;;  %v2112_v11 = vpop.f32.mrb[67].mxu0  ;;  %v2165_v16 = vpop.f32.mrb[67].mxu1 }
 0x39e   :  { %v2287_v6 = vmax.f32 %v2112_v11, %v2165_v16 }
 0x3a2   :  { %v2116_v24 = vpop.f32.mrb[68].mxu0  ;;  %v2169_v23 = vpop.f32.mrb[68].mxu1 }
 0x3a3   :  { %v2288_v48 = vmax.f32 %v2116_v24, %v2169_v23  ;;  %v2118_v37 = vpop.f32.mrb[69].mxu0  ;;  %v2171_v60 = vpop.f32.mrb[69].mxu1 }
 0x3a4   :  { %v2289_v14 = vmax.f32 %v2118_v37, %v2171_v60  ;;  %v2120_v30 = vpop.f32.mrb[70].mxu0  ;;  %v2173_v49 = vpop.f32.mrb[70].mxu1 }
 0x3a5   :  { %v2290_v28 = vmax.f32 %v2120_v30, %v2173_v49  ;;  %v2122_v20 = vpop.f32.mrb[71].mxu0  ;;  %v2175_v40 = vpop.f32.mrb[71].mxu1 }
 0x3a6   :  { %v2291_v19 = vmax.f32 %v2122_v20, %v2175_v40 }
 0x3da   :  { %v2212_v62 = vpop.f32.mrb[72].mxu0  ;;  %v2265_v25 = vpop.f32.mrb[72].mxu1 }
 0x3db   :  { %v2292_v55 = vmax.f32 %v2212_v62, %v2265_v25  ;;  %v2214_v58 = vpop.f32.mrb[73].mxu0  ;;  %v2267_v52 = vpop.f32.mrb[73].mxu1 }
 0x3dc   :  { %v2293_v43 = vmax.f32 %v2214_v58, %v2267_v52  ;;  %v2216_v21 = vpop.f32.mrb[74].mxu0  ;;  %v2269_v54 = vpop.f32.mrb[74].mxu1 }
 0x3dd   :  { %v2300_v1 = vmax.f32 %v2284_v18, %v2292_v55  ;;  %v2294_v29 = vmax.f32 %v2216_v21, %v2269_v54  ;;  %v2218_v61 = vpop.f32.mrb[75].mxu0  ;;  %v2271_v36 = vpop.f32.mrb[75].mxu1 }
 0x3de   :  { %v2301_v31 = vmax.f32 %v2285_v56, %v2293_v43  ;;  %v2295_v10 = vmax.f32 %v2218_v61, %v2271_v36 }
 0x3df   :  { %v2320_v45 = vadd.f32 %v2313_v33, %v2300_v1  ;;  %v2302_v50 = vmax.f32 %v2286_v51, %v2294_v29 }
 0x3e0   :  { %v2321_v59 = vadd.f32 %v2317_v53, %v2301_v31  ;;  %v2303_v42 = vmax.f32 %v2287_v6, %v2295_v10 }
 0x3e1   :  { %v2322_v35 = vadd.f32 %v2313_v33, %v2302_v50  ;;  %v2328_v34 = vmax.f32 %v2320_v45, 0.0 }
 0x3e2   :  { %v2323_v38 = vadd.f32 %v2317_v53, %v2303_v42  ;;  %v2222_v39 = vpop.f32.mrb[76].mxu0  ;;  %v2275_v26 = vpop.f32.mrb[76].mxu1  ;;  %v2329_v24 = vmax.f32 %v2321_v59, 0.0 }
 0x3e3   :  { %v2330_v63 = vmax.f32 %v2322_v35, 0.0  ;;  %v2296_v7 = vmax.f32 %v2222_v39, %v2275_v26  ;;  %v2224_v11 = vpop.f32.mrb[77].mxu0  ;;  %v2277_v16 = vpop.f32.mrb[77].mxu1 }
 0x3e4   :  { %v2331_v18 = vmax.f32 %v2323_v38, 0.0  ;;  %v2297_v23 = vmax.f32 %v2224_v11, %v2277_v16  ;;  %v2226_v37 = vpop.f32.mrb[78].mxu0  ;;  %v2279_v60 = vpop.f32.mrb[78].mxu1 }
 0x3e5   :  { %v6790_v56 = vpack.c.bf16 %v2330_v63, %v2328_v34  ;;  %v2304_v30 = vmax.f32 %v2288_v48, %v2296_v7  ;;  %v2298_v51 = vmax.f32 %v2226_v37, %v2279_v60  ;;  %v2228_v49 = vpop.f32.mrb[79].mxu0  ;;  %v2281_v6 = vpop.f32.mrb[79].mxu1  ;;  %v2733_v37 = vld [vmem:[#allocation6 + $0xa] sm:$0x3] }
 0x3e6   :  { %v6792_v20 = vpack.c.bf16 %v2331_v18, %v2329_v24  ;;  %v2305_v40 = vmax.f32 %v2289_v14, %v2297_v23  ;;  %v2299_v47 = vmax.f32 %v2228_v49, %v2281_v6  ;;  %v2738_v49 = vrot.slane %v2733_v37, %v6342_v9 }
 0x3e7   :  { %v2324_v62 = vadd.f32 %v2313_v33, %v2304_v30  ;;  %v2306_v25 = vmax.f32 %v2290_v28, %v2298_v51 }
 0x3e8   :  { %v2325_v55 = vadd.f32 %v2317_v53, %v2305_v40  ;;  %v2307_v58 = vmax.f32 %v2291_v19, %v2299_v47 }
 0x3e9   :  { %v2326_v52 = vadd.f32 %v2313_v33, %v2306_v25  ;;  %v2332_v21 = vmax.f32 %v2324_v62, 0.0  ;;  %v2742_v62 = vrot.slane %v2733_v37, %v6344_v13 }
 0x3ea   :  { %v2327_v43 = vadd.f32 %v2317_v53, %v2307_v58  ;;  %v2333_v1 = vmax.f32 %v2325_v55, 0.0 }
 0x3eb   :  { %v2334_v54 = vmax.f32 %v2326_v52, 0.0 }
 0x3ec   :  { %v2335_v29 = vmax.f32 %v2327_v43, 0.0 }
 0x3ed   :  { %v6794_v61 = vpack.c.bf16 %v2334_v54, %v2332_v21 }
 0x3ee   :  { %v6796_v48 = vpack.c.bf16 %v2335_v29, %v2333_v1 }
 0x41a   :  { %v2531_v36 = vpop.f32.mrb[80].mxu0  ;;  %v2584_v31 = vpop.f32.mrb[80].mxu1 }
 0x41b   :  { %v2709_v10 = vmax.f32 %v2531_v36, %v2584_v31  ;;  %v2533_v45 = vpop.f32.mrb[81].mxu0  ;;  %v2586_v14 = vpop.f32.mrb[81].mxu1 }
 0x41c   :  { %v2710_v50 = vmax.f32 %v2533_v45, %v2586_v14  ;;  %v2535_v59 = vpop.f32.mrb[82].mxu0  ;;  %v2588_v28 = vpop.f32.mrb[82].mxu1 }
 0x41d   :  { %v2711_v42 = vmax.f32 %v2535_v59, %v2588_v28  ;;  %v2537_v19 = vpop.f32.mrb[83].mxu0  ;;  %v2590_v33 = vpop.f32.mrb[83].mxu1 }
 0x41e   :  { %v2712_v53 = vmax.f32 %v2537_v19, %v2590_v33 }
 0x422   :  { %v2541_v35 = vpop.f32.mrb[84].mxu0  ;;  %v2594_v38 = vpop.f32.mrb[84].mxu1 }
 0x423   :  { %v2713_v39 = vmax.f32 %v2541_v35, %v2594_v38  ;;  %v2543_v26 = vpop.f32.mrb[85].mxu0  ;;  %v2596_v34 = vpop.f32.mrb[85].mxu1 }
 0x424   :  { %v2714_v63 = vmax.f32 %v2543_v26, %v2596_v34  ;;  %v2545_v7 = vpop.f32.mrb[86].mxu0  ;;  %v2598_v11 = vpop.f32.mrb[86].mxu1 }
 0x425   :  { %v2715_v16 = vmax.f32 %v2545_v7, %v2598_v11  ;;  %v2547_v24 = vpop.f32.mrb[87].mxu0  ;;  %v2600_v18 = vpop.f32.mrb[87].mxu1 }
 0x426   :  { %v2716_v23 = vmax.f32 %v2547_v24, %v2600_v18 }
 0x45a   :  { %v2637_v60 = vpop.f32.mrb[88].mxu0  ;;  %v2690_v30 = vpop.f32.mrb[88].mxu1 }
 0x45b   :  { %v2717_v51 = vmax.f32 %v2637_v60, %v2690_v30  ;;  %v2639_v6 = vpop.f32.mrb[89].mxu0  ;;  %v2692_v40 = vpop.f32.mrb[89].mxu1 }
 0x45c   :  { %v2718_v47 = vmax.f32 %v2639_v6, %v2692_v40  ;;  %v2641_v25 = vpop.f32.mrb[90].mxu0  ;;  %v2694_v55 = vpop.f32.mrb[90].mxu1 }
 0x45d   :  { %v2725_v58 = vmax.f32 %v2709_v10, %v2717_v51  ;;  %v2719_v52 = vmax.f32 %v2641_v25, %v2694_v55  ;;  %v2643_v43 = vpop.f32.mrb[91].mxu0  ;;  %v2696_v21 = vpop.f32.mrb[91].mxu1 }
 0x45e   :  { %v2726_v54 = vmax.f32 %v2710_v50, %v2718_v47  ;;  %v2720_v1 = vmax.f32 %v2643_v43, %v2696_v21 }
 0x45f   :  { %v2745_v29 = vadd.f32 %v2738_v49, %v2725_v58  ;;  %v2727_v36 = vmax.f32 %v2711_v42, %v2719_v52 }
 0x460   :  { %v2746_v31 = vadd.f32 %v2742_v62, %v2726_v54  ;;  %v2728_v45 = vmax.f32 %v2712_v53, %v2720_v1 }
 0x461   :  { %v2747_v14 = vadd.f32 %v2738_v49, %v2727_v36  ;;  %v2753_v19 = vmax.f32 %v2745_v29, 0.0 }
 0x462   :  { %v2748_v59 = vadd.f32 %v2742_v62, %v2728_v45  ;;  %v2647_v9 = vpop.f32.mrb[92].mxu0  ;;  %v2700_v28 = vpop.f32.mrb[92].mxu1  ;;  %v2754_v26 = vmax.f32 %v2746_v31, 0.0 }
 0x463   :  { %v2755_v33 = vmax.f32 %v2747_v14, 0.0  ;;  %v2721_v35 = vmax.f32 %v2647_v9, %v2700_v28  ;;  %v2649_v13 = vpop.f32.mrb[93].mxu0  ;;  %v2702_v38 = vpop.f32.mrb[93].mxu1 }
 0x464   :  { %v2756_v10 = vmax.f32 %v2748_v59, 0.0  ;;  %v2722_v34 = vmax.f32 %v2649_v13, %v2702_v38  ;;  %v2651_v7 = vpop.f32.mrb[94].mxu0  ;;  %v2704_v11 = vpop.f32.mrb[94].mxu1 }
 0x465   :  { %v6800_v50 = vpack.c.bf16 %v2755_v33, %v2753_v19  ;;  %v2729_v24 = vmax.f32 %v2713_v39, %v2721_v35  ;;  %v2723_v42 = vmax.f32 %v2651_v7, %v2704_v11  ;;  %v2653_v18 = vpop.f32.mrb[95].mxu0  ;;  %v2706_v53 = vpop.f32.mrb[95].mxu1 }
 0x466   :  { %v6802_v37 = vpack.c.bf16 %v2756_v10, %v2754_v26  ;;  %v2730_v60 = vmax.f32 %v2714_v63, %v2722_v34  ;;  %v2724_v30 = vmax.f32 %v2653_v18, %v2706_v53 }
 0x467   :  { %v2749_v51 = vadd.f32 %v2738_v49, %v2729_v24  ;;  %v2731_v6 = vmax.f32 %v2715_v16, %v2723_v42 }
 0x468   :  { %v2750_v40 = vadd.f32 %v2742_v62, %v2730_v60  ;;  %v2732_v47 = vmax.f32 %v2716_v23, %v2724_v30 }
 0x469   :  { %v2751_v25 = vadd.f32 %v2738_v49, %v2731_v6  ;;  %v2757_v58 = vmax.f32 %v2749_v51, 0.0 }
 0x46a   :  { %v2752_v55 = vadd.f32 %v2742_v62, %v2732_v47  ;;  %v2758_v43 = vmax.f32 %v2750_v40, 0.0 }
 0x46b   :  { %v2759_v52 = vmax.f32 %v2751_v25, 0.0 }
 0x46c   :  { %v2760_v21 = vmax.f32 %v2752_v55, 0.0 }
 0x46d   :  { %v6804_v54 = vpack.c.bf16 %v2759_v52, %v2757_v58 }
 0x46e   :  { %v6806_v39 = vpack.c.bf16 %v2760_v21, %v2758_v43 }
 0x46f   :  { %6029 = dma.done.wait [#allocation5 + $0x1], 98304 }
 0x470   :  { %6030 = vsyncadd [#allocation5 + $0x1], 4294868992  ;;  %3014 = vmatprep.mubr.bf16.mxu0 %v6373_v3  ;;  %3173 = vmatprep.mubr.bf16.mxu1 %v6373_v3  ;;  %v2791_v63 = vld [vmem:[#allocation3 + $0x8] sm:$0xff]  ;;  %v2793_v16 = vld [vmem:[#allocation3 + $0x18] sm:$0xff] }
 0x471   :  { %v2790_v1 = vld [vmem:[#allocation3] sm:$0xff]  ;;  %2982 = vmatprep.subr.bf16.mxu0 %v2791_v63  ;;  %3141 = vmatprep.subr.bf16.mxu1 %v2793_v16  ;;  %v2792_v23 = vld [vmem:[#allocation3 + $0x10] sm:$0xff]  ;;  %v2795_v49 = vld [vmem:[#allocation3 + $0x28] sm:$0xff] }
 0x472   :  { %v2797_v62 = vld [vmem:[#allocation3 + $0x38] sm:$0xff]  ;;  %2983 = vmatpush1.bf16.msra.mxu0 %v2790_v1  ;;  %3142 = vmatpush1.bf16.msra.mxu1 %v2792_v23  ;;  %v2794_v29 = vld [vmem:[#allocation3 + $0x20] sm:$0xff]  ;;  %v2796_v36 = vld [vmem:[#allocation3 + $0x30] sm:$0xff] }
 0x473   :  { %2984 = vmatprep.subr.bf16.mxu0 %v2795_v49  ;;  %3143 = vmatprep.subr.bf16.mxu1 %v2797_v62  ;;  %v2799_v31 = vld [vmem:[#allocation3 + $0x48] sm:$0xff]  ;;  %v2801_v45 = vld [vmem:[#allocation3 + $0x58] sm:$0xff]  ;;  %v2798_v3 = vld [vmem:[#allocation3 + $0x40] sm:$0xff] }
 0x474   :  { %v2800_v14 = vld [vmem:[#allocation3 + $0x50] sm:$0xff]  ;;  %v2803_v59 = vld [vmem:[#allocation3 + $0x68] sm:$0xff]  ;;  %v2805_v9 = vld [vmem:[#allocation3 + $0x78] sm:$0xff] }
 0x475   :  { %v2802_v28 = vld [vmem:[#allocation3 + $0x60] sm:$0xff]  ;;  %v2804_v19 = vld [vmem:[#allocation3 + $0x70] sm:$0xff]  ;;  %v2807_v33 = vld [vmem:[#allocation3 + $0x88] sm:$0xff] }
 0x476   :  { %2985 = vmatpush1.bf16.msra.mxu0 %v2794_v29  ;;  %3144 = vmatpush1.bf16.msra.mxu1 %v2796_v36  ;;  %v2809_v35 = vld [vmem:[#allocation3 + $0x98] sm:$0xff]  ;;  %v2806_v13 = vld [vmem:[#allocation3 + $0x80] sm:$0xff]  ;;  %v2808_v38 = vld [vmem:[#allocation3 + $0x90] sm:$0xff] }
 0x477   :  { %2986 = vmatprep.subr.bf16.mxu0 %v2799_v31  ;;  %3145 = vmatprep.subr.bf16.mxu1 %v2801_v45  ;;  %v2811_v26 = vld [vmem:[#allocation3 + $0xa8] sm:$0xff]  ;;  %v2813_v10 = vld [vmem:[#allocation3 + $0xb8] sm:$0xff]  ;;  %v2810_v34 = vld [vmem:[#allocation3 + $0xa0] sm:$0xff] }
 0x478   :  { %v2812_v7 = vld [vmem:[#allocation3 + $0xb0] sm:$0xff]  ;;  %v2815_v11 = vld [vmem:[#allocation3 + $0xc8] sm:$0xff]  ;;  %v2817_v24 = vld [vmem:[#allocation3 + $0xd8] sm:$0xff] }
 0x479   :  { %v2814_v42 = vld [vmem:[#allocation3 + $0xc0] sm:$0xff]  ;;  %v2816_v18 = vld [vmem:[#allocation3 + $0xd0] sm:$0xff]  ;;  %v2819_v53 = vld [vmem:[#allocation3 + $0xe8] sm:$0xff] }
 0x47a   :  { %2987 = vmatpush1.bf16.msra.mxu0 %v2798_v3  ;;  %3146 = vmatpush1.bf16.msra.mxu1 %v2800_v14  ;;  %v2821_v60 = vld [vmem:[#allocation3 + $0xf8] sm:$0xff]  ;;  %v2818_v30 = vld [vmem:[#allocation3 + $0xe0] sm:$0xff]  ;;  %v2820_v51 = vld [vmem:[#allocation3 + $0xf0] sm:$0xff] }
 0x47b   :  { %2988 = vmatprep.subr.bf16.mxu0 %v2803_v59  ;;  %3147 = vmatprep.subr.bf16.mxu1 %v2805_v9  ;;  %v2823_v6 = vld [vmem:[#allocation3 + $0x108] sm:$0xff]  ;;  %v2825_v40 = vld [vmem:[#allocation3 + $0x118] sm:$0xff]  ;;  %v2822_v47 = vld [vmem:[#allocation3 + $0x100] sm:$0xff] }
 0x47c   :  { %v2824_v25 = vld [vmem:[#allocation3 + $0x110] sm:$0xff]  ;;  %v2827_v55 = vld [vmem:[#allocation3 + $0x128] sm:$0xff]  ;;  %v2829_v58 = vld [vmem:[#allocation3 + $0x138] sm:$0xff] }
 0x47d   :  { %v2826_v52 = vld [vmem:[#allocation3 + $0x120] sm:$0xff]  ;;  %v2828_v43 = vld [vmem:[#allocation3 + $0x130] sm:$0xff]  ;;  %v2831_v21 = vld [vmem:[#allocation3 + $0x148] sm:$0xff] }
 0x47e   :  { %2989 = vmatpush1.bf16.msra.mxu0 %v2802_v28  ;;  %3148 = vmatpush1.bf16.msra.mxu1 %v2804_v19  ;;  %v2833_v63 = vld [vmem:[#allocation3 + $0x158] sm:$0xff]  ;;  %v2830_v16 = vld [vmem:[#allocation3 + $0x140] sm:$0xff]  ;;  %v2832_v1 = vld [vmem:[#allocation3 + $0x150] sm:$0xff] }
 0x47f   :  { %2990 = vmatprep.subr.bf16.mxu0 %v2807_v33  ;;  %3149 = vmatprep.subr.bf16.mxu1 %v2809_v35  ;;  %v2835_v23 = vld [vmem:[#allocation3 + $0x168] sm:$0xff]  ;;  %v2837_v49 = vld [vmem:[#allocation3 + $0x178] sm:$0xff]  ;;  %v2834_v62 = vld [vmem:[#allocation3 + $0x160] sm:$0xff] }
 0x480   :  { %v2836_v29 = vld [vmem:[#allocation3 + $0x170] sm:$0xff]  ;;  %v2839_v36 = vld [vmem:[#allocation3 + $0x188] sm:$0xff]  ;;  %v2841_v31 = vld [vmem:[#allocation3 + $0x198] sm:$0xff] }
 0x481   :  { %v2838_v45 = vld [vmem:[#allocation3 + $0x180] sm:$0xff]  ;;  %v2840_v3 = vld [vmem:[#allocation3 + $0x190] sm:$0xff]  ;;  %v2843_v14 = vld [vmem:[#allocation3 + $0x1a8] sm:$0xff] }
 0x482   :  { %2991 = vmatpush1.bf16.msra.mxu0 %v2806_v13  ;;  %3150 = vmatpush1.bf16.msra.mxu1 %v2808_v38  ;;  %v2845_v59 = vld [vmem:[#allocation3 + $0x1b8] sm:$0xff]  ;;  %v2842_v9 = vld [vmem:[#allocation3 + $0x1a0] sm:$0xff]  ;;  %v2844_v28 = vld [vmem:[#allocation3 + $0x1b0] sm:$0xff] }
 0x483   :  { %2992 = vmatprep.subr.bf16.mxu0 %v2811_v26  ;;  %3151 = vmatprep.subr.bf16.mxu1 %v2813_v10  ;;  %v2847_v19 = vld [vmem:[#allocation3 + $0x1c8] sm:$0xff]  ;;  %v2849_v33 = vld [vmem:[#allocation3 + $0x1d8] sm:$0xff]  ;;  %v2846_v35 = vld [vmem:[#allocation3 + $0x1c0] sm:$0xff] }
 0x484   :  { %v2848_v13 = vld [vmem:[#allocation3 + $0x1d0] sm:$0xff]  ;;  %v2851_v38 = vld [vmem:[#allocation3 + $0x1e8] sm:$0xff]  ;;  %v2853_v26 = vld [vmem:[#allocation3 + $0x1f8] sm:$0xff] }
 0x485   :  { %v2850_v10 = vld [vmem:[#allocation3 + $0x1e0] sm:$0xff] }
 0x486   :  { %2993 = vmatpush1.bf16.msra.mxu0 %v2810_v34  ;;  %3152 = vmatpush1.bf16.msra.mxu1 %v2812_v7  ;;  %v2852_v34 = vld [vmem:[#allocation3 + $0x1f0] sm:$0xff]  ;;  %v2855_v7 = vld [vmem:[#allocation3 + $0x208] sm:$0xff] }
 0x487   :  { %2994 = vmatprep.subr.bf16.mxu0 %v2815_v11  ;;  %3153 = vmatprep.subr.bf16.mxu1 %v2817_v24  ;;  %v2857_v11 = vld [vmem:[#allocation3 + $0x218] sm:$0xff]  ;;  %v2854_v24 = vld [vmem:[#allocation3 + $0x200] sm:$0xff] }
 0x48a   :  { %2995 = vmatpush1.bf16.msra.mxu0 %v2814_v42  ;;  %3154 = vmatpush1.bf16.msra.mxu1 %v2816_v18  ;;  %v2856_v42 = vld [vmem:[#allocation3 + $0x210] sm:$0xff]  ;;  %v2859_v18 = vld [vmem:[#allocation3 + $0x228] sm:$0xff] }
 0x48b   :  { %2996 = vmatprep.subr.bf16.mxu0 %v2819_v53  ;;  %3155 = vmatprep.subr.bf16.mxu1 %v2821_v60  ;;  %v2861_v53 = vld [vmem:[#allocation3 + $0x238] sm:$0xff]  ;;  %v2858_v60 = vld [vmem:[#allocation3 + $0x220] sm:$0xff] }
 0x48e   :  { %2997 = vmatpush1.bf16.msra.mxu0 %v2818_v30  ;;  %3156 = vmatpush1.bf16.msra.mxu1 %v2820_v51  ;;  %v2860_v30 = vld [vmem:[#allocation3 + $0x230] sm:$0xff]  ;;  %v2863_v51 = vld [vmem:[#allocation3 + $0x248] sm:$0xff] }
 0x48f   :  { %2998 = vmatprep.subr.bf16.mxu0 %v2823_v6  ;;  %3157 = vmatprep.subr.bf16.mxu1 %v2825_v40  ;;  %v2865_v6 = vld [vmem:[#allocation3 + $0x258] sm:$0xff]  ;;  %v2862_v40 = vld [vmem:[#allocation3 + $0x240] sm:$0xff] }
 0x492   :  { %2999 = vmatpush1.bf16.msra.mxu0 %v2822_v47  ;;  %3158 = vmatpush1.bf16.msra.mxu1 %v2824_v25  ;;  %v2864_v47 = vld [vmem:[#allocation3 + $0x250] sm:$0xff]  ;;  %v2867_v25 = vld [vmem:[#allocation3 + $0x268] sm:$0xff] }
 0x493   :  { %3000 = vmatprep.subr.bf16.mxu0 %v2827_v55  ;;  %3159 = vmatprep.subr.bf16.mxu1 %v2829_v58  ;;  %v2866_v55 = vld [vmem:[#allocation3 + $0x260] sm:$0xff]  ;;  %v2868_v58 = vld [vmem:[#allocation3 + $0x270] sm:$0xff] }
 0x496   :  { %3001 = vmatpush1.bf16.msra.mxu0 %v2826_v52  ;;  %3160 = vmatpush1.bf16.msra.mxu1 %v2828_v43  ;;  %v2871_v52 = vld [vmem:[#allocation3 + $0x288] sm:$0xff]  ;;  %v2870_v43 = vld [vmem:[#allocation3 + $0x280] sm:$0xff] }
 0x497   :  { %3002 = vmatprep.subr.bf16.mxu0 %v2831_v21  ;;  %3161 = vmatprep.subr.bf16.mxu1 %v2833_v63  ;;  %v2872_v21 = vld [vmem:[#allocation3 + $0x290] sm:$0xff]  ;;  %v2875_v63 = vld [vmem:[#allocation3 + $0x2a8] sm:$0xff] }
 0x49a   :  { %3003 = vmatpush1.bf16.msra.mxu0 %v2830_v16  ;;  %3162 = vmatpush1.bf16.msra.mxu1 %v2832_v1  ;;  %v2874_v16 = vld [vmem:[#allocation3 + $0x2a0] sm:$0xff]  ;;  %v2876_v1 = vld [vmem:[#allocation3 + $0x2b0] sm:$0xff] }
 0x49b   :  { %3004 = vmatprep.subr.bf16.mxu0 %v2835_v23  ;;  %3163 = vmatprep.subr.bf16.mxu1 %v2837_v49  ;;  %v2879_v23 = vld [vmem:[#allocation3 + $0x2c8] sm:$0xff]  ;;  %v2881_v49 = vld [vmem:[#allocation3 + $0x2d8] sm:$0xff] }
 0x49e   :  { %3005 = vmatpush1.bf16.msra.mxu0 %v2834_v62  ;;  %3164 = vmatpush1.bf16.msra.mxu1 %v2836_v29  ;;  %v2878_v62 = vld [vmem:[#allocation3 + $0x2c0] sm:$0xff]  ;;  %v2880_v29 = vld [vmem:[#allocation3 + $0x2d0] sm:$0xff] }
 0x49f   :  { %3006 = vmatprep.subr.bf16.mxu0 %v2839_v36  ;;  %3165 = vmatprep.subr.bf16.mxu1 %v2841_v31  ;;  %v2883_v36 = vld [vmem:[#allocation3 + $0x2e8] sm:$0xff]  ;;  %v2885_v31 = vld [vmem:[#allocation3 + $0x2f8] sm:$0xff] }
 0x4a2   :  { %3007 = vmatpush1.bf16.msra.mxu0 %v2838_v45  ;;  %3166 = vmatpush1.bf16.msra.mxu1 %v2840_v3  ;;  %v2882_v45 = vld [vmem:[#allocation3 + $0x2e0] sm:$0xff]  ;;  %v2884_v3 = vld [vmem:[#allocation3 + $0x2f0] sm:$0xff] }
 0x4a3   :  { %3008 = vmatprep.subr.bf16.mxu0 %v2843_v14  ;;  %3167 = vmatprep.subr.bf16.mxu1 %v2845_v59  ;;  %v2887_v14 = vld [vmem:[#allocation3 + $0x308] sm:$0xff]  ;;  %v2889_v59 = vld [vmem:[#allocation3 + $0x318] sm:$0xff] }
 0x4a6   :  { %3009 = vmatpush1.bf16.msra.mxu0 %v2842_v9  ;;  %3168 = vmatpush1.bf16.msra.mxu1 %v2844_v28  ;;  %v2886_v9 = vld [vmem:[#allocation3 + $0x300] sm:$0xff]  ;;  %v2888_v28 = vld [vmem:[#allocation3 + $0x310] sm:$0xff] }
 0x4a7   :  { %3010 = vmatprep.subr.bf16.mxu0 %v2847_v19  ;;  %3169 = vmatprep.subr.bf16.mxu1 %v2849_v33  ;;  %v2891_v19 = vld [vmem:[#allocation3 + $0x328] sm:$0xff]  ;;  %v2893_v33 = vld [vmem:[#allocation3 + $0x338] sm:$0xff] }
 0x4aa   :  { %3011 = vmatpush1.bf16.msra.mxu0 %v2846_v35  ;;  %3170 = vmatpush1.bf16.msra.mxu1 %v2848_v13  ;;  %v2890_v35 = vld [vmem:[#allocation3 + $0x320] sm:$0xff]  ;;  %v2892_v13 = vld [vmem:[#allocation3 + $0x330] sm:$0xff] }
 0x4ab   :  { %3012 = vmatprep.subr.bf16.mxu0 %v2851_v38  ;;  %3171 = vmatprep.subr.bf16.mxu1 %v2853_v26  ;;  %v2895_v38 = vld [vmem:[#allocation3 + $0x348] sm:$0xff]  ;;  %v2897_v26 = vld [vmem:[#allocation3 + $0x358] sm:$0xff] }
 0x4ae   :  { %3013 = vmatpush1.bf16.msra.mxu0 %v2850_v10  ;;  %3172 = vmatpush1.bf16.msra.mxu1 %v2852_v34  ;;  %v2894_v10 = vld [vmem:[#allocation3 + $0x340] sm:$0xff]  ;;  %v2896_v34 = vld [vmem:[#allocation3 + $0x350] sm:$0xff] }
 0x4af   :  { %3035 = vmatprep.subr.bf16.mxu0 %v2855_v7  ;;  %3194 = vmatprep.subr.bf16.mxu1 %v2857_v11  ;;  %v2899_v7 = vld [vmem:[#allocation3 + $0x368] sm:$0xff]  ;;  %v2901_v11 = vld [vmem:[#allocation3 + $0x378] sm:$0xff] }
 0x4b1   :  { %3015 = vmatmul.mubr.bf16.vlgmr.msra.gmra.mrb[96].mxu0 %v6368_v15  ;;  %3174 = vmatmul.mubr.bf16.vlgmr.msra.gmra.mrb[96].mxu1 %v6368_v15  ;;  %v2869_v15 = vld [vmem:[#allocation3 + $0x278] sm:$0xff] }
 0x4b2   :  { %3036 = vmatpush1.bf16.msra.mxu0 %v2854_v24  ;;  %3195 = vmatpush1.bf16.msra.mxu1 %v2856_v42  ;;  %v2898_v24 = vld [vmem:[#allocation3 + $0x360] sm:$0xff]  ;;  %v2900_v42 = vld [vmem:[#allocation3 + $0x370] sm:$0xff] }
 0x4b3   :  { %3037 = vmatprep.subr.bf16.mxu0 %v2859_v18  ;;  %3196 = vmatprep.subr.bf16.mxu1 %v2861_v53  ;;  %v2903_v18 = vld [vmem:[#allocation3 + $0x388] sm:$0xff]  ;;  %v2905_v53 = vld [vmem:[#allocation3 + $0x398] sm:$0xff] }
 0x4b4   :  { %3024 = vmatprep.mubr.bf16.mxu0 %v6390_v32  ;;  %3183 = vmatprep.mubr.bf16.mxu1 %v6390_v32  ;;  %v2873_v32 = vld [vmem:[#allocation3 + $0x298] sm:$0xff] }
 0x4b6   :  { %3038 = vmatpush1.bf16.msra.mxu0 %v2858_v60  ;;  %3197 = vmatpush1.bf16.msra.mxu1 %v2860_v30  ;;  %v2902_v60 = vld [vmem:[#allocation3 + $0x380] sm:$0xff]  ;;  %v2904_v30 = vld [vmem:[#allocation3 + $0x390] sm:$0xff] }
 0x4b7   :  { %3039 = vmatprep.subr.bf16.mxu0 %v2863_v51  ;;  %3198 = vmatprep.subr.bf16.mxu1 %v2865_v6  ;;  %v2907_v51 = vld [vmem:[#allocation3 + $0x3a8] sm:$0xff]  ;;  %v2909_v6 = vld [vmem:[#allocation3 + $0x3b8] sm:$0xff] }
 0x4b9   :  { %3025 = vmatmul.mubr.bf16.gmra.mrb[100].mxu0 %v6388_v2  ;;  %3184 = vmatmul.mubr.bf16.gmra.mrb[100].mxu1 %v6388_v2  ;;  %v2877_v2 = vld [vmem:[#allocation3 + $0x2b8] sm:$0xff] }
 0x4ba   :  { %3040 = vmatpush1.bf16.msra.mxu0 %v2862_v40  ;;  %3199 = vmatpush1.bf16.msra.mxu1 %v2864_v47  ;;  %v2906_v40 = vld [vmem:[#allocation3 + $0x3a0] sm:$0xff]  ;;  %v2908_v47 = vld [vmem:[#allocation3 + $0x3b0] sm:$0xff] }
 0x4bb   :  { %3041 = vmatprep.subr.bf16.mxu0 %v2867_v25  ;;  %3200 = vmatprep.subr.bf16.mxu1 %v2869_v15  ;;  %v2911_v25 = vld [vmem:[#allocation3 + $0x3c8] sm:$0xff]  ;;  %v2913_v15 = vld [vmem:[#allocation3 + $0x3d8] sm:$0xff] }
 0x4bc   :  { %3067 = vmatprep.mubr.bf16.mxu0 %v6503_v22  ;;  %3226 = vmatprep.mubr.bf16.mxu1 %v6503_v22 }
 0x4be   :  { %3042 = vmatpush1.bf16.msra.mxu0 %v2866_v55  ;;  %3201 = vmatpush1.bf16.msra.mxu1 %v2868_v58  ;;  %v2910_v55 = vld [vmem:[#allocation3 + $0x3c0] sm:$0xff]  ;;  %v2912_v58 = vld [vmem:[#allocation3 + $0x3d0] sm:$0xff] }
 0x4bf   :  { %3043 = vmatprep.subr.bf16.mxu0 %v2871_v52  ;;  %3202 = vmatprep.subr.bf16.mxu1 %v2873_v32  ;;  %v2915_v52 = vld [vmem:[#allocation3 + $0x3e8] sm:$0xff]  ;;  %v2917_v32 = vld [vmem:[#allocation3 + $0x3f8] sm:$0xff] }
 0x4c2   :  { %3044 = vmatpush1.bf16.msra.mxu0 %v2870_v43  ;;  %3203 = vmatpush1.bf16.msra.mxu1 %v2872_v21  ;;  %v2914_v43 = vld [vmem:[#allocation3 + $0x3e0] sm:$0xff]  ;;  %v2916_v21 = vld [vmem:[#allocation3 + $0x3f0] sm:$0xff] }
 0x4c3   :  { %3045 = vmatprep.subr.bf16.mxu0 %v2875_v63  ;;  %3204 = vmatprep.subr.bf16.mxu1 %v2877_v2  ;;  %v2919_v63 = vld [vmem:[#allocation3 + $0x408] sm:$0xff]  ;;  %v2921_v2 = vld [vmem:[#allocation3 + $0x418] sm:$0xff] }
 0x4c6   :  { %3046 = vmatpush1.bf16.msra.mxu0 %v2874_v16  ;;  %3205 = vmatpush1.bf16.msra.mxu1 %v2876_v1  ;;  %v2918_v16 = vld [vmem:[#allocation3 + $0x400] sm:$0xff]  ;;  %v2920_v1 = vld [vmem:[#allocation3 + $0x410] sm:$0xff] }
 0x4c7   :  { %3047 = vmatprep.subr.bf16.mxu0 %v2879_v23  ;;  %3206 = vmatprep.subr.bf16.mxu1 %v2881_v49  ;;  %v2923_v23 = vld [vmem:[#allocation3 + $0x428] sm:$0xff]  ;;  %v2925_v49 = vld [vmem:[#allocation3 + $0x438] sm:$0xff] }
 0x4ca   :  { %3048 = vmatpush1.bf16.msra.mxu0 %v2878_v62  ;;  %3207 = vmatpush1.bf16.msra.mxu1 %v2880_v29  ;;  %v2922_v62 = vld [vmem:[#allocation3 + $0x420] sm:$0xff]  ;;  %v2924_v29 = vld [vmem:[#allocation3 + $0x430] sm:$0xff] }
 0x4cb   :  { %3049 = vmatprep.subr.bf16.mxu0 %v2883_v36  ;;  %3208 = vmatprep.subr.bf16.mxu1 %v2885_v31  ;;  %v2927_v36 = vld [vmem:[#allocation3 + $0x448] sm:$0xff]  ;;  %v2929_v31 = vld [vmem:[#allocation3 + $0x458] sm:$0xff] }
 0x4ce   :  { %3050 = vmatpush1.bf16.msra.mxu0 %v2882_v45  ;;  %3209 = vmatpush1.bf16.msra.mxu1 %v2884_v3  ;;  %v2926_v45 = vld [vmem:[#allocation3 + $0x440] sm:$0xff]  ;;  %v2928_v3 = vld [vmem:[#allocation3 + $0x450] sm:$0xff] }
 0x4cf   :  { %3051 = vmatprep.subr.bf16.mxu0 %v2887_v14  ;;  %3210 = vmatprep.subr.bf16.mxu1 %v2889_v59  ;;  %v2931_v14 = vld [vmem:[#allocation3 + $0x468] sm:$0xff]  ;;  %v2933_v59 = vld [vmem:[#allocation3 + $0x478] sm:$0xff] }
 0x4d2   :  { %3052 = vmatpush1.bf16.msra.mxu0 %v2886_v9  ;;  %3211 = vmatpush1.bf16.msra.mxu1 %v2888_v28  ;;  %v2930_v9 = vld [vmem:[#allocation3 + $0x460] sm:$0xff]  ;;  %v2932_v28 = vld [vmem:[#allocation3 + $0x470] sm:$0xff] }
 0x4d3   :  { %3053 = vmatprep.subr.bf16.mxu0 %v2891_v19  ;;  %3212 = vmatprep.subr.bf16.mxu1 %v2893_v33  ;;  %v2935_v19 = vld [vmem:[#allocation3 + $0x488] sm:$0xff]  ;;  %v2937_v33 = vld [vmem:[#allocation3 + $0x498] sm:$0xff] }
 0x4d6   :  { %3054 = vmatpush1.bf16.msra.mxu0 %v2890_v35  ;;  %3213 = vmatpush1.bf16.msra.mxu1 %v2892_v13  ;;  %v2934_v35 = vld [vmem:[#allocation3 + $0x480] sm:$0xff]  ;;  %v2936_v13 = vld [vmem:[#allocation3 + $0x490] sm:$0xff] }
 0x4d7   :  { %3055 = vmatprep.subr.bf16.mxu0 %v2895_v38  ;;  %3214 = vmatprep.subr.bf16.mxu1 %v2897_v26  ;;  %v2939_v38 = vld [vmem:[#allocation3 + $0x4a8] sm:$0xff]  ;;  %v2941_v26 = vld [vmem:[#allocation3 + $0x4b8] sm:$0xff] }
 0x4da   :  { %3056 = vmatpush1.bf16.msra.mxu0 %v2894_v10  ;;  %3215 = vmatpush1.bf16.msra.mxu1 %v2896_v34  ;;  %v2938_v10 = vld [vmem:[#allocation3 + $0x4a0] sm:$0xff]  ;;  %v2940_v34 = vld [vmem:[#allocation3 + $0x4b0] sm:$0xff] }
 0x4db   :  { %3057 = vmatprep.subr.bf16.mxu0 %v2899_v7  ;;  %3216 = vmatprep.subr.bf16.mxu1 %v2901_v11  ;;  %v2943_v7 = vld [vmem:[#allocation3 + $0x4c8] sm:$0xff]  ;;  %v2945_v11 = vld [vmem:[#allocation3 + $0x4d8] sm:$0xff] }
 0x4de   :  { %3058 = vmatpush1.bf16.msra.mxu0 %v2898_v24  ;;  %3217 = vmatpush1.bf16.msra.mxu1 %v2900_v42  ;;  %v2942_v24 = vld [vmem:[#allocation3 + $0x4c0] sm:$0xff]  ;;  %v2944_v42 = vld [vmem:[#allocation3 + $0x4d0] sm:$0xff] }
 0x4df   :  { %3059 = vmatprep.subr.bf16.mxu0 %v2903_v18  ;;  %3218 = vmatprep.subr.bf16.mxu1 %v2905_v53  ;;  %v2947_v18 = vld [vmem:[#allocation3 + $0x4e8] sm:$0xff]  ;;  %v2949_v53 = vld [vmem:[#allocation3 + $0x4f8] sm:$0xff] }
 0x4e2   :  { %3060 = vmatpush1.bf16.msra.mxu0 %v2902_v60  ;;  %3219 = vmatpush1.bf16.msra.mxu1 %v2904_v30  ;;  %v2946_v60 = vld [vmem:[#allocation3 + $0x4e0] sm:$0xff]  ;;  %v2948_v30 = vld [vmem:[#allocation3 + $0x4f0] sm:$0xff] }
 0x4e3   :  { %3061 = vmatprep.subr.bf16.mxu0 %v2907_v51  ;;  %3220 = vmatprep.subr.bf16.mxu1 %v2909_v6  ;;  %v2951_v51 = vld [vmem:[#allocation3 + $0x508] sm:$0xff]  ;;  %v2953_v6 = vld [vmem:[#allocation3 + $0x518] sm:$0xff] }
 0x4e6   :  { %3062 = vmatpush1.bf16.msra.mxu0 %v2906_v40  ;;  %3221 = vmatpush1.bf16.msra.mxu1 %v2908_v47  ;;  %v2950_v40 = vld [vmem:[#allocation3 + $0x500] sm:$0xff]  ;;  %v2952_v47 = vld [vmem:[#allocation3 + $0x510] sm:$0xff] }
 0x4e7   :  { %3063 = vmatprep.subr.bf16.mxu0 %v2911_v25  ;;  %3222 = vmatprep.subr.bf16.mxu1 %v2913_v15  ;;  %v2955_v25 = vld [vmem:[#allocation3 + $0x528] sm:$0xff]  ;;  %v2957_v15 = vld [vmem:[#allocation3 + $0x538] sm:$0xff] }
 0x4ea   :  { %3064 = vmatpush1.bf16.msra.mxu0 %v2910_v55  ;;  %3223 = vmatpush1.bf16.msra.mxu1 %v2912_v58  ;;  %v2954_v55 = vld [vmem:[#allocation3 + $0x520] sm:$0xff]  ;;  %v2956_v58 = vld [vmem:[#allocation3 + $0x530] sm:$0xff] }
 0x4eb   :  { %3065 = vmatprep.subr.bf16.mxu0 %v2915_v52  ;;  %3224 = vmatprep.subr.bf16.mxu1 %v2917_v32  ;;  %v2959_v52 = vld [vmem:[#allocation3 + $0x548] sm:$0xff]  ;;  %v2961_v32 = vld [vmem:[#allocation3 + $0x558] sm:$0xff] }
 0x4ee   :  { %3066 = vmatpush1.bf16.msra.mxu0 %v2914_v43  ;;  %3225 = vmatpush1.bf16.msra.mxu1 %v2916_v21  ;;  %v2958_v43 = vld [vmem:[#allocation3 + $0x540] sm:$0xff]  ;;  %v2960_v21 = vld [vmem:[#allocation3 + $0x550] sm:$0xff] }
 0x4ef   :  { %3088 = vmatprep.subr.bf16.mxu0 %v2919_v63  ;;  %3247 = vmatprep.subr.bf16.mxu1 %v2921_v2  ;;  %v2963_v63 = vld [vmem:[#allocation3 + $0x568] sm:$0xff]  ;;  %v2965_v2 = vld [vmem:[#allocation3 + $0x578] sm:$0xff] }
 0x4f1   :  { %3068 = vmatmul.mubr.bf16.vlgmr.msra.gmra.mrb[96].mxu0 %v6498_v5  ;;  %3227 = vmatmul.mubr.bf16.vlgmr.msra.gmra.mrb[96].mxu1 %v6498_v5 }
 0x4f2   :  { %3089 = vmatpush1.bf16.msra.mxu0 %v2918_v16  ;;  %3248 = vmatpush1.bf16.msra.mxu1 %v2920_v1  ;;  %v2962_v16 = vld [vmem:[#allocation3 + $0x560] sm:$0xff]  ;;  %v2964_v1 = vld [vmem:[#allocation3 + $0x570] sm:$0xff] }
 0x4f3   :  { %3090 = vmatprep.subr.bf16.mxu0 %v2923_v23  ;;  %3249 = vmatprep.subr.bf16.mxu1 %v2925_v49  ;;  %v2967_v23 = vld [vmem:[#allocation3 + $0x588] sm:$0xff]  ;;  %v2969_v49 = vld [vmem:[#allocation3 + $0x598] sm:$0xff] }
 0x4f4   :  { %3077 = vmatprep.mubr.bf16.mxu0 %v6520_v12  ;;  %3236 = vmatprep.mubr.bf16.mxu1 %v6520_v12 }
 0x4f6   :  { %3091 = vmatpush1.bf16.msra.mxu0 %v2922_v62  ;;  %3250 = vmatpush1.bf16.msra.mxu1 %v2924_v29  ;;  %v2966_v62 = vld [vmem:[#allocation3 + $0x580] sm:$0xff]  ;;  %v2968_v29 = vld [vmem:[#allocation3 + $0x590] sm:$0xff] }
 0x4f7   :  { %3092 = vmatprep.subr.bf16.mxu0 %v2927_v36  ;;  %3251 = vmatprep.subr.bf16.mxu1 %v2929_v31  ;;  %v2971_v36 = vld [vmem:[#allocation3 + $0x5a8] sm:$0xff]  ;;  %v2973_v31 = vld [vmem:[#allocation3 + $0x5b8] sm:$0xff] }
 0x4f9   :  { %3078 = vmatmul.mubr.bf16.gmra.mrb[100].mxu0 %v6518_v8  ;;  %3237 = vmatmul.mubr.bf16.gmra.mrb[100].mxu1 %v6518_v8 }
 0x4fa   :  { %3093 = vmatpush1.bf16.msra.mxu0 %v2926_v45  ;;  %3252 = vmatpush1.bf16.msra.mxu1 %v2928_v3  ;;  %v2970_v45 = vld [vmem:[#allocation3 + $0x5a0] sm:$0xff]  ;;  %v2972_v3 = vld [vmem:[#allocation3 + $0x5b0] sm:$0xff] }
 0x4fb   :  { %3094 = vmatprep.subr.bf16.mxu0 %v2931_v14  ;;  %3253 = vmatprep.subr.bf16.mxu1 %v2933_v59  ;;  %v2975_v14 = vld [vmem:[#allocation3 + $0x5c8] sm:$0xff]  ;;  %v2977_v59 = vld [vmem:[#allocation3 + $0x5d8] sm:$0xff] }
 0x4fc   :  { %3120 = vmatprep.mubr.bf16.mxu0 %v6633_v27  ;;  %3279 = vmatprep.mubr.bf16.mxu1 %v6633_v27 }
 0x4fe   :  { %3095 = vmatpush1.bf16.msra.mxu0 %v2930_v9  ;;  %3254 = vmatpush1.bf16.msra.mxu1 %v2932_v28  ;;  %v2974_v9 = vld [vmem:[#allocation3 + $0x5c0] sm:$0xff]  ;;  %v2976_v28 = vld [vmem:[#allocation3 + $0x5d0] sm:$0xff] }
 0x4ff   :  { %3096 = vmatprep.subr.bf16.mxu0 %v2935_v19  ;;  %3255 = vmatprep.subr.bf16.mxu1 %v2937_v33  ;;  %v2979_v19 = vld [vmem:[#allocation3 + $0x5e8] sm:$0xff]  ;;  %v2981_v33 = vld [vmem:[#allocation3 + $0x5f8] sm:$0xff] }
 0x502   :  { %3097 = vmatpush1.bf16.msra.mxu0 %v2934_v35  ;;  %3256 = vmatpush1.bf16.msra.mxu1 %v2936_v13  ;;  %v2978_v35 = vld [vmem:[#allocation3 + $0x5e0] sm:$0xff]  ;;  %v2980_v13 = vld [vmem:[#allocation3 + $0x5f0] sm:$0xff] }
 0x503   :  { %3098 = vmatprep.subr.bf16.mxu0 %v2939_v38  ;;  %3257 = vmatprep.subr.bf16.mxu1 %v2941_v26  ;;  %v3341_v38 = vld [vmem:[#allocation3 + $0x608] sm:$0xff]  ;;  %v3343_v26 = vld [vmem:[#allocation3 + $0x618] sm:$0xff] }
 0x506   :  { %3099 = vmatpush1.bf16.msra.mxu0 %v2938_v10  ;;  %3258 = vmatpush1.bf16.msra.mxu1 %v2940_v34  ;;  %v3340_v10 = vld [vmem:[#allocation3 + $0x600] sm:$0xff]  ;;  %v3342_v34 = vld [vmem:[#allocation3 + $0x610] sm:$0xff] }
 0x507   :  { %3100 = vmatprep.subr.bf16.mxu0 %v2943_v7  ;;  %3259 = vmatprep.subr.bf16.mxu1 %v2945_v11  ;;  %v3345_v7 = vld [vmem:[#allocation3 + $0x628] sm:$0xff]  ;;  %v3347_v11 = vld [vmem:[#allocation3 + $0x638] sm:$0xff] }
 0x50a   :  { %3101 = vmatpush1.bf16.msra.mxu0 %v2942_v24  ;;  %3260 = vmatpush1.bf16.msra.mxu1 %v2944_v42  ;;  %v3344_v24 = vld [vmem:[#allocation3 + $0x620] sm:$0xff]  ;;  %v3346_v42 = vld [vmem:[#allocation3 + $0x630] sm:$0xff] }
 0x50b   :  { %3102 = vmatprep.subr.bf16.mxu0 %v2947_v18  ;;  %3261 = vmatprep.subr.bf16.mxu1 %v2949_v53  ;;  %v3349_v18 = vld [vmem:[#allocation3 + $0x648] sm:$0xff]  ;;  %v3351_v53 = vld [vmem:[#allocation3 + $0x658] sm:$0xff] }
 0x50e   :  { %3103 = vmatpush1.bf16.msra.mxu0 %v2946_v60  ;;  %3262 = vmatpush1.bf16.msra.mxu1 %v2948_v30  ;;  %v3348_v60 = vld [vmem:[#allocation3 + $0x640] sm:$0xff]  ;;  %v3350_v30 = vld [vmem:[#allocation3 + $0x650] sm:$0xff] }
 0x50f   :  { %3104 = vmatprep.subr.bf16.mxu0 %v2951_v51  ;;  %3263 = vmatprep.subr.bf16.mxu1 %v2953_v6  ;;  %v3353_v51 = vld [vmem:[#allocation3 + $0x668] sm:$0xff]  ;;  %v3355_v6 = vld [vmem:[#allocation3 + $0x678] sm:$0xff] }
 0x512   :  { %3105 = vmatpush1.bf16.msra.mxu0 %v2950_v40  ;;  %3264 = vmatpush1.bf16.msra.mxu1 %v2952_v47  ;;  %v3352_v40 = vld [vmem:[#allocation3 + $0x660] sm:$0xff]  ;;  %v3354_v47 = vld [vmem:[#allocation3 + $0x670] sm:$0xff] }
 0x513   :  { %3106 = vmatprep.subr.bf16.mxu0 %v2955_v25  ;;  %3265 = vmatprep.subr.bf16.mxu1 %v2957_v15  ;;  %v3357_v25 = vld [vmem:[#allocation3 + $0x688] sm:$0xff]  ;;  %v3359_v15 = vld [vmem:[#allocation3 + $0x698] sm:$0xff] }
 0x516   :  { %3107 = vmatpush1.bf16.msra.mxu0 %v2954_v55  ;;  %3266 = vmatpush1.bf16.msra.mxu1 %v2956_v58  ;;  %v3356_v55 = vld [vmem:[#allocation3 + $0x680] sm:$0xff]  ;;  %v3358_v58 = vld [vmem:[#allocation3 + $0x690] sm:$0xff] }
 0x517   :  { %3108 = vmatprep.subr.bf16.mxu0 %v2959_v52  ;;  %3267 = vmatprep.subr.bf16.mxu1 %v2961_v32  ;;  %v3361_v52 = vld [vmem:[#allocation3 + $0x6a8] sm:$0xff]  ;;  %v3363_v32 = vld [vmem:[#allocation3 + $0x6b8] sm:$0xff] }
 0x51a   :  { %3109 = vmatpush1.bf16.msra.mxu0 %v2958_v43  ;;  %3268 = vmatpush1.bf16.msra.mxu1 %v2960_v21  ;;  %v3360_v43 = vld [vmem:[#allocation3 + $0x6a0] sm:$0xff]  ;;  %v3362_v21 = vld [vmem:[#allocation3 + $0x6b0] sm:$0xff] }
 0x51b   :  { %3110 = vmatprep.subr.bf16.mxu0 %v2963_v63  ;;  %3269 = vmatprep.subr.bf16.mxu1 %v2965_v2  ;;  %v3365_v63 = vld [vmem:[#allocation3 + $0x6c8] sm:$0xff]  ;;  %v3367_v2 = vld [vmem:[#allocation3 + $0x6d8] sm:$0xff] }
 0x51e   :  { %3111 = vmatpush1.bf16.msra.mxu0 %v2962_v16  ;;  %3270 = vmatpush1.bf16.msra.mxu1 %v2964_v1  ;;  %v3366_v16 = vld [vmem:[#allocation3 + $0x6d0] sm:$0xff]  ;;  %v3369_v1 = vld [vmem:[#allocation3 + $0x6e8] sm:$0xff] }
 0x51f   :  { %3112 = vmatprep.subr.bf16.mxu0 %v2967_v23  ;;  %3271 = vmatprep.subr.bf16.mxu1 %v2969_v49  ;;  %v3371_v23 = vld [vmem:[#allocation3 + $0x6f8] sm:$0xff]  ;;  %v3368_v49 = vld [vmem:[#allocation3 + $0x6e0] sm:$0xff] }
 0x522   :  { %3113 = vmatpush1.bf16.msra.mxu0 %v2966_v62  ;;  %3272 = vmatpush1.bf16.msra.mxu1 %v2968_v29  ;;  %v3370_v62 = vld [vmem:[#allocation3 + $0x6f0] sm:$0xff]  ;;  %v3373_v29 = vld [vmem:[#allocation3 + $0x708] sm:$0xff] }
 0x523   :  { %3114 = vmatprep.subr.bf16.mxu0 %v2971_v36  ;;  %3273 = vmatprep.subr.bf16.mxu1 %v2973_v31  ;;  %v3375_v36 = vld [vmem:[#allocation3 + $0x718] sm:$0xff]  ;;  %v3372_v31 = vld [vmem:[#allocation3 + $0x700] sm:$0xff] }
 0x526   :  { %3115 = vmatpush1.bf16.msra.mxu0 %v2970_v45  ;;  %3274 = vmatpush1.bf16.msra.mxu1 %v2972_v3  ;;  %v3374_v45 = vld [vmem:[#allocation3 + $0x710] sm:$0xff]  ;;  %v3377_v3 = vld [vmem:[#allocation3 + $0x728] sm:$0xff] }
 0x527   :  { %3116 = vmatprep.subr.bf16.mxu0 %v2975_v14  ;;  %3275 = vmatprep.subr.bf16.mxu1 %v2977_v59  ;;  %v3379_v14 = vld [vmem:[#allocation3 + $0x738] sm:$0xff]  ;;  %v3376_v59 = vld [vmem:[#allocation3 + $0x720] sm:$0xff] }
 0x52a   :  { %3117 = vmatpush1.bf16.msra.mxu0 %v2974_v9  ;;  %3276 = vmatpush1.bf16.msra.mxu1 %v2976_v28  ;;  %v3378_v9 = vld [vmem:[#allocation3 + $0x730] sm:$0xff]  ;;  %v3381_v28 = vld [vmem:[#allocation3 + $0x748] sm:$0xff] }
 0x52b   :  { %3118 = vmatprep.subr.bf16.mxu0 %v2979_v19  ;;  %3277 = vmatprep.subr.bf16.mxu1 %v2981_v33  ;;  %v3383_v19 = vld [vmem:[#allocation3 + $0x758] sm:$0xff]  ;;  %v3380_v33 = vld [vmem:[#allocation3 + $0x740] sm:$0xff] }
 0x52e   :  { %3119 = vmatpush1.bf16.msra.mxu0 %v2978_v35  ;;  %3278 = vmatpush1.bf16.msra.mxu1 %v2980_v13  ;;  %v3382_v35 = vld [vmem:[#allocation3 + $0x750] sm:$0xff]  ;;  %v3385_v13 = vld [vmem:[#allocation3 + $0x768] sm:$0xff] }
 0x52f   :  { %3532 = vmatprep.subr.bf16.mxu0 %v3341_v38  ;;  %3691 = vmatprep.subr.bf16.mxu1 %v3343_v26  ;;  %v3387_v38 = vld [vmem:[#allocation3 + $0x778] sm:$0xff]  ;;  %v3384_v26 = vld [vmem:[#allocation3 + $0x760] sm:$0xff] }
 0x531   :  { %3121 = vmatmul.mubr.bf16.vlgmr.msra.gmra.mrb[96].mxu0 %v6628_v44  ;;  %3280 = vmatmul.mubr.bf16.vlgmr.msra.gmra.mrb[96].mxu1 %v6628_v44 }
 0x532   :  { %3533 = vmatpush1.bf16.msra.mxu0 %v3340_v10  ;;  %3692 = vmatpush1.bf16.msra.mxu1 %v3342_v34  ;;  %v3386_v10 = vld [vmem:[#allocation3 + $0x770] sm:$0xff]  ;;  %v3389_v34 = vld [vmem:[#allocation3 + $0x788] sm:$0xff] }
 0x533   :  { %3534 = vmatprep.subr.bf16.mxu0 %v3345_v7  ;;  %3693 = vmatprep.subr.bf16.mxu1 %v3347_v11  ;;  %v3391_v7 = vld [vmem:[#allocation3 + $0x798] sm:$0xff]  ;;  %v3388_v11 = vld [vmem:[#allocation3 + $0x780] sm:$0xff] }
 0x534   :  { %3130 = vmatprep.mubr.bf16.mxu0 %v6650_v41  ;;  %3289 = vmatprep.mubr.bf16.mxu1 %v6650_v41 }
 0x536   :  { %3535 = vmatpush1.bf16.msra.mxu0 %v3344_v24  ;;  %3694 = vmatpush1.bf16.msra.mxu1 %v3346_v42  ;;  %v3390_v24 = vld [vmem:[#allocation3 + $0x790] sm:$0xff]  ;;  %v3393_v42 = vld [vmem:[#allocation3 + $0x7a8] sm:$0xff] }
 0x537   :  { %3536 = vmatprep.subr.bf16.mxu0 %v3349_v18  ;;  %3695 = vmatprep.subr.bf16.mxu1 %v3351_v53  ;;  %v3395_v18 = vld [vmem:[#allocation3 + $0x7b8] sm:$0xff]  ;;  %v3392_v53 = vld [vmem:[#allocation3 + $0x7a0] sm:$0xff] }
 0x539   :  { %3131 = vmatmul.mubr.bf16.gmra.mrb[100].mxu0 %v6648_v0  ;;  %3290 = vmatmul.mubr.bf16.gmra.mrb[100].mxu1 %v6648_v0 }
 0x53a   :  { %3537 = vmatpush1.bf16.msra.mxu0 %v3348_v60  ;;  %3696 = vmatpush1.bf16.msra.mxu1 %v3350_v30  ;;  %v3394_v60 = vld [vmem:[#allocation3 + $0x7b0] sm:$0xff]  ;;  %v3397_v30 = vld [vmem:[#allocation3 + $0x7c8] sm:$0xff] }
 0x53b   :  { %3538 = vmatprep.subr.bf16.mxu0 %v3353_v51  ;;  %3697 = vmatprep.subr.bf16.mxu1 %v3355_v6  ;;  %v3399_v51 = vld [vmem:[#allocation3 + $0x7d8] sm:$0xff]  ;;  %v3396_v6 = vld [vmem:[#allocation3 + $0x7c0] sm:$0xff] }
 0x53c   :  { %3564 = vmatprep.mubr.bf16.mxu0 %v6503_v22  ;;  %3723 = vmatprep.mubr.bf16.mxu1 %v6503_v22  ;;  %v3364_v22 = vld [vmem:[#allocation3 + $0x6c0] sm:$0xff] }
 0x53e   :  { %3539 = vmatpush1.bf16.msra.mxu0 %v3352_v40  ;;  %3698 = vmatpush1.bf16.msra.mxu1 %v3354_v47  ;;  %v3398_v40 = vld [vmem:[#allocation3 + $0x7d0] sm:$0xff]  ;;  %v3401_v47 = vld [vmem:[#allocation3 + $0x7e8] sm:$0xff] }
 0x53f   :  { %3540 = vmatprep.subr.bf16.mxu0 %v3357_v25  ;;  %3699 = vmatprep.subr.bf16.mxu1 %v3359_v15  ;;  %v3403_v25 = vld [vmem:[#allocation3 + $0x7f8] sm:$0xff]  ;;  %v3400_v15 = vld [vmem:[#allocation3 + $0x7e0] sm:$0xff] }
 0x542   :  { %3541 = vmatpush1.bf16.msra.mxu0 %v3356_v55  ;;  %3700 = vmatpush1.bf16.msra.mxu1 %v3358_v58  ;;  %v3402_v55 = vld [vmem:[#allocation3 + $0x7f0] sm:$0xff]  ;;  %v3405_v58 = vld [vmem:[#allocation3 + $0x808] sm:$0xff] }
 0x543   :  { %3542 = vmatprep.subr.bf16.mxu0 %v3361_v52  ;;  %3701 = vmatprep.subr.bf16.mxu1 %v3363_v32  ;;  %v3407_v52 = vld [vmem:[#allocation3 + $0x818] sm:$0xff]  ;;  %v3404_v32 = vld [vmem:[#allocation3 + $0x800] sm:$0xff] }
 0x546   :  { %3543 = vmatpush1.bf16.msra.mxu0 %v3360_v43  ;;  %3702 = vmatpush1.bf16.msra.mxu1 %v3362_v21  ;;  %v3406_v43 = vld [vmem:[#allocation3 + $0x810] sm:$0xff]  ;;  %v3409_v21 = vld [vmem:[#allocation3 + $0x828] sm:$0xff] }
 0x547   :  { %3544 = vmatprep.subr.bf16.mxu0 %v3365_v63  ;;  %3703 = vmatprep.subr.bf16.mxu1 %v3367_v2  ;;  %v3411_v63 = vld [vmem:[#allocation3 + $0x838] sm:$0xff]  ;;  %v3408_v2 = vld [vmem:[#allocation3 + $0x820] sm:$0xff] }
 0x54a   :  { %3545 = vmatpush1.bf16.msra.mxu0 %v3364_v22  ;;  %3704 = vmatpush1.bf16.msra.mxu1 %v3366_v16  ;;  %v3410_v22 = vld [vmem:[#allocation3 + $0x830] sm:$0xff]  ;;  %v3413_v16 = vld [vmem:[#allocation3 + $0x848] sm:$0xff] }
 0x54b   :  { %3546 = vmatprep.subr.bf16.mxu0 %v3369_v1  ;;  %3705 = vmatprep.subr.bf16.mxu1 %v3371_v23  ;;  %v3415_v1 = vld [vmem:[#allocation3 + $0x858] sm:$0xff]  ;;  %v3412_v23 = vld [vmem:[#allocation3 + $0x840] sm:$0xff] }
 0x54e   :  { %3547 = vmatpush1.bf16.msra.mxu0 %v3368_v49  ;;  %3706 = vmatpush1.bf16.msra.mxu1 %v3370_v62  ;;  %v3414_v49 = vld [vmem:[#allocation3 + $0x850] sm:$0xff]  ;;  %v3417_v62 = vld [vmem:[#allocation3 + $0x868] sm:$0xff] }
 0x54f   :  { %3548 = vmatprep.subr.bf16.mxu0 %v3373_v29  ;;  %3707 = vmatprep.subr.bf16.mxu1 %v3375_v36  ;;  %v3416_v29 = vld [vmem:[#allocation3 + $0x860] sm:$0xff]  ;;  %v3418_v36 = vld [vmem:[#allocation3 + $0x870] sm:$0xff] }
 0x552   :  { %3549 = vmatpush1.bf16.msra.mxu0 %v3372_v31  ;;  %3708 = vmatpush1.bf16.msra.mxu1 %v3374_v45  ;;  %v3421_v31 = vld [vmem:[#allocation3 + $0x888] sm:$0xff]  ;;  %v3420_v45 = vld [vmem:[#allocation3 + $0x880] sm:$0xff] }
 0x553   :  { %3550 = vmatprep.subr.bf16.mxu0 %v3377_v3  ;;  %3709 = vmatprep.subr.bf16.mxu1 %v3379_v14  ;;  %v3422_v3 = vld [vmem:[#allocation3 + $0x890] sm:$0xff]  ;;  %v3425_v14 = vld [vmem:[#allocation3 + $0x8a8] sm:$0xff] }
 0x556   :  { %3551 = vmatpush1.bf16.msra.mxu0 %v3376_v59  ;;  %3710 = vmatpush1.bf16.msra.mxu1 %v3378_v9  ;;  %v3424_v59 = vld [vmem:[#allocation3 + $0x8a0] sm:$0xff]  ;;  %v3426_v9 = vld [vmem:[#allocation3 + $0x8b0] sm:$0xff] }
 0x557   :  { %3552 = vmatprep.subr.bf16.mxu0 %v3381_v28  ;;  %3711 = vmatprep.subr.bf16.mxu1 %v3383_v19  ;;  %v3429_v28 = vld [vmem:[#allocation3 + $0x8c8] sm:$0xff]  ;;  %v3431_v19 = vld [vmem:[#allocation3 + $0x8d8] sm:$0xff] }
 0x55a   :  { %3553 = vmatpush1.bf16.msra.mxu0 %v3380_v33  ;;  %3712 = vmatpush1.bf16.msra.mxu1 %v3382_v35  ;;  %v3428_v33 = vld [vmem:[#allocation3 + $0x8c0] sm:$0xff]  ;;  %v3430_v35 = vld [vmem:[#allocation3 + $0x8d0] sm:$0xff] }
 0x55b   :  { %3554 = vmatprep.subr.bf16.mxu0 %v3385_v13  ;;  %3713 = vmatprep.subr.bf16.mxu1 %v3387_v38  ;;  %v3433_v13 = vld [vmem:[#allocation3 + $0x8e8] sm:$0xff]  ;;  %v3435_v38 = vld [vmem:[#allocation3 + $0x8f8] sm:$0xff] }
 0x55e   :  { %3555 = vmatpush1.bf16.msra.mxu0 %v3384_v26  ;;  %3714 = vmatpush1.bf16.msra.mxu1 %v3386_v10  ;;  %v3432_v26 = vld [vmem:[#allocation3 + $0x8e0] sm:$0xff]  ;;  %v3434_v10 = vld [vmem:[#allocation3 + $0x8f0] sm:$0xff] }
 0x55f   :  { %3556 = vmatprep.subr.bf16.mxu0 %v3389_v34  ;;  %3715 = vmatprep.subr.bf16.mxu1 %v3391_v7  ;;  %v3437_v34 = vld [vmem:[#allocation3 + $0x908] sm:$0xff]  ;;  %v3439_v7 = vld [vmem:[#allocation3 + $0x918] sm:$0xff] }
 0x562   :  { %3557 = vmatpush1.bf16.msra.mxu0 %v3388_v11  ;;  %3716 = vmatpush1.bf16.msra.mxu1 %v3390_v24  ;;  %v3436_v11 = vld [vmem:[#allocation3 + $0x900] sm:$0xff]  ;;  %v3438_v24 = vld [vmem:[#allocation3 + $0x910] sm:$0xff] }
 0x563   :  { %3558 = vmatprep.subr.bf16.mxu0 %v3393_v42  ;;  %3717 = vmatprep.subr.bf16.mxu1 %v3395_v18  ;;  %v3441_v42 = vld [vmem:[#allocation3 + $0x928] sm:$0xff]  ;;  %v3443_v18 = vld [vmem:[#allocation3 + $0x938] sm:$0xff] }
 0x566   :  { %3559 = vmatpush1.bf16.msra.mxu0 %v3392_v53  ;;  %3718 = vmatpush1.bf16.msra.mxu1 %v3394_v60  ;;  %v3440_v53 = vld [vmem:[#allocation3 + $0x920] sm:$0xff]  ;;  %v3442_v60 = vld [vmem:[#allocation3 + $0x930] sm:$0xff] }
 0x567   :  { %3560 = vmatprep.subr.bf16.mxu0 %v3397_v30  ;;  %3719 = vmatprep.subr.bf16.mxu1 %v3399_v51  ;;  %v3445_v30 = vld [vmem:[#allocation3 + $0x948] sm:$0xff]  ;;  %v3447_v51 = vld [vmem:[#allocation3 + $0x958] sm:$0xff] }
 0x56a   :  { %3561 = vmatpush1.bf16.msra.mxu0 %v3396_v6  ;;  %3720 = vmatpush1.bf16.msra.mxu1 %v3398_v40  ;;  %v3444_v6 = vld [vmem:[#allocation3 + $0x940] sm:$0xff]  ;;  %v3446_v40 = vld [vmem:[#allocation3 + $0x950] sm:$0xff] }
 0x56b   :  { %3562 = vmatprep.subr.bf16.mxu0 %v3401_v47  ;;  %3721 = vmatprep.subr.bf16.mxu1 %v3403_v25  ;;  %v3449_v47 = vld [vmem:[#allocation3 + $0x968] sm:$0xff]  ;;  %v3451_v25 = vld [vmem:[#allocation3 + $0x978] sm:$0xff] }
 0x56e   :  { %3563 = vmatpush1.bf16.msra.mxu0 %v3400_v15  ;;  %3722 = vmatpush1.bf16.msra.mxu1 %v3402_v55  ;;  %v3448_v15 = vld [vmem:[#allocation3 + $0x960] sm:$0xff]  ;;  %v3450_v55 = vld [vmem:[#allocation3 + $0x970] sm:$0xff] }
 0x56f   :  { %3585 = vmatprep.subr.bf16.mxu0 %v3405_v58  ;;  %3744 = vmatprep.subr.bf16.mxu1 %v3407_v52  ;;  %v3453_v58 = vld [vmem:[#allocation3 + $0x988] sm:$0xff]  ;;  %v3455_v52 = vld [vmem:[#allocation3 + $0x998] sm:$0xff] }
 0x571   :  { %3565 = vmatmul.mubr.bf16.vlgmr.msra.gmra.mrb[104].mxu0 %v6498_v5  ;;  %3724 = vmatmul.mubr.bf16.vlgmr.msra.gmra.mrb[104].mxu1 %v6498_v5  ;;  %v3419_v5 = vld [vmem:[#allocation3 + $0x878] sm:$0xff] }
 0x572   :  { %3586 = vmatpush1.bf16.msra.mxu0 %v3404_v32  ;;  %3745 = vmatpush1.bf16.msra.mxu1 %v3406_v43  ;;  %v3452_v32 = vld [vmem:[#allocation3 + $0x980] sm:$0xff]  ;;  %v3454_v43 = vld [vmem:[#allocation3 + $0x990] sm:$0xff] }
 0x573   :  { %3587 = vmatprep.subr.bf16.mxu0 %v3409_v21  ;;  %3746 = vmatprep.subr.bf16.mxu1 %v3411_v63  ;;  %v3457_v21 = vld [vmem:[#allocation3 + $0x9a8] sm:$0xff]  ;;  %v3459_v63 = vld [vmem:[#allocation3 + $0x9b8] sm:$0xff] }
 0x574   :  { %3574 = vmatprep.mubr.bf16.mxu0 %v6520_v12  ;;  %3733 = vmatprep.mubr.bf16.mxu1 %v6520_v12  ;;  %v3423_v12 = vld [vmem:[#allocation3 + $0x898] sm:$0xff] }
 0x576   :  { %3588 = vmatpush1.bf16.msra.mxu0 %v3408_v2  ;;  %3747 = vmatpush1.bf16.msra.mxu1 %v3410_v22  ;;  %v3456_v2 = vld [vmem:[#allocation3 + $0x9a0] sm:$0xff]  ;;  %v3458_v22 = vld [vmem:[#allocation3 + $0x9b0] sm:$0xff] }
 0x577   :  { %3589 = vmatprep.subr.bf16.mxu0 %v3413_v16  ;;  %3748 = vmatprep.subr.bf16.mxu1 %v3415_v1  ;;  %v3461_v16 = vld [vmem:[#allocation3 + $0x9c8] sm:$0xff]  ;;  %v3463_v1 = vld [vmem:[#allocation3 + $0x9d8] sm:$0xff] }
 0x579   :  { %3575 = vmatmul.mubr.bf16.gmra.mrb[108].mxu0 %v6518_v8  ;;  %3734 = vmatmul.mubr.bf16.gmra.mrb[108].mxu1 %v6518_v8  ;;  %v3427_v8 = vld [vmem:[#allocation3 + $0x8b8] sm:$0xff] }
 0x57a   :  { %3590 = vmatpush1.bf16.msra.mxu0 %v3412_v23  ;;  %3749 = vmatpush1.bf16.msra.mxu1 %v3414_v49  ;;  %v3460_v23 = vld [vmem:[#allocation3 + $0x9c0] sm:$0xff]  ;;  %v3462_v49 = vld [vmem:[#allocation3 + $0x9d0] sm:$0xff] }
 0x57b   :  { %3591 = vmatprep.subr.bf16.mxu0 %v3417_v62  ;;  %3750 = vmatprep.subr.bf16.mxu1 %v3419_v5  ;;  %v3465_v62 = vld [vmem:[#allocation3 + $0x9e8] sm:$0xff]  ;;  %v3467_v5 = vld [vmem:[#allocation3 + $0x9f8] sm:$0xff] }
 0x57c   :  { %3617 = vmatprep.mubr.bf16.mxu0 %v6633_v27  ;;  %3776 = vmatprep.mubr.bf16.mxu1 %v6633_v27 }
 0x57e   :  { %3592 = vmatpush1.bf16.msra.mxu0 %v3416_v29  ;;  %3751 = vmatpush1.bf16.msra.mxu1 %v3418_v36  ;;  %v3464_v29 = vld [vmem:[#allocation3 + $0x9e0] sm:$0xff]  ;;  %v3466_v36 = vld [vmem:[#allocation3 + $0x9f0] sm:$0xff] }
 0x57f   :  { %3593 = vmatprep.subr.bf16.mxu0 %v3421_v31  ;;  %3752 = vmatprep.subr.bf16.mxu1 %v3423_v12  ;;  %v3469_v31 = vld [vmem:[#allocation3 + $0xa08] sm:$0xff]  ;;  %v3471_v12 = vld [vmem:[#allocation3 + $0xa18] sm:$0xff] }
 0x582   :  { %3594 = vmatpush1.bf16.msra.mxu0 %v3420_v45  ;;  %3753 = vmatpush1.bf16.msra.mxu1 %v3422_v3  ;;  %v3468_v45 = vld [vmem:[#allocation3 + $0xa00] sm:$0xff]  ;;  %v3470_v3 = vld [vmem:[#allocation3 + $0xa10] sm:$0xff] }
 0x583   :  { %3595 = vmatprep.subr.bf16.mxu0 %v3425_v14  ;;  %3754 = vmatprep.subr.bf16.mxu1 %v3427_v8  ;;  %v3473_v14 = vld [vmem:[#allocation3 + $0xa28] sm:$0xff]  ;;  %v3475_v8 = vld [vmem:[#allocation3 + $0xa38] sm:$0xff] }
 0x586   :  { %3596 = vmatpush1.bf16.msra.mxu0 %v3424_v59  ;;  %3755 = vmatpush1.bf16.msra.mxu1 %v3426_v9  ;;  %v3472_v59 = vld [vmem:[#allocation3 + $0xa20] sm:$0xff]  ;;  %v3474_v9 = vld [vmem:[#allocation3 + $0xa30] sm:$0xff] }
 0x587   :  { %3597 = vmatprep.subr.bf16.mxu0 %v3429_v28  ;;  %3756 = vmatprep.subr.bf16.mxu1 %v3431_v19  ;;  %v3477_v28 = vld [vmem:[#allocation3 + $0xa48] sm:$0xff]  ;;  %v3479_v19 = vld [vmem:[#allocation3 + $0xa58] sm:$0xff] }
 0x58a   :  { %3598 = vmatpush1.bf16.msra.mxu0 %v3428_v33  ;;  %3757 = vmatpush1.bf16.msra.mxu1 %v3430_v35  ;;  %v3476_v33 = vld [vmem:[#allocation3 + $0xa40] sm:$0xff]  ;;  %v3478_v35 = vld [vmem:[#allocation3 + $0xa50] sm:$0xff] }
 0x58b   :  { %3599 = vmatprep.subr.bf16.mxu0 %v3433_v13  ;;  %3758 = vmatprep.subr.bf16.mxu1 %v3435_v38  ;;  %v3481_v13 = vld [vmem:[#allocation3 + $0xa68] sm:$0xff]  ;;  %v3483_v38 = vld [vmem:[#allocation3 + $0xa78] sm:$0xff] }
 0x58e   :  { %3600 = vmatpush1.bf16.msra.mxu0 %v3432_v26  ;;  %3759 = vmatpush1.bf16.msra.mxu1 %v3434_v10  ;;  %v3480_v26 = vld [vmem:[#allocation3 + $0xa60] sm:$0xff]  ;;  %v3482_v10 = vld [vmem:[#allocation3 + $0xa70] sm:$0xff] }
 0x58f   :  { %3601 = vmatprep.subr.bf16.mxu0 %v3437_v34  ;;  %3760 = vmatprep.subr.bf16.mxu1 %v3439_v7  ;;  %v3485_v34 = vld [vmem:[#allocation3 + $0xa88] sm:$0xff]  ;;  %v3487_v7 = vld [vmem:[#allocation3 + $0xa98] sm:$0xff] }
 0x592   :  { %3602 = vmatpush1.bf16.msra.mxu0 %v3436_v11  ;;  %3761 = vmatpush1.bf16.msra.mxu1 %v3438_v24  ;;  %v3484_v11 = vld [vmem:[#allocation3 + $0xa80] sm:$0xff]  ;;  %v3486_v24 = vld [vmem:[#allocation3 + $0xa90] sm:$0xff] }
 0x593   :  { %3603 = vmatprep.subr.bf16.mxu0 %v3441_v42  ;;  %3762 = vmatprep.subr.bf16.mxu1 %v3443_v18  ;;  %v3489_v42 = vld [vmem:[#allocation3 + $0xaa8] sm:$0xff]  ;;  %v3491_v18 = vld [vmem:[#allocation3 + $0xab8] sm:$0xff] }
 0x596   :  { %3604 = vmatpush1.bf16.msra.mxu0 %v3440_v53  ;;  %3763 = vmatpush1.bf16.msra.mxu1 %v3442_v60  ;;  %v3488_v53 = vld [vmem:[#allocation3 + $0xaa0] sm:$0xff]  ;;  %v3490_v60 = vld [vmem:[#allocation3 + $0xab0] sm:$0xff] }
 0x597   :  { %3605 = vmatprep.subr.bf16.mxu0 %v3445_v30  ;;  %3764 = vmatprep.subr.bf16.mxu1 %v3447_v51  ;;  %v3493_v30 = vld [vmem:[#allocation3 + $0xac8] sm:$0xff]  ;;  %v3495_v51 = vld [vmem:[#allocation3 + $0xad8] sm:$0xff] }
 0x59a   :  { %3606 = vmatpush1.bf16.msra.mxu0 %v3444_v6  ;;  %3765 = vmatpush1.bf16.msra.mxu1 %v3446_v40  ;;  %v3492_v6 = vld [vmem:[#allocation3 + $0xac0] sm:$0xff]  ;;  %v3494_v40 = vld [vmem:[#allocation3 + $0xad0] sm:$0xff] }
 0x59b   :  { %3607 = vmatprep.subr.bf16.mxu0 %v3449_v47  ;;  %3766 = vmatprep.subr.bf16.mxu1 %v3451_v25  ;;  %v3497_v47 = vld [vmem:[#allocation3 + $0xae8] sm:$0xff]  ;;  %v3499_v25 = vld [vmem:[#allocation3 + $0xaf8] sm:$0xff] }
 0x59e   :  { %3608 = vmatpush1.bf16.msra.mxu0 %v3448_v15  ;;  %3767 = vmatpush1.bf16.msra.mxu1 %v3450_v55  ;;  %v3496_v15 = vld [vmem:[#allocation3 + $0xae0] sm:$0xff]  ;;  %v3498_v55 = vld [vmem:[#allocation3 + $0xaf0] sm:$0xff] }
 0x59f   :  { %3609 = vmatprep.subr.bf16.mxu0 %v3453_v58  ;;  %3768 = vmatprep.subr.bf16.mxu1 %v3455_v52  ;;  %v3501_v58 = vld [vmem:[#allocation3 + $0xb08] sm:$0xff]  ;;  %v3503_v52 = vld [vmem:[#allocation3 + $0xb18] sm:$0xff] }
 0x5a2   :  { %3610 = vmatpush1.bf16.msra.mxu0 %v3452_v32  ;;  %3769 = vmatpush1.bf16.msra.mxu1 %v3454_v43  ;;  %v3500_v32 = vld [vmem:[#allocation3 + $0xb00] sm:$0xff]  ;;  %v3502_v43 = vld [vmem:[#allocation3 + $0xb10] sm:$0xff] }
 0x5a3   :  { %3611 = vmatprep.subr.bf16.mxu0 %v3457_v21  ;;  %3770 = vmatprep.subr.bf16.mxu1 %v3459_v63  ;;  %v3505_v21 = vld [vmem:[#allocation3 + $0xb28] sm:$0xff]  ;;  %v3507_v63 = vld [vmem:[#allocation3 + $0xb38] sm:$0xff] }
 0x5a6   :  { %3612 = vmatpush1.bf16.msra.mxu0 %v3456_v2  ;;  %3771 = vmatpush1.bf16.msra.mxu1 %v3458_v22  ;;  %v3504_v2 = vld [vmem:[#allocation3 + $0xb20] sm:$0xff]  ;;  %v3506_v22 = vld [vmem:[#allocation3 + $0xb30] sm:$0xff] }
 0x5a7   :  { %3613 = vmatprep.subr.bf16.mxu0 %v3461_v16  ;;  %3772 = vmatprep.subr.bf16.mxu1 %v3463_v1  ;;  %v3509_v16 = vld [vmem:[#allocation3 + $0xb48] sm:$0xff]  ;;  %v3511_v1 = vld [vmem:[#allocation3 + $0xb58] sm:$0xff] }
 0x5aa   :  { %3614 = vmatpush1.bf16.msra.mxu0 %v3460_v23  ;;  %3773 = vmatpush1.bf16.msra.mxu1 %v3462_v49  ;;  %v3508_v23 = vld [vmem:[#allocation3 + $0xb40] sm:$0xff]  ;;  %v3510_v49 = vld [vmem:[#allocation3 + $0xb50] sm:$0xff] }
 0x5ab   :  { %3615 = vmatprep.subr.bf16.mxu0 %v3465_v62  ;;  %3774 = vmatprep.subr.bf16.mxu1 %v3467_v5  ;;  %v3513_v62 = vld [vmem:[#allocation3 + $0xb68] sm:$0xff]  ;;  %v3515_v5 = vld [vmem:[#allocation3 + $0xb78] sm:$0xff] }
 0x5ae   :  { %3616 = vmatpush1.bf16.msra.mxu0 %v3464_v29  ;;  %3775 = vmatpush1.bf16.msra.mxu1 %v3466_v36  ;;  %v3512_v29 = vld [vmem:[#allocation3 + $0xb60] sm:$0xff]  ;;  %v3514_v36 = vld [vmem:[#allocation3 + $0xb70] sm:$0xff] }
 0x5af   :  { %3638 = vmatprep.subr.bf16.mxu0 %v3469_v31  ;;  %3797 = vmatprep.subr.bf16.mxu1 %v3471_v12  ;;  %v3517_v31 = vld [vmem:[#allocation3 + $0xb88] sm:$0xff]  ;;  %v3519_v12 = vld [vmem:[#allocation3 + $0xb98] sm:$0xff] }
 0x5b1   :  { %3618 = vmatmul.mubr.bf16.vlgmr.msra.gmra.mrb[104].mxu0 %v6628_v44  ;;  %3777 = vmatmul.mubr.bf16.vlgmr.msra.gmra.mrb[104].mxu1 %v6628_v44 }
 0x5b2   :  { %3639 = vmatpush1.bf16.msra.mxu0 %v3468_v45  ;;  %3798 = vmatpush1.bf16.msra.mxu1 %v3470_v3  ;;  %v3516_v45 = vld [vmem:[#allocation3 + $0xb80] sm:$0xff]  ;;  %v3518_v3 = vld [vmem:[#allocation3 + $0xb90] sm:$0xff] }
 0x5b3   :  { %3640 = vmatprep.subr.bf16.mxu0 %v3473_v14  ;;  %3799 = vmatprep.subr.bf16.mxu1 %v3475_v8  ;;  %v3521_v14 = vld [vmem:[#allocation3 + $0xba8] sm:$0xff]  ;;  %v3523_v8 = vld [vmem:[#allocation3 + $0xbb8] sm:$0xff] }
 0x5b4   :  { %3627 = vmatprep.mubr.bf16.mxu0 %v6650_v41  ;;  %3786 = vmatprep.mubr.bf16.mxu1 %v6650_v41 }
 0x5b6   :  { %3641 = vmatpush1.bf16.msra.mxu0 %v3472_v59  ;;  %3800 = vmatpush1.bf16.msra.mxu1 %v3474_v9  ;;  %v3520_v59 = vld [vmem:[#allocation3 + $0xba0] sm:$0xff]  ;;  %v3522_v9 = vld [vmem:[#allocation3 + $0xbb0] sm:$0xff] }
 0x5b7   :  { %3642 = vmatprep.subr.bf16.mxu0 %v3477_v28  ;;  %3801 = vmatprep.subr.bf16.mxu1 %v3479_v19  ;;  %v3525_v28 = vld [vmem:[#allocation3 + $0xbc8] sm:$0xff]  ;;  %v3527_v19 = vld [vmem:[#allocation3 + $0xbd8] sm:$0xff] }
 0x5b9   :  { %3628 = vmatmul.mubr.bf16.gmra.mrb[108].mxu0 %v6648_v0  ;;  %3787 = vmatmul.mubr.bf16.gmra.mrb[108].mxu1 %v6648_v0 }
 0x5ba   :  { %3643 = vmatpush1.bf16.msra.mxu0 %v3476_v33  ;;  %3802 = vmatpush1.bf16.msra.mxu1 %v3478_v35  ;;  %v3524_v33 = vld [vmem:[#allocation3 + $0xbc0] sm:$0xff]  ;;  %v3526_v35 = vld [vmem:[#allocation3 + $0xbd0] sm:$0xff] }
 0x5bb   :  { %3644 = vmatprep.subr.bf16.mxu0 %v3481_v13  ;;  %3803 = vmatprep.subr.bf16.mxu1 %v3483_v38  ;;  %v3529_v13 = vld [vmem:[#allocation3 + $0xbe8] sm:$0xff]  ;;  %v3531_v38 = vld [vmem:[#allocation3 + $0xbf8] sm:$0xff] }
 0x5bc   :  { %3670 = vmatprep.mubr.bf16.mxu0 %v6763_v57  ;;  %3829 = vmatprep.mubr.bf16.mxu1 %v6763_v57 }
 0x5be   :  { %3645 = vmatpush1.bf16.msra.mxu0 %v3480_v26  ;;  %3804 = vmatpush1.bf16.msra.mxu1 %v3482_v10  ;;  %v3528_v26 = vld [vmem:[#allocation3 + $0xbe0] sm:$0xff]  ;;  %v3530_v10 = vld [vmem:[#allocation3 + $0xbf0] sm:$0xff] }
 0x5bf   :  { %3646 = vmatprep.subr.bf16.mxu0 %v3485_v34  ;;  %3805 = vmatprep.subr.bf16.mxu1 %v3487_v7  ;;  %v3891_v34 = vld [vmem:[#allocation3 + $0xc08] sm:$0xff]  ;;  %v3893_v7 = vld [vmem:[#allocation3 + $0xc18] sm:$0xff] }
 0x5c2   :  { %3647 = vmatpush1.bf16.msra.mxu0 %v3484_v11  ;;  %3806 = vmatpush1.bf16.msra.mxu1 %v3486_v24  ;;  %v3890_v11 = vld [vmem:[#allocation3 + $0xc00] sm:$0xff]  ;;  %v3892_v24 = vld [vmem:[#allocation3 + $0xc10] sm:$0xff] }
 0x5c3   :  { %3648 = vmatprep.subr.bf16.mxu0 %v3489_v42  ;;  %3807 = vmatprep.subr.bf16.mxu1 %v3491_v18  ;;  %v3895_v42 = vld [vmem:[#allocation3 + $0xc28] sm:$0xff]  ;;  %v3897_v18 = vld [vmem:[#allocation3 + $0xc38] sm:$0xff] }
 0x5c6   :  { %3649 = vmatpush1.bf16.msra.mxu0 %v3488_v53  ;;  %3808 = vmatpush1.bf16.msra.mxu1 %v3490_v60  ;;  %v3894_v53 = vld [vmem:[#allocation3 + $0xc20] sm:$0xff]  ;;  %v3896_v60 = vld [vmem:[#allocation3 + $0xc30] sm:$0xff] }
 0x5c7   :  { %3650 = vmatprep.subr.bf16.mxu0 %v3493_v30  ;;  %3809 = vmatprep.subr.bf16.mxu1 %v3495_v51  ;;  %v3899_v30 = vld [vmem:[#allocation3 + $0xc48] sm:$0xff]  ;;  %v3901_v51 = vld [vmem:[#allocation3 + $0xc58] sm:$0xff] }
 0x5ca   :  { %3651 = vmatpush1.bf16.msra.mxu0 %v3492_v6  ;;  %3810 = vmatpush1.bf16.msra.mxu1 %v3494_v40  ;;  %v3898_v6 = vld [vmem:[#allocation3 + $0xc40] sm:$0xff]  ;;  %v3900_v40 = vld [vmem:[#allocation3 + $0xc50] sm:$0xff] }
 0x5cb   :  { %3652 = vmatprep.subr.bf16.mxu0 %v3497_v47  ;;  %3811 = vmatprep.subr.bf16.mxu1 %v3499_v25  ;;  %v3903_v47 = vld [vmem:[#allocation3 + $0xc68] sm:$0xff]  ;;  %v3905_v25 = vld [vmem:[#allocation3 + $0xc78] sm:$0xff] }
 0x5ce   :  { %3653 = vmatpush1.bf16.msra.mxu0 %v3496_v15  ;;  %3812 = vmatpush1.bf16.msra.mxu1 %v3498_v55  ;;  %v3902_v15 = vld [vmem:[#allocation3 + $0xc60] sm:$0xff]  ;;  %v3904_v55 = vld [vmem:[#allocation3 + $0xc70] sm:$0xff] }
 0x5cf   :  { %3654 = vmatprep.subr.bf16.mxu0 %v3501_v58  ;;  %3813 = vmatprep.subr.bf16.mxu1 %v3503_v52  ;;  %v3907_v58 = vld [vmem:[#allocation3 + $0xc88] sm:$0xff]  ;;  %v3909_v52 = vld [vmem:[#allocation3 + $0xc98] sm:$0xff] }
 0x5d2   :  { %3655 = vmatpush1.bf16.msra.mxu0 %v3500_v32  ;;  %3814 = vmatpush1.bf16.msra.mxu1 %v3502_v43  ;;  %v3906_v32 = vld [vmem:[#allocation3 + $0xc80] sm:$0xff]  ;;  %v3908_v43 = vld [vmem:[#allocation3 + $0xc90] sm:$0xff] }
 0x5d3   :  { %3656 = vmatprep.subr.bf16.mxu0 %v3505_v21  ;;  %3815 = vmatprep.subr.bf16.mxu1 %v3507_v63  ;;  %v3911_v21 = vld [vmem:[#allocation3 + $0xca8] sm:$0xff]  ;;  %v3913_v63 = vld [vmem:[#allocation3 + $0xcb8] sm:$0xff] }
 0x5d6   :  { %3657 = vmatpush1.bf16.msra.mxu0 %v3504_v2  ;;  %3816 = vmatpush1.bf16.msra.mxu1 %v3506_v22  ;;  %v3910_v2 = vld [vmem:[#allocation3 + $0xca0] sm:$0xff]  ;;  %v3912_v22 = vld [vmem:[#allocation3 + $0xcb0] sm:$0xff] }
 0x5d7   :  { %3658 = vmatprep.subr.bf16.mxu0 %v3509_v16  ;;  %3817 = vmatprep.subr.bf16.mxu1 %v3511_v1 }
 0x5da   :  { %3659 = vmatpush1.bf16.msra.mxu0 %v3508_v23  ;;  %3818 = vmatpush1.bf16.msra.mxu1 %v3510_v49  ;;  %v3915_v23 = vld [vmem:[#allocation3 + $0xcc8] sm:$0xff]  ;;  %v3917_v49 = vld [vmem:[#allocation3 + $0xcd8] sm:$0xff] }
 0x5db   :  { %3660 = vmatprep.subr.bf16.mxu0 %v3513_v62  ;;  %3819 = vmatprep.subr.bf16.mxu1 %v3515_v5 }
 0x5de   :  { %3661 = vmatpush1.bf16.msra.mxu0 %v3512_v29  ;;  %3820 = vmatpush1.bf16.msra.mxu1 %v3514_v36 }
 0x5df   :  { %3662 = vmatprep.subr.bf16.mxu0 %v3517_v31  ;;  %3821 = vmatprep.subr.bf16.mxu1 %v3519_v12 }
 0x5e2   :  { %3663 = vmatpush1.bf16.msra.mxu0 %v3516_v45  ;;  %3822 = vmatpush1.bf16.msra.mxu1 %v3518_v3  ;;  %v3914_v3 = vld [vmem:[#allocation3 + $0xcc0] sm:$0xff] }
 0x5e3   :  { %3664 = vmatprep.subr.bf16.mxu0 %v3521_v14  ;;  %3823 = vmatprep.subr.bf16.mxu1 %v3523_v8  ;;  %v3916_v14 = vld [vmem:[#allocation3 + $0xcd0] sm:$0xff] }
 0x5e6   :  { %3665 = vmatpush1.bf16.msra.mxu0 %v3520_v59  ;;  %3824 = vmatpush1.bf16.msra.mxu1 %v3522_v9 }
 0x5e7   :  { %3666 = vmatprep.subr.bf16.mxu0 %v3525_v28  ;;  %3825 = vmatprep.subr.bf16.mxu1 %v3527_v19  ;;  %v3919_v28 = vld [vmem:[#allocation3 + $0xce8] sm:$0xff]  ;;  %v3921_v19 = vld [vmem:[#allocation3 + $0xcf8] sm:$0xff] }
 0x5ea   :  { %3667 = vmatpush1.bf16.msra.mxu0 %v3524_v33  ;;  %3826 = vmatpush1.bf16.msra.mxu1 %v3526_v35  ;;  %v3918_v35 = vld [vmem:[#allocation3 + $0xce0] sm:$0xff] }
 0x5eb   :  { %3668 = vmatprep.subr.bf16.mxu0 %v3529_v13  ;;  %3827 = vmatprep.subr.bf16.mxu1 %v3531_v38  ;;  %v3920_v13 = vld [vmem:[#allocation3 + $0xcf0] sm:$0xff] }
 0x5ee   :  { %3669 = vmatpush1.bf16.msra.mxu0 %v3528_v26  ;;  %3828 = vmatpush1.bf16.msra.mxu1 %v3530_v10  ;;  %v3923_v10 = vld [vmem:[#allocation3 + $0xd08] sm:$0xff] }
 0x5ef   :  { %4082 = vmatprep.subr.bf16.mxu0 %v3891_v34  ;;  %4241 = vmatprep.subr.bf16.mxu1 %v3893_v7  ;;  %v3925_v34 = vld [vmem:[#allocation3 + $0xd18] sm:$0xff] }
 0x5f1   :  { %3671 = vmatmul.mubr.bf16.vlgmr.msra.gmra.mrb[104].mxu0 %v6758_v46  ;;  %3830 = vmatmul.mubr.bf16.vlgmr.msra.gmra.mrb[104].mxu1 %v6758_v46 }
 0x5f2   :  { %4083 = vmatpush1.bf16.msra.mxu0 %v3890_v11  ;;  %4242 = vmatpush1.bf16.msra.mxu1 %v3892_v24 }
 0x5f3   :  { %4084 = vmatprep.subr.bf16.mxu0 %v3895_v42  ;;  %4243 = vmatprep.subr.bf16.mxu1 %v3897_v18 }
 0x5f4   :  { %3680 = vmatprep.mubr.bf16.mxu0 %v6780_v4  ;;  %3839 = vmatprep.mubr.bf16.mxu1 %v6780_v4 }
 0x5f6   :  { %4085 = vmatpush1.bf16.msra.mxu0 %v3894_v53  ;;  %4244 = vmatpush1.bf16.msra.mxu1 %v3896_v60 }
 0x5f7   :  { %4086 = vmatprep.subr.bf16.mxu0 %v3899_v30  ;;  %4245 = vmatprep.subr.bf16.mxu1 %v3901_v51  ;;  %v3922_v51 = vld [vmem:[#allocation3 + $0xd00] sm:$0xff] }
 0x5f9   :  { %3681 = vmatmul.mubr.bf16.gmra.mrb[108].mxu0 %v6778_v17  ;;  %3840 = vmatmul.mubr.bf16.gmra.mrb[108].mxu1 %v6778_v17 }
 0x5fa   :  { %4087 = vmatpush1.bf16.msra.mxu0 %v3898_v6  ;;  %4246 = vmatpush1.bf16.msra.mxu1 %v3900_v40  ;;  %v3924_v6 = vld [vmem:[#allocation3 + $0xd10] sm:$0xff] }
 0x5fb   :  { %4088 = vmatprep.subr.bf16.mxu0 %v3903_v47  ;;  %4247 = vmatprep.subr.bf16.mxu1 %v3905_v25 }
 0x5fc   :  { %4114 = vmatprep.mubr.bf16.mxu0 %v6633_v27  ;;  %4273 = vmatprep.mubr.bf16.mxu1 %v6633_v27 }
 0x5fe   :  { %4089 = vmatpush1.bf16.msra.mxu0 %v3902_v15  ;;  %4248 = vmatpush1.bf16.msra.mxu1 %v3904_v55  ;;  %v3927_v15 = vld [vmem:[#allocation3 + $0xd28] sm:$0xff]  ;;  %v3929_v55 = vld [vmem:[#allocation3 + $0xd38] sm:$0xff] }
 0x5ff   :  { %4090 = vmatprep.subr.bf16.mxu0 %v3907_v58  ;;  %4249 = vmatprep.subr.bf16.mxu1 %v3909_v52  ;;  %v3926_v52 = vld [vmem:[#allocation3 + $0xd20] sm:$0xff] }
 0x602   :  { %4091 = vmatpush1.bf16.msra.mxu0 %v3906_v32  ;;  %4250 = vmatpush1.bf16.msra.mxu1 %v3908_v43  ;;  %v3928_v32 = vld [vmem:[#allocation3 + $0xd30] sm:$0xff]  ;;  %v3931_v43 = vld [vmem:[#allocation3 + $0xd48] sm:$0xff] }
 0x603   :  { %4092 = vmatprep.subr.bf16.mxu0 %v3911_v21  ;;  %4251 = vmatprep.subr.bf16.mxu1 %v3913_v63  ;;  %v3933_v21 = vld [vmem:[#allocation3 + $0xd58] sm:$0xff]  ;;  %v3930_v63 = vld [vmem:[#allocation3 + $0xd40] sm:$0xff] }
 0x604   :  { %v3122_v16 = vpop.f32.mrb[96].mxu0  ;;  %v3281_v1 = vpop.f32.mrb[96].mxu1 }
 0x605   :  { %v3124_v62 = vpop.f32.mrb[97].mxu0  ;;  %v3283_v27 = vpop.f32.mrb[97].mxu1 }
 0x606   :  { %v3300_v5 = vmax.f32 %v3122_v16, %v3124_v62  ;;  %v3304_v29 = vmax.f32 %v3281_v1, %v3283_v27  ;;  %v3126_v36 = vpop.f32.mrb[98].mxu0  ;;  %v3285_v31 = vpop.f32.mrb[98].mxu1  ;;  %4093 = vmatpush1.bf16.msra.mxu0 %v3910_v2  ;;  %4252 = vmatpush1.bf16.msra.mxu1 %v3912_v22  ;;  %v3932_v2 = vld [vmem:[#allocation3 + $0xd50] sm:$0xff]  ;;  %v3935_v22 = vld [vmem:[#allocation3 + $0xd68] sm:$0xff]  ;;  %v3937_v16 = vld [vmem:[#allocation3 + $0xd78] sm:$0xff] }
 0x607   :  { %v3128_v12 = vpop.f32.mrb[99].mxu0  ;;  %v3287_v45 = vpop.f32.mrb[99].mxu1  ;;  %4094 = vmatprep.subr.bf16.mxu0 %v3915_v23  ;;  %4253 = vmatprep.subr.bf16.mxu1 %v3917_v49  ;;  %v3934_v1 = vld [vmem:[#allocation3 + $0xd60] sm:$0xff]  ;;  %v3936_v23 = vld [vmem:[#allocation3 + $0xd70] sm:$0xff]  ;;  %v3939_v49 = vld [vmem:[#allocation3 + $0xd88] sm:$0xff] }
 0x608   :  { %v6858_v8 = vmax.f32 %v3300_v5, %v3304_v29  ;;  %v3301_v59 = vmax.f32 %v3126_v36, %v3128_v12  ;;  %v3305_v9 = vmax.f32 %v3285_v31, %v3287_v45  ;;  %v3941_v62 = vld [vmem:[#allocation3 + $0xd98] sm:$0xff]  ;;  %v3938_v27 = vld [vmem:[#allocation3 + $0xd80] sm:$0xff]  ;;  %v3940_v5 = vld [vmem:[#allocation3 + $0xd90] sm:$0xff] }
 0x609   :  { %v3943_v29 = vld [vmem:[#allocation3 + $0xda8] sm:$0xff]  ;;  %v3945_v36 = vld [vmem:[#allocation3 + $0xdb8] sm:$0xff]  ;;  %v3942_v31 = vld [vmem:[#allocation3 + $0xda0] sm:$0xff] }
 0x60a   :  { %v6860_v33 = vmax.f32 %v3301_v59, %v3305_v9  ;;  %4095 = vmatpush1.bf16.msra.mxu0 %v3914_v3  ;;  %4254 = vmatpush1.bf16.msra.mxu1 %v3916_v14  ;;  %v3944_v12 = vld [vmem:[#allocation3 + $0xdb0] sm:$0xff]  ;;  %v3947_v45 = vld [vmem:[#allocation3 + $0xdc8] sm:$0xff]  ;;  %v3949_v3 = vld [vmem:[#allocation3 + $0xdd8] sm:$0xff] }
 0x60b   :  { %4096 = vmatprep.subr.bf16.mxu0 %v3919_v28  ;;  %4255 = vmatprep.subr.bf16.mxu1 %v3921_v19  ;;  %v3946_v14 = vld [vmem:[#allocation3 + $0xdc0] sm:$0xff]  ;;  %v3948_v59 = vld [vmem:[#allocation3 + $0xdd0] sm:$0xff]  ;;  %v3951_v9 = vld [vmem:[#allocation3 + $0xde8] sm:$0xff] }
 0x60c   :  { %v3132_v38 = vpop.f32.mrb[100].mxu0  ;;  %v3291_v26 = vpop.f32.mrb[100].mxu1  ;;  %v3953_v28 = vld [vmem:[#allocation3 + $0xdf8] sm:$0xff]  ;;  %v3950_v19 = vld [vmem:[#allocation3 + $0xde0] sm:$0xff] }
 0x60d   :  { %v3134_v7 = vpop.f32.mrb[101].mxu0  ;;  %v3293_v11 = vpop.f32.mrb[101].mxu1 }
 0x60e   :  { %v3302_v24 = vmax.f32 %v3132_v38, %v3134_v7  ;;  %v3306_v42 = vmax.f32 %v3291_v26, %v3293_v11  ;;  %v3136_v18 = vpop.f32.mrb[102].mxu0  ;;  %v3295_v53 = vpop.f32.mrb[102].mxu1  ;;  %4097 = vmatpush1.bf16.msra.mxu0 %v3918_v35  ;;  %4256 = vmatpush1.bf16.msra.mxu1 %v3920_v13  ;;  %v3952_v35 = vld [vmem:[#allocation3 + $0xdf0] sm:$0xff]  ;;  %v3955_v13 = vld [vmem:[#allocation3 + $0xe08] sm:$0xff]  ;;  %v3957_v38 = vld [vmem:[#allocation3 + $0xe18] sm:$0xff] }
 0x60f   :  { %v3138_v60 = vpop.f32.mrb[103].mxu0  ;;  %v3297_v30 = vpop.f32.mrb[103].mxu1  ;;  %4098 = vmatprep.subr.bf16.mxu0 %v3923_v10  ;;  %4257 = vmatprep.subr.bf16.mxu1 %v3925_v34  ;;  %v3954_v26 = vld [vmem:[#allocation3 + $0xe00] sm:$0xff]  ;;  %v3956_v10 = vld [vmem:[#allocation3 + $0xe10] sm:$0xff]  ;;  %v3959_v34 = vld [vmem:[#allocation3 + $0xe28] sm:$0xff] }
 0x610   :  { %v6862_v40 = vmax.f32 %v3302_v24, %v3306_v42  ;;  %v3303_v47 = vmax.f32 %v3136_v18, %v3138_v60  ;;  %v3307_v25 = vmax.f32 %v3295_v53, %v3297_v30  ;;  %v3961_v7 = vld [vmem:[#allocation3 + $0xe38] sm:$0xff]  ;;  %v3958_v11 = vld [vmem:[#allocation3 + $0xe20] sm:$0xff]  ;;  %v3960_v24 = vld [vmem:[#allocation3 + $0xe30] sm:$0xff] }
 0x611   :  { %v3963_v42 = vld [vmem:[#allocation3 + $0xe48] sm:$0xff]  ;;  %v3965_v18 = vld [vmem:[#allocation3 + $0xe58] sm:$0xff]  ;;  %v3962_v53 = vld [vmem:[#allocation3 + $0xe40] sm:$0xff] }
 0x612   :  { %v6864_v58 = vmax.f32 %v3303_v47, %v3307_v25  ;;  %4099 = vmatpush1.bf16.msra.mxu0 %v3922_v51  ;;  %4258 = vmatpush1.bf16.msra.mxu1 %v3924_v6  ;;  %v3964_v60 = vld [vmem:[#allocation3 + $0xe50] sm:$0xff]  ;;  %v3967_v30 = vld [vmem:[#allocation3 + $0xe68] sm:$0xff]  ;;  %v3966_v51 = vld [vmem:[#allocation3 + $0xe60] sm:$0xff] }
 0x613   :  { %4100 = vmatprep.subr.bf16.mxu0 %v3927_v15  ;;  %4259 = vmatprep.subr.bf16.mxu1 %v3929_v55  ;;  %v3968_v6 = vld [vmem:[#allocation3 + $0xe70] sm:$0xff]  ;;  %v3971_v47 = vld [vmem:[#allocation3 + $0xe88] sm:$0xff]  ;;  %v3970_v25 = vld [vmem:[#allocation3 + $0xe80] sm:$0xff] }
 0x614   :  { %v3972_v15 = vld [vmem:[#allocation3 + $0xe90] sm:$0xff]  ;;  %v3975_v55 = vld [vmem:[#allocation3 + $0xea8] sm:$0xff] }
 0x616   :  { %4101 = vmatpush1.bf16.msra.mxu0 %v3926_v52  ;;  %4260 = vmatpush1.bf16.msra.mxu1 %v3928_v32  ;;  %v3974_v52 = vld [vmem:[#allocation3 + $0xea0] sm:$0xff]  ;;  %v3976_v32 = vld [vmem:[#allocation3 + $0xeb0] sm:$0xff] }
 0x617   :  { %4102 = vmatprep.subr.bf16.mxu0 %v3931_v43  ;;  %4261 = vmatprep.subr.bf16.mxu1 %v3933_v21  ;;  %v3979_v43 = vld [vmem:[#allocation3 + $0xec8] sm:$0xff]  ;;  %v3981_v21 = vld [vmem:[#allocation3 + $0xed8] sm:$0xff] }
 0x61a   :  { %4103 = vmatpush1.bf16.msra.mxu0 %v3930_v63  ;;  %4262 = vmatpush1.bf16.msra.mxu1 %v3932_v2  ;;  %v3978_v63 = vld [vmem:[#allocation3 + $0xec0] sm:$0xff]  ;;  %v3980_v2 = vld [vmem:[#allocation3 + $0xed0] sm:$0xff] }
 0x61b   :  { %4104 = vmatprep.subr.bf16.mxu0 %v3935_v22  ;;  %4263 = vmatprep.subr.bf16.mxu1 %v3937_v16  ;;  %v3983_v22 = vld [vmem:[#allocation3 + $0xee8] sm:$0xff]  ;;  %v3985_v16 = vld [vmem:[#allocation3 + $0xef8] sm:$0xff] }
 0x61e   :  { %4105 = vmatpush1.bf16.msra.mxu0 %v3934_v1  ;;  %4264 = vmatpush1.bf16.msra.mxu1 %v3936_v23  ;;  %v3982_v1 = vld [vmem:[#allocation3 + $0xee0] sm:$0xff]  ;;  %v3984_v23 = vld [vmem:[#allocation3 + $0xef0] sm:$0xff] }
 0x61f   :  { %4106 = vmatprep.subr.bf16.mxu0 %v3939_v49  ;;  %4265 = vmatprep.subr.bf16.mxu1 %v3941_v62  ;;  %v3987_v49 = vld [vmem:[#allocation3 + $0xf08] sm:$0xff]  ;;  %v3989_v62 = vld [vmem:[#allocation3 + $0xf18] sm:$0xff] }
 0x622   :  { %4107 = vmatpush1.bf16.msra.mxu0 %v3938_v27  ;;  %4266 = vmatpush1.bf16.msra.mxu1 %v3940_v5  ;;  %v3986_v27 = vld [vmem:[#allocation3 + $0xf00] sm:$0xff]  ;;  %v3988_v5 = vld [vmem:[#allocation3 + $0xf10] sm:$0xff] }
 0x623   :  { %4108 = vmatprep.subr.bf16.mxu0 %v3943_v29  ;;  %4267 = vmatprep.subr.bf16.mxu1 %v3945_v36  ;;  %v3991_v29 = vld [vmem:[#allocation3 + $0xf28] sm:$0xff]  ;;  %v3993_v36 = vld [vmem:[#allocation3 + $0xf38] sm:$0xff] }
 0x626   :  { %4109 = vmatpush1.bf16.msra.mxu0 %v3942_v31  ;;  %4268 = vmatpush1.bf16.msra.mxu1 %v3944_v12  ;;  %v3990_v31 = vld [vmem:[#allocation3 + $0xf20] sm:$0xff]  ;;  %v3992_v12 = vld [vmem:[#allocation3 + $0xf30] sm:$0xff] }
 0x627   :  { %4110 = vmatprep.subr.bf16.mxu0 %v3947_v45  ;;  %4269 = vmatprep.subr.bf16.mxu1 %v3949_v3  ;;  %v3995_v45 = vld [vmem:[#allocation3 + $0xf48] sm:$0xff]  ;;  %v3997_v3 = vld [vmem:[#allocation3 + $0xf58] sm:$0xff] }
 0x62a   :  { %4111 = vmatpush1.bf16.msra.mxu0 %v3946_v14  ;;  %4270 = vmatpush1.bf16.msra.mxu1 %v3948_v59  ;;  %v3994_v14 = vld [vmem:[#allocation3 + $0xf40] sm:$0xff]  ;;  %v3996_v59 = vld [vmem:[#allocation3 + $0xf50] sm:$0xff] }
 0x62b   :  { %4112 = vmatprep.subr.bf16.mxu0 %v3951_v9  ;;  %4271 = vmatprep.subr.bf16.mxu1 %v3953_v28  ;;  %v3999_v9 = vld [vmem:[#allocation3 + $0xf68] sm:$0xff]  ;;  %v4001_v28 = vld [vmem:[#allocation3 + $0xf78] sm:$0xff] }
 0x62e   :  { %4113 = vmatpush1.bf16.msra.mxu0 %v3950_v19  ;;  %4272 = vmatpush1.bf16.msra.mxu1 %v3952_v35  ;;  %v3998_v19 = vld [vmem:[#allocation3 + $0xf60] sm:$0xff]  ;;  %v4000_v35 = vld [vmem:[#allocation3 + $0xf70] sm:$0xff] }
 0x62f   :  { %4135 = vmatprep.subr.bf16.mxu0 %v3955_v13  ;;  %4294 = vmatprep.subr.bf16.mxu1 %v3957_v38  ;;  %v4003_v13 = vld [vmem:[#allocation3 + $0xf88] sm:$0xff]  ;;  %v4005_v38 = vld [vmem:[#allocation3 + $0xf98] sm:$0xff] }
 0x631   :  { %4115 = vmatmul.mubr.bf16.vlgmr.msra.gmra.mrb[112].mxu0 %v6628_v44  ;;  %4274 = vmatmul.mubr.bf16.vlgmr.msra.gmra.mrb[112].mxu1 %v6628_v44  ;;  %v3969_v44 = vld [vmem:[#allocation3 + $0xe78] sm:$0xff] }
 0x632   :  { %4136 = vmatpush1.bf16.msra.mxu0 %v3954_v26  ;;  %4295 = vmatpush1.bf16.msra.mxu1 %v3956_v10  ;;  %v4002_v26 = vld [vmem:[#allocation3 + $0xf80] sm:$0xff]  ;;  %v4004_v10 = vld [vmem:[#allocation3 + $0xf90] sm:$0xff] }
 0x633   :  { %4137 = vmatprep.subr.bf16.mxu0 %v3959_v34  ;;  %4296 = vmatprep.subr.bf16.mxu1 %v3961_v7  ;;  %v4007_v34 = vld [vmem:[#allocation3 + $0xfa8] sm:$0xff]  ;;  %v4009_v7 = vld [vmem:[#allocation3 + $0xfb8] sm:$0xff] }
 0x634   :  { %4124 = vmatprep.mubr.bf16.mxu0 %v6650_v41  ;;  %4283 = vmatprep.mubr.bf16.mxu1 %v6650_v41  ;;  %v3973_v41 = vld [vmem:[#allocation3 + $0xe98] sm:$0xff] }
 0x636   :  { %4138 = vmatpush1.bf16.msra.mxu0 %v3958_v11  ;;  %4297 = vmatpush1.bf16.msra.mxu1 %v3960_v24  ;;  %v4006_v11 = vld [vmem:[#allocation3 + $0xfa0] sm:$0xff]  ;;  %v4008_v24 = vld [vmem:[#allocation3 + $0xfb0] sm:$0xff] }
 0x637   :  { %4139 = vmatprep.subr.bf16.mxu0 %v3963_v42  ;;  %4298 = vmatprep.subr.bf16.mxu1 %v3965_v18  ;;  %v4011_v42 = vld [vmem:[#allocation3 + $0xfc8] sm:$0xff]  ;;  %v4013_v18 = vld [vmem:[#allocation3 + $0xfd8] sm:$0xff] }
 0x639   :  { %4125 = vmatmul.mubr.bf16.gmra.mrb[116].mxu0 %v6648_v0  ;;  %4284 = vmatmul.mubr.bf16.gmra.mrb[116].mxu1 %v6648_v0  ;;  %v3977_v0 = vld [vmem:[#allocation3 + $0xeb8] sm:$0xff] }
 0x63a   :  { %4140 = vmatpush1.bf16.msra.mxu0 %v3962_v53  ;;  %4299 = vmatpush1.bf16.msra.mxu1 %v3964_v60  ;;  %v4010_v53 = vld [vmem:[#allocation3 + $0xfc0] sm:$0xff]  ;;  %v4012_v60 = vld [vmem:[#allocation3 + $0xfd0] sm:$0xff] }
 0x63b   :  { %4141 = vmatprep.subr.bf16.mxu0 %v3967_v30  ;;  %4300 = vmatprep.subr.bf16.mxu1 %v3969_v44  ;;  %v4015_v30 = vld [vmem:[#allocation3 + $0xfe8] sm:$0xff]  ;;  %v4017_v44 = vld [vmem:[#allocation3 + $0xff8] sm:$0xff] }
 0x63c   :  { %4167 = vmatprep.mubr.bf16.mxu0 %v6763_v57  ;;  %4326 = vmatprep.mubr.bf16.mxu1 %v6763_v57 }
 0x63e   :  { %4142 = vmatpush1.bf16.msra.mxu0 %v3966_v51  ;;  %4301 = vmatpush1.bf16.msra.mxu1 %v3968_v6  ;;  %v4014_v51 = vld [vmem:[#allocation3 + $0xfe0] sm:$0xff]  ;;  %v4016_v6 = vld [vmem:[#allocation3 + $0xff0] sm:$0xff] }
 0x63f   :  { %4143 = vmatprep.subr.bf16.mxu0 %v3971_v47  ;;  %4302 = vmatprep.subr.bf16.mxu1 %v3973_v41  ;;  %v4019_v47 = vld [vmem:[#allocation3 + $0x1008] sm:$0xff]  ;;  %v4021_v41 = vld [vmem:[#allocation3 + $0x1018] sm:$0xff] }
 0x642   :  { %4144 = vmatpush1.bf16.msra.mxu0 %v3970_v25  ;;  %4303 = vmatpush1.bf16.msra.mxu1 %v3972_v15  ;;  %v4018_v25 = vld [vmem:[#allocation3 + $0x1000] sm:$0xff]  ;;  %v4020_v15 = vld [vmem:[#allocation3 + $0x1010] sm:$0xff] }
 0x643   :  { %4145 = vmatprep.subr.bf16.mxu0 %v3975_v55  ;;  %4304 = vmatprep.subr.bf16.mxu1 %v3977_v0  ;;  %v4023_v55 = vld [vmem:[#allocation3 + $0x1028] sm:$0xff]  ;;  %v4025_v0 = vld [vmem:[#allocation3 + $0x1038] sm:$0xff] }
 0x646   :  { %4146 = vmatpush1.bf16.msra.mxu0 %v3974_v52  ;;  %4305 = vmatpush1.bf16.msra.mxu1 %v3976_v32  ;;  %v4022_v52 = vld [vmem:[#allocation3 + $0x1020] sm:$0xff]  ;;  %v4024_v32 = vld [vmem:[#allocation3 + $0x1030] sm:$0xff] }
 0x647   :  { %4147 = vmatprep.subr.bf16.mxu0 %v3979_v43  ;;  %4306 = vmatprep.subr.bf16.mxu1 %v3981_v21  ;;  %v4027_v43 = vld [vmem:[#allocation3 + $0x1048] sm:$0xff]  ;;  %v4029_v21 = vld [vmem:[#allocation3 + $0x1058] sm:$0xff] }
 0x64a   :  { %4148 = vmatpush1.bf16.msra.mxu0 %v3978_v63  ;;  %4307 = vmatpush1.bf16.msra.mxu1 %v3980_v2  ;;  %v4026_v63 = vld [vmem:[#allocation3 + $0x1040] sm:$0xff]  ;;  %v4028_v2 = vld [vmem:[#allocation3 + $0x1050] sm:$0xff] }
 0x64b   :  { %4149 = vmatprep.subr.bf16.mxu0 %v3983_v22  ;;  %4308 = vmatprep.subr.bf16.mxu1 %v3985_v16  ;;  %v4031_v22 = vld [vmem:[#allocation3 + $0x1068] sm:$0xff]  ;;  %v4033_v16 = vld [vmem:[#allocation3 + $0x1078] sm:$0xff] }
 0x64e   :  { %4150 = vmatpush1.bf16.msra.mxu0 %v3982_v1  ;;  %4309 = vmatpush1.bf16.msra.mxu1 %v3984_v23  ;;  %v4030_v1 = vld [vmem:[#allocation3 + $0x1060] sm:$0xff]  ;;  %v4032_v23 = vld [vmem:[#allocation3 + $0x1070] sm:$0xff] }
 0x64f   :  { %4151 = vmatprep.subr.bf16.mxu0 %v3987_v49  ;;  %4310 = vmatprep.subr.bf16.mxu1 %v3989_v62  ;;  %v4035_v49 = vld [vmem:[#allocation3 + $0x1088] sm:$0xff]  ;;  %v4037_v62 = vld [vmem:[#allocation3 + $0x1098] sm:$0xff] }
 0x652   :  { %4152 = vmatpush1.bf16.msra.mxu0 %v3986_v27  ;;  %4311 = vmatpush1.bf16.msra.mxu1 %v3988_v5  ;;  %v4034_v27 = vld [vmem:[#allocation3 + $0x1080] sm:$0xff]  ;;  %v4036_v5 = vld [vmem:[#allocation3 + $0x1090] sm:$0xff] }
 0x653   :  { %4153 = vmatprep.subr.bf16.mxu0 %v3991_v29  ;;  %4312 = vmatprep.subr.bf16.mxu1 %v3993_v36  ;;  %v4039_v29 = vld [vmem:[#allocation3 + $0x10a8] sm:$0xff]  ;;  %v4041_v36 = vld [vmem:[#allocation3 + $0x10b8] sm:$0xff] }
 0x656   :  { %4154 = vmatpush1.bf16.msra.mxu0 %v3990_v31  ;;  %4313 = vmatpush1.bf16.msra.mxu1 %v3992_v12  ;;  %v4038_v31 = vld [vmem:[#allocation3 + $0x10a0] sm:$0xff]  ;;  %v4040_v12 = vld [vmem:[#allocation3 + $0x10b0] sm:$0xff] }
 0x657   :  { %4155 = vmatprep.subr.bf16.mxu0 %v3995_v45  ;;  %4314 = vmatprep.subr.bf16.mxu1 %v3997_v3  ;;  %v4043_v45 = vld [vmem:[#allocation3 + $0x10c8] sm:$0xff]  ;;  %v4045_v3 = vld [vmem:[#allocation3 + $0x10d8] sm:$0xff] }
 0x65a   :  { %4156 = vmatpush1.bf16.msra.mxu0 %v3994_v14  ;;  %4315 = vmatpush1.bf16.msra.mxu1 %v3996_v59  ;;  %v4042_v14 = vld [vmem:[#allocation3 + $0x10c0] sm:$0xff]  ;;  %v4044_v59 = vld [vmem:[#allocation3 + $0x10d0] sm:$0xff] }
 0x65b   :  { %4157 = vmatprep.subr.bf16.mxu0 %v3999_v9  ;;  %4316 = vmatprep.subr.bf16.mxu1 %v4001_v28  ;;  %v4047_v9 = vld [vmem:[#allocation3 + $0x10e8] sm:$0xff]  ;;  %v4049_v28 = vld [vmem:[#allocation3 + $0x10f8] sm:$0xff] }
 0x65e   :  { %4158 = vmatpush1.bf16.msra.mxu0 %v3998_v19  ;;  %4317 = vmatpush1.bf16.msra.mxu1 %v4000_v35  ;;  %v4046_v19 = vld [vmem:[#allocation3 + $0x10e0] sm:$0xff]  ;;  %v4048_v35 = vld [vmem:[#allocation3 + $0x10f0] sm:$0xff] }
 0x65f   :  { %4159 = vmatprep.subr.bf16.mxu0 %v4003_v13  ;;  %4318 = vmatprep.subr.bf16.mxu1 %v4005_v38  ;;  %v4051_v13 = vld [vmem:[#allocation3 + $0x1108] sm:$0xff]  ;;  %v4053_v38 = vld [vmem:[#allocation3 + $0x1118] sm:$0xff] }
 0x662   :  { %4160 = vmatpush1.bf16.msra.mxu0 %v4002_v26  ;;  %4319 = vmatpush1.bf16.msra.mxu1 %v4004_v10  ;;  %v4050_v26 = vld [vmem:[#allocation3 + $0x1100] sm:$0xff]  ;;  %v4052_v10 = vld [vmem:[#allocation3 + $0x1110] sm:$0xff] }
 0x663   :  { %4161 = vmatprep.subr.bf16.mxu0 %v4007_v34  ;;  %4320 = vmatprep.subr.bf16.mxu1 %v4009_v7  ;;  %v4055_v34 = vld [vmem:[#allocation3 + $0x1128] sm:$0xff]  ;;  %v4057_v7 = vld [vmem:[#allocation3 + $0x1138] sm:$0xff] }
 0x666   :  { %4162 = vmatpush1.bf16.msra.mxu0 %v4006_v11  ;;  %4321 = vmatpush1.bf16.msra.mxu1 %v4008_v24  ;;  %v4054_v11 = vld [vmem:[#allocation3 + $0x1120] sm:$0xff]  ;;  %v4056_v24 = vld [vmem:[#allocation3 + $0x1130] sm:$0xff] }
 0x667   :  { %4163 = vmatprep.subr.bf16.mxu0 %v4011_v42  ;;  %4322 = vmatprep.subr.bf16.mxu1 %v4013_v18  ;;  %v4059_v42 = vld [vmem:[#allocation3 + $0x1148] sm:$0xff]  ;;  %v4061_v18 = vld [vmem:[#allocation3 + $0x1158] sm:$0xff] }
 0x66a   :  { %4164 = vmatpush1.bf16.msra.mxu0 %v4010_v53  ;;  %4323 = vmatpush1.bf16.msra.mxu1 %v4012_v60  ;;  %v4058_v53 = vld [vmem:[#allocation3 + $0x1140] sm:$0xff]  ;;  %v4060_v60 = vld [vmem:[#allocation3 + $0x1150] sm:$0xff] }
 0x66b   :  { %4165 = vmatprep.subr.bf16.mxu0 %v4015_v30  ;;  %4324 = vmatprep.subr.bf16.mxu1 %v4017_v44  ;;  %v4063_v30 = vld [vmem:[#allocation3 + $0x1168] sm:$0xff]  ;;  %v4065_v44 = vld [vmem:[#allocation3 + $0x1178] sm:$0xff] }
 0x66e   :  { %4166 = vmatpush1.bf16.msra.mxu0 %v4014_v51  ;;  %4325 = vmatpush1.bf16.msra.mxu1 %v4016_v6  ;;  %v4062_v51 = vld [vmem:[#allocation3 + $0x1160] sm:$0xff]  ;;  %v4064_v6 = vld [vmem:[#allocation3 + $0x1170] sm:$0xff] }
 0x66f   :  { %4188 = vmatprep.subr.bf16.mxu0 %v4019_v47  ;;  %4347 = vmatprep.subr.bf16.mxu1 %v4021_v41  ;;  %v4067_v47 = vld [vmem:[#allocation3 + $0x1188] sm:$0xff]  ;;  %v4069_v41 = vld [vmem:[#allocation3 + $0x1198] sm:$0xff] }
 0x671   :  { %4168 = vmatmul.mubr.bf16.vlgmr.msra.gmra.mrb[112].mxu0 %v6758_v46  ;;  %4327 = vmatmul.mubr.bf16.vlgmr.msra.gmra.mrb[112].mxu1 %v6758_v46 }
 0x672   :  { %4189 = vmatpush1.bf16.msra.mxu0 %v4018_v25  ;;  %4348 = vmatpush1.bf16.msra.mxu1 %v4020_v15  ;;  %v4066_v25 = vld [vmem:[#allocation3 + $0x1180] sm:$0xff]  ;;  %v4068_v15 = vld [vmem:[#allocation3 + $0x1190] sm:$0xff] }
 0x673   :  { %4190 = vmatprep.subr.bf16.mxu0 %v4023_v55  ;;  %4349 = vmatprep.subr.bf16.mxu1 %v4025_v0  ;;  %v4071_v55 = vld [vmem:[#allocation3 + $0x11a8] sm:$0xff]  ;;  %v4073_v0 = vld [vmem:[#allocation3 + $0x11b8] sm:$0xff] }
 0x674   :  { %4177 = vmatprep.mubr.bf16.mxu0 %v6780_v4  ;;  %4336 = vmatprep.mubr.bf16.mxu1 %v6780_v4 }
 0x676   :  { %4191 = vmatpush1.bf16.msra.mxu0 %v4022_v52  ;;  %4350 = vmatpush1.bf16.msra.mxu1 %v4024_v32  ;;  %v4070_v52 = vld [vmem:[#allocation3 + $0x11a0] sm:$0xff]  ;;  %v4072_v32 = vld [vmem:[#allocation3 + $0x11b0] sm:$0xff] }
 0x677   :  { %4192 = vmatprep.subr.bf16.mxu0 %v4027_v43  ;;  %4351 = vmatprep.subr.bf16.mxu1 %v4029_v21  ;;  %v4075_v43 = vld [vmem:[#allocation3 + $0x11c8] sm:$0xff]  ;;  %v4077_v21 = vld [vmem:[#allocation3 + $0x11d8] sm:$0xff] }
 0x679   :  { %4178 = vmatmul.mubr.bf16.gmra.mrb[116].mxu0 %v6778_v17  ;;  %4337 = vmatmul.mubr.bf16.gmra.mrb[116].mxu1 %v6778_v17 }
 0x67a   :  { %4193 = vmatpush1.bf16.msra.mxu0 %v4026_v63  ;;  %4352 = vmatpush1.bf16.msra.mxu1 %v4028_v2  ;;  %v4074_v63 = vld [vmem:[#allocation3 + $0x11c0] sm:$0xff]  ;;  %v4076_v2 = vld [vmem:[#allocation3 + $0x11d0] sm:$0xff] }
 0x67b   :  { %4194 = vmatprep.subr.bf16.mxu0 %v4031_v22  ;;  %4353 = vmatprep.subr.bf16.mxu1 %v4033_v16  ;;  %v4079_v22 = vld [vmem:[#allocation3 + $0x11e8] sm:$0xff]  ;;  %v4081_v16 = vld [vmem:[#allocation3 + $0x11f8] sm:$0xff] }
 0x67c   :  { %4220 = vmatprep.mubr.bf16.mxu0 %v6792_v20  ;;  %4379 = vmatprep.mubr.bf16.mxu1 %v6792_v20 }
 0x67e   :  { %4195 = vmatpush1.bf16.msra.mxu0 %v4030_v1  ;;  %4354 = vmatpush1.bf16.msra.mxu1 %v4032_v23  ;;  %v4078_v1 = vld [vmem:[#allocation3 + $0x11e0] sm:$0xff]  ;;  %v4080_v23 = vld [vmem:[#allocation3 + $0x11f0] sm:$0xff] }
 0x67f   :  { %4196 = vmatprep.subr.bf16.mxu0 %v4035_v49  ;;  %4355 = vmatprep.subr.bf16.mxu1 %v4037_v62  ;;  %v4441_v49 = vld [vmem:[#allocation3 + $0x1208] sm:$0xff]  ;;  %v4443_v62 = vld [vmem:[#allocation3 + $0x1218] sm:$0xff] }
 0x682   :  { %4197 = vmatpush1.bf16.msra.mxu0 %v4034_v27  ;;  %4356 = vmatpush1.bf16.msra.mxu1 %v4036_v5  ;;  %v4440_v27 = vld [vmem:[#allocation3 + $0x1200] sm:$0xff]  ;;  %v4442_v5 = vld [vmem:[#allocation3 + $0x1210] sm:$0xff] }
 0x683   :  { %4198 = vmatprep.subr.bf16.mxu0 %v4039_v29  ;;  %4357 = vmatprep.subr.bf16.mxu1 %v4041_v36  ;;  %v4445_v29 = vld [vmem:[#allocation3 + $0x1228] sm:$0xff]  ;;  %v4447_v36 = vld [vmem:[#allocation3 + $0x1238] sm:$0xff] }
 0x686   :  { %4199 = vmatpush1.bf16.msra.mxu0 %v4038_v31  ;;  %4358 = vmatpush1.bf16.msra.mxu1 %v4040_v12  ;;  %v4444_v31 = vld [vmem:[#allocation3 + $0x1220] sm:$0xff]  ;;  %v4446_v12 = vld [vmem:[#allocation3 + $0x1230] sm:$0xff] }
 0x687   :  { %4200 = vmatprep.subr.bf16.mxu0 %v4043_v45  ;;  %4359 = vmatprep.subr.bf16.mxu1 %v4045_v3  ;;  %v4449_v45 = vld [vmem:[#allocation3 + $0x1248] sm:$0xff]  ;;  %v4451_v3 = vld [vmem:[#allocation3 + $0x1258] sm:$0xff] }
 0x68a   :  { %4201 = vmatpush1.bf16.msra.mxu0 %v4042_v14  ;;  %4360 = vmatpush1.bf16.msra.mxu1 %v4044_v59  ;;  %v4448_v14 = vld [vmem:[#allocation3 + $0x1240] sm:$0xff]  ;;  %v4450_v59 = vld [vmem:[#allocation3 + $0x1250] sm:$0xff] }
 0x68b   :  { %4202 = vmatprep.subr.bf16.mxu0 %v4047_v9  ;;  %4361 = vmatprep.subr.bf16.mxu1 %v4049_v28  ;;  %v4453_v9 = vld [vmem:[#allocation3 + $0x1268] sm:$0xff]  ;;  %v4455_v28 = vld [vmem:[#allocation3 + $0x1278] sm:$0xff] }
 0x68e   :  { %4203 = vmatpush1.bf16.msra.mxu0 %v4046_v19  ;;  %4362 = vmatpush1.bf16.msra.mxu1 %v4048_v35  ;;  %v4452_v19 = vld [vmem:[#allocation3 + $0x1260] sm:$0xff]  ;;  %v4454_v35 = vld [vmem:[#allocation3 + $0x1270] sm:$0xff] }
 0x68f   :  { %4204 = vmatprep.subr.bf16.mxu0 %v4051_v13  ;;  %4363 = vmatprep.subr.bf16.mxu1 %v4053_v38  ;;  %v4457_v13 = vld [vmem:[#allocation3 + $0x1288] sm:$0xff]  ;;  %v4459_v38 = vld [vmem:[#allocation3 + $0x1298] sm:$0xff] }
 0x692   :  { %4205 = vmatpush1.bf16.msra.mxu0 %v4050_v26  ;;  %4364 = vmatpush1.bf16.msra.mxu1 %v4052_v10  ;;  %v4456_v26 = vld [vmem:[#allocation3 + $0x1280] sm:$0xff]  ;;  %v4458_v10 = vld [vmem:[#allocation3 + $0x1290] sm:$0xff] }
 0x693   :  { %4206 = vmatprep.subr.bf16.mxu0 %v4055_v34  ;;  %4365 = vmatprep.subr.bf16.mxu1 %v4057_v7  ;;  %v4461_v34 = vld [vmem:[#allocation3 + $0x12a8] sm:$0xff]  ;;  %v4463_v7 = vld [vmem:[#allocation3 + $0x12b8] sm:$0xff] }
 0x696   :  { %4207 = vmatpush1.bf16.msra.mxu0 %v4054_v11  ;;  %4366 = vmatpush1.bf16.msra.mxu1 %v4056_v24  ;;  %v4460_v11 = vld [vmem:[#allocation3 + $0x12a0] sm:$0xff]  ;;  %v4462_v24 = vld [vmem:[#allocation3 + $0x12b0] sm:$0xff] }
 0x697   :  { %4208 = vmatprep.subr.bf16.mxu0 %v4059_v42  ;;  %4367 = vmatprep.subr.bf16.mxu1 %v4061_v18 }
 0x69a   :  { %4209 = vmatpush1.bf16.msra.mxu0 %v4058_v53  ;;  %4368 = vmatpush1.bf16.msra.mxu1 %v4060_v60  ;;  %v4465_v53 = vld [vmem:[#allocation3 + $0x12c8] sm:$0xff]  ;;  %v4467_v60 = vld [vmem:[#allocation3 + $0x12d8] sm:$0xff] }
 0x69b   :  { %4210 = vmatprep.subr.bf16.mxu0 %v4063_v30  ;;  %4369 = vmatprep.subr.bf16.mxu1 %v4065_v44 }
 0x69e   :  { %4211 = vmatpush1.bf16.msra.mxu0 %v4062_v51  ;;  %4370 = vmatpush1.bf16.msra.mxu1 %v4064_v6 }
 0x69f   :  { %4212 = vmatprep.subr.bf16.mxu0 %v4067_v47  ;;  %4371 = vmatprep.subr.bf16.mxu1 %v4069_v41 }
 0x6a2   :  { %4213 = vmatpush1.bf16.msra.mxu0 %v4066_v25  ;;  %4372 = vmatpush1.bf16.msra.mxu1 %v4068_v15  ;;  %v4464_v15 = vld [vmem:[#allocation3 + $0x12c0] sm:$0xff] }
 0x6a3   :  { %4214 = vmatprep.subr.bf16.mxu0 %v4071_v55  ;;  %4373 = vmatprep.subr.bf16.mxu1 %v4073_v0  ;;  %v4466_v55 = vld [vmem:[#allocation3 + $0x12d0] sm:$0xff] }
 0x6a6   :  { %4215 = vmatpush1.bf16.msra.mxu0 %v4070_v52  ;;  %4374 = vmatpush1.bf16.msra.mxu1 %v4072_v32 }
 0x6a7   :  { %4216 = vmatprep.subr.bf16.mxu0 %v4075_v43  ;;  %4375 = vmatprep.subr.bf16.mxu1 %v4077_v21  ;;  %v4469_v43 = vld [vmem:[#allocation3 + $0x12e8] sm:$0xff]  ;;  %v4471_v21 = vld [vmem:[#allocation3 + $0x12f8] sm:$0xff] }
 0x6aa   :  { %4217 = vmatpush1.bf16.msra.mxu0 %v4074_v63  ;;  %4376 = vmatpush1.bf16.msra.mxu1 %v4076_v2  ;;  %v4468_v2 = vld [vmem:[#allocation3 + $0x12e0] sm:$0xff] }
 0x6ab   :  { %4218 = vmatprep.subr.bf16.mxu0 %v4079_v22  ;;  %4377 = vmatprep.subr.bf16.mxu1 %v4081_v16  ;;  %v4470_v22 = vld [vmem:[#allocation3 + $0x12f0] sm:$0xff] }
 0x6ae   :  { %4219 = vmatpush1.bf16.msra.mxu0 %v4078_v1  ;;  %4378 = vmatpush1.bf16.msra.mxu1 %v4080_v23  ;;  %v4473_v23 = vld [vmem:[#allocation3 + $0x1308] sm:$0xff] }
 0x6af   :  { %4632 = vmatprep.subr.bf16.mxu0 %v4441_v49  ;;  %4791 = vmatprep.subr.bf16.mxu1 %v4443_v62  ;;  %v4475_v49 = vld [vmem:[#allocation3 + $0x1318] sm:$0xff] }
 0x6b1   :  { %4221 = vmatmul.mubr.bf16.vlgmr.msra.gmra.mrb[112].mxu0 %v6790_v56  ;;  %4380 = vmatmul.mubr.bf16.vlgmr.msra.gmra.mrb[112].mxu1 %v6790_v56 }
 0x6b2   :  { %4633 = vmatpush1.bf16.msra.mxu0 %v4440_v27  ;;  %4792 = vmatpush1.bf16.msra.mxu1 %v4442_v5 }
 0x6b3   :  { %4634 = vmatprep.subr.bf16.mxu0 %v4445_v29  ;;  %4793 = vmatprep.subr.bf16.mxu1 %v4447_v36 }
 0x6b4   :  { %4230 = vmatprep.mubr.bf16.mxu0 %v6796_v48  ;;  %4389 = vmatprep.mubr.bf16.mxu1 %v6796_v48 }
 0x6b6   :  { %4635 = vmatpush1.bf16.msra.mxu0 %v4444_v31  ;;  %4794 = vmatpush1.bf16.msra.mxu1 %v4446_v12 }
 0x6b7   :  { %4636 = vmatprep.subr.bf16.mxu0 %v4449_v45  ;;  %4795 = vmatprep.subr.bf16.mxu1 %v4451_v3  ;;  %v4472_v3 = vld [vmem:[#allocation3 + $0x1300] sm:$0xff] }
 0x6b9   :  { %4231 = vmatmul.mubr.bf16.gmra.mrb[116].mxu0 %v6794_v61  ;;  %4390 = vmatmul.mubr.bf16.gmra.mrb[116].mxu1 %v6794_v61 }
 0x6ba   :  { %4637 = vmatpush1.bf16.msra.mxu0 %v4448_v14  ;;  %4796 = vmatpush1.bf16.msra.mxu1 %v4450_v59  ;;  %v4474_v14 = vld [vmem:[#allocation3 + $0x1310] sm:$0xff] }
 0x6bb   :  { %4638 = vmatprep.subr.bf16.mxu0 %v4453_v9  ;;  %4797 = vmatprep.subr.bf16.mxu1 %v4455_v28 }
 0x6bc   :  { %4664 = vmatprep.mubr.bf16.mxu0 %v6763_v57  ;;  %4823 = vmatprep.mubr.bf16.mxu1 %v6763_v57 }
 0x6be   :  { %4639 = vmatpush1.bf16.msra.mxu0 %v4452_v19  ;;  %4798 = vmatpush1.bf16.msra.mxu1 %v4454_v35  ;;  %v4477_v19 = vld [vmem:[#allocation3 + $0x1328] sm:$0xff]  ;;  %v4479_v35 = vld [vmem:[#allocation3 + $0x1338] sm:$0xff] }
 0x6bf   :  { %4640 = vmatprep.subr.bf16.mxu0 %v4457_v13  ;;  %4799 = vmatprep.subr.bf16.mxu1 %v4459_v38  ;;  %v4476_v38 = vld [vmem:[#allocation3 + $0x1320] sm:$0xff] }
 0x6c2   :  { %4641 = vmatpush1.bf16.msra.mxu0 %v4456_v26  ;;  %4800 = vmatpush1.bf16.msra.mxu1 %v4458_v10  ;;  %v4478_v26 = vld [vmem:[#allocation3 + $0x1330] sm:$0xff]  ;;  %v4481_v10 = vld [vmem:[#allocation3 + $0x1348] sm:$0xff] }
 0x6c3   :  { %4642 = vmatprep.subr.bf16.mxu0 %v4461_v34  ;;  %4801 = vmatprep.subr.bf16.mxu1 %v4463_v7  ;;  %v4483_v34 = vld [vmem:[#allocation3 + $0x1358] sm:$0xff]  ;;  %v4480_v7 = vld [vmem:[#allocation3 + $0x1340] sm:$0xff] }
 0x6c4   :  { %v3672_v42 = vpop.f32.mrb[104].mxu0  ;;  %v3831_v18 = vpop.f32.mrb[104].mxu1 }
 0x6c5   :  { %v3674_v30 = vpop.f32.mrb[105].mxu0  ;;  %v3833_v57 = vpop.f32.mrb[105].mxu1 }
 0x6c6   :  { %v3850_v44 = vmax.f32 %v3672_v42, %v3674_v30  ;;  %v3854_v51 = vmax.f32 %v3831_v18, %v3833_v57  ;;  %v3676_v6 = vpop.f32.mrb[106].mxu0  ;;  %v3835_v47 = vpop.f32.mrb[106].mxu1  ;;  %4643 = vmatpush1.bf16.msra.mxu0 %v4460_v11  ;;  %4802 = vmatpush1.bf16.msra.mxu1 %v4462_v24  ;;  %v4482_v11 = vld [vmem:[#allocation3 + $0x1350] sm:$0xff]  ;;  %v4485_v24 = vld [vmem:[#allocation3 + $0x1368] sm:$0xff]  ;;  %v4487_v42 = vld [vmem:[#allocation3 + $0x1378] sm:$0xff] }
 0x6c7   :  { %v3678_v41 = vpop.f32.mrb[107].mxu0  ;;  %v3837_v25 = vpop.f32.mrb[107].mxu1  ;;  %4644 = vmatprep.subr.bf16.mxu0 %v4465_v53  ;;  %4803 = vmatprep.subr.bf16.mxu1 %v4467_v60  ;;  %v4484_v18 = vld [vmem:[#allocation3 + $0x1360] sm:$0xff]  ;;  %v4486_v53 = vld [vmem:[#allocation3 + $0x1370] sm:$0xff]  ;;  %v4489_v60 = vld [vmem:[#allocation3 + $0x1388] sm:$0xff] }
 0x6c8   :  { %v6890_v0 = vmax.f32 %v3850_v44, %v3854_v51  ;;  %v3851_v52 = vmax.f32 %v3676_v6, %v3678_v41  ;;  %v3855_v32 = vmax.f32 %v3835_v47, %v3837_v25  ;;  %v4491_v30 = vld [vmem:[#allocation3 + $0x1398] sm:$0xff]  ;;  %v4488_v57 = vld [vmem:[#allocation3 + $0x1380] sm:$0xff]  ;;  %v4490_v44 = vld [vmem:[#allocation3 + $0x1390] sm:$0xff] }
 0x6c9   :  { %v4493_v51 = vld [vmem:[#allocation3 + $0x13a8] sm:$0xff]  ;;  %v4495_v6 = vld [vmem:[#allocation3 + $0x13b8] sm:$0xff]  ;;  %v4492_v47 = vld [vmem:[#allocation3 + $0x13a0] sm:$0xff] }
 0x6ca   :  { %v6892_v63 = vmax.f32 %v3851_v52, %v3855_v32  ;;  %4645 = vmatpush1.bf16.msra.mxu0 %v4464_v15  ;;  %4804 = vmatpush1.bf16.msra.mxu1 %v4466_v55  ;;  %v4494_v41 = vld [vmem:[#allocation3 + $0x13b0] sm:$0xff]  ;;  %v4497_v25 = vld [vmem:[#allocation3 + $0x13c8] sm:$0xff]  ;;  %v4499_v15 = vld [vmem:[#allocation3 + $0x13d8] sm:$0xff] }
 0x6cb   :  { %4646 = vmatprep.subr.bf16.mxu0 %v4469_v43  ;;  %4805 = vmatprep.subr.bf16.mxu1 %v4471_v21  ;;  %v4496_v55 = vld [vmem:[#allocation3 + $0x13c0] sm:$0xff]  ;;  %v4498_v52 = vld [vmem:[#allocation3 + $0x13d0] sm:$0xff]  ;;  %v4501_v32 = vld [vmem:[#allocation3 + $0x13e8] sm:$0xff] }
 0x6cc   :  { %v3682_v16 = vpop.f32.mrb[108].mxu0  ;;  %v3841_v1 = vpop.f32.mrb[108].mxu1  ;;  %v4503_v43 = vld [vmem:[#allocation3 + $0x13f8] sm:$0xff]  ;;  %v4500_v21 = vld [vmem:[#allocation3 + $0x13e0] sm:$0xff] }
 0x6cd   :  { %v3684_v62 = vpop.f32.mrb[109].mxu0  ;;  %v3843_v27 = vpop.f32.mrb[109].mxu1 }
 0x6ce   :  { %v3852_v5 = vmax.f32 %v3682_v16, %v3684_v62  ;;  %v3856_v29 = vmax.f32 %v3841_v1, %v3843_v27  ;;  %v3686_v36 = vpop.f32.mrb[110].mxu0  ;;  %v3845_v31 = vpop.f32.mrb[110].mxu1  ;;  %4647 = vmatpush1.bf16.msra.mxu0 %v4468_v2  ;;  %4806 = vmatpush1.bf16.msra.mxu1 %v4470_v22  ;;  %v4502_v2 = vld [vmem:[#allocation3 + $0x13f0] sm:$0xff]  ;;  %v4505_v22 = vld [vmem:[#allocation3 + $0x1408] sm:$0xff]  ;;  %v4507_v16 = vld [vmem:[#allocation3 + $0x1418] sm:$0xff] }
 0x6cf   :  { %v3688_v12 = vpop.f32.mrb[111].mxu0  ;;  %v3847_v45 = vpop.f32.mrb[111].mxu1  ;;  %4648 = vmatprep.subr.bf16.mxu0 %v4473_v23  ;;  %4807 = vmatprep.subr.bf16.mxu1 %v4475_v49  ;;  %v4504_v1 = vld [vmem:[#allocation3 + $0x1400] sm:$0xff]  ;;  %v4506_v23 = vld [vmem:[#allocation3 + $0x1410] sm:$0xff]  ;;  %v4509_v49 = vld [vmem:[#allocation3 + $0x1428] sm:$0xff] }
 0x6d0   :  { %v6894_v59 = vmax.f32 %v3852_v5, %v3856_v29  ;;  %v3853_v9 = vmax.f32 %v3686_v36, %v3688_v12  ;;  %v3857_v28 = vmax.f32 %v3845_v31, %v3847_v45  ;;  %v4511_v62 = vld [vmem:[#allocation3 + $0x1438] sm:$0xff]  ;;  %v4508_v27 = vld [vmem:[#allocation3 + $0x1420] sm:$0xff]  ;;  %v4510_v5 = vld [vmem:[#allocation3 + $0x1430] sm:$0xff] }
 0x6d1   :  { %v4513_v29 = vld [vmem:[#allocation3 + $0x1448] sm:$0xff]  ;;  %v4515_v36 = vld [vmem:[#allocation3 + $0x1458] sm:$0xff]  ;;  %v4512_v31 = vld [vmem:[#allocation3 + $0x1440] sm:$0xff] }
 0x6d2   :  { %v6896_v13 = vmax.f32 %v3853_v9, %v3857_v28  ;;  %4649 = vmatpush1.bf16.msra.mxu0 %v4472_v3  ;;  %4808 = vmatpush1.bf16.msra.mxu1 %v4474_v14  ;;  %v4514_v12 = vld [vmem:[#allocation3 + $0x1450] sm:$0xff]  ;;  %v4517_v45 = vld [vmem:[#allocation3 + $0x1468] sm:$0xff]  ;;  %v4516_v3 = vld [vmem:[#allocation3 + $0x1460] sm:$0xff] }
 0x6d3   :  { %4650 = vmatprep.subr.bf16.mxu0 %v4477_v19  ;;  %4809 = vmatprep.subr.bf16.mxu1 %v4479_v35  ;;  %v4518_v14 = vld [vmem:[#allocation3 + $0x1470] sm:$0xff]  ;;  %v4521_v9 = vld [vmem:[#allocation3 + $0x1488] sm:$0xff]  ;;  %v4520_v28 = vld [vmem:[#allocation3 + $0x1480] sm:$0xff] }
 0x6d4   :  { %v4522_v19 = vld [vmem:[#allocation3 + $0x1490] sm:$0xff]  ;;  %v4525_v35 = vld [vmem:[#allocation3 + $0x14a8] sm:$0xff] }
 0x6d6   :  { %4651 = vmatpush1.bf16.msra.mxu0 %v4476_v38  ;;  %4810 = vmatpush1.bf16.msra.mxu1 %v4478_v26  ;;  %v4524_v38 = vld [vmem:[#allocation3 + $0x14a0] sm:$0xff]  ;;  %v4526_v26 = vld [vmem:[#allocation3 + $0x14b0] sm:$0xff] }
 0x6d7   :  { %4652 = vmatprep.subr.bf16.mxu0 %v4481_v10  ;;  %4811 = vmatprep.subr.bf16.mxu1 %v4483_v34  ;;  %v4529_v10 = vld [vmem:[#allocation3 + $0x14c8] sm:$0xff]  ;;  %v4531_v34 = vld [vmem:[#allocation3 + $0x14d8] sm:$0xff] }
 0x6da   :  { %4653 = vmatpush1.bf16.msra.mxu0 %v4480_v7  ;;  %4812 = vmatpush1.bf16.msra.mxu1 %v4482_v11  ;;  %v4530_v7 = vld [vmem:[#allocation3 + $0x14d0] sm:$0xff]  ;;  %v4533_v11 = vld [vmem:[#allocation3 + $0x14e8] sm:$0xff] }
 0x6db   :  { %4654 = vmatprep.subr.bf16.mxu0 %v4485_v24  ;;  %4813 = vmatprep.subr.bf16.mxu1 %v4487_v42  ;;  %v4535_v24 = vld [vmem:[#allocation3 + $0x14f8] sm:$0xff]  ;;  %v4532_v42 = vld [vmem:[#allocation3 + $0x14e0] sm:$0xff] }
 0x6de   :  { %4655 = vmatpush1.bf16.msra.mxu0 %v4484_v18  ;;  %4814 = vmatpush1.bf16.msra.mxu1 %v4486_v53  ;;  %v4534_v18 = vld [vmem:[#allocation3 + $0x14f0] sm:$0xff]  ;;  %v4537_v53 = vld [vmem:[#allocation3 + $0x1508] sm:$0xff] }
 0x6df   :  { %4656 = vmatprep.subr.bf16.mxu0 %v4489_v60  ;;  %4815 = vmatprep.subr.bf16.mxu1 %v4491_v30  ;;  %v4539_v60 = vld [vmem:[#allocation3 + $0x1518] sm:$0xff]  ;;  %v4536_v30 = vld [vmem:[#allocation3 + $0x1500] sm:$0xff] }
 0x6e2   :  { %4657 = vmatpush1.bf16.msra.mxu0 %v4488_v57  ;;  %4816 = vmatpush1.bf16.msra.mxu1 %v4490_v44  ;;  %v4538_v57 = vld [vmem:[#allocation3 + $0x1510] sm:$0xff]  ;;  %v4541_v44 = vld [vmem:[#allocation3 + $0x1528] sm:$0xff] }
 0x6e3   :  { %4658 = vmatprep.subr.bf16.mxu0 %v4493_v51  ;;  %4817 = vmatprep.subr.bf16.mxu1 %v4495_v6  ;;  %v4543_v51 = vld [vmem:[#allocation3 + $0x1538] sm:$0xff]  ;;  %v4540_v6 = vld [vmem:[#allocation3 + $0x1520] sm:$0xff] }
 0x6e6   :  { %4659 = vmatpush1.bf16.msra.mxu0 %v4492_v47  ;;  %4818 = vmatpush1.bf16.msra.mxu1 %v4494_v41  ;;  %v4542_v47 = vld [vmem:[#allocation3 + $0x1530] sm:$0xff]  ;;  %v4545_v41 = vld [vmem:[#allocation3 + $0x1548] sm:$0xff] }
 0x6e7   :  { %4660 = vmatprep.subr.bf16.mxu0 %v4497_v25  ;;  %4819 = vmatprep.subr.bf16.mxu1 %v4499_v15  ;;  %v4547_v25 = vld [vmem:[#allocation3 + $0x1558] sm:$0xff]  ;;  %v4544_v15 = vld [vmem:[#allocation3 + $0x1540] sm:$0xff] }
 0x6ea   :  { %4661 = vmatpush1.bf16.msra.mxu0 %v4496_v55  ;;  %4820 = vmatpush1.bf16.msra.mxu1 %v4498_v52  ;;  %v4546_v55 = vld [vmem:[#allocation3 + $0x1550] sm:$0xff]  ;;  %v4549_v52 = vld [vmem:[#allocation3 + $0x1568] sm:$0xff] }
 0x6eb   :  { %4662 = vmatprep.subr.bf16.mxu0 %v4501_v32  ;;  %4821 = vmatprep.subr.bf16.mxu1 %v4503_v43  ;;  %v4551_v32 = vld [vmem:[#allocation3 + $0x1578] sm:$0xff]  ;;  %v4548_v43 = vld [vmem:[#allocation3 + $0x1560] sm:$0xff] }
 0x6ee   :  { %4663 = vmatpush1.bf16.msra.mxu0 %v4500_v21  ;;  %4822 = vmatpush1.bf16.msra.mxu1 %v4502_v2  ;;  %v4550_v21 = vld [vmem:[#allocation3 + $0x1570] sm:$0xff]  ;;  %v4553_v2 = vld [vmem:[#allocation3 + $0x1588] sm:$0xff] }
 0x6ef   :  { %4685 = vmatprep.subr.bf16.mxu0 %v4505_v22  ;;  %4844 = vmatprep.subr.bf16.mxu1 %v4507_v16  ;;  %v4555_v22 = vld [vmem:[#allocation3 + $0x1598] sm:$0xff]  ;;  %v4552_v16 = vld [vmem:[#allocation3 + $0x1580] sm:$0xff] }
 0x6f1   :  { %4665 = vmatmul.mubr.bf16.vlgmr.msra.gmra.mrb[120].mxu0 %v6758_v46  ;;  %4824 = vmatmul.mubr.bf16.vlgmr.msra.gmra.mrb[120].mxu1 %v6758_v46  ;;  %v4519_v46 = vld [vmem:[#allocation3 + $0x1478] sm:$0xff] }
 0x6f2   :  { %4686 = vmatpush1.bf16.msra.mxu0 %v4504_v1  ;;  %4845 = vmatpush1.bf16.msra.mxu1 %v4506_v23  ;;  %v4554_v1 = vld [vmem:[#allocation3 + $0x1590] sm:$0xff]  ;;  %v4557_v23 = vld [vmem:[#allocation3 + $0x15a8] sm:$0xff] }
 0x6f3   :  { %4687 = vmatprep.subr.bf16.mxu0 %v4509_v49  ;;  %4846 = vmatprep.subr.bf16.mxu1 %v4511_v62  ;;  %v4559_v49 = vld [vmem:[#allocation3 + $0x15b8] sm:$0xff]  ;;  %v4556_v62 = vld [vmem:[#allocation3 + $0x15a0] sm:$0xff] }
 0x6f4   :  { %4674 = vmatprep.mubr.bf16.mxu0 %v6780_v4  ;;  %4833 = vmatprep.mubr.bf16.mxu1 %v6780_v4  ;;  %v4523_v4 = vld [vmem:[#allocation3 + $0x1498] sm:$0xff] }
 0x6f6   :  { %4688 = vmatpush1.bf16.msra.mxu0 %v4508_v27  ;;  %4847 = vmatpush1.bf16.msra.mxu1 %v4510_v5  ;;  %v4558_v27 = vld [vmem:[#allocation3 + $0x15b0] sm:$0xff]  ;;  %v4561_v5 = vld [vmem:[#allocation3 + $0x15c8] sm:$0xff] }
 0x6f7   :  { %4689 = vmatprep.subr.bf16.mxu0 %v4513_v29  ;;  %4848 = vmatprep.subr.bf16.mxu1 %v4515_v36  ;;  %v4563_v29 = vld [vmem:[#allocation3 + $0x15d8] sm:$0xff]  ;;  %v4560_v36 = vld [vmem:[#allocation3 + $0x15c0] sm:$0xff] }
 0x6f9   :  { %4675 = vmatmul.mubr.bf16.gmra.mrb[124].mxu0 %v6778_v17  ;;  %4834 = vmatmul.mubr.bf16.gmra.mrb[124].mxu1 %v6778_v17  ;;  %v4527_v17 = vld [vmem:[#allocation3 + $0x14b8] sm:$0xff] }
 0x6fa   :  { %4690 = vmatpush1.bf16.msra.mxu0 %v4512_v31  ;;  %4849 = vmatpush1.bf16.msra.mxu1 %v4514_v12  ;;  %v4562_v31 = vld [vmem:[#allocation3 + $0x15d0] sm:$0xff]  ;;  %v4565_v12 = vld [vmem:[#allocation3 + $0x15e8] sm:$0xff] }
 0x6fb   :  { %4691 = vmatprep.subr.bf16.mxu0 %v4517_v45  ;;  %4850 = vmatprep.subr.bf16.mxu1 %v4519_v46  ;;  %v4567_v45 = vld [vmem:[#allocation3 + $0x15f8] sm:$0xff]  ;;  %v4564_v46 = vld [vmem:[#allocation3 + $0x15e0] sm:$0xff] }
 0x6fc   :  { %4717 = vmatprep.mubr.bf16.mxu0 %v6792_v20  ;;  %4876 = vmatprep.mubr.bf16.mxu1 %v6792_v20  ;;  %v4528_v20 = vld [vmem:[#allocation3 + $0x14c0] sm:$0xff] }
 0x6fe   :  { %4692 = vmatpush1.bf16.msra.mxu0 %v4516_v3  ;;  %4851 = vmatpush1.bf16.msra.mxu1 %v4518_v14  ;;  %v4566_v3 = vld [vmem:[#allocation3 + $0x15f0] sm:$0xff]  ;;  %v4569_v14 = vld [vmem:[#allocation3 + $0x1608] sm:$0xff] }
 0x6ff   :  { %4693 = vmatprep.subr.bf16.mxu0 %v4521_v9  ;;  %4852 = vmatprep.subr.bf16.mxu1 %v4523_v4  ;;  %v4571_v9 = vld [vmem:[#allocation3 + $0x1618] sm:$0xff]  ;;  %v4568_v4 = vld [vmem:[#allocation3 + $0x1600] sm:$0xff] }
 0x702   :  { %4694 = vmatpush1.bf16.msra.mxu0 %v4520_v28  ;;  %4853 = vmatpush1.bf16.msra.mxu1 %v4522_v19  ;;  %v4570_v28 = vld [vmem:[#allocation3 + $0x1610] sm:$0xff]  ;;  %v4573_v19 = vld [vmem:[#allocation3 + $0x1628] sm:$0xff] }
 0x703   :  { %4695 = vmatprep.subr.bf16.mxu0 %v4525_v35  ;;  %4854 = vmatprep.subr.bf16.mxu1 %v4527_v17  ;;  %v4575_v35 = vld [vmem:[#allocation3 + $0x1638] sm:$0xff]  ;;  %v4572_v17 = vld [vmem:[#allocation3 + $0x1620] sm:$0xff] }
 0x706   :  { %4696 = vmatpush1.bf16.msra.mxu0 %v4524_v38  ;;  %4855 = vmatpush1.bf16.msra.mxu1 %v4526_v26  ;;  %v4574_v38 = vld [vmem:[#allocation3 + $0x1630] sm:$0xff]  ;;  %v4577_v26 = vld [vmem:[#allocation3 + $0x1648] sm:$0xff] }
 0x707   :  { %4697 = vmatprep.subr.bf16.mxu0 %v4529_v10  ;;  %4856 = vmatprep.subr.bf16.mxu1 %v4531_v34  ;;  %v4579_v10 = vld [vmem:[#allocation3 + $0x1658] sm:$0xff]  ;;  %v4576_v34 = vld [vmem:[#allocation3 + $0x1640] sm:$0xff] }
 0x70a   :  { %4698 = vmatpush1.bf16.msra.mxu0 %v4528_v20  ;;  %4857 = vmatpush1.bf16.msra.mxu1 %v4530_v7  ;;  %v4578_v20 = vld [vmem:[#allocation3 + $0x1650] sm:$0xff]  ;;  %v4581_v7 = vld [vmem:[#allocation3 + $0x1668] sm:$0xff] }
 0x70b   :  { %4699 = vmatprep.subr.bf16.mxu0 %v4533_v11  ;;  %4858 = vmatprep.subr.bf16.mxu1 %v4535_v24  ;;  %v4580_v11 = vld [vmem:[#allocation3 + $0x1660] sm:$0xff]  ;;  %v4582_v24 = vld [vmem:[#allocation3 + $0x1670] sm:$0xff] }
 0x70e   :  { %4700 = vmatpush1.bf16.msra.mxu0 %v4532_v42  ;;  %4859 = vmatpush1.bf16.msra.mxu1 %v4534_v18  ;;  %v4585_v42 = vld [vmem:[#allocation3 + $0x1688] sm:$0xff]  ;;  %v4584_v18 = vld [vmem:[#allocation3 + $0x1680] sm:$0xff] }
 0x70f   :  { %4701 = vmatprep.subr.bf16.mxu0 %v4537_v53  ;;  %4860 = vmatprep.subr.bf16.mxu1 %v4539_v60  ;;  %v4586_v53 = vld [vmem:[#allocation3 + $0x1690] sm:$0xff]  ;;  %v4589_v60 = vld [vmem:[#allocation3 + $0x16a8] sm:$0xff] }
 0x712   :  { %4702 = vmatpush1.bf16.msra.mxu0 %v4536_v30  ;;  %4861 = vmatpush1.bf16.msra.mxu1 %v4538_v57  ;;  %v4588_v30 = vld [vmem:[#allocation3 + $0x16a0] sm:$0xff]  ;;  %v4590_v57 = vld [vmem:[#allocation3 + $0x16b0] sm:$0xff] }
 0x713   :  { %4703 = vmatprep.subr.bf16.mxu0 %v4541_v44  ;;  %4862 = vmatprep.subr.bf16.mxu1 %v4543_v51  ;;  %v4593_v44 = vld [vmem:[#allocation3 + $0x16c8] sm:$0xff]  ;;  %v4595_v51 = vld [vmem:[#allocation3 + $0x16d8] sm:$0xff] }
 0x716   :  { %4704 = vmatpush1.bf16.msra.mxu0 %v4540_v6  ;;  %4863 = vmatpush1.bf16.msra.mxu1 %v4542_v47  ;;  %v4594_v6 = vld [vmem:[#allocation3 + $0x16d0] sm:$0xff]  ;;  %v4597_v47 = vld [vmem:[#allocation3 + $0x16e8] sm:$0xff] }
 0x717   :  { %4705 = vmatprep.subr.bf16.mxu0 %v4545_v41  ;;  %4864 = vmatprep.subr.bf16.mxu1 %v4547_v25  ;;  %v4599_v41 = vld [vmem:[#allocation3 + $0x16f8] sm:$0xff]  ;;  %v4596_v25 = vld [vmem:[#allocation3 + $0x16e0] sm:$0xff] }
 0x71a   :  { %4706 = vmatpush1.bf16.msra.mxu0 %v4544_v15  ;;  %4865 = vmatpush1.bf16.msra.mxu1 %v4546_v55  ;;  %v4598_v15 = vld [vmem:[#allocation3 + $0x16f0] sm:$0xff]  ;;  %v4601_v55 = vld [vmem:[#allocation3 + $0x1708] sm:$0xff] }
 0x71b   :  { %4707 = vmatprep.subr.bf16.mxu0 %v4549_v52  ;;  %4866 = vmatprep.subr.bf16.mxu1 %v4551_v32  ;;  %v4603_v52 = vld [vmem:[#allocation3 + $0x1718] sm:$0xff]  ;;  %v4600_v32 = vld [vmem:[#allocation3 + $0x1700] sm:$0xff] }
 0x71e   :  { %4708 = vmatpush1.bf16.msra.mxu0 %v4548_v43  ;;  %4867 = vmatpush1.bf16.msra.mxu1 %v4550_v21  ;;  %v4602_v43 = vld [vmem:[#allocation3 + $0x1710] sm:$0xff]  ;;  %v4605_v21 = vld [vmem:[#allocation3 + $0x1728] sm:$0xff] }
 0x71f   :  { %4709 = vmatprep.subr.bf16.mxu0 %v4553_v2  ;;  %4868 = vmatprep.subr.bf16.mxu1 %v4555_v22  ;;  %v4607_v2 = vld [vmem:[#allocation3 + $0x1738] sm:$0xff]  ;;  %v4604_v22 = vld [vmem:[#allocation3 + $0x1720] sm:$0xff] }
 0x722   :  { %4710 = vmatpush1.bf16.msra.mxu0 %v4552_v16  ;;  %4869 = vmatpush1.bf16.msra.mxu1 %v4554_v1  ;;  %v4606_v16 = vld [vmem:[#allocation3 + $0x1730] sm:$0xff]  ;;  %v4609_v1 = vld [vmem:[#allocation3 + $0x1748] sm:$0xff] }
 0x723   :  { %4711 = vmatprep.subr.bf16.mxu0 %v4557_v23  ;;  %4870 = vmatprep.subr.bf16.mxu1 %v4559_v49  ;;  %v4611_v23 = vld [vmem:[#allocation3 + $0x1758] sm:$0xff]  ;;  %v4608_v49 = vld [vmem:[#allocation3 + $0x1740] sm:$0xff] }
 0x726   :  { %4712 = vmatpush1.bf16.msra.mxu0 %v4556_v62  ;;  %4871 = vmatpush1.bf16.msra.mxu1 %v4558_v27  ;;  %v4610_v62 = vld [vmem:[#allocation3 + $0x1750] sm:$0xff]  ;;  %v4613_v27 = vld [vmem:[#allocation3 + $0x1768] sm:$0xff] }
 0x727   :  { %4713 = vmatprep.subr.bf16.mxu0 %v4561_v5  ;;  %4872 = vmatprep.subr.bf16.mxu1 %v4563_v29  ;;  %v4615_v5 = vld [vmem:[#allocation3 + $0x1778] sm:$0xff]  ;;  %v4612_v29 = vld [vmem:[#allocation3 + $0x1760] sm:$0xff] }
 0x72a   :  { %4714 = vmatpush1.bf16.msra.mxu0 %v4560_v36  ;;  %4873 = vmatpush1.bf16.msra.mxu1 %v4562_v31  ;;  %v4614_v36 = vld [vmem:[#allocation3 + $0x1770] sm:$0xff]  ;;  %v4617_v31 = vld [vmem:[#allocation3 + $0x1788] sm:$0xff] }
 0x72b   :  { %4715 = vmatprep.subr.bf16.mxu0 %v4565_v12  ;;  %4874 = vmatprep.subr.bf16.mxu1 %v4567_v45  ;;  %v4619_v12 = vld [vmem:[#allocation3 + $0x1798] sm:$0xff]  ;;  %v4616_v45 = vld [vmem:[#allocation3 + $0x1780] sm:$0xff] }
 0x72e   :  { %4716 = vmatpush1.bf16.msra.mxu0 %v4564_v46  ;;  %4875 = vmatpush1.bf16.msra.mxu1 %v4566_v3  ;;  %v4618_v46 = vld [vmem:[#allocation3 + $0x1790] sm:$0xff]  ;;  %v4621_v3 = vld [vmem:[#allocation3 + $0x17a8] sm:$0xff] }
 0x72f   :  { %4738 = vmatprep.subr.bf16.mxu0 %v4569_v14  ;;  %4897 = vmatprep.subr.bf16.mxu1 %v4571_v9  ;;  %v4623_v14 = vld [vmem:[#allocation3 + $0x17b8] sm:$0xff]  ;;  %v4620_v9 = vld [vmem:[#allocation3 + $0x17a0] sm:$0xff] }
 0x731   :  { %4718 = vmatmul.mubr.bf16.vlgmr.msra.gmra.mrb[120].mxu0 %v6790_v56  ;;  %4877 = vmatmul.mubr.bf16.vlgmr.msra.gmra.mrb[120].mxu1 %v6790_v56  ;;  %v4583_v56 = vld [vmem:[#allocation3 + $0x1678] sm:$0xff] }
 0x732   :  { %4739 = vmatpush1.bf16.msra.mxu0 %v4568_v4  ;;  %4898 = vmatpush1.bf16.msra.mxu1 %v4570_v28  ;;  %v4622_v4 = vld [vmem:[#allocation3 + $0x17b0] sm:$0xff]  ;;  %v4625_v28 = vld [vmem:[#allocation3 + $0x17c8] sm:$0xff] }
 0x733   :  { %4740 = vmatprep.subr.bf16.mxu0 %v4573_v19  ;;  %4899 = vmatprep.subr.bf16.mxu1 %v4575_v35  ;;  %v4627_v19 = vld [vmem:[#allocation3 + $0x17d8] sm:$0xff]  ;;  %v4624_v35 = vld [vmem:[#allocation3 + $0x17c0] sm:$0xff] }
 0x734   :  { %4727 = vmatprep.mubr.bf16.mxu0 %v6796_v48  ;;  %4886 = vmatprep.mubr.bf16.mxu1 %v6796_v48  ;;  %v4587_v48 = vld [vmem:[#allocation3 + $0x1698] sm:$0xff] }
 0x736   :  { %4741 = vmatpush1.bf16.msra.mxu0 %v4572_v17  ;;  %4900 = vmatpush1.bf16.msra.mxu1 %v4574_v38  ;;  %v4626_v17 = vld [vmem:[#allocation3 + $0x17d0] sm:$0xff]  ;;  %v4629_v38 = vld [vmem:[#allocation3 + $0x17e8] sm:$0xff] }
 0x737   :  { %4742 = vmatprep.subr.bf16.mxu0 %v4577_v26  ;;  %4901 = vmatprep.subr.bf16.mxu1 %v4579_v10  ;;  %v4631_v26 = vld [vmem:[#allocation3 + $0x17f8] sm:$0xff]  ;;  %v4993_v10 = vld [vmem:[#allocation10 + $0x80] sm:$0xff] }
 0x739   :  { %4728 = vmatmul.mubr.bf16.gmra.mrb[124].mxu0 %v6794_v61  ;;  %4887 = vmatmul.mubr.bf16.gmra.mrb[124].mxu1 %v6794_v61  ;;  %v4591_v61 = vld [vmem:[#allocation3 + $0x16b8] sm:$0xff] }
 0x73a   :  { %4743 = vmatpush1.bf16.msra.mxu0 %v4576_v34  ;;  %4902 = vmatpush1.bf16.msra.mxu1 %v4578_v20  ;;  %v4994_v34 = vld [vmem:[#allocation10 + $0x88] sm:$0xff]  ;;  %v5025_v20 = vld [vmem:[#allocation10 + $0x180] sm:$0xff] }
 0x73b   :  { %4744 = vmatprep.subr.bf16.mxu0 %v4581_v7  ;;  %4903 = vmatprep.subr.bf16.mxu1 %v4583_v56  ;;  %v5026_v7 = vld [vmem:[#allocation10 + $0x188] sm:$0xff]  ;;  %v4628_v56 = vld [vmem:[#allocation3 + $0x17e0] sm:$0xff] }
 0x73c   :  { %4770 = vmatprep.mubr.bf16.mxu0 %v6802_v37  ;;  %4929 = vmatprep.mubr.bf16.mxu1 %v6802_v37  ;;  %v4592_v37 = vld [vmem:[#allocation3 + $0x16c0] sm:$0xff] }
 0x73e   :  { %4745 = vmatpush1.bf16.msra.mxu0 %v4580_v11  ;;  %4904 = vmatpush1.bf16.msra.mxu1 %v4582_v24  ;;  %v4630_v11 = vld [vmem:[#allocation3 + $0x17f0] sm:$0xff]  ;;  %v5581_v24 = vpack.c.bf16 %v4994_v34, %v4993_v10 }
 0x73f   :  { %4746 = vmatprep.subr.bf16.mxu0 %v4585_v42  ;;  %4905 = vmatprep.subr.bf16.mxu1 %v4587_v48  ;;  %v4977_v42 = vld [vmem:[#allocation10] sm:$0xff]  ;;  %v4978_v48 = vld [vmem:[#allocation10 + $0x8] sm:$0xff] }
 0x740   :  { %v4985_v34 = vld [vmem:[#allocation10 + $0x40] sm:$0xff] }
 0x742   :  { %4747 = vmatpush1.bf16.msra.mxu0 %v4584_v18  ;;  %4906 = vmatpush1.bf16.msra.mxu1 %v4586_v53  ;;  %v5613_v18 = vpack.c.bf16 %v5026_v7, %v5025_v20  ;;  %v4995_v53 = vld [vmem:[#allocation10 + $0x90] sm:$0xff]  ;;  %v4986_v20 = vld [vmem:[#allocation10 + $0x48] sm:$0xff] }
 0x743   :  { %4748 = vmatprep.subr.bf16.mxu0 %v4589_v60  ;;  %4907 = vmatprep.subr.bf16.mxu1 %v4591_v61  ;;  %v4996_v60 = vld [vmem:[#allocation10 + $0x98] sm:$0xff]  ;;  %v5009_v61 = vld [vmem:[#allocation10 + $0x100] sm:$0xff]  ;;  %v5003_v7 = vld [vmem:[#allocation10 + $0xd0] sm:$0xff] }
 0x746   :  { %4749 = vmatpush1.bf16.msra.mxu0 %v4588_v30  ;;  %4908 = vmatpush1.bf16.msra.mxu1 %v4590_v57  ;;  %v5010_v30 = vld [vmem:[#allocation10 + $0x108] sm:$0xff]  ;;  %v5583_v57 = vpack.c.bf16 %v4978_v48, %v4977_v42  ;;  %v5599_v48 = vpack.c.bf16 %v4986_v20, %v4985_v34 }
 0x747   :  { %4750 = vmatprep.subr.bf16.mxu0 %v4593_v44  ;;  %4909 = vmatprep.subr.bf16.mxu1 %v4595_v51  ;;  %v5027_v44 = vld [vmem:[#allocation10 + $0x190] sm:$0xff]  ;;  %v5028_v51 = vld [vmem:[#allocation10 + $0x198] sm:$0xff]  ;;  %v5018_v42 = vld [vmem:[#allocation10 + $0x148] sm:$0xff] }
 0x74a   :  { %4751 = vmatpush1.bf16.msra.mxu0 %v4592_v37  ;;  %4910 = vmatpush1.bf16.msra.mxu1 %v4594_v6  ;;  %v5585_v37 = vpack.c.bf16 %v4996_v60, %v4995_v53  ;;  %v4979_v6 = vld [vmem:[#allocation10 + $0x10] sm:$0xff]  ;;  %v5036_v53 = vld [vmem:[#allocation10 + $0x1d8] sm:$0xff] }
 0x74b   :  { %4752 = vmatprep.subr.bf16.mxu0 %v4597_v47  ;;  %4911 = vmatprep.subr.bf16.mxu1 %v4599_v41  ;;  %v4980_v47 = vld [vmem:[#allocation10 + $0x18] sm:$0xff]  ;;  %v4997_v41 = vld [vmem:[#allocation10 + $0xa0] sm:$0xff] }
 0x74e   :  { %4753 = vmatpush1.bf16.msra.mxu0 %v4596_v25  ;;  %4912 = vmatpush1.bf16.msra.mxu1 %v4598_v15  ;;  %v4998_v25 = vld [vmem:[#allocation10 + $0xa8] sm:$0xff]  ;;  %v5615_v15 = vpack.c.bf16 %v5010_v30, %v5009_v61  ;;  %v4987_v61 = vld [vmem:[#allocation10 + $0x50] sm:$0xff]  ;;  %v4988_v30 = vld [vmem:[#allocation10 + $0x58] sm:$0xff] }
 0x74f   :  { %4754 = vmatprep.subr.bf16.mxu0 %v4601_v55  ;;  %4913 = vmatprep.subr.bf16.mxu1 %v4603_v52  ;;  %v6916_v55 = vld [vmem:[#allocation8 + $0x1] ss:$0 sm:$0xff]  ;;  %v5617_v52 = vpack.c.bf16 %v5028_v51, %v5027_v44  ;;  %v5006_v44 = vld [vmem:[#allocation10 + $0xe8] sm:$0xff] }
 0x752   :  { %4755 = vmatpush1.bf16.msra.mxu0 %v4600_v32  ;;  %4914 = vmatpush1.bf16.msra.mxu1 %v4602_v43  ;;  %v5011_v32 = vld [vmem:[#allocation10 + $0x110] sm:$0xff]  ;;  %v5012_v43 = vld [vmem:[#allocation10 + $0x118] sm:$0xff] }
 0x753   :  { %4756 = vmatprep.subr.bf16.mxu0 %v4605_v21  ;;  %4915 = vmatprep.subr.bf16.mxu1 %v4607_v2  ;;  %v5587_v21 = vpack.c.bf16 %v4980_v47, %v4979_v6  ;;  %v5589_v2 = vpack.c.bf16 %v4998_v25, %v4997_v41  ;;  %v5603_v6 = vpack.c.bf16 %v4988_v30, %v4987_v61  ;;  %v4989_v41 = vld [vmem:[#allocation10 + $0x60] sm:$0xff]  ;;  %v4990_v25 = vld [vmem:[#allocation10 + $0x68] sm:$0xff]  ;;  %v5019_v61 = vld [vmem:[#allocation10 + $0x150] sm:$0xff] }
 0x754   :  { %v5020_v30 = vld [vmem:[#allocation10 + $0x158] sm:$0xff] }
 0x756   :  { %4757 = vmatpush1.bf16.msra.mxu0 %v4604_v22  ;;  %4916 = vmatpush1.bf16.msra.mxu1 %v4606_v16  ;;  %v4981_v22 = vld [vmem:[#allocation10 + $0x20] sm:$0xff]  ;;  %v4982_v16 = vld [vmem:[#allocation10 + $0x28] sm:$0xff] }
 0x757   :  { %4758 = vmatprep.subr.bf16.mxu0 %v4609_v1  ;;  %4917 = vmatprep.subr.bf16.mxu1 %v4611_v23  ;;  %v4999_v1 = vld [vmem:[#allocation10 + $0xb0] sm:$0xff]  ;;  %v3869_v23 = vadd.f32 %v6916_v55, %v6890_v0  ;;  %v5002_v0 = vld [vmem:[#allocation10 + $0xc8] sm:$0xff] }
 0x75a   :  { %4759 = vmatpush1.bf16.msra.mxu0 %v4608_v49  ;;  %4918 = vmatpush1.bf16.msra.mxu1 %v4610_v62  ;;  %v5619_v49 = vpack.c.bf16 %v5012_v43, %v5011_v32  ;;  %v5029_v62 = vld [vmem:[#allocation10 + $0x1a0] sm:$0xff]  ;;  %v5007_v32 = vld [vmem:[#allocation10 + $0xf0] sm:$0xff]  ;;  %v5008_v43 = vld [vmem:[#allocation10 + $0xf8] sm:$0xff] }
 0x75b   :  { %4760 = vmatprep.subr.bf16.mxu0 %v4613_v27  ;;  %4919 = vmatprep.subr.bf16.mxu1 %v4615_v5  ;;  %v5030_v27 = vld [vmem:[#allocation10 + $0x1a8] sm:$0xff]  ;;  %v5013_v5 = vld [vmem:[#allocation10 + $0x120] sm:$0xff] }
 0x75e   :  { %4761 = vmatpush1.bf16.msra.mxu0 %v4612_v29  ;;  %4920 = vmatpush1.bf16.msra.mxu1 %v4614_v36  ;;  %v5014_v29 = vld [vmem:[#allocation10 + $0x128] sm:$0xff]  ;;  %v5591_v36 = vpack.c.bf16 %v4982_v16, %v4981_v22 }
 0x75f   :  { %4762 = vmatprep.subr.bf16.mxu0 %v4617_v31  ;;  %4921 = vmatprep.subr.bf16.mxu1 %v4619_v12  ;;  %v5031_v31 = vld [vmem:[#allocation10 + $0x1b0] sm:$0xff]  ;;  %v5032_v12 = vld [vmem:[#allocation10 + $0x1b8] sm:$0xff] }
 0x762   :  { %4763 = vmatpush1.bf16.msra.mxu0 %v4616_v45  ;;  %4922 = vmatpush1.bf16.msra.mxu1 %v4618_v46  ;;  %v4983_v45 = vld [vmem:[#allocation10 + $0x30] sm:$0xff]  ;;  %v4984_v46 = vld [vmem:[#allocation10 + $0x38] sm:$0xff] }
 0x763   :  { %4764 = vmatprep.subr.bf16.mxu0 %v4621_v3  ;;  %4923 = vmatprep.subr.bf16.mxu1 %v4623_v14  ;;  %v5621_v3 = vpack.c.bf16 %v5030_v27, %v5029_v62  ;;  %v3873_v14 = vmax.f32 %v3869_v23, 0.0  ;;  %v5609_v27 = vpack.c.bf16 %v5008_v43, %v5007_v32  ;;  %v5223_v32 = vld [vmem:[#allocation13 + $0x8] sm:$0xff]  ;;  %v5224_v43 = vld [vmem:[#allocation13 + $0x10] sm:$0xff] }
 0x766   :  { %4765 = vmatpush1.bf16.msra.mxu0 %v4620_v9  ;;  %4924 = vmatpush1.bf16.msra.mxu1 %v4622_v4  ;;  %v5001_v9 = vld [vmem:[#allocation10 + $0xc0] sm:$0xff]  ;;  %v5623_v4 = vpack.c.bf16 %v5014_v29, %v5013_v5  ;;  %v4991_v5 = vld [vmem:[#allocation10 + $0x70] sm:$0xff]  ;;  %v4992_v29 = vld [vmem:[#allocation10 + $0x78] sm:$0xff] }
 0x767   :  { %4766 = vmatprep.subr.bf16.mxu0 %v4625_v28  ;;  %4925 = vmatprep.subr.bf16.mxu1 %v4627_v19  ;;  %v5625_v28 = vpack.c.bf16 %v5032_v12, %v5031_v31  ;;  %v5015_v19 = vld [vmem:[#allocation10 + $0x130] sm:$0xff]  ;;  %v5597_v10 = vpack.c.bf16 %v5002_v0, %v5001_v9 }
 0x76a   :  { %4767 = vmatpush1.bf16.msra.mxu0 %v4624_v35  ;;  %4926 = vmatpush1.bf16.msra.mxu1 %v4626_v17  ;;  %v5016_v35 = vld [vmem:[#allocation10 + $0x138] sm:$0xff]  ;;  %v5595_v17 = vpack.c.bf16 %v4984_v46, %v4983_v45  ;;  %v5611_v46 = vpack.c.bf16 %v4992_v29, %v4991_v5  ;;  %v5231_v5 = vld [vmem:[#allocation13 + $0x48] sm:$0xff] }
 0x76b   :  { %4768 = vmatprep.subr.bf16.mxu0 %v4629_v38  ;;  %4927 = vmatprep.subr.bf16.mxu1 %v4631_v26  ;;  %v5033_v38 = vld [vmem:[#allocation10 + $0x1c0] sm:$0xff]  ;;  %v5034_v26 = vld [vmem:[#allocation10 + $0x1c8] sm:$0xff] }
 0x76e   :  { %4769 = vmatpush1.bf16.msra.mxu0 %v4628_v56  ;;  %4928 = vmatpush1.bf16.msra.mxu1 %v4630_v11  ;;  %v5004_v56 = vld [vmem:[#allocation10 + $0xd8] sm:$0xff]  ;;  %v5627_v11 = vpack.c.bf16 %v5016_v35, %v5015_v19 }
 0x76f   :  { %5582 = vmatprep.subr.bf16.mxu0 %v5581_v24  ;;  %5614 = vmatprep.subr.bf16.mxu1 %v5613_v18  ;;  %v5629_v24 = vpack.c.bf16 %v5034_v26, %v5033_v38  ;;  %v5035_v18 = vld [vmem:[#allocation10 + $0x1d0] sm:$0xff]  ;;  %v5601_v60 = vpack.c.bf16 %v5004_v56, %v5003_v7 }
 0x771   :  { %4771 = vmatmul.mubr.bf16.vlgmr.msra.gmra.mrb[120].mxu0 %v6800_v50  ;;  %4930 = vmatmul.mubr.bf16.vlgmr.msra.gmra.mrb[120].mxu1 %v6800_v50  ;;  %v5000_v50 = vld [vmem:[#allocation10 + $0xb8] sm:$0xff] }
 0x772   :  { %5584 = vmatpush3.bf16.msra.mxu0 %v5583_v57  ;;  %4780 = vmatprep.mubr.bf16.mxu0 %v6806_v39  ;;  %v5005_v57 = vld [vmem:[#allocation10 + $0xe0] sm:$0xff] }
 0x773   :  { %5586 = vmatprep.subr.bf16.mxu0 %v5585_v37  ;;  %4939 = vmatprep.mubr.bf16.mxu1 %v6806_v39  ;;  %v5593_v39 = vpack.c.bf16 %v5000_v50, %v4999_v1  ;;  %v5633_v37 = vpack.c.bf16 %v5036_v53, %v5035_v18  ;;  %v5605_v47 = vpack.c.bf16 %v5006_v44, %v5005_v57  ;;  %v5037_v44 = vld [vmem:[#allocation10 + $0x1e0] sm:$0xff] }
 0x774   :  { %5616 = vmatpush3.bf16.msra.mxu1 %v5615_v15  ;;  %v5607_v50 = vpack.c.bf16 %v4990_v25, %v4989_v41  ;;  %v3872_v18 = vadd.f32 %v6916_v55, %v6896_v13  ;;  %v5635_v57 = vpack.c.bf16 %v5020_v30, %v5019_v61  ;;  %v5023_v41 = vld [vmem:[#allocation10 + $0x170] sm:$0xff]  ;;  %v5024_v25 = vld [vmem:[#allocation10 + $0x178] sm:$0xff] }
 0x775   :  { %5618 = vmatprep.subr.bf16.mxu1 %v5617_v52 }
 0x776   :  { %5588 = vmatpush3.bf16.msra.mxu0 %v5587_v21 }
 0x777   :  { %5590 = vmatprep.subr.bf16.mxu0 %v5589_v2 }
 0x778   :  { %5620 = vmatpush3.bf16.msra.mxu1 %v5619_v49 }
 0x779   :  { %4781 = vmatmul.mubr.bf16.gmra.mrb[124].mxu0 %v6804_v54  ;;  %4940 = vmatmul.mubr.bf16.gmra.mrb[124].mxu1 %v6804_v54  ;;  %v5017_v54 = vld [vmem:[#allocation10 + $0x140] sm:$0xff] }
 0x77a   :  { %5592 = vmatpush3.bf16.msra.mxu0 %v5591_v36  ;;  %5112 = vmatprep.mubr.f32.mxu0 %v3873_v14  ;;  %v5631_v51 = vpack.c.bf16 %v5018_v42, %v5017_v54  ;;  %v5427_v36 = vld [vmem:[#allocation8] ss:$0 sm:$0xff]  ;;  %v3870_v14 = vadd.f32 %v6916_v55, %v6892_v63  ;;  %v3871_v63 = vadd.f32 %v6916_v55, %v6894_v59  ;;  %v5039_v55 = vld [vmem:[#allocation10 + $0x1f0] sm:$0xff] }
 0x77b   :  { %5594 = vmatprep.subr.bf16.mxu0 %v5593_v39  ;;  %5622 = vmatprep.subr.bf16.mxu1 %v5621_v3  ;;  %v3319_v3 = vadd.f32 %v5427_v36, %v6858_v8  ;;  %v3320_v7 = vadd.f32 %v5427_v36, %v6860_v33  ;;  %v3321_v42 = vadd.f32 %v5427_v36, %v6862_v40  ;;  %v5038_v40 = vld [vmem:[#allocation10 + $0x1e8] sm:$0xff] }
 0x77c   :  { %5624 = vmatpush3.bf16.msra.mxu1 %v5623_v4  ;;  %v3874_v20 = vmax.f32 %v3870_v14, 0.0  ;;  %v3322_v53 = vadd.f32 %v5427_v36, %v6864_v58 }
 0x77d   :  { %5626 = vmatprep.subr.bf16.mxu1 %v5625_v28  ;;  %v3323_v26 = vmax.f32 %v3319_v3, 0.0  ;;  %v3324_v54 = vmax.f32 %v3320_v7, 0.0  ;;  %v3325_v33 = vmax.f32 %v3321_v42, 0.0  ;;  %v5429_v3 = vld [vmem:[#allocation8 + $0x2] ss:$0 sm:$0xff] }
 0x77e   :  { %5596 = vmatpush3.bf16.msra.mxu0 %v5595_v17  ;;  %v3326_v59 = vmax.f32 %v3322_v53, 0.0 }
 0x77f   :  { %5598 = vmatprep.subr.bf16.mxu0 %v5597_v10 }
 0x780   :  { %5628 = vmatpush3.bf16.msra.mxu1 %v5627_v11 }
 0x781   :  { %5630 = vmatprep.subr.bf16.mxu1 %v5629_v24 }
 0x782   :  { %5600 = vmatpush3.bf16.msra.mxu0 %v5599_v48  ;;  %v3875_v48 = vmax.f32 %v3871_v63, 0.0 }
 0x783   :  { %5602 = vmatprep.subr.bf16.mxu0 %v5601_v60  ;;  %v3876_v60 = vmax.f32 %v3872_v18, 0.0 }
 0x784   :  { %v4222_v15 = vpop.f32.mrb[112].mxu0  ;;  %v4381_v52 = vpop.f32.mrb[112].mxu1  ;;  %5632 = vmatpush3.bf16.msra.mxu1 %v5631_v51  ;;  %v5637_v51 = vpack.c.bf16 %v5038_v40, %v5037_v44 }
 0x785   :  { %v4224_v21 = vpop.f32.mrb[113].mxu0  ;;  %v4383_v2 = vpop.f32.mrb[113].mxu1  ;;  %5634 = vmatprep.subr.bf16.mxu1 %v5633_v37  ;;  %v5021_v37 = vld [vmem:[#allocation10 + $0x160] sm:$0xff] }
 0x786   :  { %v4400_v22 = vmax.f32 %v4222_v15, %v4224_v21  ;;  %v4404_v16 = vmax.f32 %v4381_v52, %v4383_v2  ;;  %v4226_v1 = vpop.f32.mrb[114].mxu0  ;;  %v4385_v23 = vpop.f32.mrb[114].mxu1  ;;  %5604 = vmatpush3.bf16.msra.mxu0 %v5603_v6  ;;  %v5022_v6 = vld [vmem:[#allocation10 + $0x168] sm:$0xff]  ;;  %v5643_v15 = vpack.c.bf16 %v5024_v25, %v5023_v41  ;;  %v5225_v2 = vld [vmem:[#allocation13 + $0x18] sm:$0xff] }
 0x787   :  { %v4228_v49 = vpop.f32.mrb[115].mxu0  ;;  %v4387_v62 = vpop.f32.mrb[115].mxu1  ;;  %5606 = vmatprep.subr.bf16.mxu0 %v5605_v47  ;;  %v5639_v13 = vpack.c.bf16 %v5022_v6, %v5021_v37  ;;  %v5040_v47 = vld [vmem:[#allocation10 + $0x1f8] sm:$0xff]  ;;  %v5222_v52 = vld [vmem:[#allocation13] sm:$0xff] }
 0x788   :  { %v6924_v31 = vmax.f32 %v4400_v22, %v4404_v16  ;;  %v4401_v12 = vmax.f32 %v4226_v1, %v4228_v49  ;;  %v4405_v39 = vmax.f32 %v4385_v23, %v4387_v62  ;;  %5636 = vmatpush3.bf16.msra.mxu1 %v5635_v57  ;;  %v5641_v58 = vpack.c.bf16 %v5040_v47, %v5039_v55  ;;  %v5226_v16 = vld [vmem:[#allocation13 + $0x20] sm:$0xff]  ;;  %v5227_v1 = vld [vmem:[#allocation13 + $0x28] sm:$0xff]  ;;  %v5229_v49 = vld [vmem:[#allocation13 + $0x38] sm:$0xff] }
 0x789   :  { %5638 = vmatprep.subr.bf16.mxu1 %v5637_v51  ;;  %v5645_v21 = vpack.c.bf16 %v5223_v32, %v5222_v52  ;;  %v6942_v22 = vpack.c.bf16 %v5225_v2, %v5224_v43  ;;  %v6945_v23 = vpack.c.bf16 %v5227_v1, %v5226_v16 }
 0x78a   :  { %v6926_v45 = vmax.f32 %v4401_v12, %v4405_v39  ;;  %5608 = vmatpush3.bf16.msra.mxu0 %v5607_v50  ;;  %v5228_v50 = vld [vmem:[#allocation13 + $0x30] sm:$0xff] }
 0x78b   :  { %5610 = vmatprep.subr.bf16.mxu0 %v5609_v27  ;;  %v6949_v62 = vpack.c.bf16 %v5229_v49, %v5228_v50  ;;  %v5230_v27 = vld [vmem:[#allocation13 + $0x40] sm:$0xff]  ;;  %v5232_v50 = vld [vmem:[#allocation13 + $0x50] sm:$0xff]  ;;  %v5233_v49 = vld [vmem:[#allocation13 + $0x58] sm:$0xff] }
 0x78c   :  { %v4232_v9 = vpop.f32.mrb[116].mxu0  ;;  %v4391_v0 = vpop.f32.mrb[116].mxu1  ;;  %5640 = vmatpush3.bf16.msra.mxu1 %v5639_v13  ;;  %v6953_v29 = vpack.c.bf16 %v5231_v5, %v5230_v27  ;;  %v4420_v18 = vadd.f32 %v5429_v3, %v6926_v45  ;;  %v5665_v27 = vpack.c.bf16 %v5233_v49, %v5232_v50  ;;  %v5235_v5 = vld [vmem:[#allocation13 + $0x68] sm:$0xff] }
 0x78d   :  { %v4234_v4 = vpop.f32.mrb[117].mxu0  ;;  %v4393_v28 = vpop.f32.mrb[117].mxu1  ;;  %5642 = vmatprep.subr.bf16.mxu1 %v5641_v58 }
 0x78e   :  { %v4402_v19 = vmax.f32 %v4232_v9, %v4234_v4  ;;  %v4406_v35 = vmax.f32 %v4391_v0, %v4393_v28  ;;  %v4236_v17 = vpop.f32.mrb[118].mxu0  ;;  %v4395_v38 = vpop.f32.mrb[118].mxu1  ;;  %5612 = vmatpush3.bf16.msra.mxu0 %v5611_v46  ;;  %v4424_v51 = vmax.f32 %v4420_v18, 0.0 }
 0x78f   :  { %v4238_v10 = vpop.f32.mrb[119].mxu0  ;;  %v4397_v34 = vpop.f32.mrb[119].mxu1  ;;  %5646 = vmatprep.subr.bf16.mxu0 %v5645_v21 }
 0x790   :  { %v6932_v8 = vmax.f32 %v4402_v19, %v4406_v35  ;;  %v4403_v56 = vmax.f32 %v4236_v17, %v4238_v10  ;;  %v4407_v11 = vmax.f32 %v4395_v38, %v4397_v34  ;;  %5644 = vmatpush3.bf16.msra.mxu1 %v5643_v15  ;;  %v5430_v35 = vld [vmem:[#allocation8 + $0x3] ss:$0 sm:$0xff]  ;;  %v4419_v10 = vadd.f32 %v5429_v3, %v6924_v31 }
 0x791   :  { %5113 = vmatmul.mubr.f32.vlgmr.msra.gmra.mrb[128].mxu0 %v3323_v26  ;;  %5677 = vmatprep.subr.bf16.mxu1 %v5645_v21 }
 0x792   :  { %v6936_v24 = vmax.f32 %v4403_v56, %v4407_v11  ;;  %5117 = vmatprep.mubr.f32.mxu0 %v3874_v20  ;;  %5648 = vmatpush3.bf16.msra.mxu0 %v5645_v21  ;;  %v4421_v37 = vadd.f32 %v5429_v3, %v6932_v8 }
 0x793   :  { %5650 = vmatprep.subr.bf16.mxu0 %v6942_v22 }
 0x794   :  { %v4425_v47 = vmax.f32 %v4421_v37, 0.0  ;;  %v4422_v58 = vadd.f32 %v5429_v3, %v6936_v24 }
 0x795   :  { %5118 = vmatmul.mubr.f32.gmra.mrb[130].mxu0 %v3324_v54  ;;  %v4423_v54 = vmax.f32 %v4419_v10, 0.0 }
 0x796   :  { %5122 = vmatprep.mubr.f32.mxu0 %v3875_v48  ;;  %5652 = vmatpush3.bf16.msra.mxu0 %v6942_v22  ;;  %v4426_v8 = vmax.f32 %v4422_v58, 0.0 }
 0x797   :  { %5654 = vmatprep.subr.bf16.mxu0 %v6945_v23 }
 0x799   :  { %5123 = vmatmul.mubr.f32.gmra.mrb[132].mxu0 %v3325_v33 }
 0x79a   :  { %5127 = vmatprep.mubr.f32.mxu0 %v3876_v60  ;;  %5656 = vmatpush3.bf16.msra.mxu0 %v6945_v23 }
 0x79b   :  { %5658 = vmatprep.subr.bf16.mxu0 %v6949_v62 }
 0x79d   :  { %5128 = vmatmul.mubr.f32.gmra.mrb[134].mxu0 %v3326_v59 }
 0x79e   :  { %5660 = vmatpush3.bf16.msra.mxu0 %v6949_v62 }
 0x79f   :  { %5662 = vmatprep.subr.bf16.mxu0 %v6953_v29 }
 0x7a2   :  { %5664 = vmatpush3.bf16.msra.mxu0 %v6953_v29 }
 0x7a3   :  { %5666 = vmatprep.subr.bf16.mxu0 %v5665_v27 }
 0x7a6   :  { %5668 = vmatpush3.bf16.msra.mxu0 %v5665_v27 }
 0x844   :  { %v4772_v36 = vpop.f32.mrb[120].mxu0  ;;  %v4931_v12 = vpop.f32.mrb[120].mxu1 }
 0x845   :  { %v4774_v39 = vpop.f32.mrb[121].mxu0  ;;  %v4933_v46 = vpop.f32.mrb[121].mxu1 }
 0x846   :  { %v4950_v14 = vmax.f32 %v4772_v36, %v4774_v39  ;;  %v4954_v9 = vmax.f32 %v4931_v12, %v4933_v46  ;;  %v4776_v0 = vpop.f32.mrb[122].mxu0  ;;  %v4935_v4 = vpop.f32.mrb[122].mxu1  ;;  %v5236_v36 = vld [vmem:[#allocation13 + $0x70] sm:$0xff]  ;;  %v5237_v12 = vld [vmem:[#allocation13 + $0x78] sm:$0xff] }
 0x847   :  { %v4778_v28 = vpop.f32.mrb[123].mxu0  ;;  %v4937_v19 = vpop.f32.mrb[123].mxu1  ;;  %v5673_v39 = vpack.c.bf16 %v5237_v12, %v5236_v36  ;;  %v5431_v46 = vld [vmem:[#allocation11] ss:$0 sm:$0xff] }
 0x848   :  { %v4958_v17 = vmax.f32 %v4950_v14, %v4954_v9  ;;  %v4951_v38 = vmax.f32 %v4776_v0, %v4778_v28  ;;  %v4955_v26 = vmax.f32 %v4935_v4, %v4937_v19 }
 0x84a   :  { %v4959_v34 = vmax.f32 %v4951_v38, %v4955_v26  ;;  %v4969_v20 = vadd.f32 %v5430_v35, %v4958_v17 }
 0x84c   :  { %v4782_v7 = vpop.f32.mrb[124].mxu0  ;;  %v4941_v56 = vpop.f32.mrb[124].mxu1  ;;  %v4973_v11 = vmax.f32 %v4969_v20, 0.0  ;;  %v4970_v63 = vadd.f32 %v5430_v35, %v4959_v34 }
 0x84d   :  { %v4784_v42 = vpop.f32.mrb[125].mxu0  ;;  %v4943_v48 = vpop.f32.mrb[125].mxu1 }
 0x84e   :  { %v4952_v33 = vmax.f32 %v4782_v7, %v4784_v42  ;;  %v4956_v53 = vmax.f32 %v4941_v56, %v4943_v48  ;;  %v4786_v60 = vpop.f32.mrb[126].mxu0  ;;  %v4945_v59 = vpop.f32.mrb[126].mxu1  ;;  %5197 = vmatprep.mubr.f32.mxu1 %v4973_v11  ;;  %v4974_v61 = vmax.f32 %v4970_v63, 0.0 }
 0x84f   :  { %v4788_v30 = vpop.f32.mrb[127].mxu0  ;;  %v4947_v57 = vpop.f32.mrb[127].mxu1  ;;  %5198 = vmatmul.mubr.f32.vlgmr.msra.gmra.mrb[128].mxu1 %v4423_v54 }
 0x850   :  { %v4960_v31 = vmax.f32 %v4952_v33, %v4956_v53  ;;  %v4953_v44 = vmax.f32 %v4786_v60, %v4788_v30  ;;  %v4957_v40 = vmax.f32 %v4945_v59, %v4947_v57  ;;  %5202 = vmatprep.mubr.f32.mxu1 %v4974_v61  ;;  %5685 = vmatpush3.bf16.msra.mxu1 %v5645_v21  ;;  %v5432_v60 = vld [vmem:[#allocation14] ss:$0 sm:$0xff] }
 0x851   :  { %5678 = vmatprep.subr.bf16.mxu1 %v6942_v22 }
 0x852   :  { %v4961_v45 = vmax.f32 %v4953_v44, %v4957_v40  ;;  %v4971_v6 = vadd.f32 %v5430_v35, %v4960_v31 }
 0x853   :  { %5203 = vmatmul.mubr.f32.gmra.mrb[130].mxu1 %v4424_v51 }
 0x854   :  { %v4975_v13 = vmax.f32 %v4971_v6, 0.0  ;;  %v4972_v55 = vadd.f32 %v5430_v35, %v4961_v45  ;;  %5686 = vmatpush3.bf16.msra.mxu1 %v6942_v22 }
 0x855   :  { %5679 = vmatprep.subr.bf16.mxu1 %v6945_v23 }
 0x856   :  { %5207 = vmatprep.mubr.f32.mxu1 %v4975_v13  ;;  %v4976_v41 = vmax.f32 %v4972_v55, 0.0 }
 0x857   :  { %5208 = vmatmul.mubr.f32.gmra.mrb[132].mxu1 %v4425_v47 }
 0x858   :  { %5212 = vmatprep.mubr.f32.mxu1 %v4976_v41  ;;  %5687 = vmatpush3.bf16.msra.mxu1 %v6945_v23 }
 0x859   :  { %5680 = vmatprep.subr.bf16.mxu1 %v6949_v62 }
 0x85b   :  { %5213 = vmatmul.mubr.f32.gmra.mrb[134].mxu1 %v4426_v8 }
 0x85c   :  { %5688 = vmatpush3.bf16.msra.mxu1 %v6949_v62  ;;  %v5234_v62 = vld [vmem:[#allocation13 + $0x60] sm:$0xff] }
 0x85d   :  { %5681 = vmatprep.subr.bf16.mxu1 %v6953_v29 }
 0x860   :  { %5689 = vmatpush3.bf16.msra.mxu1 %v6953_v29  ;;  %v5669_v29 = vpack.c.bf16 %v5235_v5, %v5234_v62 }
 0x861   :  { %5682 = vmatprep.subr.bf16.mxu1 %v5665_v27 }
 0x862   :  { %5670 = vmatprep.subr.bf16.mxu0 %v5669_v29 }
 0x863   :  { %5672 = vmatpush3.bf16.msra.mxu0 %v5669_v29 }
 0x864   :  { %v5467_v25 = vpop.f32.mrb[128].mxu0  ;;  %5690 = vmatpush3.bf16.msra.mxu1 %v5665_v27  ;;  %5674 = vmatprep.subr.bf16.mxu0 %v5673_v39 }
 0x865   :  { %v5468_v24 = vpop.f32.mrb[129].mxu0  ;;  %5683 = vmatprep.subr.bf16.mxu1 %v5669_v29 }
 0x866   :  { %v5469_v15 = vadd.f32 %v5468_v24, %v5467_v25 }
 0x867   :  { %5676 = vmatpush3.bf16.msra.mxu0 %v5673_v39 }
 0x868   :  { %v5470_v52 = vpop.f32.mrb[130].mxu0  ;;  %5691 = vmatpush3.bf16.msra.mxu1 %v5669_v29  ;;  %v5115_v9 = vadd.f32 %v5469_v15, %v5431_v46 }
 0x869   :  { %v5471_v32 = vpop.f32.mrb[131].mxu0  ;;  %5684 = vmatprep.subr.bf16.mxu1 %v5673_v39 }
 0x86a   :  { %v5472_v43 = vadd.f32 %v5471_v32, %v5470_v52 }
 0x86c   :  { %v5473_v21 = vpop.f32.mrb[132].mxu0  ;;  %5692 = vmatpush3.bf16.msra.mxu1 %v5673_v39  ;;  %v5120_v35 = vadd.f32 %v5472_v43, %v5431_v46 }
 0x86d   :  { %v5474_v2 = vpop.f32.mrb[133].mxu0 }
 0x86e   :  { %v5475_v22 = vadd.f32 %v5474_v2, %v5473_v21 }
 0x870   :  { %v5476_v16 = vpop.f32.mrb[134].mxu0  ;;  %v5125_v20 = vadd.f32 %v5475_v22, %v5431_v46 }
 0x871   :  { %v5477_v1 = vpop.f32.mrb[135].mxu0 }
 0x872   :  { %v5478_v23 = vadd.f32 %v5477_v1, %v5476_v16 }
 0x874   :  { %v5130_v42 = vadd.f32 %v5478_v23, %v5431_v46 }
 0x922   :  { %v5511_v3 = vpop.f32.mrb[128].mxu1 }
 0x923   :  { %v5512_v14 = vpop.f32.mrb[129].mxu1 }
 0x924   :  { %v5513_v0 = vadd.f32 %v5512_v14, %v5511_v3 }
 0x926   :  { %v5200_v4 = vadd.f32 %v5513_v0, %v5115_v9  ;;  %v5514_v28 = vpop.f32.mrb[130].mxu1 }
 0x927   :  { %v5515_v19 = vpop.f32.mrb[131].mxu1 }
 0x928   :  { %v5218_v17 = vmax.f32 %v5200_v4, 0.0  ;;  %v5516_v38 = vadd.f32 %v5515_v19, %v5514_v28 }
 0x92a   :  { %v5205_v26 = vadd.f32 %v5516_v38, %v5120_v35  ;;  %v5517_v10 = vpop.f32.mrb[132].mxu1  ;;  %5575 = vmatprep.mubr.f32.mxu0 %v5218_v17 }
 0x92b   :  { %v5518_v34 = vpop.f32.mrb[133].mxu1 }
 0x92c   :  { %v5219_v7 = vmax.f32 %v5205_v26, 0.0  ;;  %v5519_v56 = vadd.f32 %v5518_v34, %v5517_v10 }
 0x92e   :  { %v5210_v11 = vadd.f32 %v5519_v56, %v5125_v20  ;;  %v5520_v63 = vpop.f32.mrb[134].mxu1  ;;  %5576 = vmatmul.mubr.f32.vlgmr.msra.gmra.mrb[136].mxu0 %v5219_v7 }
 0x92f   :  { %v5521_v54 = vpop.f32.mrb[135].mxu1 }
 0x930   :  { %v5220_v48 = vmax.f32 %v5210_v11, 0.0  ;;  %v5522_v18 = vadd.f32 %v5521_v54, %v5520_v63 }
 0x932   :  { %v5215_v33 = vadd.f32 %v5522_v18, %v5130_v42  ;;  %5578 = vmatprep.mubr.f32.mxu1 %v5220_v48 }
 0x934   :  { %v5221_v53 = vmax.f32 %v5215_v33, 0.0 }
 0x936   :  { %5579 = vmatmul.mubr.f32.vlgmr.msra.gmra.mrb[136].mxu1 %v5221_v53 }
 0xa01   :  { %v5577_v59 = vpop.f32.mrb[136].mxu0 }
 0xa02   :  { %v5317_v61 = vadd.f32 %v5577_v59, %v5432_v60  ;;  %v5311_v30 = vpop.f32.mrb[137].mxu0 }
 0xa03   :  { %v5312_v57 = vadd.f32 %v5432_v60, %v5311_v30 }
 0xa04   :  { %v5331_v31 = vmul.f32 0.5, %v5317_v61 }
 0xa05   :  { %v5330_v44 = vmul.f32 0.5, %v5312_v57 }
 0xa06   :  { %5879 = vtanh.f32 %v5331_v31 }
 0xa07   :  { %5881 = vtanh.f32 %v5330_v44 }
 0xa09   :  { %v5580_v40 = vpop.f32.mrb[136].mxu1 }
 0xa0a   :  { %v5327_v51 = vadd.f32 %v5580_v40, %v5432_v60  ;;  %v5321_v37 = vpop.f32.mrb[137].mxu1 }
 0xa0b   :  { %v5322_v45 = vadd.f32 %v5432_v60, %v5321_v37 }
 0xa0c   :  { %v5333_v6 = vmul.f32 0.5, %v5327_v51 }
 0xa0d   :  { %v5332_v13 = vmul.f32 0.5, %v5322_v45 }
 0xa0e   :  { %5883 = vtanh.f32 %v5333_v6 }
 0xa0f   :  { %5885 = vtanh.f32 %v5332_v13 }
 0xa10   :  { %v5880_v55 = vpop.eup %5879 }
 0xa11   :  { %v5882_v47 = vpop.eup %5881  ;;  %v5339_v58 = vadd.f32 1.0, %v5880_v55 }
 0xa12   :  { %v5338_v41 = vadd.f32 1.0, %v5882_v47 }
 0xa13   :  { %v5343_v8 = vmul.f32 0.5, %v5339_v58 }
 0xa14   :  { %v5342_v25 = vmul.f32 0.5, %v5338_v41 }
 0xa15   :  { %5347 = vst [vmem:[%s6991_s9 + $0x8] sm:$0xff] %v5343_v8 }
 0xa16   :  { %5346 = vst [vmem:[%s6991_s9] sm:$0xff] %v5342_v25 }
 0xa18   :  { %v5884_v24 = vpop.eup %5883 }
 0xa19   :  { %v5886_v15 = vpop.eup %5885  ;;  %v5341_v52 = vadd.f32 1.0, %v5884_v24 }
 0xa1a   :  { %v5340_v32 = vadd.f32 1.0, %v5886_v15 }
 0xa1b   :  { %v5345_v43 = vmul.f32 0.5, %v5341_v52 }
 0xa1c   :  { %v5344_v21 = vmul.f32 0.5, %v5340_v32 }
 0xa1d   :  { %5349 = vst [vmem:[%s6991_s9 + $0x18] sm:$0xff] %v5345_v43 }
 0xa1e   :  { %5348 = vst [vmem:[%s6991_s9 + $0x10] sm:$0xff] %v5344_v21 }
 0xa1f   :  { %5368 = vsyncpa [#allocation7], 1 }
 0xa20   :  { %5369 = vsyncpa [#allocation9], 1 }
 0xa21   :  { %5370 = vsyncpa [#allocation12], 1 }
 0xa22   :  { %5371 = vsyncpa [#allocation15], 1 }
 0xa23   :  { %5372 = vsyncmov [#allocation5] }
 0xa26   :  { %s5373_s30 = vpop.sfrf %5372 }
 0xa27   :  { %p5433_p6 = scmp.ne.s32.totalorder %s5373_s30, 0 }
 0xa29   :  { %5377 = shalt.err (%p5433_p6)  }
 0xa2a   :  { %5379 = vsyncmov [#allocation5 + $0x1] }
 0xa2d   :  { %s5380_s11 = vpop.sfrf %5379 }
 0xa2e   :  { %p5434_p7 = scmp.ne.s32.totalorder %s5380_s11, 0 }
 0xa30   :  { %5384 = shalt.err (%p5434_p7)  }

</bundles_post_ra>
